<compile_context>
chip_gen: v5e
topology: v5e:2x2
jax: 0.10.0
libtpu: 0.0.40
codegen_flags: <defaults>
</compile_context>

<pallas_src>
import math

import jax
import jax.numpy as jnp
from jax.experimental import pallas as pl
from jax.experimental.pallas import tpu as pltpu

# ----------------------------- configuration --------------------------------
INPUT_DIM = 32
OUTPUT_DIM = 32
SUBSPACE = 4
N_HEADS = 4
D_FF = 1                                   # hidden = D_FF * OUTPUT_DIM
CHUNK = INPUT_DIM // SUBSPACE              # per-subspace input width
SEQ = SUBSPACE + 1                         # semantic sequence length
D_HEAD = OUTPUT_DIM // N_HEADS
HIDDEN = D_FF * OUTPUT_DIM

QB = SEQ * OUTPUT_DIM                      # 160: rows per Q/K/V band in preT

# rows per grid step == lane width of every in-kernel slab.  Sweepable
# (128..512); 256 keeps the per-query attention working set near the 64-vreg
# file while amortizing the ~0.35 us/step pipeline overhead, and gives
# grid >= 2 at the demo shape so v7x megacore stays fed.
TILE_M = 256

PARAM_ORDER = ("wsub", "bsub", "wg", "bg",
               "wq", "bq", "wk", "bk", "wv", "bv", "wo", "bo",
               "w1", "b1", "w2", "b2", "wf", "bf")


# ------------------------------- kernel -------------------------------------
def _rep_seq(a):
    """Repeat a (r, TM) slab SEQ times along the sublane axis."""
    return jnp.concatenate([a] * SEQ, axis=0)


def lgsem_kernel(x_ref, f_ref, wpre_ref, bpre_ref, hsum_ref, bcast_ref,
                 wo_ref, bo_ref, w1_ref, b1_ref, w2_ref, b2_ref,
                 wfy_ref, wff_ref, bf_ref, out_ref):
    D = OUTPUT_DIM
    xT = x_ref[...]                         # (32, TM)  enc, feature-major
    fT = f_ref[...]                         # (32, TM)  forget, feature-major

    # --- one fused feature-major matmul: subspace linears + global linear +
    #     Q/K/V of all 5 semantic tokens + residual token-mean ---------------
    preT = (jnp.dot(wpre_ref[...], xT, preferred_element_type=jnp.float32)
            + bpre_ref[...])                # (512, TM)

    q_band = preT[0 * QB:1 * QB]            # (160, TM)  Q of tokens 0..4
    k_band = preT[1 * QB:2 * QB]            # (160, TM)  K
    v_band = preT[2 * QB:3 * QB]            # (160, TM)  V
    semT = preT[3 * QB:3 * QB + D]          # (32, TM)   token-mean residual

    hsum = hsum_ref[...]                    # (40, 160) per-(token,head) segment sum
    bcast = bcast_ref[...]                  # (160, 40) head -> head-dim broadcast-back

    # --- multi-head attention over the 5 tokens ------------------------------
    ctx_sum = jnp.zeros((D, xT.shape[-1]), jnp.float32)
    for q in range(SEQ):                    # unrolled (SEQ = 5)
        qq = q_band[q * D:(q + 1) * D]                                 # (32, TM)
        prod = _rep_seq(qq) * k_band                                   # (160, TM)
        # rows k*8 + h (h < 4) hold score(q, k, head h); h >= 4 rows are 0.
        s = jnp.dot(hsum, prod, preferred_element_type=jnp.float32)    # (40, TM)
        m = s[0:8]
        for k in range(1, SEQ):
            m = jnp.maximum(m, s[k * 8:(k + 1) * 8])                   # per-head max
        e = jnp.exp(s - _rep_seq(m))                                   # (40, TM)
        den = e[0:8]
        for k in range(1, SEQ):
            den = den + e[k * 8:(k + 1) * 8]                           # (8, TM)
        # approx=True is a further (near-free) EUP option; exact keeps 2e-4.
        p = e * _rep_seq(pl.reciprocal(den, approx=False))             # softmax probs
        pb = jnp.dot(bcast, p, preferred_element_type=jnp.float32)     # (160, TM)
        w = pb * v_band                                                # (160, TM)
        ctx_q = w[0:D]
        for k in range(1, SEQ):
            ctx_q = ctx_q + w[k * D:(k + 1) * D]                       # (32, TM)
        ctx_sum = ctx_sum + ctx_q

    # outputs.mean(dim=-2): 1/SEQ and W_O folded host-side (wo_ref = (wo/SEQ)^T),
    # residual = token-mean of the semantic sequence.
    xm = (jnp.dot(wo_ref[...], ctx_sum, preferred_element_type=jnp.float32)
          + bo_ref[...] + semT)                                        # (32, TM)

    # --- PoswiseFeedForwardNet2 (no LayerNorm, residual add) -----------------
    h = jnp.maximum(
        jnp.dot(w1_ref[...], xm, preferred_element_type=jnp.float32) + b1_ref[...],
        0.0)                                                           # (HIDDEN, TM)
    y = (jnp.dot(w2_ref[...], h, preferred_element_type=jnp.float32)
         + b2_ref[...] + xm)                                           # (32, TM)

    # --- forget gate: sigmoid(wf_y @ y + wf_f @ forget + bf) -----------------
    gate = jax.nn.sigmoid(
        jnp.dot(wfy_ref[...], y, preferred_element_type=jnp.float32)
        + jnp.dot(wff_ref[...], fT, preferred_element_type=jnp.float32)
        + bf_ref[...])

    # packed, lane-dense output: [y ; y*gate] -> (64, TM)
    out_ref[...] = jnp.concatenate([y, y * gate], axis=0)


# --------------------------- host-side weight prep ---------------------------
def _fold_params(p):
    """One-time host-side folding + transposition of all weights (exact in f32)."""
    D, Din, S, C = OUTPUT_DIM, INPUT_DIM, SUBSPACE, CHUNK
    f32 = jnp.float32
    wsub, bsub = p["wsub"].astype(f32), p["bsub"].astype(f32)
    wg, bg = p["wg"].astype(f32), p["bg"].astype(f32)[0]
    wq, bq = p["wq"].astype(f32), p["bq"].astype(f32)[0]
    wk, bk = p["wk"].astype(f32), p["bk"].astype(f32)[0]
    wv, bv = p["wv"].astype(f32), p["bv"].astype(f32)[0]
    wf = p["wf"].astype(f32)

    # block-diagonal subspace map (enc -> 4 token features) and its bias
    W_bd = jnp.zeros((Din, S * D), f32)
    b_bd = jnp.zeros((S * D,), f32)
    for s in range(S):
        W_bd = W_bd.at[s * C:(s + 1) * C, s * D:(s + 1) * D].set(wsub[s])
        b_bd = b_bd.at[s * D:(s + 1) * D].set(bsub[s])
    # global semantic token: g = enc @ Wg_eff + bg_eff
    Wg_eff = W_bd @ wg[:S * D] + wg[S * D:]
    bg_eff = b_bd @ wg[:S * D] + bg

    def band(wp, bp):
        # enc -> [proj(token0) | ... | proj(token3) | proj(global)]  (Din, SEQ*D)
        W = jnp.zeros((Din, SEQ * D), f32)
        b = jnp.zeros((SEQ * D,), f32)
        for s in range(S):
            W = W.at[s * C:(s + 1) * C, s * D:(s + 1) * D].set(wsub[s] @ wp)
            b = b.at[s * D:(s + 1) * D].set(bsub[s] @ wp + bp)
        W = W.at[:, S * D:].set(Wg_eff @ wp)
        b = b.at[S * D:].set(bg_eff @ wp + bp)
        return W, b

    Wq_b, bq_b = band(wq, bq)
    Wk_b, bk_b = band(wk, bk)
    Wv_b, bv_b = band(wv, bv)

    # residual = mean over the 5 semantic tokens
    W_vsum = jnp.zeros((Din, D), f32)
    b_vsum = jnp.zeros((D,), f32)
    for s in range(S):
        W_vsum = W_vsum.at[s * C:(s + 1) * C, :].set(wsub[s])
        b_vsum = b_vsum + bsub[s]
    Wsem = (W_vsum + Wg_eff) / SEQ
    bsem = (b_vsum + bg_eff) / SEQ

    # fused pre-matmul, band-ordered columns: [Q(160) | K(160) | V(160) | sem(32)]
    Wpre = jnp.concatenate([Wq_b, Wk_b, Wv_b, Wsem], axis=1)     # (32, 512)
    bpre = jnp.concatenate([bq_b, bk_b, bv_b, bsem])             # (512,)
    wpre_T = Wpre.T                                              # (512, 32)
    bpre_c = bpre[:, None]                                       # (512, 1)

    # per-(token, head) segment-sum mask (scale folded) and broadcast-back mask,
    # with head rows padded 4 -> 8 for sublane alignment.
    hsum1 = jnp.concatenate(
        [jnp.kron(jnp.eye(N_HEADS, dtype=f32), jnp.ones((1, D_HEAD), f32)),
         jnp.zeros((8 - N_HEADS, D), f32)], axis=0) / math.sqrt(D_HEAD)   # (8, 32)
    hsum = jnp.kron(jnp.eye(SEQ, dtype=f32), hsum1)              # (40, 160)
    bc1 = jnp.concatenate(
        [jnp.kron(jnp.eye(N_HEADS, dtype=f32), jnp.ones((D_HEAD, 1), f32)),
         jnp.zeros((D, 8 - N_HEADS), f32)], axis=1)              # (32, 8)
    bcast = jnp.kron(jnp.eye(SEQ, dtype=f32), bc1)               # (160, 40)

    wo_T = (p["wo"].astype(f32) / SEQ).T                         # fold token-mean 1/SEQ
    bo_c = p["bo"].astype(f32)[0][:, None]
    w1_T = p["w1"].astype(f32).T
    b1_c = p["b1"].astype(f32)[0][:, None]
    w2_T = p["w2"].astype(f32).T
    b2_c = p["b2"].astype(f32)[0][:, None]
    wfy_T = wf[:D].T                                             # gate: y half
    wff_T = wf[D:].T                                             # gate: forget half
    bf_c = p["bf"].astype(f32)[0][:, None]

    return (wpre_T, bpre_c, hsum, bcast, wo_T, bo_c, w1_T, b1_c,
            w2_T, b2_c, wfy_T, wff_T, bf_c)


# ------------------------------- wrapper -------------------------------------
def _round_up(x, m):
    return ((x + m - 1) // m) * m


def _const_spec(shape):
    zeros = (0,) * len(shape)
    return pl.BlockSpec(shape, lambda i, _z=zeros: _z)


def lgsem_attention(enc_inputs, forget, params, *, tile_m=TILE_M):
    B, N, din = enc_inputs.shape
    assert din == INPUT_DIM
    M = B * N

    # feature-major slabs: rows = features (sublanes), cols = flattened rows
    # (lanes).  One wrapper transpose per tensor is layout plumbing that buys
    # 128-lane-dense VPU/EUP work and unmasked stores inside the kernel.
    xT = enc_inputs.reshape(M, INPUT_DIM).T.astype(jnp.float32)   # (32, M)
    fT = forget.reshape(M, INPUT_DIM).T.astype(jnp.float32)       # (32, M)

    # lane tile: multiple of 128; keep grid >= 2 when there is enough work so
    # both v7x TensorCores are fed.
    tile = min(tile_m, _round_up(M, 128))
    grid = pl.cdiv(M, tile)
    if grid == 1 and tile >= 256:
        tile //= 2
        grid = 2
    Mp = grid * tile
    if Mp != M:
        xT = jnp.pad(xT, ((0, 0), (0, Mp - M)))
        fT = jnp.pad(fT, ((0, 0), (0, Mp - M)))

    folded = _fold_params(params)
    data_spec = pl.BlockSpec((INPUT_DIM, tile), lambda i: (0, i))
    out_spec = pl.BlockSpec((2 * OUTPUT_DIM, tile), lambda i: (0, i))
    param_specs = [_const_spec(w.shape) for w in folded]   # constant block index
                                                           # -> fetched once, VMEM-resident

    packed = pl.pallas_call(
        lgsem_kernel,
        out_shape=jax.ShapeDtypeStruct((2 * OUTPUT_DIM, Mp), jnp.float32),
        grid_spec=pltpu.PrefetchScalarGridSpec(
            num_scalar_prefetch=0,
            grid=(grid,),
            in_specs=[data_spec, data_spec] + param_specs,
            out_specs=out_spec,
        ),
        compiler_params=pltpu.CompilerParams(
            dimension_semantics=("parallel",)),
    )(xT, fT, *folded)

    out = packed[:OUTPUT_DIM, :M].T.reshape(B, N, OUTPUT_DIM)
    fout = packed[OUTPUT_DIM:, :M].T.reshape(B, N, OUTPUT_DIM)
    return out, fout


# ------------------------- deterministic parameters --------------------------
def init_params(key):
    keys = jax.random.split(key, len(PARAM_ORDER))
    shapes = {
        "wsub": (SUBSPACE, CHUNK, OUTPUT_DIM),
        "bsub": (SUBSPACE, OUTPUT_DIM),
        "wg": (SUBSPACE * OUTPUT_DIM + INPUT_DIM, OUTPUT_DIM),
        "bg": (1, OUTPUT_DIM),
        "wq": (OUTPUT_DIM, OUTPUT_DIM), "bq": (1, OUTPUT_DIM),
        "wk": (OUTPUT_DIM, OUTPUT_DIM), "bk": (1, OUTPUT_DIM),
        "wv": (OUTPUT_DIM, OUTPUT_DIM), "bv": (1, OUTPUT_DIM),
        "wo": (OUTPUT_DIM, OUTPUT_DIM), "bo": (1, OUTPUT_DIM),
        "w1": (OUTPUT_DIM, HIDDEN), "b1": (1, HIDDEN),
        "w2": (HIDDEN, OUTPUT_DIM), "b2": (1, OUTPUT_DIM),
        "wf": (OUTPUT_DIM + INPUT_DIM, OUTPUT_DIM), "bf": (1, OUTPUT_DIM),
    }
    return {name: (0.05 * jax.random.normal(k, shapes[name])).astype(jnp.float32)
            for name, k in zip(PARAM_ORDER, keys)}


# ------------------------- pure-JAX reference (check) ------------------------
def lgsem_reference(enc, fg, p):
    B, N, _ = enc.shape
    chunks = jnp.split(enc, SUBSPACE, axis=-1)
    combined = jnp.stack(
        [chunks[s] @ p["wsub"][s] + p["bsub"][s] for s in range(SUBSPACE)],
        axis=-2)                                            # (B,N,S,D)
    comb_flat = combined.reshape(B, N, SUBSPACE * OUTPUT_DIM)
    g_out = jnp.concatenate([comb_flat, enc], axis=-1) @ p["wg"] + p["bg"][0]
    sem = jnp.concatenate([combined, g_out[:, :, None, :]], axis=2)  # (B,N,SEQ,D)

    q = sem @ p["wq"] + p["bq"][0]
    k = sem @ p["wk"] + p["bk"][0]
    v = sem @ p["wv"] + p["bv"][0]
    split = lambda t: t.reshape(B, N, SEQ, N_HEADS, D_HEAD).transpose(0, 1, 3, 2, 4)
    qh, kh, vh = split(q), split(k), split(v)
    scores = jnp.einsum("bnhqd,bnhkd->bnhqk", qh, kh) / math.sqrt(D_HEAD)
    attn = jax.nn.softmax(scores, axis=-1)
    ctx = jnp.einsum("bnhqk,bnhkd->bnhqd", attn, vh)
    ctx = ctx.transpose(0, 1, 3, 2, 4).reshape(B, N, SEQ, OUTPUT_DIM)
    att_out = ctx @ p["wo"] + p["bo"][0] + sem              # residual='V'
    x = att_out.mean(axis=-2)

    h = jax.nn.relu(x @ p["w1"] + p["b1"][0])
    y = h @ p["w2"] + p["b2"][0] + x
    gate = jax.nn.sigmoid(
        jnp.concatenate([y, fg], axis=-1) @ p["wf"] + p["bf"][0])
    return y, y * gate


# ---------------------------------- main -------------------------------------
if __name__ == "__main__":
    key = jax.random.PRNGKey(0)
    k_enc, k_fg, k_par = jax.random.split(key, 3)
    params = init_params(k_par)

    # main shape: batch=4, neg_sampling=256 -> M=1024 rows, grid of 4 tiles of 256
    B, N = 4, 256
    enc = jax.random.normal(k_enc, (B, N, INPUT_DIM), dtype=jnp.float32)
    fg = jax.random.normal(k_fg, (B, N, INPUT_DIM), dtype=jnp.float32)

    out, fout = lgsem_attention(enc, fg, params)
    jax.block_until_ready((out, fout))
    ref_out, ref_fout = lgsem_reference(enc, fg, params)
    assert jnp.allclose(out, ref_out, atol=2e-4, rtol=2e-4)
    assert jnp.allclose(fout, ref_fout, atol=2e-4, rtol=2e-4)

    # tiny shape (batch=2, neg_sampling=8) exercises the lane-padding path
    enc_s, fg_s = enc[:2, :8], fg[:2, :8]
    out_s, fout_s = lgsem_attention(enc_s, fg_s, params)
    jax.block_until_ready((out_s, fout_s))
    ref_out_s, ref_fout_s = lgsem_reference(enc_s, fg_s, params)
    assert jnp.allclose(out_s, ref_out_s, atol=2e-4, rtol=2e-4)
    assert jnp.allclose(fout_s, ref_fout_s, atol=2e-4, rtol=2e-4)

    print("KERNEL_OK")
</pallas_src>

<mosaic_0001>
module attributes {stable_mosaic.version = 11 : i64} {
  func.func @lgsem_kernel(%arg0: i32, %arg1: memref<32x256xf32, #tpu.memory_space<vmem>>, %arg2: memref<32x256xf32, #tpu.memory_space<vmem>>, %arg3: memref<512x32xf32, #tpu.memory_space<vmem>>, %arg4: memref<512x1xf32, #tpu.memory_space<vmem>>, %arg5: memref<40x160xf32, #tpu.memory_space<vmem>>, %arg6: memref<160x40xf32, #tpu.memory_space<vmem>>, %arg7: memref<32x32xf32, #tpu.memory_space<vmem>>, %arg8: memref<32x1xf32, #tpu.memory_space<vmem>>, %arg9: memref<32x32xf32, #tpu.memory_space<vmem>>, %arg10: memref<32x1xf32, #tpu.memory_space<vmem>>, %arg11: memref<32x32xf32, #tpu.memory_space<vmem>>, %arg12: memref<32x1xf32, #tpu.memory_space<vmem>>, %arg13: memref<32x32xf32, #tpu.memory_space<vmem>>, %arg14: memref<32x32xf32, #tpu.memory_space<vmem>>, %arg15: memref<32x1xf32, #tpu.memory_space<vmem>>, %arg16: memref<64x256xf32, #tpu.memory_space<vmem>>) attributes {dimension_semantics = [#tpu.dimension_semantics<parallel>], iteration_bounds = array<i64: 4>, scalar_prefetch = 0 : i64, scratch_operands = 0 : i64, tpu.core_type = #tpu.core_type<tc>, window_params = [{transform_indices = @transform_0, window_bounds = array<i64: 32, 256>}, {transform_indices = @transform_1, window_bounds = array<i64: 32, 256>}, {pipeline_mode = #tpu.pipeline_mode<synchronous>, transform_indices = @transform_2, window_bounds = array<i64: 512, 32>}, {pipeline_mode = #tpu.pipeline_mode<synchronous>, transform_indices = @transform_3, window_bounds = array<i64: 512, 1>}, {pipeline_mode = #tpu.pipeline_mode<synchronous>, transform_indices = @transform_4, window_bounds = array<i64: 40, 160>}, {pipeline_mode = #tpu.pipeline_mode<synchronous>, transform_indices = @transform_5, window_bounds = array<i64: 160, 40>}, {pipeline_mode = #tpu.pipeline_mode<synchronous>, transform_indices = @transform_6, window_bounds = array<i64: 32, 32>}, {pipeline_mode = #tpu.pipeline_mode<synchronous>, transform_indices = @transform_7, window_bounds = array<i64: 32, 1>}, {pipeline_mode = #tpu.pipeline_mode<synchronous>, transform_indices = @transform_8, window_bounds = array<i64: 32, 32>}, {pipeline_mode = #tpu.pipeline_mode<synchronous>, transform_indices = @transform_9, window_bounds = array<i64: 32, 1>}, {pipeline_mode = #tpu.pipeline_mode<synchronous>, transform_indices = @transform_10, window_bounds = array<i64: 32, 32>}, {pipeline_mode = #tpu.pipeline_mode<synchronous>, transform_indices = @transform_11, window_bounds = array<i64: 32, 1>}, {pipeline_mode = #tpu.pipeline_mode<synchronous>, transform_indices = @transform_12, window_bounds = array<i64: 32, 32>}, {pipeline_mode = #tpu.pipeline_mode<synchronous>, transform_indices = @transform_13, window_bounds = array<i64: 32, 32>}, {pipeline_mode = #tpu.pipeline_mode<synchronous>, transform_indices = @transform_14, window_bounds = array<i64: 32, 1>}, {transform_indices = @transform_15, window_bounds = array<i64: 64, 256>}]} {
    %c0 = arith.constant 0 : index
    %c0_0 = arith.constant 0 : index
    %0 = vector.load %arg1[%c0, %c0_0] : memref<32x256xf32, #tpu.memory_space<vmem>>, vector<32x256xf32>
    %c0_1 = arith.constant 0 : index
    %c0_2 = arith.constant 0 : index
    %1 = vector.load %arg2[%c0_1, %c0_2] : memref<32x256xf32, #tpu.memory_space<vmem>>, vector<32x256xf32>
    %c0_3 = arith.constant 0 : index
    %c0_4 = arith.constant 0 : index
    %2 = vector.load %arg3[%c0_3, %c0_4] : memref<512x32xf32, #tpu.memory_space<vmem>>, vector<512x32xf32>
    %cst = arith.constant dense<0.000000e+00> : vector<512x256xf32>
    %3 = tpu.matmul %2, %0, %cst {dimension_numbers = #tpu.dot_dimension_numbers<[1], [0], [0], [1], [0, 0, 1, 1], [], []>} : vector<512x32xf32>, vector<32x256xf32>, vector<512x256xf32> -> vector<512x256xf32>
    %c0_5 = arith.constant 0 : index
    %c0_6 = arith.constant 0 : index
    %4 = vector.load %arg4[%c0_5, %c0_6] : memref<512x1xf32, #tpu.memory_space<vmem>>, vector<512x1xf32>
    %5 = vector.broadcast %4 : vector<512x1xf32> to vector<512x256xf32>
    %6 = arith.addf %3, %5 : vector<512x256xf32>
    %7 = vector.extract_strided_slice %6 {offsets = [0, 0], sizes = [160, 256], strides = [1, 1]} : vector<512x256xf32> to vector<160x256xf32>
    %8 = vector.extract_strided_slice %6 {offsets = [160, 0], sizes = [160, 256], strides = [1, 1]} : vector<512x256xf32> to vector<160x256xf32>
    %9 = vector.extract_strided_slice %6 {offsets = [320, 0], sizes = [160, 256], strides = [1, 1]} : vector<512x256xf32> to vector<160x256xf32>
    %10 = vector.extract_strided_slice %6 {offsets = [480, 0], sizes = [32, 256], strides = [1, 1]} : vector<512x256xf32> to vector<32x256xf32>
    %c0_7 = arith.constant 0 : index
    %c0_8 = arith.constant 0 : index
    %11 = vector.load %arg5[%c0_7, %c0_8] : memref<40x160xf32, #tpu.memory_space<vmem>>, vector<40x160xf32>
    %c0_9 = arith.constant 0 : index
    %c0_10 = arith.constant 0 : index
    %12 = vector.load %arg6[%c0_9, %c0_10] : memref<160x40xf32, #tpu.memory_space<vmem>>, vector<160x40xf32>
    %cst_11 = arith.constant 0.000000e+00 : f32
    %13 = vector.broadcast %cst_11 : f32 to vector<32x256xf32>
    %14 = vector.extract_strided_slice %7 {offsets = [0, 0], sizes = [32, 256], strides = [1, 1]} : vector<160x256xf32> to vector<32x256xf32>
    %15 = tpu.concatenate %14, %14, %14, %14, %14 in 0 : vector<32x256xf32>, vector<32x256xf32>, vector<32x256xf32>, vector<32x256xf32>, vector<32x256xf32> -> vector<160x256xf32>
    %16 = arith.mulf %15, %8 : vector<160x256xf32>
    %cst_12 = arith.constant dense<0.000000e+00> : vector<40x256xf32>
    %17 = tpu.matmul %11, %16, %cst_12 {dimension_numbers = #tpu.dot_dimension_numbers<[1], [0], [0], [1], [0, 0, 1, 1], [], []>} : vector<40x160xf32>, vector<160x256xf32>, vector<40x256xf32> -> vector<40x256xf32>
    %18 = vector.extract_strided_slice %17 {offsets = [0, 0], sizes = [8, 256], strides = [1, 1]} : vector<40x256xf32> to vector<8x256xf32>
    %19 = vector.extract_strided_slice %17 {offsets = [8, 0], sizes = [8, 256], strides = [1, 1]} : vector<40x256xf32> to vector<8x256xf32>
    %20 = arith.maximumf %18, %19 : vector<8x256xf32>
    %21 = vector.extract_strided_slice %17 {offsets = [16, 0], sizes = [8, 256], strides = [1, 1]} : vector<40x256xf32> to vector<8x256xf32>
    %22 = arith.maximumf %20, %21 : vector<8x256xf32>
    %23 = vector.extract_strided_slice %17 {offsets = [24, 0], sizes = [8, 256], strides = [1, 1]} : vector<40x256xf32> to vector<8x256xf32>
    %24 = arith.maximumf %22, %23 : vector<8x256xf32>
    %25 = vector.extract_strided_slice %17 {offsets = [32, 0], sizes = [8, 256], strides = [1, 1]} : vector<40x256xf32> to vector<8x256xf32>
    %26 = arith.maximumf %24, %25 : vector<8x256xf32>
    %27 = tpu.concatenate %26, %26, %26, %26, %26 in 0 : vector<8x256xf32>, vector<8x256xf32>, vector<8x256xf32>, vector<8x256xf32>, vector<8x256xf32> -> vector<40x256xf32>
    %28 = arith.subf %17, %27 : vector<40x256xf32>
    %29 = math.exp %28 : vector<40x256xf32>
    %30 = vector.extract_strided_slice %29 {offsets = [0, 0], sizes = [8, 256], strides = [1, 1]} : vector<40x256xf32> to vector<8x256xf32>
    %31 = vector.extract_strided_slice %29 {offsets = [8, 0], sizes = [8, 256], strides = [1, 1]} : vector<40x256xf32> to vector<8x256xf32>
    %32 = arith.addf %30, %31 : vector<8x256xf32>
    %33 = vector.extract_strided_slice %29 {offsets = [16, 0], sizes = [8, 256], strides = [1, 1]} : vector<40x256xf32> to vector<8x256xf32>
    %34 = arith.addf %32, %33 : vector<8x256xf32>
    %35 = vector.extract_strided_slice %29 {offsets = [24, 0], sizes = [8, 256], strides = [1, 1]} : vector<40x256xf32> to vector<8x256xf32>
    %36 = arith.addf %34, %35 : vector<8x256xf32>
    %37 = vector.extract_strided_slice %29 {offsets = [32, 0], sizes = [8, 256], strides = [1, 1]} : vector<40x256xf32> to vector<8x256xf32>
    %38 = arith.addf %36, %37 : vector<8x256xf32>
    %39 = tpu.reciprocal %38 : vector<8x256xf32> -> vector<8x256xf32>
    %40 = tpu.concatenate %39, %39, %39, %39, %39 in 0 : vector<8x256xf32>, vector<8x256xf32>, vector<8x256xf32>, vector<8x256xf32>, vector<8x256xf32> -> vector<40x256xf32>
    %41 = arith.mulf %29, %40 : vector<40x256xf32>
    %cst_13 = arith.constant dense<0.000000e+00> : vector<160x256xf32>
    %42 = tpu.matmul %12, %41, %cst_13 {dimension_numbers = #tpu.dot_dimension_numbers<[1], [0], [0], [1], [0, 0, 1, 1], [], []>} : vector<160x40xf32>, vector<40x256xf32>, vector<160x256xf32> -> vector<160x256xf32>
    %43 = arith.mulf %42, %9 : vector<160x256xf32>
    %44 = vector.extract_strided_slice %43 {offsets = [0, 0], sizes = [32, 256], strides = [1, 1]} : vector<160x256xf32> to vector<32x256xf32>
    %45 = vector.extract_strided_slice %43 {offsets = [32, 0], sizes = [32, 256], strides = [1, 1]} : vector<160x256xf32> to vector<32x256xf32>
    %46 = arith.addf %44, %45 : vector<32x256xf32>
    %47 = vector.extract_strided_slice %43 {offsets = [64, 0], sizes = [32, 256], strides = [1, 1]} : vector<160x256xf32> to vector<32x256xf32>
    %48 = arith.addf %46, %47 : vector<32x256xf32>
    %49 = vector.extract_strided_slice %43 {offsets = [96, 0], sizes = [32, 256], strides = [1, 1]} : vector<160x256xf32> to vector<32x256xf32>
    %50 = arith.addf %48, %49 : vector<32x256xf32>
    %51 = vector.extract_strided_slice %43 {offsets = [128, 0], sizes = [32, 256], strides = [1, 1]} : vector<160x256xf32> to vector<32x256xf32>
    %52 = arith.addf %50, %51 : vector<32x256xf32>
    %53 = arith.addf %13, %52 : vector<32x256xf32>
    %54 = vector.extract_strided_slice %7 {offsets = [32, 0], sizes = [32, 256], strides = [1, 1]} : vector<160x256xf32> to vector<32x256xf32>
    %55 = tpu.concatenate %54, %54, %54, %54, %54 in 0 : vector<32x256xf32>, vector<32x256xf32>, vector<32x256xf32>, vector<32x256xf32>, vector<32x256xf32> -> vector<160x256xf32>
    %56 = arith.mulf %55, %8 : vector<160x256xf32>
    %cst_14 = arith.constant dense<0.000000e+00> : vector<40x256xf32>
    %57 = tpu.matmul %11, %56, %cst_14 {dimension_numbers = #tpu.dot_dimension_numbers<[1], [0], [0], [1], [0, 0, 1, 1], [], []>} : vector<40x160xf32>, vector<160x256xf32>, vector<40x256xf32> -> vector<40x256xf32>
    %58 = vector.extract_strided_slice %57 {offsets = [0, 0], sizes = [8, 256], strides = [1, 1]} : vector<40x256xf32> to vector<8x256xf32>
    %59 = vector.extract_strided_slice %57 {offsets = [8, 0], sizes = [8, 256], strides = [1, 1]} : vector<40x256xf32> to vector<8x256xf32>
    %60 = arith.maximumf %58, %59 : vector<8x256xf32>
    %61 = vector.extract_strided_slice %57 {offsets = [16, 0], sizes = [8, 256], strides = [1, 1]} : vector<40x256xf32> to vector<8x256xf32>
    %62 = arith.maximumf %60, %61 : vector<8x256xf32>
    %63 = vector.extract_strided_slice %57 {offsets = [24, 0], sizes = [8, 256], strides = [1, 1]} : vector<40x256xf32> to vector<8x256xf32>
    %64 = arith.maximumf %62, %63 : vector<8x256xf32>
    %65 = vector.extract_strided_slice %57 {offsets = [32, 0], sizes = [8, 256], strides = [1, 1]} : vector<40x256xf32> to vector<8x256xf32>
    %66 = arith.maximumf %64, %65 : vector<8x256xf32>
    %67 = tpu.concatenate %66, %66, %66, %66, %66 in 0 : vector<8x256xf32>, vector<8x256xf32>, vector<8x256xf32>, vector<8x256xf32>, vector<8x256xf32> -> vector<40x256xf32>
    %68 = arith.subf %57, %67 : vector<40x256xf32>
    %69 = math.exp %68 : vector<40x256xf32>
    %70 = vector.extract_strided_slice %69 {offsets = [0, 0], sizes = [8, 256], strides = [1, 1]} : vector<40x256xf32> to vector<8x256xf32>
    %71 = vector.extract_strided_slice %69 {offsets = [8, 0], sizes = [8, 256], strides = [1, 1]} : vector<40x256xf32> to vector<8x256xf32>
    %72 = arith.addf %70, %71 : vector<8x256xf32>
    %73 = vector.extract_strided_slice %69 {offsets = [16, 0], sizes = [8, 256], strides = [1, 1]} : vector<40x256xf32> to vector<8x256xf32>
    %74 = arith.addf %72, %73 : vector<8x256xf32>
    %75 = vector.extract_strided_slice %69 {offsets = [24, 0], sizes = [8, 256], strides = [1, 1]} : vector<40x256xf32> to vector<8x256xf32>
    %76 = arith.addf %74, %75 : vector<8x256xf32>
    %77 = vector.extract_strided_slice %69 {offsets = [32, 0], sizes = [8, 256], strides = [1, 1]} : vector<40x256xf32> to vector<8x256xf32>
    %78 = arith.addf %76, %77 : vector<8x256xf32>
    %79 = tpu.reciprocal %78 : vector<8x256xf32> -> vector<8x256xf32>
    %80 = tpu.concatenate %79, %79, %79, %79, %79 in 0 : vector<8x256xf32>, vector<8x256xf32>, vector<8x256xf32>, vector<8x256xf32>, vector<8x256xf32> -> vector<40x256xf32>
    %81 = arith.mulf %69, %80 : vector<40x256xf32>
    %cst_15 = arith.constant dense<0.000000e+00> : vector<160x256xf32>
    %82 = tpu.matmul %12, %81, %cst_15 {dimension_numbers = #tpu.dot_dimension_numbers<[1], [0], [0], [1], [0, 0, 1, 1], [], []>} : vector<160x40xf32>, vector<40x256xf32>, vector<160x256xf32> -> vector<160x256xf32>
    %83 = arith.mulf %82, %9 : vector<160x256xf32>
    %84 = vector.extract_strided_slice %83 {offsets = [0, 0], sizes = [32, 256], strides = [1, 1]} : vector<160x256xf32> to vector<32x256xf32>
    %85 = vector.extract_strided_slice %83 {offsets = [32, 0], sizes = [32, 256], strides = [1, 1]} : vector<160x256xf32> to vector<32x256xf32>
    %86 = arith.addf %84, %85 : vector<32x256xf32>
    %87 = vector.extract_strided_slice %83 {offsets = [64, 0], sizes = [32, 256], strides = [1, 1]} : vector<160x256xf32> to vector<32x256xf32>
    %88 = arith.addf %86, %87 : vector<32x256xf32>
    %89 = vector.extract_strided_slice %83 {offsets = [96, 0], sizes = [32, 256], strides = [1, 1]} : vector<160x256xf32> to vector<32x256xf32>
    %90 = arith.addf %88, %89 : vector<32x256xf32>
    %91 = vector.extract_strided_slice %83 {offsets = [128, 0], sizes = [32, 256], strides = [1, 1]} : vector<160x256xf32> to vector<32x256xf32>
    %92 = arith.addf %90, %91 : vector<32x256xf32>
    %93 = arith.addf %53, %92 : vector<32x256xf32>
    %94 = vector.extract_strided_slice %7 {offsets = [64, 0], sizes = [32, 256], strides = [1, 1]} : vector<160x256xf32> to vector<32x256xf32>
    %95 = tpu.concatenate %94, %94, %94, %94, %94 in 0 : vector<32x256xf32>, vector<32x256xf32>, vector<32x256xf32>, vector<32x256xf32>, vector<32x256xf32> -> vector<160x256xf32>
    %96 = arith.mulf %95, %8 : vector<160x256xf32>
    %cst_16 = arith.constant dense<0.000000e+00> : vector<40x256xf32>
    %97 = tpu.matmul %11, %96, %cst_16 {dimension_numbers = #tpu.dot_dimension_numbers<[1], [0], [0], [1], [0, 0, 1, 1], [], []>} : vector<40x160xf32>, vector<160x256xf32>, vector<40x256xf32> -> vector<40x256xf32>
    %98 = vector.extract_strided_slice %97 {offsets = [0, 0], sizes = [8, 256], strides = [1, 1]} : vector<40x256xf32> to vector<8x256xf32>
    %99 = vector.extract_strided_slice %97 {offsets = [8, 0], sizes = [8, 256], strides = [1, 1]} : vector<40x256xf32> to vector<8x256xf32>
    %100 = arith.maximumf %98, %99 : vector<8x256xf32>
    %101 = vector.extract_strided_slice %97 {offsets = [16, 0], sizes = [8, 256], strides = [1, 1]} : vector<40x256xf32> to vector<8x256xf32>
    %102 = arith.maximumf %100, %101 : vector<8x256xf32>
    %103 = vector.extract_strided_slice %97 {offsets = [24, 0], sizes = [8, 256], strides = [1, 1]} : vector<40x256xf32> to vector<8x256xf32>
    %104 = arith.maximumf %102, %103 : vector<8x256xf32>
    %105 = vector.extract_strided_slice %97 {offsets = [32, 0], sizes = [8, 256], strides = [1, 1]} : vector<40x256xf32> to vector<8x256xf32>
    %106 = arith.maximumf %104, %105 : vector<8x256xf32>
    %107 = tpu.concatenate %106, %106, %106, %106, %106 in 0 : vector<8x256xf32>, vector<8x256xf32>, vector<8x256xf32>, vector<8x256xf32>, vector<8x256xf32> -> vector<40x256xf32>
    %108 = arith.subf %97, %107 : vector<40x256xf32>
    %109 = math.exp %108 : vector<40x256xf32>
    %110 = vector.extract_strided_slice %109 {offsets = [0, 0], sizes = [8, 256], strides = [1, 1]} : vector<40x256xf32> to vector<8x256xf32>
    %111 = vector.extract_strided_slice %109 {offsets = [8, 0], sizes = [8, 256], strides = [1, 1]} : vector<40x256xf32> to vector<8x256xf32>
    %112 = arith.addf %110, %111 : vector<8x256xf32>
    %113 = vector.extract_strided_slice %109 {offsets = [16, 0], sizes = [8, 256], strides = [1, 1]} : vector<40x256xf32> to vector<8x256xf32>
    %114 = arith.addf %112, %113 : vector<8x256xf32>
    %115 = vector.extract_strided_slice %109 {offsets = [24, 0], sizes = [8, 256], strides = [1, 1]} : vector<40x256xf32> to vector<8x256xf32>
    %116 = arith.addf %114, %115 : vector<8x256xf32>
    %117 = vector.extract_strided_slice %109 {offsets = [32, 0], sizes = [8, 256], strides = [1, 1]} : vector<40x256xf32> to vector<8x256xf32>
    %118 = arith.addf %116, %117 : vector<8x256xf32>
    %119 = tpu.reciprocal %118 : vector<8x256xf32> -> vector<8x256xf32>
    %120 = tpu.concatenate %119, %119, %119, %119, %119 in 0 : vector<8x256xf32>, vector<8x256xf32>, vector<8x256xf32>, vector<8x256xf32>, vector<8x256xf32> -> vector<40x256xf32>
    %121 = arith.mulf %109, %120 : vector<40x256xf32>
    %cst_17 = arith.constant dense<0.000000e+00> : vector<160x256xf32>
    %122 = tpu.matmul %12, %121, %cst_17 {dimension_numbers = #tpu.dot_dimension_numbers<[1], [0], [0], [1], [0, 0, 1, 1], [], []>} : vector<160x40xf32>, vector<40x256xf32>, vector<160x256xf32> -> vector<160x256xf32>
    %123 = arith.mulf %122, %9 : vector<160x256xf32>
    %124 = vector.extract_strided_slice %123 {offsets = [0, 0], sizes = [32, 256], strides = [1, 1]} : vector<160x256xf32> to vector<32x256xf32>
    %125 = vector.extract_strided_slice %123 {offsets = [32, 0], sizes = [32, 256], strides = [1, 1]} : vector<160x256xf32> to vector<32x256xf32>
    %126 = arith.addf %124, %125 : vector<32x256xf32>
    %127 = vector.extract_strided_slice %123 {offsets = [64, 0], sizes = [32, 256], strides = [1, 1]} : vector<160x256xf32> to vector<32x256xf32>
    %128 = arith.addf %126, %127 : vector<32x256xf32>
    %129 = vector.extract_strided_slice %123 {offsets = [96, 0], sizes = [32, 256], strides = [1, 1]} : vector<160x256xf32> to vector<32x256xf32>
    %130 = arith.addf %128, %129 : vector<32x256xf32>
    %131 = vector.extract_strided_slice %123 {offsets = [128, 0], sizes = [32, 256], strides = [1, 1]} : vector<160x256xf32> to vector<32x256xf32>
    %132 = arith.addf %130, %131 : vector<32x256xf32>
    %133 = arith.addf %93, %132 : vector<32x256xf32>
    %134 = vector.extract_strided_slice %7 {offsets = [96, 0], sizes = [32, 256], strides = [1, 1]} : vector<160x256xf32> to vector<32x256xf32>
    %135 = tpu.concatenate %134, %134, %134, %134, %134 in 0 : vector<32x256xf32>, vector<32x256xf32>, vector<32x256xf32>, vector<32x256xf32>, vector<32x256xf32> -> vector<160x256xf32>
    %136 = arith.mulf %135, %8 : vector<160x256xf32>
    %cst_18 = arith.constant dense<0.000000e+00> : vector<40x256xf32>
    %137 = tpu.matmul %11, %136, %cst_18 {dimension_numbers = #tpu.dot_dimension_numbers<[1], [0], [0], [1], [0, 0, 1, 1], [], []>} : vector<40x160xf32>, vector<160x256xf32>, vector<40x256xf32> -> vector<40x256xf32>
    %138 = vector.extract_strided_slice %137 {offsets = [0, 0], sizes = [8, 256], strides = [1, 1]} : vector<40x256xf32> to vector<8x256xf32>
    %139 = vector.extract_strided_slice %137 {offsets = [8, 0], sizes = [8, 256], strides = [1, 1]} : vector<40x256xf32> to vector<8x256xf32>
    %140 = arith.maximumf %138, %139 : vector<8x256xf32>
    %141 = vector.extract_strided_slice %137 {offsets = [16, 0], sizes = [8, 256], strides = [1, 1]} : vector<40x256xf32> to vector<8x256xf32>
    %142 = arith.maximumf %140, %141 : vector<8x256xf32>
    %143 = vector.extract_strided_slice %137 {offsets = [24, 0], sizes = [8, 256], strides = [1, 1]} : vector<40x256xf32> to vector<8x256xf32>
    %144 = arith.maximumf %142, %143 : vector<8x256xf32>
    %145 = vector.extract_strided_slice %137 {offsets = [32, 0], sizes = [8, 256], strides = [1, 1]} : vector<40x256xf32> to vector<8x256xf32>
    %146 = arith.maximumf %144, %145 : vector<8x256xf32>
    %147 = tpu.concatenate %146, %146, %146, %146, %146 in 0 : vector<8x256xf32>, vector<8x256xf32>, vector<8x256xf32>, vector<8x256xf32>, vector<8x256xf32> -> vector<40x256xf32>
    %148 = arith.subf %137, %147 : vector<40x256xf32>
    %149 = math.exp %148 : vector<40x256xf32>
    %150 = vector.extract_strided_slice %149 {offsets = [0, 0], sizes = [8, 256], strides = [1, 1]} : vector<40x256xf32> to vector<8x256xf32>
    %151 = vector.extract_strided_slice %149 {offsets = [8, 0], sizes = [8, 256], strides = [1, 1]} : vector<40x256xf32> to vector<8x256xf32>
    %152 = arith.addf %150, %151 : vector<8x256xf32>
    %153 = vector.extract_strided_slice %149 {offsets = [16, 0], sizes = [8, 256], strides = [1, 1]} : vector<40x256xf32> to vector<8x256xf32>
    %154 = arith.addf %152, %153 : vector<8x256xf32>
    %155 = vector.extract_strided_slice %149 {offsets = [24, 0], sizes = [8, 256], strides = [1, 1]} : vector<40x256xf32> to vector<8x256xf32>
    %156 = arith.addf %154, %155 : vector<8x256xf32>
    %157 = vector.extract_strided_slice %149 {offsets = [32, 0], sizes = [8, 256], strides = [1, 1]} : vector<40x256xf32> to vector<8x256xf32>
    %158 = arith.addf %156, %157 : vector<8x256xf32>
    %159 = tpu.reciprocal %158 : vector<8x256xf32> -> vector<8x256xf32>
    %160 = tpu.concatenate %159, %159, %159, %159, %159 in 0 : vector<8x256xf32>, vector<8x256xf32>, vector<8x256xf32>, vector<8x256xf32>, vector<8x256xf32> -> vector<40x256xf32>
    %161 = arith.mulf %149, %160 : vector<40x256xf32>
    %cst_19 = arith.constant dense<0.000000e+00> : vector<160x256xf32>
    %162 = tpu.matmul %12, %161, %cst_19 {dimension_numbers = #tpu.dot_dimension_numbers<[1], [0], [0], [1], [0, 0, 1, 1], [], []>} : vector<160x40xf32>, vector<40x256xf32>, vector<160x256xf32> -> vector<160x256xf32>
    %163 = arith.mulf %162, %9 : vector<160x256xf32>
    %164 = vector.extract_strided_slice %163 {offsets = [0, 0], sizes = [32, 256], strides = [1, 1]} : vector<160x256xf32> to vector<32x256xf32>
    %165 = vector.extract_strided_slice %163 {offsets = [32, 0], sizes = [32, 256], strides = [1, 1]} : vector<160x256xf32> to vector<32x256xf32>
    %166 = arith.addf %164, %165 : vector<32x256xf32>
    %167 = vector.extract_strided_slice %163 {offsets = [64, 0], sizes = [32, 256], strides = [1, 1]} : vector<160x256xf32> to vector<32x256xf32>
    %168 = arith.addf %166, %167 : vector<32x256xf32>
    %169 = vector.extract_strided_slice %163 {offsets = [96, 0], sizes = [32, 256], strides = [1, 1]} : vector<160x256xf32> to vector<32x256xf32>
    %170 = arith.addf %168, %169 : vector<32x256xf32>
    %171 = vector.extract_strided_slice %163 {offsets = [128, 0], sizes = [32, 256], strides = [1, 1]} : vector<160x256xf32> to vector<32x256xf32>
    %172 = arith.addf %170, %171 : vector<32x256xf32>
    %173 = arith.addf %133, %172 : vector<32x256xf32>
    %174 = vector.extract_strided_slice %7 {offsets = [128, 0], sizes = [32, 256], strides = [1, 1]} : vector<160x256xf32> to vector<32x256xf32>
    %175 = tpu.concatenate %174, %174, %174, %174, %174 in 0 : vector<32x256xf32>, vector<32x256xf32>, vector<32x256xf32>, vector<32x256xf32>, vector<32x256xf32> -> vector<160x256xf32>
    %176 = arith.mulf %175, %8 : vector<160x256xf32>
    %cst_20 = arith.constant dense<0.000000e+00> : vector<40x256xf32>
    %177 = tpu.matmul %11, %176, %cst_20 {dimension_numbers = #tpu.dot_dimension_numbers<[1], [0], [0], [1], [0, 0, 1, 1], [], []>} : vector<40x160xf32>, vector<160x256xf32>, vector<40x256xf32> -> vector<40x256xf32>
    %178 = vector.extract_strided_slice %177 {offsets = [0, 0], sizes = [8, 256], strides = [1, 1]} : vector<40x256xf32> to vector<8x256xf32>
    %179 = vector.extract_strided_slice %177 {offsets = [8, 0], sizes = [8, 256], strides = [1, 1]} : vector<40x256xf32> to vector<8x256xf32>
    %180 = arith.maximumf %178, %179 : vector<8x256xf32>
    %181 = vector.extract_strided_slice %177 {offsets = [16, 0], sizes = [8, 256], strides = [1, 1]} : vector<40x256xf32> to vector<8x256xf32>
    %182 = arith.maximumf %180, %181 : vector<8x256xf32>
    %183 = vector.extract_strided_slice %177 {offsets = [24, 0], sizes = [8, 256], strides = [1, 1]} : vector<40x256xf32> to vector<8x256xf32>
    %184 = arith.maximumf %182, %183 : vector<8x256xf32>
    %185 = vector.extract_strided_slice %177 {offsets = [32, 0], sizes = [8, 256], strides = [1, 1]} : vector<40x256xf32> to vector<8x256xf32>
    %186 = arith.maximumf %184, %185 : vector<8x256xf32>
    %187 = tpu.concatenate %186, %186, %186, %186, %186 in 0 : vector<8x256xf32>, vector<8x256xf32>, vector<8x256xf32>, vector<8x256xf32>, vector<8x256xf32> -> vector<40x256xf32>
    %188 = arith.subf %177, %187 : vector<40x256xf32>
    %189 = math.exp %188 : vector<40x256xf32>
    %190 = vector.extract_strided_slice %189 {offsets = [0, 0], sizes = [8, 256], strides = [1, 1]} : vector<40x256xf32> to vector<8x256xf32>
    %191 = vector.extract_strided_slice %189 {offsets = [8, 0], sizes = [8, 256], strides = [1, 1]} : vector<40x256xf32> to vector<8x256xf32>
    %192 = arith.addf %190, %191 : vector<8x256xf32>
    %193 = vector.extract_strided_slice %189 {offsets = [16, 0], sizes = [8, 256], strides = [1, 1]} : vector<40x256xf32> to vector<8x256xf32>
    %194 = arith.addf %192, %193 : vector<8x256xf32>
    %195 = vector.extract_strided_slice %189 {offsets = [24, 0], sizes = [8, 256], strides = [1, 1]} : vector<40x256xf32> to vector<8x256xf32>
    %196 = arith.addf %194, %195 : vector<8x256xf32>
    %197 = vector.extract_strided_slice %189 {offsets = [32, 0], sizes = [8, 256], strides = [1, 1]} : vector<40x256xf32> to vector<8x256xf32>
    %198 = arith.addf %196, %197 : vector<8x256xf32>
    %199 = tpu.reciprocal %198 : vector<8x256xf32> -> vector<8x256xf32>
    %200 = tpu.concatenate %199, %199, %199, %199, %199 in 0 : vector<8x256xf32>, vector<8x256xf32>, vector<8x256xf32>, vector<8x256xf32>, vector<8x256xf32> -> vector<40x256xf32>
    %201 = arith.mulf %189, %200 : vector<40x256xf32>
    %cst_21 = arith.constant dense<0.000000e+00> : vector<160x256xf32>
    %202 = tpu.matmul %12, %201, %cst_21 {dimension_numbers = #tpu.dot_dimension_numbers<[1], [0], [0], [1], [0, 0, 1, 1], [], []>} : vector<160x40xf32>, vector<40x256xf32>, vector<160x256xf32> -> vector<160x256xf32>
    %203 = arith.mulf %202, %9 : vector<160x256xf32>
    %204 = vector.extract_strided_slice %203 {offsets = [0, 0], sizes = [32, 256], strides = [1, 1]} : vector<160x256xf32> to vector<32x256xf32>
    %205 = vector.extract_strided_slice %203 {offsets = [32, 0], sizes = [32, 256], strides = [1, 1]} : vector<160x256xf32> to vector<32x256xf32>
    %206 = arith.addf %204, %205 : vector<32x256xf32>
    %207 = vector.extract_strided_slice %203 {offsets = [64, 0], sizes = [32, 256], strides = [1, 1]} : vector<160x256xf32> to vector<32x256xf32>
    %208 = arith.addf %206, %207 : vector<32x256xf32>
    %209 = vector.extract_strided_slice %203 {offsets = [96, 0], sizes = [32, 256], strides = [1, 1]} : vector<160x256xf32> to vector<32x256xf32>
    %210 = arith.addf %208, %209 : vector<32x256xf32>
    %211 = vector.extract_strided_slice %203 {offsets = [128, 0], sizes = [32, 256], strides = [1, 1]} : vector<160x256xf32> to vector<32x256xf32>
    %212 = arith.addf %210, %211 : vector<32x256xf32>
    %213 = arith.addf %173, %212 : vector<32x256xf32>
    %c0_22 = arith.constant 0 : index
    %c0_23 = arith.constant 0 : index
    %214 = vector.load %arg7[%c0_22, %c0_23] : memref<32x32xf32, #tpu.memory_space<vmem>>, vector<32x32xf32>
    %cst_24 = arith.constant dense<0.000000e+00> : vector<32x256xf32>
    %215 = tpu.matmul %214, %213, %cst_24 {dimension_numbers = #tpu.dot_dimension_numbers<[1], [0], [0], [1], [0, 0, 1, 1], [], []>} : vector<32x32xf32>, vector<32x256xf32>, vector<32x256xf32> -> vector<32x256xf32>
    %c0_25 = arith.constant 0 : index
    %c0_26 = arith.constant 0 : index
    %216 = vector.load %arg8[%c0_25, %c0_26] : memref<32x1xf32, #tpu.memory_space<vmem>>, vector<32x1xf32>
    %217 = vector.broadcast %216 : vector<32x1xf32> to vector<32x256xf32>
    %218 = arith.addf %215, %217 : vector<32x256xf32>
    %219 = arith.addf %218, %10 : vector<32x256xf32>
    %c0_27 = arith.constant 0 : index
    %c0_28 = arith.constant 0 : index
    %220 = vector.load %arg9[%c0_27, %c0_28] : memref<32x32xf32, #tpu.memory_space<vmem>>, vector<32x32xf32>
    %cst_29 = arith.constant dense<0.000000e+00> : vector<32x256xf32>
    %221 = tpu.matmul %220, %219, %cst_29 {dimension_numbers = #tpu.dot_dimension_numbers<[1], [0], [0], [1], [0, 0, 1, 1], [], []>} : vector<32x32xf32>, vector<32x256xf32>, vector<32x256xf32> -> vector<32x256xf32>
    %c0_30 = arith.constant 0 : index
    %c0_31 = arith.constant 0 : index
    %222 = vector.load %arg10[%c0_30, %c0_31] : memref<32x1xf32, #tpu.memory_space<vmem>>, vector<32x1xf32>
    %223 = vector.broadcast %222 : vector<32x1xf32> to vector<32x256xf32>
    %224 = arith.addf %221, %223 : vector<32x256xf32>
    %cst_32 = arith.constant 0.000000e+00 : f32
    %225 = vector.broadcast %cst_32 : f32 to vector<32x256xf32>
    %226 = arith.maximumf %224, %225 : vector<32x256xf32>
    %c0_33 = arith.constant 0 : index
    %c0_34 = arith.constant 0 : index
    %227 = vector.load %arg11[%c0_33, %c0_34] : memref<32x32xf32, #tpu.memory_space<vmem>>, vector<32x32xf32>
    %cst_35 = arith.constant dense<0.000000e+00> : vector<32x256xf32>
    %228 = tpu.matmul %227, %226, %cst_35 {dimension_numbers = #tpu.dot_dimension_numbers<[1], [0], [0], [1], [0, 0, 1, 1], [], []>} : vector<32x32xf32>, vector<32x256xf32>, vector<32x256xf32> -> vector<32x256xf32>
    %c0_36 = arith.constant 0 : index
    %c0_37 = arith.constant 0 : index
    %229 = vector.load %arg12[%c0_36, %c0_37] : memref<32x1xf32, #tpu.memory_space<vmem>>, vector<32x1xf32>
    %230 = vector.broadcast %229 : vector<32x1xf32> to vector<32x256xf32>
    %231 = arith.addf %228, %230 : vector<32x256xf32>
    %232 = arith.addf %231, %219 : vector<32x256xf32>
    %c0_38 = arith.constant 0 : index
    %c0_39 = arith.constant 0 : index
    %233 = vector.load %arg13[%c0_38, %c0_39] : memref<32x32xf32, #tpu.memory_space<vmem>>, vector<32x32xf32>
    %cst_40 = arith.constant dense<0.000000e+00> : vector<32x256xf32>
    %234 = tpu.matmul %233, %232, %cst_40 {dimension_numbers = #tpu.dot_dimension_numbers<[1], [0], [0], [1], [0, 0, 1, 1], [], []>} : vector<32x32xf32>, vector<32x256xf32>, vector<32x256xf32> -> vector<32x256xf32>
    %c0_41 = arith.constant 0 : index
    %c0_42 = arith.constant 0 : index
    %235 = vector.load %arg14[%c0_41, %c0_42] : memref<32x32xf32, #tpu.memory_space<vmem>>, vector<32x32xf32>
    %cst_43 = arith.constant dense<0.000000e+00> : vector<32x256xf32>
    %236 = tpu.matmul %235, %1, %cst_43 {dimension_numbers = #tpu.dot_dimension_numbers<[1], [0], [0], [1], [0, 0, 1, 1], [], []>} : vector<32x32xf32>, vector<32x256xf32>, vector<32x256xf32> -> vector<32x256xf32>
    %237 = arith.addf %234, %236 : vector<32x256xf32>
    %c0_44 = arith.constant 0 : index
    %c0_45 = arith.constant 0 : index
    %238 = vector.load %arg15[%c0_44, %c0_45] : memref<32x1xf32, #tpu.memory_space<vmem>>, vector<32x1xf32>
    %239 = vector.broadcast %238 : vector<32x1xf32> to vector<32x256xf32>
    %240 = arith.addf %237, %239 : vector<32x256xf32>
    %241 = arith.negf %240 : vector<32x256xf32>
    %242 = math.exp %241 : vector<32x256xf32>
    %cst_46 = arith.constant 1.000000e+00 : f32
    %243 = vector.broadcast %cst_46 : f32 to vector<32x256xf32>
    %244 = arith.addf %243, %242 : vector<32x256xf32>
    %245 = arith.divf %243, %244 : vector<32x256xf32>
    %246 = arith.mulf %232, %245 : vector<32x256xf32>
    %247 = tpu.concatenate %232, %246 in 0 : vector<32x256xf32>, vector<32x256xf32> -> vector<64x256xf32>
    %c0_47 = arith.constant 0 : index
    %c0_48 = arith.constant 0 : index
    %248 = vector.load %arg16[%c0_47, %c0_48] : memref<64x256xf32, #tpu.memory_space<vmem>>, vector<64x256xf32>
    tpu.vector_store %arg16[%c0_47, %c0_48], %247 {strides = array<i32>} : memref<64x256xf32, #tpu.memory_space<vmem>>, vector<64x256xf32>,
    return
  }
  func.func @transform_0(%arg0: i32) -> (i32, i32) {
    %c0_i32 = arith.constant 0 : i32
    %c0_i32_0 = arith.constant 0 : i32
    return %c0_i32, %arg0 : i32, i32
  }
  func.func @transform_1(%arg0: i32) -> (i32, i32) {
    %c0_i32 = arith.constant 0 : i32
    %c0_i32_0 = arith.constant 0 : i32
    return %c0_i32, %arg0 : i32, i32
  }
  func.func @transform_2(%arg0: i32) -> (i32, i32) {
    %c0_i32 = arith.constant 0 : i32
    %c0_i32_0 = arith.constant 0 : i32
    %c0_i32_1 = arith.constant 0 : i32
    return %c0_i32, %c0_i32_0 : i32, i32
  }
  func.func @transform_3(%arg0: i32) -> (i32, i32) {
    %c0_i32 = arith.constant 0 : i32
    %c0_i32_0 = arith.constant 0 : i32
    %c0_i32_1 = arith.constant 0 : i32
    return %c0_i32, %c0_i32_0 : i32, i32
  }
  func.func @transform_4(%arg0: i32) -> (i32, i32) {
    %c0_i32 = arith.constant 0 : i32
    %c0_i32_0 = arith.constant 0 : i32
    %c0_i32_1 = arith.constant 0 : i32
    return %c0_i32, %c0_i32_0 : i32, i32
  }
  func.func @transform_5(%arg0: i32) -> (i32, i32) {
    %c0_i32 = arith.constant 0 : i32
    %c0_i32_0 = arith.constant 0 : i32
    %c0_i32_1 = arith.constant 0 : i32
    return %c0_i32, %c0_i32_0 : i32, i32
  }
  func.func @transform_6(%arg0: i32) -> (i32, i32) {
    %c0_i32 = arith.constant 0 : i32
    %c0_i32_0 = arith.constant 0 : i32
    %c0_i32_1 = arith.constant 0 : i32
    return %c0_i32, %c0_i32_0 : i32, i32
  }
  func.func @transform_7(%arg0: i32) -> (i32, i32) {
    %c0_i32 = arith.constant 0 : i32
    %c0_i32_0 = arith.constant 0 : i32
    %c0_i32_1 = arith.constant 0 : i32
    return %c0_i32, %c0_i32_0 : i32, i32
  }
  func.func @transform_8(%arg0: i32) -> (i32, i32) {
    %c0_i32 = arith.constant 0 : i32
    %c0_i32_0 = arith.constant 0 : i32
    %c0_i32_1 = arith.constant 0 : i32
    return %c0_i32, %c0_i32_0 : i32, i32
  }
  func.func @transform_9(%arg0: i32) -> (i32, i32) {
    %c0_i32 = arith.constant 0 : i32
    %c0_i32_0 = arith.constant 0 : i32
    %c0_i32_1 = arith.constant 0 : i32
    return %c0_i32, %c0_i32_0 : i32, i32
  }
  func.func @transform_10(%arg0: i32) -> (i32, i32) {
    %c0_i32 = arith.constant 0 : i32
    %c0_i32_0 = arith.constant 0 : i32
    %c0_i32_1 = arith.constant 0 : i32
    return %c0_i32, %c0_i32_0 : i32, i32
  }
  func.func @transform_11(%arg0: i32) -> (i32, i32) {
    %c0_i32 = arith.constant 0 : i32
    %c0_i32_0 = arith.constant 0 : i32
    %c0_i32_1 = arith.constant 0 : i32
    return %c0_i32, %c0_i32_0 : i32, i32
  }
  func.func @transform_12(%arg0: i32) -> (i32, i32) {
    %c0_i32 = arith.constant 0 : i32
    %c0_i32_0 = arith.constant 0 : i32
    %c0_i32_1 = arith.constant 0 : i32
    return %c0_i32, %c0_i32_0 : i32, i32
  }
  func.func @transform_13(%arg0: i32) -> (i32, i32) {
    %c0_i32 = arith.constant 0 : i32
    %c0_i32_0 = arith.constant 0 : i32
    %c0_i32_1 = arith.constant 0 : i32
    return %c0_i32, %c0_i32_0 : i32, i32
  }
  func.func @transform_14(%arg0: i32) -> (i32, i32) {
    %c0_i32 = arith.constant 0 : i32
    %c0_i32_0 = arith.constant 0 : i32
    %c0_i32_1 = arith.constant 0 : i32
    return %c0_i32, %c0_i32_0 : i32, i32
  }
  func.func @transform_15(%arg0: i32) -> (i32, i32) {
    %c0_i32 = arith.constant 0 : i32
    %c0_i32_0 = arith.constant 0 : i32
    return %c0_i32, %arg0 : i32, i32
  }
}

</mosaic_0001>

<bundles_post_ra>
// kernel: tpu_custom_call.1
= control target key start
LH: loop header
LB: loop body
LE: loop exit
PB: predicated region body
PF: predicated region fallthrough
CT: control target
= control target key end

     0   :  { %s9584_s0 = inlined_call_operand.vmem [shape: f32[32,1024], index: 0, kind: input, shape index: {}]   ;;  %s9585_s1 = inlined_call_operand.vmem [shape: f32[32,1024], index: 1, kind: input, shape index: {}]   ;;  %s9586_s2 = inlined_call_operand.vmem [shape: f32[512,32], index: 2, kind: input, shape index: {}]   ;;  %s9587_s3 = inlined_call_operand.vmem [shape: f32[512,1], index: 3, kind: input, shape index: {}]   ;;  %s9588_s4 = inlined_call_operand.vmem [shape: f32[40,160], index: 4, kind: input, shape index: {}]   ;;  %s9589_s5 = inlined_call_operand.vmem [shape: f32[160,40], index: 5, kind: input, shape index: {}]   ;;  %s9590_s6 = inlined_call_operand.vmem [shape: f32[32,32], index: 6, kind: input, shape index: {}]   ;;  %s9591_s7 = inlined_call_operand.vmem [shape: f32[32,1], index: 7, kind: input, shape index: {}]   ;;  %s9592_s8 = inlined_call_operand.vmem [shape: f32[32,32], index: 8, kind: input, shape index: {}]   ;;  %s9593_s9 = inlined_call_operand.vmem [shape: f32[32,1], index: 9, kind: input, shape index: {}]   ;;  %s9594_s10 = inlined_call_operand.vmem [shape: f32[32,32], index: 10, kind: input, shape index: {}]   ;;  %s9595_s11 = inlined_call_operand.vmem [shape: f32[32,1], index: 11, kind: input, shape index: {}]   ;;  %s9596_s12 = inlined_call_operand.vmem [shape: f32[32,32], index: 12, kind: input, shape index: {}]   ;;  %s9597_s13 = inlined_call_operand.vmem [shape: f32[32,32], index: 13, kind: input, shape index: {}]   ;;  %s9598_s14 = inlined_call_operand.vmem [shape: f32[32,1], index: 14, kind: input, shape index: {}]   ;;  %s9599_s15 = inlined_call_operand.hbm [shape: f32[64,1024], index: 15, kind: output, shape index: {}]  }
   0x1   :  { %9754 = sst [smem:[#allocation175_spill]] %s9584_s0 }
   0x2   :  { %9755 = sst [smem:[#allocation176_spill]] %s9585_s1 }
   0x3   :  { %9756 = sst [smem:[#allocation177_spill]] %s9586_s2 }
   0x4   :  { %9757 = sst [smem:[#allocation178_spill]] %s9587_s3 }
   0x5   :  { %9758 = sst [smem:[#allocation179_spill]] %s9588_s4 }
   0x6   :  { %20 = vsyncpa [#allocation5], 0 }
   0x7   :  { %22 = vsyncpa [#allocation5 + $0x1], 0  ;;  %s5832_s18 = smov 0   ;;  %s5834_s19 = smov 0  }
   0x8   :  { %s5836_s20 = smov 0   ;;  %s5838_s21 = smov 0  }
   0x9 LB: > { %s9600_s22 = sadd.s32 4294967295, %s5746_s21   ;;  %s4971_s23 = sadd.s32 4294967294, %s5746_s21   ;;  %s5746_s21 = sphi %s5838_s21, %s10388_s21   ;;  %s5742_s20 = sphi %s5836_s20, %s10387_s20   ;;  %s5738_s19 = sphi %s5834_s19, %s10386_s19   ;;  %s5734_s18 = sphi %s5832_s18, %s10385_s18  }
   0xa   : > { %s5855_s24 = sadd.s32 1, %s5746_s21   ;;  %s35_s25 = sadd.s32 1, %s5742_s20 }
   0xb   : > { %s32_s26 = ssub.s32 %s5746_s21, %s5855_s24  ;;  %p42_p0 = scmp.ne.s32.totalorder %s5742_s20, %s5738_s19 }
   0xc   : > { %p33_p1 = scmp.eq.s32.totalorder %s32_s26, 0  ;;  %p43_p2 = scmp.eq.s32.totalorder %s5746_s21, 0 }
   0xd   : > { %p371_p3 = scmp.eq.s32.totalorder %s9600_s22, 3  ;;  %p376_p4 = scmp.ne.s32.totalorder %s5738_s19, %s5734_s18 }
   0xe   : > { %s5868_s27 = scalar_select %p33_p1, %s5742_s20, %s35_s25  }
   0xf   : > { %p5870_p5 = por %p43_p2, %p42_p0  ;;  %p5874_p6 = por %p371_p3, %p42_p0 }
  0x10   : > { %9759 = sst [smem:[#allocation7_spill]] %s5868_s27  ;;  %p377_p7 = scmp.eq.s32.totalorder %s4971_s23, 3 }
  0x11   : > { %p4973_p9 = scmp.ge.s32.totalorder %s5746_s21, 4 }
  0x12   : > { %p5878_p8 = por %p377_p7, %p376_p4 }
  0x13   : > { %432 = sbr.rel (%p4973_p9) target bundleno = 60 (0x3c), region = 68 }
  0x18   : > { %435 = sbr.rel (!%p5870_p5) target bundleno = 42 (0x2a), region = 72  ;;  %s437_s16 = sand.u32 (%p5870_p5), 1, %s5742_s20  }
  0x19   : > { %s5415_s17 = sshll.u32 (%p5870_p5), %s5746_s21, 4  ;;  %s4974_s25 = sshll.u32 (%p5870_p5), %s437_s16, 6 }
  0x1a   : > { %s9763_s0 = sld [smem:[#allocation175_spill]] (%p5870_p5)  ;;  %s439_s23 = scalar_lea.vmem (%p5870_p5), [#allocation2], %s4974_s25 }
  0x20   : > { %s442_s27 = scalar_lea.vmem %s9763_s0, %s5415_s17 }
  0x21   : > { %v455_v0 = vld [vmem:[%s442_s27] sm:$0xff]  ;;  %v457_v1 = vld [vmem:[%s442_s27 + $0x8] sm:$0xff] }
  0x22   : > { %v459_v2 = vld [vmem:[%s442_s27 + $0x40] sm:$0xff]  ;;  %456 = vst [vmem:[%s439_s23] sm:$0xff] %v455_v0  ;;  %v461_v3 = vld [vmem:[%s442_s27 + $0x48] sm:$0xff] }
  0x23   : > { %458 = vst [vmem:[%s439_s23 + $0x8] sm:$0xff] %v457_v1  ;;  %v463_v4 = vld [vmem:[%s442_s27 + $0x80] sm:$0xff]  ;;  %v465_v5 = vld [vmem:[%s442_s27 + $0x88] sm:$0xff] }
  0x24   : > { %460 = vst [vmem:[%s439_s23 + $0x10] sm:$0xff] %v459_v2  ;;  %v467_v6 = vld [vmem:[%s442_s27 + $0xc0] sm:$0xff]  ;;  %v469_v7 = vld [vmem:[%s442_s27 + $0xc8] sm:$0xff] }
  0x25   : > { %462 = vst [vmem:[%s439_s23 + $0x18] sm:$0xff] %v461_v3 }
  0x26   : > { %464 = vst [vmem:[%s439_s23 + $0x20] sm:$0xff] %v463_v4 }
  0x27   : > { %466 = vst [vmem:[%s439_s23 + $0x28] sm:$0xff] %v465_v5 }
  0x28   : > { %468 = vst [vmem:[%s439_s23 + $0x30] sm:$0xff] %v467_v6 }
  0x29   : > { %470 = vst [vmem:[%s439_s23 + $0x38] sm:$0xff] %v469_v7 }
  0x2a PF: > { %476 = sbr.rel (!%p5870_p5) target bundleno = 60 (0x3c), region = 95  ;;  %s478_s22 = sand.u32 (%p5870_p5), 1, %s5742_s20  }
  0x2b   : > { %s5416_s16 = sshll.u32 (%p5870_p5), %s5746_s21, 4  ;;  %s4977_s17 = sshll.u32 (%p5870_p5), %s478_s22, 6 }
  0x2c   : > { %s9764_s1 = sld [smem:[#allocation176_spill]] (%p5870_p5)  ;;  %s480_s27 = scalar_lea.vmem (%p5870_p5), [#allocation3], %s4977_s17 }
  0x32   : > { %s483_s0 = scalar_lea.vmem %s9764_s1, %s5416_s16 }
  0x33   : > { %v496_v8 = vld [vmem:[%s483_s0] sm:$0xff]  ;;  %v498_v9 = vld [vmem:[%s483_s0 + $0x8] sm:$0xff] }
  0x34   : > { %v500_v10 = vld [vmem:[%s483_s0 + $0x40] sm:$0xff]  ;;  %497 = vst [vmem:[%s480_s27] sm:$0xff] %v496_v8  ;;  %v502_v11 = vld [vmem:[%s483_s0 + $0x48] sm:$0xff] }
  0x35   : > { %499 = vst [vmem:[%s480_s27 + $0x8] sm:$0xff] %v498_v9  ;;  %v504_v12 = vld [vmem:[%s483_s0 + $0x80] sm:$0xff]  ;;  %v506_v13 = vld [vmem:[%s483_s0 + $0x88] sm:$0xff] }
  0x36   : > { %501 = vst [vmem:[%s480_s27 + $0x10] sm:$0xff] %v500_v10  ;;  %v508_v14 = vld [vmem:[%s483_s0 + $0xc0] sm:$0xff]  ;;  %v510_v15 = vld [vmem:[%s483_s0 + $0xc8] sm:$0xff] }
  0x37   : > { %503 = vst [vmem:[%s480_s27 + $0x18] sm:$0xff] %v502_v11 }
  0x38   : > { %505 = vst [vmem:[%s480_s27 + $0x20] sm:$0xff] %v504_v12 }
  0x39   : > { %507 = vst [vmem:[%s480_s27 + $0x28] sm:$0xff] %v506_v13 }
  0x3a   : > { %509 = vst [vmem:[%s480_s27 + $0x30] sm:$0xff] %v508_v14 }
  0x3b   : > { %511 = vst [vmem:[%s480_s27 + $0x38] sm:$0xff] %v510_v15 }
  0x3c PF: > { %p4980_p10 = scmp.ge.s32.totalorder %s5746_s21, 1  ;;  %p516_p11 = scmp.lt.s32.totalorder %s5746_s21, 5 }
  0x3e   : > { %p517_p12 = pnand %p4980_p10, %p516_p11 }
  0x40   : > { %520 = sbr.rel (%p517_p12) target bundleno = 2969 (0xb99), region = 118 }
  0x45   : > { %s9765_s3 = sld [smem:[#allocation178_spill]]  ;;  %s5903_s22 = sand.u32 1, %s5738_s19   ;;  %v5748_v18 = vmov 0   ;;  %vm1048_vm0 = vcmask 261120   ;;  %vm1956_vm5 = vcmask 326656  }
  0x46   : > { %5469 = vset.pattern.permute.xlu0 %v5748_v18  ;;  %s9601_s17 = sshll.u32 %s5903_s22, 6  ;;  %5470 = vset.pattern.permute.xlu1 %v5748_v18  ;;  %s9766_s2 = sld [smem:[#allocation177_spill]] }
  0x47   : > { %s525_s27 = scalar_lea.vmem [#allocation2], %s9601_s17  ;;  %5471 = vset.pattern.permute.xlu2 %v5748_v18  ;;  %s9935_s4 = sld [smem:[#allocation179_spill]] }
  0x48   : > { %v590_v20 = vld [vmem:[%s525_s27 + $0x30] sm:$0xff]  ;;  %v591_v21 = vld [vmem:[%s525_s27 + $0x38] sm:$0xff]  ;;  %v588_v22 = vld [vmem:[%s525_s27 + $0x20] sm:$0xff]  ;;  %s10382_s26 = sshll.u32 %s5903_s22, 6  ;;  %s4983_s23 = sshll.u32 %s5903_s22, 7 }
  0x49   : > { %1253 = vmatpush.msra.mxu0 %v590_v20  ;;  %1462 = vmatpush.msra.mxu1 %v591_v21  ;;  %v589_v23 = vld [vmem:[%s525_s27 + $0x28] sm:$0xff]  ;;  %v586_v24 = vld [vmem:[%s525_s27 + $0x10] sm:$0xff]  ;;  %v587_v25 = vld [vmem:[%s525_s27 + $0x18] sm:$0xff]  ;;  %s9398_s28 = scalar_lea.vmem [#allocation3], %s10382_s26  ;;  %s9430_s16 = scalar_lea.vmem [#allocation4], %s4983_s23 }
  0x4a   : > { %5418 = vmatpush.msra.mxu3 %v590_v20  ;;  %v584_v27 = vld [vmem:[%s525_s27] sm:$0xff]  ;;  %v585_v28 = vld [vmem:[%s525_s27 + $0x8] sm:$0xff]  ;;  %s10383_s0 = sadd.s32 4294967295, %s5746_s21   ;;  %s4882_s23 = sshll.u32 %s9430_s16, 4  ;;  %s4883_s23 = int_to_ptr.vmem [resolvable:$true] %s4882_s23 }
  0x4b   : > { %v667_v16 = vld [vmem:[%s9765_s3 + $0x18] sm:$0xff]  ;;  %v666_v17 = vld [vmem:[%s9765_s3 + $0x10] sm:$0xff]  ;;  %v665_v19 = vld [vmem:[%s9765_s3 + $0x8] sm:$0xff]  ;;  %1254 = vmatpush.msra.mxu0 %v588_v22  ;;  %1463 = vmatpush.msra.mxu1 %v589_v23  ;;  %s5417_s17 = sshll.u32 %s10383_s0, 4  ;;  %s4870_s0 = scalar_lea.sflag [#allocation5], %s5903_s22 }
  0x4c   : > { %745 = vperm.xlu0 %5469, %v667_v16   ;;  %740 = vperm.xlu1 %5470, %v666_v17   ;;  %v699_v26 = vld [vmem:[%s9765_s3 + $0x118] sm:$0xff]  ;;  %v600_v29 = vld [vmem:[%s9766_s2] sm:$0xff]  ;;  %v698_v30 = vld [vmem:[%s9765_s3 + $0x110] sm:$0xff]  ;;  %s4881_s27 = scalar_lea.hbm %s9599_s15, %s5417_s17  ;;  %s5704_s1 = scalar_lea.hbm %s9599_s15, 512 }
  0x4d   : > { %735 = vperm.xlu2 %5471, %v665_v19   ;;  %5419 = vmatpush.msra.mxu3 %v588_v22  ;;  %v697_v31 = vld [vmem:[%s9765_s3 + $0x108] sm:$0xff]  ;;  %v664_v32 = vld [vmem:[%s9765_s3] sm:$0xff]  ;;  %v695_v35 = vld [vmem:[%s9765_s3 + $0xf8] sm:$0xff] }
  0x4e   : > { %1255 = vmatpush.msra.mxu0 %v586_v24  ;;  %1464 = vmatpush.msra.mxu1 %v587_v25  ;;  %v601_v33 = vld [vmem:[%s9766_s2 + $0x8] sm:$0xff]  ;;  %v696_v34 = vld [vmem:[%s9765_s3 + $0x100] sm:$0xff]  ;;  %v694_v36 = vld [vmem:[%s9765_s3 + $0xf0] sm:$0xff] }
  0x4f   : > { %5420 = vmatpush.msra.mxu3 %v586_v24  ;;  %v602_v37 = vld [vmem:[%s9766_s2 + $0x10] sm:$0xff]  ;;  %v693_v38 = vld [vmem:[%s9765_s3 + $0xe8] sm:$0xff]  ;;  %v692_v39 = vld [vmem:[%s9765_s3 + $0xe0] sm:$0xff] }
  0x50   : > { %1256 = vmatpush.msra.mxu0 %v584_v27  ;;  %1465 = vmatpush.msra.mxu1 %v585_v28  ;;  %v691_v40 = vld [vmem:[%s9765_s3 + $0xd8] sm:$0xff]  ;;  %v690_v42 = vld [vmem:[%s9765_s3 + $0xd0] sm:$0xff]  ;;  %v689_v43 = vld [vmem:[%s9765_s3 + $0xc8] sm:$0xff] }
  0x51   : > { %4984 = vmatmul.msk.f32.vlgmr.msra.gmra.mxu0 %vm1048_vm0, %v600_v29  ;;  %5048 = vmatmul.msk.f32.vlgmr.msra.gmra.mxu1 %vm1048_vm0, %v600_v29  ;;  %v603_v41 = vld [vmem:[%s9766_s2 + $0x18] sm:$0xff]  ;;  %v688_v44 = vld [vmem:[%s9765_s3 + $0xc0] sm:$0xff]  ;;  %v686_v48 = vld [vmem:[%s9765_s3 + $0xb0] sm:$0xff] }
  0x52   : > { %5421 = vmatpush.msra.mxu3 %v584_v27  ;;  %v604_v45 = vld [vmem:[%s9766_s2 + $0x20] sm:$0xff]  ;;  %v687_v46 = vld [vmem:[%s9765_s3 + $0xb8] sm:$0xff]  ;;  %v605_v49 = vld [vmem:[%s9766_s2 + $0x28] sm:$0xff] }
  0x53   : > { %v703_v47 = vld [vmem:[%s9765_s3 + $0x138] sm:$0xff]  ;;  %v702_v50 = vld [vmem:[%s9765_s3 + $0x130] sm:$0xff]  ;;  %v685_v51 = vld [vmem:[%s9765_s3 + $0xa8] sm:$0xff] }
  0x54   : > { %905 = vperm.xlu0 %5469, %v699_v26   ;;  %900 = vperm.xlu1 %5470, %v698_v30   ;;  %v701_v52 = vld [vmem:[%s9765_s3 + $0x128] sm:$0xff]  ;;  %v606_v53 = vld [vmem:[%s9766_s2 + $0x30] sm:$0xff]  ;;  %v684_v54 = vld [vmem:[%s9765_s3 + $0xa0] sm:$0xff] }
  0x55   : > { %895 = vperm.xlu2 %5471, %v697_v31   ;;  %5422 = vmatpush.msrb.mxu3 %v591_v21  ;;  %v700_v55 = vld [vmem:[%s9765_s3 + $0x120] sm:$0xff]  ;;  %v671_v56 = vld [vmem:[%s9765_s3 + $0x38] sm:$0xff]  ;;  %v670_v58 = vld [vmem:[%s9765_s3 + $0x30] sm:$0xff] }
  0x56   : > { %v607_v57 = vld [vmem:[%s9766_s2 + $0x38] sm:$0xff]  ;;  %v669_v59 = vld [vmem:[%s9765_s3 + $0x28] sm:$0xff]  ;;  %v668_v60 = vld [vmem:[%s9765_s3 + $0x20] sm:$0xff] }
  0x57   : > { %5423 = vmatpush.msrb.mxu3 %v589_v23  ;;  %v608_v61 = vld [vmem:[%s9766_s2 + $0x40] sm:$0xff]  ;;  %v675_v62 = vld [vmem:[%s9765_s3 + $0x58] sm:$0xff]  ;;  %v673_v63 = vld [vmem:[%s9765_s3 + $0x48] sm:$0xff] }
  0x58   : > { %v609_v0 = vld [vmem:[%s9766_s2 + $0x48] sm:$0xff]  ;;  %v672_v1 = vld [vmem:[%s9765_s3 + $0x40] sm:$0xff]  ;;  %v682_v2 = vld [vmem:[%s9765_s3 + $0x90] sm:$0xff] }
  0x59   : > { %5424 = vmatpush.msrb.mxu3 %v587_v25  ;;  %4985 = vmatmul.msk.f32.gmra.mxu0 %vm1048_vm0, %v601_v33  ;;  %v610_v3 = vld [vmem:[%s9766_s2 + $0x50] sm:$0xff]  ;;  %v681_v4 = vld [vmem:[%s9765_s3 + $0x88] sm:$0xff]  ;;  %v679_v6 = vld [vmem:[%s9765_s3 + $0x78] sm:$0xff] }
  0x5a   : > { %5049 = vmatmul.msk.f32.gmra.mxu1 %vm1048_vm0, %v601_v33  ;;  %v674_v5 = vld [vmem:[%s9765_s3 + $0x50] sm:$0xff]  ;;  %v611_v7 = vld [vmem:[%s9766_s2 + $0x58] sm:$0xff]  ;;  %v676_v10 = vld [vmem:[%s9765_s3 + $0x60] sm:$0xff] }
  0x5b   : > { %5425 = vmatpush.msrb.mxu3 %v585_v28  ;;  %v678_v8 = vld [vmem:[%s9765_s3 + $0x70] sm:$0xff]  ;;  %v683_v9 = vld [vmem:[%s9765_s3 + $0x98] sm:$0xff]  ;;  %v612_v11 = vld [vmem:[%s9766_s2 + $0x60] sm:$0xff] }
  0x5c   : > { %730 = vperm.xlu0 %5469, %v664_v32   ;;  %890 = vperm.xlu1 %5470, %v696_v34   ;;  %v680_v12 = vld [vmem:[%s9765_s3 + $0x80] sm:$0xff]  ;;  %v613_v13 = vld [vmem:[%s9766_s2 + $0x68] sm:$0xff]  ;;  %v614_v16 = vld [vmem:[%s9766_s2 + $0x70] sm:$0xff] }
  0x5d   : > { %885 = vperm.xlu2 %5471, %v695_v35   ;;  %v677_v15 = vld [vmem:[%s9765_s3 + $0x68] sm:$0xff]  ;;  %v615_v18 = vld [vmem:[%s9766_s2 + $0x78] sm:$0xff]  ;;  %v616_v21 = vld [vmem:[%s9766_s2 + $0x80] sm:$0xff] }
  0x5e   : > { %v617_v25 = vld [vmem:[%s9766_s2 + $0x88] sm:$0xff]  ;;  %v707_v28 = vld [vmem:[%s9765_s3 + $0x158] sm:$0xff]  ;;  %v618_v30 = vld [vmem:[%s9766_s2 + $0x90] sm:$0xff] }
  0x5f   : > { %v706_v32 = vld [vmem:[%s9765_s3 + $0x150] sm:$0xff] }
  0x60   : > { %v710_v34 = vld [vmem:[%s9765_s3 + $0x170] sm:$0xff] }
  0x61   : > { %4986 = vmatmul.msk.f32.gmra.mxu0 %vm1048_vm0, %v602_v37 }
  0x62   : > { %5050 = vmatmul.msk.f32.gmra.mxu1 %vm1048_vm0, %v602_v37 }
  0x64   : > { %880 = vperm.xlu0 %5469, %v694_v36   ;;  %875 = vperm.xlu1 %5470, %v693_v38   ;;  %v619_v36 = vld [vmem:[%s9766_s2 + $0x98] sm:$0xff]  ;;  %v705_v38 = vld [vmem:[%s9765_s3 + $0x148] sm:$0xff] }
  0x65   : > { %870 = vperm.xlu2 %5471, %v692_v39  }
  0x69   : > { %4987 = vmatmul.msk.f32.gmra.mxu0 %vm1048_vm0, %v603_v41 }
  0x6a   : > { %5051 = vmatmul.msk.f32.gmra.mxu1 %vm1048_vm0, %v603_v41 }
  0x6c   : > { %865 = vperm.xlu0 %5469, %v691_v40   ;;  %860 = vperm.xlu1 %5470, %v690_v42   ;;  %v709_v40 = vld [vmem:[%s9765_s3 + $0x168] sm:$0xff]  ;;  %v620_v42 = vld [vmem:[%s9766_s2 + $0xa0] sm:$0xff] }
  0x6d   : > { %855 = vperm.xlu2 %5471, %v689_v43  }
  0x71   : > { %4988 = vmatmul.msk.f32.gmra.mxu0 %vm1048_vm0, %v604_v45 }
  0x72   : > { %5052 = vmatmul.msk.f32.gmra.mxu1 %vm1048_vm0, %v604_v45 }
  0x74   : > { %850 = vperm.xlu0 %5469, %v688_v44   ;;  %845 = vperm.xlu1 %5470, %v687_v46   ;;  %v719_v44 = vld [vmem:[%s9765_s3 + $0x1b8] sm:$0xff]  ;;  %v704_v46 = vld [vmem:[%s9765_s3 + $0x140] sm:$0xff] }
  0x75   : > { %925 = vperm.xlu2 %5471, %v703_v47  }
  0x79   : > { %4989 = vmatmul.msk.f32.gmra.mxu0 %vm1048_vm0, %v605_v49 }
  0x7a   : > { %5053 = vmatmul.msk.f32.gmra.mxu1 %vm1048_vm0, %v605_v49 }
  0x7c   : > { %840 = vperm.xlu0 %5469, %v686_v48   ;;  %920 = vperm.xlu1 %5470, %v702_v50   ;;  %v621_v48 = vld [vmem:[%s9766_s2 + $0xa8] sm:$0xff] }
  0x7d   : > { %835 = vperm.xlu2 %5471, %v685_v51   ;;  %v713_v50 = vld [vmem:[%s9765_s3 + $0x188] sm:$0xff] }
  0x81   : > { %4990 = vmatmul.msk.f32.gmra.mxu0 %vm1048_vm0, %v606_v53 }
  0x82   : > { %5054 = vmatmul.msk.f32.gmra.mxu1 %vm1048_vm0, %v606_v53  ;;  %v711_v53 = vld [vmem:[%s9765_s3 + $0x178] sm:$0xff] }
  0x84   : > { %915 = vperm.xlu0 %5469, %v701_v52   ;;  %830 = vperm.xlu1 %5470, %v684_v54   ;;  %v718_v52 = vld [vmem:[%s9765_s3 + $0x1b0] sm:$0xff] }
  0x85   : > { %910 = vperm.xlu2 %5471, %v700_v55   ;;  %v622_v55 = vld [vmem:[%s9766_s2 + $0xb0] sm:$0xff] }
  0x89   : > { %4991 = vmatmul.msk.f32.gmra.mxu0 %vm1048_vm0, %v607_v57 }
  0x8a   : > { %5055 = vmatmul.msk.f32.gmra.mxu1 %vm1048_vm0, %v607_v57  ;;  %v712_v57 = vld [vmem:[%s9765_s3 + $0x180] sm:$0xff] }
  0x8c   : > { %765 = vperm.xlu0 %5469, %v671_v56   ;;  %760 = vperm.xlu1 %5470, %v670_v58  }
  0x8d   : > { %755 = vperm.xlu2 %5471, %v669_v59  }
  0x91   : > { %4992 = vmatmul.msk.f32.gmra.mxu0 %vm1048_vm0, %v608_v61 }
  0x92   : > { %5056 = vmatmul.msk.f32.gmra.mxu1 %vm1048_vm0, %v608_v61  ;;  %v715_v61 = vld [vmem:[%s9765_s3 + $0x198] sm:$0xff] }
  0x94   : > { %750 = vperm.xlu0 %5469, %v668_v60   ;;  %785 = vperm.xlu1 %5470, %v675_v62   ;;  %v717_v60 = vld [vmem:[%s9765_s3 + $0x1a8] sm:$0xff] }
  0x95   : > { %780 = vperm.xlu2 %5471, %v674_v5   ;;  %v721_v5 = vld [vmem:[%s9765_s3 + $0x1c8] sm:$0xff] }
  0x99   : > { %4993 = vmatmul.msk.f32.gmra.mxu0 %vm1048_vm0, %v609_v0 }
  0x9a   : > { %5057 = vmatmul.msk.f32.gmra.mxu1 %vm1048_vm0, %v609_v0 }
  0x9c   : > { %775 = vperm.xlu0 %5469, %v673_v63   ;;  %770 = vperm.xlu1 %5470, %v672_v1   ;;  %v623_v1 = vld [vmem:[%s9766_s2 + $0xb8] sm:$0xff] }
  0x9d   : > { %825 = vperm.xlu2 %5471, %v683_v9   ;;  %v624_v9 = vld [vmem:[%s9766_s2 + $0xc0] sm:$0xff] }
  0xa1   : > { %4994 = vmatmul.msk.f32.gmra.mxu0 %vm1048_vm0, %v610_v3 }
  0xa2   : > { %5058 = vmatmul.msk.f32.gmra.mxu1 %vm1048_vm0, %v610_v3 }
  0xa4   : > { %820 = vperm.xlu0 %5469, %v682_v2   ;;  %815 = vperm.xlu1 %5470, %v681_v4   ;;  %v716_v4 = vld [vmem:[%s9765_s3 + $0x1a0] sm:$0xff] }
  0xa5   : > { %810 = vperm.xlu2 %5471, %v680_v12  }
  0xa7   : > { %v6213_v58 = vpop.permute.xlu2 %735 }
  0xa9   : > { %4995 = vmatmul.msk.f32.gmra.mxu0 %vm1048_vm0, %v611_v7 }
  0xaa   : > { %5059 = vmatmul.msk.f32.gmra.mxu1 %vm1048_vm0, %v611_v7 }
  0xac   : > { %805 = vperm.xlu0 %5469, %v679_v6   ;;  %800 = vperm.xlu1 %5470, %v678_v8   ;;  %v714_v6 = vld [vmem:[%s9765_s3 + $0x190] sm:$0xff] }
  0xad   : > { %795 = vperm.xlu2 %5471, %v677_v15   ;;  %v708_v15 = vld [vmem:[%s9765_s3 + $0x160] sm:$0xff] }
  0xaf   : > { %v6247_v7 = vpop.permute.xlu2 %895 }
  0xb1   : > { %4996 = vmatmul.msk.f32.gmra.mxu0 %vm1048_vm0, %v612_v11 }
  0xb2   : > { %5060 = vmatmul.msk.f32.gmra.mxu1 %vm1048_vm0, %v612_v11  ;;  %v727_v11 = vld [vmem:[%s9765_s3 + $0x1f8] sm:$0xff] }
  0xb4   : > { %790 = vperm.xlu0 %5469, %v676_v10   ;;  %945 = vperm.xlu1 %5470, %v707_v28   ;;  %v4201_v28 = vld [vmem:[%s9591_s7 + $0x10] sm:$0xff] }
  0xb5   : > { %965 = vperm.xlu2 %5471, %v711_v53   ;;  %v663_v53 = vld [vmem:[%s9766_s2 + $0x1f8] sm:$0xff] }
  0xb6   : > { %5047 = vmatmul.msk.f32.vlgmr.msra.gmra.mxu3 %vm1048_vm0, %v663_v53 }
  0xb9   : > { %4997 = vmatmul.msk.f32.gmra.mxu0 %vm1048_vm0, %v613_v13 }
  0xba   : > { %5061 = vmatmul.msk.f32.gmra.mxu1 %vm1048_vm0, %v613_v13  ;;  %v4202_v13 = vld [vmem:[%s9591_s7 + $0x18] sm:$0xff] }
  0xbc   : > { %940 = vperm.xlu0 %5469, %v706_v32   ;;  %960 = vperm.xlu1 %5470, %v710_v34   ;;  %v723_v32 = vld [vmem:[%s9765_s3 + $0x1d8] sm:$0xff] }
  0xbd   : > { %985 = vperm.xlu2 %5471, %v715_v61  }
  0xbe   : > { %v6092_v14 = vpop.permute.xlu0 %745  ;;  %v6234_v3 = vpop.permute.xlu1 %740  ;;  %5111 = vmatmul.msk.f32.vlgmr.msrb.gmra.mxu3 %vm1048_vm0, %v663_v53 }
  0xc1   : > { %4998 = vmatmul.msk.f32.gmra.mxu0 %vm1048_vm0, %v614_v16 }
  0xc2   : > { %5062 = vmatmul.msk.f32.gmra.mxu1 %vm1048_vm0, %v614_v16  ;;  %v6269_v16 = vpop.permute.xlu2 %885 }
  0xc4   : > { %935 = vperm.xlu0 %5469, %v705_v38   ;;  %955 = vperm.xlu1 %5470, %v709_v40   ;;  %v626_v38 = vld [vmem:[%s9766_s2 + $0xd0] sm:$0xff] }
  0xc5   : > { %980 = vperm.xlu2 %5471, %v714_v6   ;;  %v4414_v6 = vld [vmem:[%s9595_s11 + $0x18] sm:$0xff] }
  0xc6   : > { %v6102_v17 = vpop.permute.xlu0 %905  ;;  %v6260_v12 = vpop.permute.xlu1 %900 }
  0xc9   : > { %4999 = vmatmul.msk.f32.gmra.mxu0 %vm1048_vm0, %v615_v18 }
  0xca   : > { %5063 = vmatmul.msk.f32.gmra.mxu1 %vm1048_vm0, %v615_v18  ;;  %v6296_v40 = vpop.permute.xlu2 %870 }
  0xcc   : > { %1005 = vperm.xlu0 %5469, %v719_v44   ;;  %930 = vperm.xlu1 %5470, %v704_v46   ;;  %v722_v44 = vld [vmem:[%s9765_s3 + $0x1d0] sm:$0xff] }
  0xcd   : > { %950 = vperm.xlu2 %5471, %v708_v15  }
  0xce   : > { %v6109_v19 = vpop.permute.xlu0 %730  ;;  %v6111_v20 = vpop.f32.mrf.mxu0 }
  0xcf   : > { %v6116_v22 = vpop.f32.mrf.mxu1  ;;  %v6289_v34 = vpop.permute.xlu1 %890 }
  0xd1   : > { %5000 = vmatmul.msk.f32.gmra.mxu0 %vm1048_vm0, %v616_v21 }
  0xd2   : > { %5064 = vmatmul.msk.f32.gmra.mxu1 %vm1048_vm0, %v616_v21  ;;  %v625_v21 = vld [vmem:[%s9766_s2 + $0xc8] sm:$0xff] }
  0xd4   : > { %975 = vperm.xlu0 %5469, %v713_v50   ;;  %1000 = vperm.xlu1 %5470, %v718_v52   ;;  %v627_v50 = vld [vmem:[%s9766_s2 + $0xd8] sm:$0xff] }
  0xd5   : > { %1025 = vperm.xlu2 %5471, %v723_v32  }
  0xd6   : > { %v6120_v23 = vpop.permute.xlu0 %880  ;;  %v6122_v24 = vpop.f32.mrf.mxu0 }
  0xd7   : > { %v6127_v26 = vpop.f32.mrf.mxu1  ;;  %v6311_v46 = vpop.permute.xlu1 %875 }
  0xd9   : > { %5001 = vmatmul.msk.f32.gmra.mxu0 %vm1048_vm0, %v617_v25 }
  0xda   : > { %5065 = vmatmul.msk.f32.gmra.mxu1 %vm1048_vm0, %v617_v25 }
  0xdc   : > { %970 = vperm.xlu0 %5469, %v712_v57   ;;  %995 = vperm.xlu1 %5470, %v717_v60   ;;  %v6327_v57 = vpop.permute.xlu2 %855  ;;  %v720_v60 = vld [vmem:[%s9765_s3 + $0x1c0] sm:$0xff] }
  0xdd   : > { %1020 = vperm.xlu2 %5471, %v722_v44  }
  0xde   : > { %v6131_v27 = vpop.permute.xlu0 %865  ;;  %v6136_v29 = vpop.f32.mrf.mxu0 }
  0xdf   : > { %v6141_v31 = vpop.f32.mrf.mxu1 }
  0xe1   : > { %5002 = vmatmul.msk.f32.gmra.mxu0 %vm1048_vm0, %v618_v30 }
  0xe2   : > { %5066 = vmatmul.msk.f32.gmra.mxu1 %vm1048_vm0, %v618_v30  ;;  %v725_v30 = vld [vmem:[%s9765_s3 + $0x1e8] sm:$0xff] }
  0xe4   : > { %990 = vperm.xlu0 %5469, %v716_v4   ;;  %1015 = vperm.xlu1 %5470, %v721_v5   ;;  %v6344_v5 = vpop.permute.xlu1 %860 }
  0xe5   : > { %1010 = vperm.xlu2 %5471, %v720_v60   ;;  %v4308_v60 = vld [vmem:[%s9593_s9 + $0x18] sm:$0xff] }
  0xe6   : > { %v6148_v33 = vpop.permute.xlu0 %850  ;;  %v6153_v35 = vpop.f32.mrf.mxu0 }
  0xe7   : > { %v6158_v37 = vpop.f32.mrf.mxu1 }
  0xe9   : > { %5003 = vmatmul.msk.f32.gmra.mxu0 %vm1048_vm0, %v619_v36 }
  0xea   : > { %5067 = vmatmul.msk.f32.gmra.mxu1 %vm1048_vm0, %v619_v36 }
  0xec   : > { %1045 = vperm.xlu0 %5469, %v727_v11   ;;  %4220 = vperm.xlu1 %5470, %v4202_v13   ;;  %v726_v11 = vld [vmem:[%s9765_s3 + $0x1f0] sm:$0xff]  ;;  %v6358_v13 = vpop.permute.xlu2 %925  ;;  %v6371_v32 = vpop.permute.xlu1 %845 }
  0xed   : > { %9770 = vst [vmem:[#allocation11_spill] sm:$0xff] %v6358_v13  ;;  %1040 = vperm.xlu2 %5471, %v726_v11  }
  0xee   : > { %v6165_v39 = vpop.permute.xlu0 %840  ;;  %v1270_v41 = vpop.f32.mrf.mxu0 }
  0xef   : > { %v1479_v43 = vpop.f32.mrf.mxu1 }
  0xf1   : > { %5004 = vmatmul.msk.f32.gmra.mxu0 %vm1048_vm0, %v620_v42 }
  0xf2   : > { %5068 = vmatmul.msk.f32.gmra.mxu1 %vm1048_vm0, %v620_v42  ;;  %v724_v42 = vld [vmem:[%s9765_s3 + $0x1e0] sm:$0xff] }
  0xf4   : > { %4215 = vperm.xlu0 %5469, %v4201_v28   ;;  %1035 = vperm.xlu1 %5470, %v725_v30   ;;  %v4411_v30 = vld [vmem:[%s9595_s11] sm:$0xff] }
  0xf6   : > { %v6178_v45 = vpop.permute.xlu0 %915  ;;  %v6183_v47 = vpop.f32.mrf.mxu0 }
  0xf7   : > { %9767 = vst [vmem:[#allocation8_spill] sm:$0xff] %v6178_v45  ;;  %v6188_v49 = vpop.f32.mrf.mxu1 }
  0xf9   : > { %5005 = vmatmul.msk.f32.gmra.mxu0 %vm1048_vm0, %v621_v48 }
  0xfa   : > { %5069 = vmatmul.msk.f32.gmra.mxu1 %vm1048_vm0, %v621_v48 }
  0xfc   : > { %1030 = vperm.xlu0 %5469, %v724_v42   ;;  %v4200_v42 = vld [vmem:[%s9591_s7 + $0x8] sm:$0xff] }
  0xfd   : > { %4210 = vperm.xlu2 %5471, %v4200_v42  }
  0xfe   : > { %v6195_v51 = vpop.permute.xlu0 %765  ;;  %v6203_v54 = vpop.f32.mrf.mxu0 }
  0xff   : > { %v6208_v56 = vpop.f32.mrf.mxu1 }
 0x101   : > { %5006 = vmatmul.msk.f32.gmra.mxu0 %vm1048_vm0, %v622_v55 }
 0x102   : > { %5070 = vmatmul.msk.f32.gmra.mxu1 %vm1048_vm0, %v622_v55  ;;  %v4307_v55 = vld [vmem:[%s9593_s9 + $0x10] sm:$0xff] }
 0x104   : > { %4321 = vperm.xlu0 %5469, %v4307_v55   ;;  %v4663_v55 = vld [vmem:[%s9598_s14 + $0x10] sm:$0xff] }
 0x105   : > { %4326 = vperm.xlu2 %5471, %v4308_v60  }
 0x106   : > { %v751_v59 = vpop.permute.xlu0 %750  ;;  %v6227_v0 = vpop.f32.mrf.mxu0 }
 0x107   : > { %v6223_v62 = vadd.f32 %v1270_v41, %v751_v59  ;;  %v6225_v63 = vadd.f32 %v1479_v43, %v751_v59  ;;  %v6232_v2 = vpop.f32.mrf.mxu1  ;;  %v4199_v43 = vld [vmem:[%s9591_s7] sm:$0xff]  ;;  %v4306_v59 = vld [vmem:[%s9593_s9 + $0x8] sm:$0xff] }
 0x108   : > { %4205 = vperm.xlu1 %5470, %v4199_v43   ;;  %v6380_v43 = vpop.permute.xlu2 %835 }
 0x109   : > { %5007 = vmatmul.msk.f32.gmra.mxu0 %vm1048_vm0, %v623_v1 }
 0x10a   : > { %5071 = vmatmul.msk.f32.gmra.mxu1 %vm1048_vm0, %v623_v1  ;;  %v628_v1 = vld [vmem:[%s9766_s2 + $0xe0] sm:$0xff] }
 0x10c   : > { %4432 = vperm.xlu0 %5469, %v4414_v6  }
 0x10e   : > { %v6249_v8 = vpop.f32.mrf.mxu0  ;;  %v6423_v60 = vpop.permute.xlu0 %775 }
 0x10f   : > { %v6254_v10 = vpop.f32.mrf.mxu1 }
 0x110   : > { %9768 = vst [vmem:[#allocation9_spill] sm:$0xff] %v6254_v10  ;;  %4316 = vperm.xlu1 %5470, %v4306_v59   ;;  %v4664_v59 = vld [vmem:[%s9598_s14 + $0x18] sm:$0xff]  ;;  %v6407_v11 = vpop.permute.xlu2 %910 }
 0x111   : > { %5008 = vmatmul.msk.f32.gmra.mxu0 %vm1048_vm0, %v624_v9  ;;  %9775 = vst [vmem:[#allocation16_spill] sm:$0xff] %v6407_v11 }
 0x112   : > { %5072 = vmatmul.msk.f32.gmra.mxu1 %vm1048_vm0, %v624_v9  ;;  %v4413_v9 = vld [vmem:[%s9595_s11 + $0x10] sm:$0xff] }
 0x114   : > { %4417 = vperm.xlu0 %5469, %v4411_v30   ;;  %v4305_v30 = vld [vmem:[%s9593_s9] sm:$0xff] }
 0x115   : > { %4311 = vperm.xlu2 %5471, %v4305_v30  }
 0x116   : > { %v6271_v18 = vpop.f32.mrf.mxu0 }
 0x117   : > { %v6276_v25 = vpop.f32.mrf.mxu1 }
 0x118   : > { %4427 = vperm.xlu1 %5470, %v4413_v9   ;;  %v631_v9 = vld [vmem:[%s9766_s2 + $0xf8] sm:$0xff] }
 0x119   : > { %5009 = vmatmul.msk.f32.gmra.mxu0 %vm1048_vm0, %v625_v21 }
 0x11a   : > { %5073 = vmatmul.msk.f32.gmra.mxu1 %vm1048_vm0, %v625_v21  ;;  %v629_v21 = vld [vmem:[%s9766_s2 + $0xe8] sm:$0xff] }
 0x11c   : > { %4677 = vperm.xlu0 %5469, %v4663_v55  }
 0x11e   : > { %v6291_v36 = vpop.f32.mrf.mxu0 }
 0x11f   : > { %v6298_v41 = vpop.f32.mrf.mxu1 }
 0x121   : > { %5010 = vmatmul.msk.f32.gmra.mxu0 %vm1048_vm0, %v626_v38 }
 0x122   : > { %5074 = vmatmul.msk.f32.gmra.mxu1 %vm1048_vm0, %v626_v38  ;;  %v4661_v38 = vld [vmem:[%s9598_s14] sm:$0xff] }
 0x123   : > { %4667 = vperm.xlu1 %5470, %v4661_v38  }
 0x126   : > { %v6313_v48 = vpop.f32.mrf.mxu0 }
 0x127   : > { %v6318_v52 = vpop.f32.mrf.mxu1 }
 0x129   : > { %5011 = vmatmul.msk.f32.gmra.mxu0 %vm1048_vm0, %v627_v50 }
 0x12a   : > { %5075 = vmatmul.msk.f32.gmra.mxu1 %vm1048_vm0, %v627_v50  ;;  %v630_v50 = vld [vmem:[%s9766_s2 + $0xf0] sm:$0xff] }
 0x12b   : > { %4682 = vperm.xlu1 %5470, %v4664_v59   ;;  %v756_v59 = vpop.permute.xlu2 %755 }
 0x12e   : > { %v6337_v61 = vpop.f32.mrf.mxu0 }
 0x12f   : > { %9769 = vst [vmem:[#allocation10_spill] sm:$0xff] %v6337_v61  ;;  %v6342_v4 = vpop.f32.mrf.mxu1 }
 0x131   : > { %5012 = vmatmul.msk.f32.gmra.mxu0 %vm1048_vm0, %v628_v1 }
 0x132   : > { %5076 = vmatmul.msk.f32.gmra.mxu1 %vm1048_vm0, %v628_v1  ;;  %v6400_v1 = vpop.permute.xlu1 %920 }
 0x133   : > { %9773 = vst [vmem:[#allocation14_spill] sm:$0xff] %v6400_v1 }
 0x136   : > { %v6360_v15 = vpop.f32.mrf.mxu0 }
 0x137   : > { %9771 = vst [vmem:[#allocation12_spill] sm:$0xff] %v6360_v15  ;;  %v6365_v28 = vpop.f32.mrf.mxu1  ;;  %v6437_v15 = vpop.permute.xlu2 %780 }
 0x139   : > { %5013 = vmatmul.msk.f32.gmra.mxu0 %vm1048_vm0, %v629_v21 }
 0x13a   : > { %5077 = vmatmul.msk.f32.gmra.mxu1 %vm1048_vm0, %v629_v21  ;;  %v831_v38 = vpop.permute.xlu1 %830 }
 0x13e   : > { %v6382_v44 = vpop.f32.mrf.mxu0 }
 0x13f   : > { %9772 = vst [vmem:[#allocation13_spill] sm:$0xff] %v6382_v44  ;;  %v6387_v53 = vpop.f32.mrf.mxu1 }
 0x141   : > { %5014 = vmatmul.msk.f32.gmra.mxu0 %vm1048_vm0, %v630_v50 }
 0x142   : > { %5078 = vmatmul.msk.f32.gmra.mxu1 %vm1048_vm0, %v630_v50  ;;  %v632_v50 = vld [vmem:[%s9766_s2 + $0x100] sm:$0xff] }
 0x146   : > { %v6402_v6 = vpop.f32.mrf.mxu0 }
 0x147   : > { %9774 = vst [vmem:[#allocation15_spill] sm:$0xff] %v6402_v6  ;;  %v6409_v21 = vpop.f32.mrf.mxu1 }
 0x149   : > { %5015 = vmatmul.msk.f32.gmra.mxu0 %vm1048_vm0, %v631_v9 }
 0x14a   : > { %5079 = vmatmul.msk.f32.gmra.mxu1 %vm1048_vm0, %v631_v9  ;;  %v4412_v9 = vld [vmem:[%s9595_s11 + $0x8] sm:$0xff] }
 0x14b   : > { %4422 = vperm.xlu2 %5471, %v4412_v9   ;;  %v6444_v9 = vpop.permute.xlu0 %820 }
 0x14c   : > { %9780 = vst [vmem:[#allocation21_spill] sm:$0xff] %v6444_v9 }
 0x14e   : > { %v6416_v42 = vpop.f32.mrf.mxu0 }
 0x14f   : > { %9776 = vst [vmem:[#allocation17_spill] sm:$0xff] %v6416_v42  ;;  %v6421_v55 = vpop.f32.mrf.mxu1  ;;  %v633_v42 = vld [vmem:[%s9766_s2 + $0x108] sm:$0xff] }
 0x150   : > { %9777 = vst [vmem:[#allocation18_spill] sm:$0xff] %v6421_v55  ;;  %v761_v55 = vpop.permute.xlu1 %760 }
 0x151   : > { %5016 = vmatmul.msk.f32.gmra.mxu0 %vm1048_vm0, %v632_v50 }
 0x152   : > { %5080 = vmatmul.msk.f32.gmra.mxu1 %vm1048_vm0, %v632_v50  ;;  %v4662_v50 = vld [vmem:[%s9598_s14 + $0x8] sm:$0xff] }
 0x153   : > { %4672 = vperm.xlu2 %5471, %v4662_v50   ;;  %v6459_v44 = vpop.permute.xlu0 %805  ;;  %v635_v50 = vld [vmem:[%s9766_s2 + $0x118] sm:$0xff] }
 0x154   : > { %9784 = vst [vmem:[#allocation25_spill] sm:$0xff] %v6459_v44 }
 0x156   : > { %v6430_v30 = vpop.f32.mrf.mxu0 }
 0x157   : > { %9778 = vst [vmem:[#allocation19_spill] sm:$0xff] %v6430_v30  ;;  %v6435_v61 = vpop.f32.mrf.mxu1 }
 0x158   : > { %9779 = vst [vmem:[#allocation20_spill] sm:$0xff] %v6435_v61  ;;  %v634_v61 = vld [vmem:[%s9766_s2 + $0x110] sm:$0xff]  ;;  %v6454_v6 = vpop.permute.xlu1 %785 }
 0x159   : > { %5017 = vmatmul.msk.f32.gmra.mxu0 %vm1048_vm0, %v633_v42 }
 0x15a   : > { %5081 = vmatmul.msk.f32.gmra.mxu1 %vm1048_vm0, %v633_v42  ;;  %v6457_v42 = vpop.permute.xlu2 %825 }
 0x15b   : > { %9783 = vst [vmem:[#allocation24_spill] sm:$0xff] %v6457_v42  ;;  %v636_v42 = vld [vmem:[%s9766_s2 + $0x120] sm:$0xff]  ;;  %v6481_v45 = vpop.permute.xlu0 %790 }
 0x15c   : > { %9788 = vst [vmem:[#allocation29_spill] sm:$0xff] %v6481_v45 }
 0x15e   : > { %v6446_v30 = vpop.f32.mrf.mxu0 }
 0x15f   : > { %9781 = vst [vmem:[#allocation22_spill] sm:$0xff] %v6446_v30  ;;  %v6451_v13 = vpop.f32.mrf.mxu1 }
 0x160   : > { %9782 = vst [vmem:[#allocation23_spill] sm:$0xff] %v6451_v13  ;;  %v6470_v13 = vpop.permute.xlu1 %770 }
 0x161   : > { %5018 = vmatmul.msk.f32.gmra.mxu0 %vm1048_vm0, %v634_v61 }
 0x162   : > { %5082 = vmatmul.msk.f32.gmra.mxu1 %vm1048_vm0, %v634_v61  ;;  %v6472_v1 = vpop.permute.xlu2 %810 }
 0x163   : > { %9787 = vst [vmem:[#allocation28_spill] sm:$0xff] %v6472_v1 }
 0x166   : > { %v6461_v9 = vpop.f32.mrf.mxu0 }
 0x167   : > { %9785 = vst [vmem:[#allocation26_spill] sm:$0xff] %v6461_v9  ;;  %v6466_v30 = vpop.f32.mrf.mxu1  ;;  %v6479_v9 = vadd.f32 %v6249_v8, %v6470_v13 }
 0x168   : > { %9786 = vst [vmem:[#allocation27_spill] sm:$0xff] %v6466_v30 }
 0x169   : > { %5019 = vmatmul.msk.f32.gmra.mxu0 %vm1048_vm0, %v635_v50 }
 0x16a   : > { %5083 = vmatmul.msk.f32.gmra.mxu1 %vm1048_vm0, %v635_v50  ;;  %v6487_v50 = vadd.f32 %v6342_v4, %v6481_v45  ;;  %v6515_v45 = vadd.f32 %v6183_v47, %v756_v59 }
 0x16e   : > { %v1318_v61 = vpop.f32.mrf.mxu0 }
 0x16f   : > { %v6483_v30 = vadd.f32 %v1318_v61, %v831_v38  ;;  %v1527_v11 = vpop.f32.mrf.mxu1 }
 0x170   : > { %v6489_v10 = vadd.f32 %v1527_v11, %v831_v38  ;;  %v6509_v11 = vpop.permute.xlu1 %815 }
 0x171   : > { %9789 = vst [vmem:[#allocation30_spill] sm:$0xff] %v6483_v30  ;;  %5020 = vmatmul.msk.f32.gmra.mxu0 %vm1048_vm0, %v636_v42  ;;  %v6494_v1 = vmul.f32 %v6483_v30, %v6223_v62  ;;  %v6498_v8 = vmul.f32 %v6483_v30, %v6479_v9 }
 0x172   : > { %9790 = vst [vmem:[#allocation31_spill] sm:$0xff] %v6489_v10  ;;  %5084 = vmatmul.msk.f32.gmra.mxu1 %vm1048_vm0, %v636_v42  ;;  %v6503_v61 = vmul.f32 %v6489_v10, %v6487_v50  ;;  %v6507_v4 = vmul.f32 %v6489_v10, %v6225_v63  ;;  %v6519_v42 = vadd.f32 %v6271_v18, %v6423_v60 }
 0x173   : > { %9791 = vst [vmem:[#allocation32_spill] sm:$0xff] %v6494_v1  ;;  %v637_v1 = vld [vmem:[%s9766_s2 + $0x128] sm:$0xff] }
 0x174   : > { %9792 = vst [vmem:[#allocation33_spill] sm:$0xff] %v6498_v8  ;;  %v6521_v8 = vpop.permute.xlu2 %795 }
 0x175   : > { %9793 = vst [vmem:[#allocation34_spill] sm:$0xff] %v6503_v61  ;;  %v6531_v10 = vadd.f32 %v6365_v28, %v6521_v8 }
 0x176   : > { %9794 = vst [vmem:[#allocation35_spill] sm:$0xff] %v6507_v4  ;;  %v1321_v38 = vpop.f32.mrf.mxu0 }
 0x177   : > { %9795 = vst [vmem:[#allocation36_spill] sm:$0xff] %v6509_v11  ;;  %v6524_v61 = vadd.f32 %v1321_v38, %v6380_v43  ;;  %v1530_v4 = vpop.f32.mrf.mxu1  ;;  %v6527_v11 = vadd.f32 %v6188_v49, %v756_v59  ;;  %v638_v59 = vld [vmem:[%s9766_s2 + $0x130] sm:$0xff] }
 0x178   : > { %9796 = vst [vmem:[#allocation37_spill] sm:$0xff] %v6521_v8  ;;  %v6534_v47 = vadd.f32 %v1530_v4, %v6380_v43  ;;  %v6558_v4 = vadd.f32 %v6203_v54, %v761_v55 }
 0x179   : > { %9797 = vst [vmem:[#allocation38_spill] sm:$0xff] %v6524_v61  ;;  %5021 = vmatmul.msk.f32.gmra.mxu0 %vm1048_vm0, %v637_v1  ;;  %v6539_v18 = vmul.f32 %v6524_v61, %v6515_v45  ;;  %v6543_v38 = vmul.f32 %v6524_v61, %v6519_v42 }
 0x17a   : > { %9798 = vst [vmem:[#allocation39_spill] sm:$0xff] %v6534_v47  ;;  %5085 = vmatmul.msk.f32.gmra.mxu1 %vm1048_vm0, %v637_v1  ;;  %v6548_v49 = vmul.f32 %v6534_v47, %v6531_v10  ;;  %v6552_v28 = vmul.f32 %v6534_v47, %v6527_v11  ;;  %v6564_v1 = vpop.permute.xlu1 %800 }
 0x17b   : > { %9799 = vst [vmem:[#allocation40_spill] sm:$0xff] %v6539_v18  ;;  %v6574_v8 = vadd.f32 %v6387_v53, %v6564_v1 }
 0x17c   : > { %9800 = vst [vmem:[#allocation41_spill] sm:$0xff] %v6543_v38  ;;  %v6562_v38 = vadd.f32 %v6291_v36, %v6437_v15 }
 0x17d   : > { %9801 = vst [vmem:[#allocation42_spill] sm:$0xff] %v6548_v49 }
 0x17e   : > { %9802 = vst [vmem:[#allocation43_spill] sm:$0xff] %v6552_v28  ;;  %v1324_v43 = vpop.f32.mrf.mxu0  ;;  %v6570_v28 = vadd.f32 %v6208_v56, %v761_v55  ;;  %v639_v55 = vld [vmem:[%s9766_s2 + $0x138] sm:$0xff] }
 0x17f   : > { %9803 = vst [vmem:[#allocation44_spill] sm:$0xff] %v6564_v1  ;;  %v6567_v18 = vadd.f32 %v1324_v43, %v6165_v39  ;;  %v1533_v49 = vpop.f32.mrf.mxu1 }
 0x180   : > { %v6577_v54 = vadd.f32 %v1533_v49, %v6165_v39  ;;  %v6602_v49 = vadd.f32 %v6227_v0, %v6195_v51 }
 0x181   : > { %9804 = vst [vmem:[#allocation45_spill] sm:$0xff] %v6567_v18  ;;  %5022 = vmatmul.msk.f32.gmra.mxu0 %vm1048_vm0, %v638_v59  ;;  %v6582_v36 = vmul.f32 %v6567_v18, %v6558_v4  ;;  %v6586_v43 = vmul.f32 %v6567_v18, %v6562_v38 }
 0x182   : > { %9805 = vst [vmem:[#allocation46_spill] sm:$0xff] %v6577_v54  ;;  %5086 = vmatmul.msk.f32.gmra.mxu1 %vm1048_vm0, %v638_v59  ;;  %v6591_v56 = vmul.f32 %v6577_v54, %v6574_v8  ;;  %v6595_v39 = vmul.f32 %v6577_v54, %v6570_v28  ;;  %v6606_v59 = vadd.f32 %v6313_v48, %v6454_v6 }
 0x183   : > { %9806 = vst [vmem:[#allocation47_spill] sm:$0xff] %v6582_v36 }
 0x184   : > { %9807 = vst [vmem:[#allocation48_spill] sm:$0xff] %v6586_v43 }
 0x185   : > { %9808 = vst [vmem:[#allocation49_spill] sm:$0xff] %v6591_v56  ;;  %v6617_v56 = vadd.f32 %v6409_v21, %v6459_v44  ;;  %v640_v21 = vld [vmem:[%s9766_s2 + $0x140] sm:$0xff] }
 0x186   : > { %9809 = vst [vmem:[#allocation50_spill] sm:$0xff] %v6595_v39  ;;  %v1327_v53 = vpop.f32.mrf.mxu0  ;;  %v6613_v39 = vadd.f32 %v6232_v2, %v6195_v51 }
 0x187   : > { %v6609_v43 = vadd.f32 %v1327_v53, %v6371_v32  ;;  %v1536_v36 = vpop.f32.mrf.mxu1 }
 0x188   : > { %v6620_v30 = vadd.f32 %v1536_v36, %v6371_v32 }
 0x189   : > { %9810 = vst [vmem:[#allocation51_spill] sm:$0xff] %v6609_v43  ;;  %5023 = vmatmul.msk.f32.gmra.mxu0 %vm1048_vm0, %v639_v55  ;;  %v6625_v0 = vmul.f32 %v6609_v43, %v6602_v49  ;;  %v6629_v48 = vmul.f32 %v6609_v43, %v6606_v59 }
 0x18a   : > { %9811 = vst [vmem:[#allocation52_spill] sm:$0xff] %v6620_v30  ;;  %5087 = vmatmul.msk.f32.gmra.mxu1 %vm1048_vm0, %v639_v55  ;;  %v6634_v51 = vmul.f32 %v6620_v30, %v6617_v56  ;;  %v6638_v2 = vmul.f32 %v6620_v30, %v6613_v39 }
 0x18b   : > { %9812 = vst [vmem:[#allocation53_spill] sm:$0xff] %v6625_v0  ;;  %v641_v0 = vld [vmem:[%s9766_s2 + $0x148] sm:$0xff] }
 0x18c   : > { %9813 = vst [vmem:[#allocation54_spill] sm:$0xff] %v6629_v48 }
 0x18d   : > { %9814 = vst [vmem:[#allocation55_spill] sm:$0xff] %v6634_v51 }
 0x18e   : > { %9815 = vst [vmem:[#allocation56_spill] sm:$0xff] %v6638_v2  ;;  %v1330_v32 = vpop.f32.mrf.mxu0 }
 0x18f   : > { %v6644_v36 = vadd.f32 %v1330_v32, %v6148_v33  ;;  %v1539_v53 = vpop.f32.mrf.mxu1 }
 0x190   : > { %v6647_v48 = vadd.f32 %v1539_v53, %v6148_v33 }
 0x191   : > { %9816 = vst [vmem:[#allocation57_spill] sm:$0xff] %v6644_v36  ;;  %5024 = vmatmul.msk.f32.gmra.mxu0 %vm1048_vm0, %v640_v21  ;;  %v6652_v55 = vmul.f32 %v6644_v36, %v6223_v62  ;;  %v6656_v2 = vmul.f32 %v6644_v36, %v6479_v9 }
 0x192   : > { %9817 = vst [vmem:[#allocation58_spill] sm:$0xff] %v6647_v48  ;;  %5088 = vmatmul.msk.f32.gmra.mxu1 %vm1048_vm0, %v640_v21  ;;  %v6661_v32 = vmul.f32 %v6647_v48, %v6487_v50  ;;  %v6665_v33 = vmul.f32 %v6647_v48, %v6225_v63 }
 0x193   : > { %9818 = vst [vmem:[#allocation59_spill] sm:$0xff] %v6652_v55 }
 0x194   : > { %9819 = vst [vmem:[#allocation60_spill] sm:$0xff] %v6656_v2 }
 0x195   : > { %9820 = vst [vmem:[#allocation61_spill] sm:$0xff] %v6661_v32  ;;  %v642_v32 = vld [vmem:[%s9766_s2 + $0x150] sm:$0xff] }
 0x196   : > { %9821 = vst [vmem:[#allocation62_spill] sm:$0xff] %v6665_v33  ;;  %v1333_v53 = vpop.f32.mrf.mxu0 }
 0x197   : > { %v6671_v55 = vadd.f32 %v1333_v53, %v6327_v57  ;;  %v1542_v51 = vpop.f32.mrf.mxu1 }
 0x198   : > { %v6674_v2 = vadd.f32 %v1542_v51, %v6327_v57 }
 0x199   : > { %9822 = vst [vmem:[#allocation63_spill] sm:$0xff] %v6671_v55  ;;  %5025 = vmatmul.msk.f32.gmra.mxu0 %vm1048_vm0, %v641_v0  ;;  %v6679_v21 = vmul.f32 %v6671_v55, %v6515_v45  ;;  %v6683_v33 = vmul.f32 %v6671_v55, %v6519_v42 }
 0x19a   : > { %9823 = vst [vmem:[#allocation64_spill] sm:$0xff] %v6674_v2  ;;  %5089 = vmatmul.msk.f32.gmra.mxu1 %vm1048_vm0, %v641_v0  ;;  %v6688_v53 = vmul.f32 %v6674_v2, %v6531_v10  ;;  %v6692_v57 = vmul.f32 %v6674_v2, %v6527_v11 }
 0x19b   : > { %9824 = vst [vmem:[#allocation65_spill] sm:$0xff] %v6679_v21 }
 0x19c   : > { %9825 = vst [vmem:[#allocation66_spill] sm:$0xff] %v6683_v33 }
 0x19d   : > { %9826 = vst [vmem:[#allocation67_spill] sm:$0xff] %v6688_v53  ;;  %v643_v53 = vld [vmem:[%s9766_s2 + $0x158] sm:$0xff] }
 0x19e   : > { %9827 = vst [vmem:[#allocation68_spill] sm:$0xff] %v6692_v57  ;;  %v1336_v51 = vpop.f32.mrf.mxu0 }
 0x19f   : > { %v6698_v21 = vadd.f32 %v1336_v51, %v6344_v5  ;;  %v1545_v44 = vpop.f32.mrf.mxu1 }
 0x1a0   : > { %v6701_v33 = vadd.f32 %v1545_v44, %v6344_v5 }
 0x1a1   : > { %9828 = vst [vmem:[#allocation69_spill] sm:$0xff] %v6698_v21  ;;  %5026 = vmatmul.msk.f32.gmra.mxu0 %vm1048_vm0, %v642_v32  ;;  %v6706_v0 = vmul.f32 %v6698_v21, %v6558_v4  ;;  %v6710_v57 = vmul.f32 %v6698_v21, %v6562_v38 }
 0x1a2   : > { %9829 = vst [vmem:[#allocation70_spill] sm:$0xff] %v6701_v33  ;;  %5090 = vmatmul.msk.f32.gmra.mxu1 %vm1048_vm0, %v642_v32  ;;  %v6715_v51 = vmul.f32 %v6701_v33, %v6574_v8  ;;  %v6719_v5 = vmul.f32 %v6701_v33, %v6570_v28 }
 0x1a3   : > { %9830 = vst [vmem:[#allocation71_spill] sm:$0xff] %v6706_v0 }
 0x1a4   : > { %9831 = vst [vmem:[#allocation72_spill] sm:$0xff] %v6710_v57 }
 0x1a5   : > { %9832 = vst [vmem:[#allocation73_spill] sm:$0xff] %v6715_v51  ;;  %v644_v51 = vld [vmem:[%s9766_s2 + $0x160] sm:$0xff] }
 0x1a6   : > { %9833 = vst [vmem:[#allocation74_spill] sm:$0xff] %v6719_v5  ;;  %v1339_v44 = vpop.f32.mrf.mxu0 }
 0x1a7   : > { %v6725_v0 = vadd.f32 %v1339_v44, %v6131_v27  ;;  %v1548_v47 = vpop.f32.mrf.mxu1 }
 0x1a8   : > { %v6728_v57 = vadd.f32 %v1548_v47, %v6131_v27 }
 0x1a9   : > { %9834 = vst [vmem:[#allocation75_spill] sm:$0xff] %v6725_v0  ;;  %5027 = vmatmul.msk.f32.gmra.mxu0 %vm1048_vm0, %v643_v53  ;;  %v6733_v32 = vmul.f32 %v6725_v0, %v6602_v49  ;;  %v6737_v5 = vmul.f32 %v6725_v0, %v6606_v59 }
 0x1aa   : > { %9835 = vst [vmem:[#allocation76_spill] sm:$0xff] %v6728_v57  ;;  %5091 = vmatmul.msk.f32.gmra.mxu1 %vm1048_vm0, %v643_v53  ;;  %v6742_v44 = vmul.f32 %v6728_v57, %v6617_v56  ;;  %v6746_v27 = vmul.f32 %v6728_v57, %v6613_v39 }
 0x1ab   : > { %9836 = vst [vmem:[#allocation77_spill] sm:$0xff] %v6733_v32  ;;  %v6753_v32 = vadd.f32 %v6111_v20, %v6109_v19 }
 0x1ac   : > { %9837 = vst [vmem:[#allocation78_spill] sm:$0xff] %v6737_v5 }
 0x1ad   : > { %9838 = vst [vmem:[#allocation79_spill] sm:$0xff] %v6742_v44  ;;  %v6760_v44 = vadd.f32 %v6116_v22, %v6109_v19 }
 0x1ae   : > { %9839 = vst [vmem:[#allocation80_spill] sm:$0xff] %v6746_v27  ;;  %v1342_v47 = vpop.f32.mrf.mxu0 }
 0x1af   : > { %v6756_v5 = vadd.f32 %v1342_v47, %v6296_v40  ;;  %v1551_v53 = vpop.f32.mrf.mxu1  ;;  %9841 = vst [vmem:[#allocation82_spill] sm:$0xff] %v6760_v44 }
 0x1b0   : > { %v6763_v1 = vadd.f32 %v1551_v53, %v6296_v40 }
 0x1b1   : > { %9840 = vst [vmem:[#allocation81_spill] sm:$0xff] %v6756_v5  ;;  %5028 = vmatmul.msk.f32.gmra.mxu0 %vm1048_vm0, %v644_v51  ;;  %v6768_v27 = vmul.f32 %v6756_v5, %v6753_v32  ;;  %v6772_v20 = vmul.f32 %v6756_v5, %v6223_v62  ;;  %v6776_v47 = vmul.f32 %v6756_v5, %v6479_v9 }
 0x1b2   : > { %9842 = vst [vmem:[#allocation83_spill] sm:$0xff] %v6763_v1  ;;  %5092 = vmatmul.msk.f32.gmra.mxu1 %vm1048_vm0, %v644_v51  ;;  %v6781_v19 = vmul.f32 %v6763_v1, %v6760_v44  ;;  %v6785_v22 = vmul.f32 %v6763_v1, %v6487_v50  ;;  %v6789_v40 = vmul.f32 %v6763_v1, %v6225_v63 }
 0x1b3   : > { %9843 = vst [vmem:[#allocation84_spill] sm:$0xff] %v6772_v20  ;;  %v645_v20 = vld [vmem:[%s9766_s2 + $0x168] sm:$0xff] }
 0x1b4   : > { %9844 = vst [vmem:[#allocation85_spill] sm:$0xff] %v6776_v47 }
 0x1b5   : > { %9845 = vst [vmem:[#allocation86_spill] sm:$0xff] %v6781_v19  ;;  %v646_v19 = vld [vmem:[%s9766_s2 + $0x170] sm:$0xff] }
 0x1b6   : > { %9846 = vst [vmem:[#allocation87_spill] sm:$0xff] %v6785_v22  ;;  %v1345_v53 = vpop.f32.mrf.mxu0 }
 0x1b7   : > { %9847 = vst [vmem:[#allocation88_spill] sm:$0xff] %v6789_v40  ;;  %v6795_v47 = vadd.f32 %v1345_v53, %v6311_v46  ;;  %v1554_v51 = vpop.f32.mrf.mxu1 }
 0x1b8   : > { %v6798_v5 = vadd.f32 %v1554_v51, %v6311_v46 }
 0x1b9   : > { %9848 = vst [vmem:[#allocation89_spill] sm:$0xff] %v6795_v47  ;;  %5029 = vmatmul.msk.f32.gmra.mxu0 %vm1048_vm0, %v645_v20  ;;  %v6803_v22 = vmul.f32 %v6795_v47, %v6515_v45  ;;  %v6807_v40 = vmul.f32 %v6795_v47, %v6519_v42 }
 0x1ba   : > { %9849 = vst [vmem:[#allocation90_spill] sm:$0xff] %v6798_v5  ;;  %5093 = vmatmul.msk.f32.gmra.mxu1 %vm1048_vm0, %v645_v20  ;;  %v6812_v53 = vmul.f32 %v6798_v5, %v6531_v10  ;;  %v6816_v46 = vmul.f32 %v6798_v5, %v6527_v11 }
 0x1bb   : > { %9850 = vst [vmem:[#allocation91_spill] sm:$0xff] %v6803_v22 }
 0x1bc   : > { %9851 = vst [vmem:[#allocation92_spill] sm:$0xff] %v6807_v40 }
 0x1bd   : > { %9852 = vst [vmem:[#allocation93_spill] sm:$0xff] %v6812_v53  ;;  %v647_v53 = vld [vmem:[%s9766_s2 + $0x178] sm:$0xff] }
 0x1be   : > { %9853 = vst [vmem:[#allocation94_spill] sm:$0xff] %v6816_v46  ;;  %v1348_v51 = vpop.f32.mrf.mxu0 }
 0x1bf   : > { %v6822_v22 = vadd.f32 %v1348_v51, %v6120_v23  ;;  %v1557_v61 = vpop.f32.mrf.mxu1 }
 0x1c0   : > { %v6825_v40 = vadd.f32 %v1557_v61, %v6120_v23 }
 0x1c1   : > { %9854 = vst [vmem:[#allocation95_spill] sm:$0xff] %v6822_v22  ;;  %5030 = vmatmul.msk.f32.gmra.mxu0 %vm1048_vm0, %v646_v19  ;;  %v6830_v20 = vmul.f32 %v6822_v22, %v6558_v4  ;;  %v6834_v46 = vmul.f32 %v6822_v22, %v6562_v38 }
 0x1c2   : > { %9855 = vst [vmem:[#allocation96_spill] sm:$0xff] %v6825_v40  ;;  %5094 = vmatmul.msk.f32.gmra.mxu1 %vm1048_vm0, %v646_v19  ;;  %v6839_v51 = vmul.f32 %v6825_v40, %v6574_v8  ;;  %v6843_v23 = vmul.f32 %v6825_v40, %v6570_v28 }
 0x1c3   : > { %9856 = vst [vmem:[#allocation97_spill] sm:$0xff] %v6830_v20 }
 0x1c4   : > { %9857 = vst [vmem:[#allocation98_spill] sm:$0xff] %v6834_v46 }
 0x1c5   : > { %9858 = vst [vmem:[#allocation99_spill] sm:$0xff] %v6839_v51  ;;  %v648_v51 = vld [vmem:[%s9766_s2 + $0x180] sm:$0xff] }
 0x1c6   : > { %9859 = vst [vmem:[#allocation100_spill] sm:$0xff] %v6843_v23  ;;  %v1351_v61 = vpop.f32.mrf.mxu0 }
 0x1c7   : > { %v6849_v20 = vadd.f32 %v1351_v61, %v6269_v16  ;;  %v1560_v54 = vpop.f32.mrf.mxu1 }
 0x1c8   : > { %v6852_v46 = vadd.f32 %v1560_v54, %v6269_v16 }
 0x1c9   : > { %9860 = vst [vmem:[#allocation101_spill] sm:$0xff] %v6849_v20  ;;  %5031 = vmatmul.msk.f32.gmra.mxu0 %vm1048_vm0, %v647_v53  ;;  %v6857_v19 = vmul.f32 %v6849_v20, %v6602_v49  ;;  %v6861_v23 = vmul.f32 %v6849_v20, %v6606_v59 }
 0x1ca   : > { %9861 = vst [vmem:[#allocation102_spill] sm:$0xff] %v6852_v46  ;;  %5095 = vmatmul.msk.f32.gmra.mxu1 %vm1048_vm0, %v647_v53  ;;  %v6866_v61 = vmul.f32 %v6852_v46, %v6617_v56  ;;  %v6870_v16 = vmul.f32 %v6852_v46, %v6613_v39 }
 0x1cb   : > { %9862 = vst [vmem:[#allocation103_spill] sm:$0xff] %v6857_v19 }
 0x1cc   : > { %9863 = vst [vmem:[#allocation104_spill] sm:$0xff] %v6861_v23 }
 0x1cd   : > { %9864 = vst [vmem:[#allocation105_spill] sm:$0xff] %v6866_v61 }
 0x1ce   : > { %9865 = vst [vmem:[#allocation106_spill] sm:$0xff] %v6870_v16  ;;  %v1354_v54 = vpop.f32.mrf.mxu0 }
 0x1cf   : > { %v6876_v19 = vadd.f32 %v1354_v54, %v6289_v34  ;;  %v1563_v18 = vpop.f32.mrf.mxu1 }
 0x1d0   : > { %v6879_v23 = vadd.f32 %v1563_v18, %v6289_v34 }
 0x1d1   : > { %9866 = vst [vmem:[#allocation107_spill] sm:$0xff] %v6876_v19  ;;  %5032 = vmatmul.msk.f32.gmra.mxu0 %vm1048_vm0, %v648_v51  ;;  %v6884_v53 = vmul.f32 %v6876_v19, %v6223_v62  ;;  %v6888_v16 = vmul.f32 %v6876_v19, %v6479_v9 }
 0x1d2   : > { %9867 = vst [vmem:[#allocation108_spill] sm:$0xff] %v6879_v23  ;;  %5096 = vmatmul.msk.f32.gmra.mxu1 %vm1048_vm0, %v648_v51  ;;  %v6893_v54 = vmul.f32 %v6879_v23, %v6760_v44  ;;  %v6897_v34 = vmul.f32 %v6879_v23, %v6487_v50  ;;  %v6901_v18 = vmul.f32 %v6879_v23, %v6225_v63 }
 0x1d3   : > { %9868 = vst [vmem:[#allocation109_spill] sm:$0xff] %v6884_v53  ;;  %v649_v53 = vld [vmem:[%s9766_s2 + $0x188] sm:$0xff]  ;;  %v6908_v51 = vadd.f32 %v6122_v24, %v6213_v58 }
 0x1d4   : > { %9869 = vst [vmem:[#allocation110_spill] sm:$0xff] %v6888_v16 }
 0x1d5   : > { %9870 = vst [vmem:[#allocation111_spill] sm:$0xff] %v6893_v54 }
 0x1d6   : > { %9871 = vst [vmem:[#allocation112_spill] sm:$0xff] %v6897_v34  ;;  %v1357_v61 = vpop.f32.mrf.mxu0  ;;  %v6915_v34 = vadd.f32 %v6127_v26, %v6213_v58 }
 0x1d7   : > { %9872 = vst [vmem:[#allocation113_spill] sm:$0xff] %v6901_v18  ;;  %v6911_v16 = vadd.f32 %v1357_v61, %v6247_v7  ;;  %v1566_v54 = vpop.f32.mrf.mxu1 }
 0x1d8   : > { %9874 = vst [vmem:[#allocation115_spill] sm:$0xff] %v6915_v34  ;;  %v6918_v44 = vadd.f32 %v1566_v54, %v6247_v7 }
 0x1d9   : > { %9873 = vst [vmem:[#allocation114_spill] sm:$0xff] %v6911_v16  ;;  %5033 = vmatmul.msk.f32.gmra.mxu0 %vm1048_vm0, %v649_v53  ;;  %v1715_v18 = vmul.f32 %v6911_v16, %v6908_v51  ;;  %v6925_v24 = vmul.f32 %v6911_v16, %v6515_v45  ;;  %v6929_v61 = vmul.f32 %v6911_v16, %v6519_v42 }
 0x1da   : > { %9875 = vst [vmem:[#allocation116_spill] sm:$0xff] %v6918_v44  ;;  %5097 = vmatmul.msk.f32.gmra.mxu1 %vm1048_vm0, %v649_v53  ;;  %v6934_v26 = vmul.f32 %v6918_v44, %v6915_v34  ;;  %v6938_v58 = vmul.f32 %v6918_v44, %v6531_v10  ;;  %v6942_v7 = vmul.f32 %v6918_v44, %v6527_v11 }
 0x1db   : > { %9876 = vst [vmem:[#allocation117_spill] sm:$0xff] %v6925_v24  ;;  %v650_v24 = vld [vmem:[%s9766_s2 + $0x190] sm:$0xff]  ;;  %v6949_v53 = vadd.f32 %v6136_v29, %v6234_v3 }
 0x1dc   : > { %9877 = vst [vmem:[#allocation118_spill] sm:$0xff] %v6929_v61 }
 0x1dd   : > { %9878 = vst [vmem:[#allocation119_spill] sm:$0xff] %v6934_v26 }
 0x1de   : > { %9879 = vst [vmem:[#allocation120_spill] sm:$0xff] %v6938_v58  ;;  %v1360_v54 = vpop.f32.mrf.mxu0  ;;  %v6956_v58 = vadd.f32 %v6141_v31, %v6234_v3 }
 0x1df   : > { %9880 = vst [vmem:[#allocation121_spill] sm:$0xff] %v6942_v7  ;;  %v6952_v61 = vadd.f32 %v1360_v54, %v6260_v12  ;;  %v1569_v26 = vpop.f32.mrf.mxu1 }
 0x1e0   : > { %9882 = vst [vmem:[#allocation123_spill] sm:$0xff] %v6956_v58  ;;  %v6959_v34 = vadd.f32 %v1569_v26, %v6260_v12 }
 0x1e1   : > { %9881 = vst [vmem:[#allocation122_spill] sm:$0xff] %v6952_v61  ;;  %5034 = vmatmul.msk.f32.gmra.mxu0 %vm1048_vm0, %v650_v24  ;;  %v1717_v7 = vmul.f32 %v6952_v61, %v6949_v53  ;;  %v6966_v29 = vmul.f32 %v6952_v61, %v6558_v4  ;;  %v6970_v54 = vmul.f32 %v6952_v61, %v6562_v38 }
 0x1e2   : > { %9883 = vst [vmem:[#allocation124_spill] sm:$0xff] %v6959_v34  ;;  %5098 = vmatmul.msk.f32.gmra.mxu1 %vm1048_vm0, %v650_v24  ;;  %v6975_v31 = vmul.f32 %v6959_v34, %v6956_v58  ;;  %v6979_v3 = vmul.f32 %v6959_v34, %v6574_v8  ;;  %v6983_v12 = vmul.f32 %v6959_v34, %v6570_v28 }
 0x1e3   : > { %9884 = vst [vmem:[#allocation125_spill] sm:$0xff] %v6966_v29  ;;  %v651_v29 = vld [vmem:[%s9766_s2 + $0x198] sm:$0xff]  ;;  %v6990_v24 = vadd.f32 %v6153_v35, %v6092_v14  ;;  %v7008_v58 = vadd.f32 %v6298_v41, %v6437_v15 }
 0x1e4   : > { %9885 = vst [vmem:[#allocation126_spill] sm:$0xff] %v6970_v54 }
 0x1e5   : > { %9886 = vst [vmem:[#allocation127_spill] sm:$0xff] %v6975_v31 }
 0x1e6   : > { %9887 = vst [vmem:[#allocation128_spill] sm:$0xff] %v6979_v3  ;;  %v1363_v26 = vpop.f32.mrf.mxu0  ;;  %v6997_v3 = vadd.f32 %v6158_v37, %v6092_v14 }
 0x1e7   : > { %9888 = vst [vmem:[#allocation129_spill] sm:$0xff] %v6983_v12  ;;  %v6993_v54 = vadd.f32 %v1363_v26, %v6102_v17  ;;  %v1572_v31 = vpop.f32.mrf.mxu1  ;;  %v7001_v12 = vadd.f32 %v6318_v52, %v6454_v6  ;;  %v7038_v6 = vadd.f32 %v6276_v25, %v6423_v60  ;;  %v9895_v25 = vld [vmem:[#allocation16_spill] sm:$0xff] }
 0x1e8   : > { %v7004_v16 = vadd.f32 %v1572_v31, %v6102_v17  ;;  %v9894_v31 = vld [vmem:[#allocation9_spill] sm:$0xff] }
 0x1e9   : > { %9889 = vst [vmem:[#allocation130_spill] sm:$0xff] %v6993_v54  ;;  %5035 = vmatmul.msk.f32.gmra.mxu0 %vm1048_vm0, %v651_v29  ;;  %v1719_v35 = vmul.f32 %v6993_v54, %v6990_v24  ;;  %v7015_v14 = vmul.f32 %v6993_v54, %v6602_v49  ;;  %v7019_v37 = vmul.f32 %v6993_v54, %v6606_v59 }
 0x1ea   : > { %9890 = vst [vmem:[#allocation131_spill] sm:$0xff] %v7004_v16  ;;  %5099 = vmatmul.msk.f32.gmra.mxu1 %vm1048_vm0, %v651_v29  ;;  %v2768_v17 = vmul.f32 %v7004_v16, %v7001_v12  ;;  %v7026_v41 = vmul.f32 %v7004_v16, %v6997_v3  ;;  %v7030_v52 = vmul.f32 %v7004_v16, %v6617_v56 }
 0x1eb   : > { %9891 = vst [vmem:[#allocation132_spill] sm:$0xff] %v7015_v14  ;;  %v7034_v15 = vmul.f32 %v7004_v16, %v6613_v39  ;;  %1744 = vmatpush.msra.mxu2 %v1719_v35  ;;  %v2766_v29 = vmul.f32 %v6959_v34, %v7008_v58  ;;  %v7044_v26 = vadd.f32 %v9894_v31, %v6470_v13  ;;  %v652_v35 = vld [vmem:[%s9766_s2 + $0x1a0] sm:$0xff] }
 0x1ec   : > { %9892 = vst [vmem:[#allocation133_spill] sm:$0xff] %v7019_v37  ;;  %2841 = vmatpush.msrb.mxu0 %v2768_v17  ;;  %v2764_v16 = vmul.f32 %v6918_v44, %v7038_v6  ;;  %v1711_v31 = vmul.f32 %v6849_v20, %v6990_v24  ;;  %v1695_v44 = vmul.f32 %v6609_v43, %v6990_v24 }
 0x1ed   : > { %9893 = vst [vmem:[#allocation134_spill] sm:$0xff] %v7034_v15  ;;  %1745 = vmatpush.msra.mxu2 %v1717_v7  ;;  %v1713_v7 = vmul.f32 %v6876_v19, %v6753_v32 }
 0x1ee   : > { %2842 = vmatpush.msrb.mxu0 %v2766_v29  ;;  %v1366_v37 = vpop.f32.mrf.mxu0  ;;  %v2762_v29 = vmul.f32 %v6879_v23, %v7044_v26 }
 0x1ef   : > { %v7052_v60 = vadd.f32 %v1366_v37, %v9895_v25  ;;  %v1575_v17 = vpop.f32.mrf.mxu1  ;;  %1746 = vmatpush.msra.mxu2 %v1715_v18  ;;  %v2760_v18 = vmul.f32 %v6852_v46, %v7001_v12 }
 0x1f0   : > { %v7057_v13 = vadd.f32 %v1575_v17, %v9895_v25  ;;  %2843 = vmatpush.msrb.mxu0 %v2764_v16  ;;  %v1709_v25 = vmul.f32 %v6822_v22, %v6949_v53 }
 0x1f1   : > { %9896 = vst [vmem:[#allocation9_spill] sm:$0xff] %v7052_v60  ;;  %5036 = vmatmul.msk.f32.gmra.mxu0 %vm1048_vm0, %v652_v35  ;;  %1747 = vmatpush.msra.mxu2 %v1713_v7  ;;  %v7066_v37 = vmul.f32 %v7052_v60, %v6223_v62  ;;  %v7083_v62 = vmul.f32 %v7052_v60, %v6479_v9 }
 0x1f2   : > { %9897 = vst [vmem:[#allocation16_spill] sm:$0xff] %v7057_v13  ;;  %5100 = vmatmul.msk.f32.gmra.mxu1 %vm1048_vm0, %v652_v35  ;;  %2844 = vmatpush.msrb.mxu0 %v2762_v29  ;;  %v7073_v16 = vmul.f32 %v7057_v13, %v6487_v50  ;;  %v7079_v17 = vmul.f32 %v7057_v13, %v6225_v63  ;;  %v653_v63 = vld [vmem:[%s9766_s2 + $0x1a8] sm:$0xff] }
 0x1f3   : > { %9898 = vst [vmem:[#allocation135_spill] sm:$0xff] %v7066_v37  ;;  %1748 = vmatpush.msra.mxu2 %v1711_v31  ;;  %v2758_v35 = vmul.f32 %v6825_v40, %v7008_v58  ;;  %v1707_v50 = vmul.f32 %v6795_v47, %v6908_v51  ;;  %v2756_v29 = vmul.f32 %v6798_v5, %v7038_v6  ;;  %v9902_v31 = vld [vmem:[#allocation8_spill] sm:$0xff] }
 0x1f4   : > { %9899 = vst [vmem:[#allocation136_spill] sm:$0xff] %v7073_v16  ;;  %2845 = vmatpush.msrb.mxu0 %v2760_v18  ;;  %v9928_v16 = vld [vmem:[#allocation31_spill] sm:$0xff] }
 0x1f5   : > { %9900 = vst [vmem:[#allocation137_spill] sm:$0xff] %v7079_v17  ;;  %1749 = vmatpush.msra.mxu2 %v1709_v25  ;;  %v2754_v25 = vmul.f32 %v6763_v1, %v7044_v26 }
 0x1f6   : > { %9901 = vst [vmem:[#allocation138_spill] sm:$0xff] %v7083_v62  ;;  %2846 = vmatpush.msrb.mxu0 %v2758_v35  ;;  %v1369_v7 = vpop.f32.mrf.mxu0  ;;  %v1703_v35 = vmul.f32 %v6725_v0, %v6990_v24  ;;  %v9918_v62 = vld [vmem:[#allocation13_spill] sm:$0xff] }
 0x1f7   : > { %v7095_v9 = vadd.f32 %v1369_v7, %v9902_v31  ;;  %v1578_v18 = vpop.f32.mrf.mxu1  ;;  %1750 = vmatpush.msra.mxu2 %v1707_v50  ;;  %v2752_v50 = vmul.f32 %v6728_v57, %v7001_v12 }
 0x1f8   : > { %v7098_v23 = vadd.f32 %v1578_v18, %v9902_v31  ;;  %2847 = vmatpush.msrb.mxu0 %v2756_v29 }
 0x1f9   : > { %9903 = vst [vmem:[#allocation8_spill] sm:$0xff] %v7095_v9  ;;  %5037 = vmatmul.msk.f32.gmra.mxu0 %vm1048_vm0, %v653_v63  ;;  %1751 = vmatpush.msra.mxu2 %v6768_v27  ;;  %v7108_v7 = vmul.f32 %v7095_v9, %v6515_v45  ;;  %v1701_v27 = vmul.f32 %v6698_v21, %v6949_v53 }
 0x1fa   : > { %9904 = vst [vmem:[#allocation139_spill] sm:$0xff] %v7098_v23  ;;  %5101 = vmatmul.msk.f32.gmra.mxu1 %vm1048_vm0, %v653_v63  ;;  %2848 = vmatpush.msrb.mxu0 %v2754_v25  ;;  %v7115_v29 = vmul.f32 %v7098_v23, %v6531_v10  ;;  %v7121_v31 = vmul.f32 %v7098_v23, %v6527_v11  ;;  %v654_v11 = vld [vmem:[%s9766_s2 + $0x1b0] sm:$0xff] }
 0x1fb   : > { %9905 = vst [vmem:[#allocation140_spill] sm:$0xff] %v7108_v7  ;;  %1752 = vmatpush.msra.mxu2 %v1703_v35  ;;  %v7125_v45 = vmul.f32 %v7095_v9, %v6519_v42  ;;  %v2750_v63 = vmul.f32 %v6701_v33, %v7008_v58  ;;  %v1699_v10 = vmul.f32 %v6671_v55, %v6908_v51  ;;  %v9908_v35 = vld [vmem:[#allocation14_spill] sm:$0xff] }
 0x1fc   : > { %9906 = vst [vmem:[#allocation141_spill] sm:$0xff] %v7121_v31  ;;  %2849 = vmatpush.msrb.mxu0 %v2752_v50  ;;  %v2748_v25 = vmul.f32 %v6674_v2, %v7038_v6 }
 0x1fd   : > { %9907 = vst [vmem:[#allocation142_spill] sm:$0xff] %v7125_v45  ;;  %1753 = vmatpush.msra.mxu2 %v1701_v27  ;;  %v1697_v27 = vmul.f32 %v6644_v36, %v6753_v32 }
 0x1fe   : > { %2850 = vmatpush.msrb.mxu0 %v2750_v63  ;;  %v1372_v18 = vpop.f32.mrf.mxu0  ;;  %v2746_v63 = vmul.f32 %v6647_v48, %v7044_v26 }
 0x1ff   : > { %v7137_v42 = vadd.f32 %v1372_v18, %v9908_v35  ;;  %v1581_v50 = vpop.f32.mrf.mxu1  ;;  %1754 = vmatpush.msra.mxu2 %v1699_v10  ;;  %v2744_v10 = vmul.f32 %v6620_v30, %v7001_v12 }
 0x200   : > { %v7142_v1 = vadd.f32 %v1581_v50, %v9908_v35  ;;  %2851 = vmatpush.msrb.mxu0 %v2748_v25  ;;  %v9912_v35 = vld [vmem:[#allocation45_spill] sm:$0xff] }
 0x201   : > { %9909 = vst [vmem:[#allocation14_spill] sm:$0xff] %v7137_v42  ;;  %5038 = vmatmul.msk.f32.gmra.mxu0 %vm1048_vm0, %v654_v11  ;;  %1755 = vmatpush.msra.mxu2 %v1697_v27  ;;  %v7151_v18 = vmul.f32 %v7137_v42, %v6558_v4  ;;  %v1693_v50 = vmul.f32 %v9912_v35, %v6949_v53 }
 0x202   : > { %9910 = vst [vmem:[#allocation143_spill] sm:$0xff] %v7142_v1  ;;  %5102 = vmatmul.msk.f32.gmra.mxu1 %vm1048_vm0, %v654_v11  ;;  %2852 = vmatpush.msrb.mxu0 %v2746_v63  ;;  %v7158_v25 = vmul.f32 %v7142_v1, %v6574_v8  ;;  %v7164_v27 = vmul.f32 %v7142_v1, %v6570_v28  ;;  %v9915_v11 = vld [vmem:[#allocation46_spill] sm:$0xff]  ;;  %v9919_v28 = vld [vmem:[#allocation39_spill] sm:$0xff] }
 0x203   : > { %9911 = vst [vmem:[#allocation144_spill] sm:$0xff] %v7151_v18  ;;  %1756 = vmatpush.msra.mxu2 %v1695_v44  ;;  %v7168_v4 = vmul.f32 %v7137_v42, %v6562_v38  ;;  %v2742_v63 = vmul.f32 %v9915_v11, %v7008_v58  ;;  %v9916_v8 = vld [vmem:[#allocation38_spill] sm:$0xff]  ;;  %v9917_v44 = vld [vmem:[#allocation44_spill] sm:$0xff]  ;;  %v2740_v31 = vmul.f32 %v9919_v28, %v7038_v6  ;;  %v655_v38 = vld [vmem:[%s9766_s2 + $0x1b8] sm:$0xff] }
 0x204   : > { %9913 = vst [vmem:[#allocation145_spill] sm:$0xff] %v7164_v27  ;;  %2853 = vmatpush.msrb.mxu0 %v2744_v10  ;;  %v1691_v34 = vmul.f32 %v9916_v8, %v6908_v51  ;;  %v7176_v45 = vadd.f32 %v9918_v62, %v9917_v44  ;;  %v9920_v10 = vld [vmem:[#allocation25_spill] sm:$0xff]  ;;  %v9924_v62 = vld [vmem:[#allocation30_spill] sm:$0xff]  ;;  %v9926_v18 = vld [vmem:[#allocation12_spill] sm:$0xff] }
 0x205   : > { %9914 = vst [vmem:[#allocation146_spill] sm:$0xff] %v7168_v4  ;;  %1757 = vmatpush.msra.mxu2 %v1693_v50  ;;  %v9921_v4 = vld [vmem:[#allocation15_spill] sm:$0xff]  ;;  %v9925_v44 = vld [vmem:[#allocation37_spill] sm:$0xff] }
 0x206   : > { %2854 = vmatpush.msrb.mxu0 %v2742_v63  ;;  %v1375_v17 = vpop.f32.mrf.mxu0  ;;  %v7185_v27 = vadd.f32 %v9921_v4, %v9920_v10  ;;  %v9922_v50 = vld [vmem:[#allocation11_spill] sm:$0xff]  ;;  %v1689_v63 = vmul.f32 %v9924_v62, %v6753_v32  ;;  %v7194_v15 = vadd.f32 %v9926_v18, %v9925_v44  ;;  %v2738_v4 = vmul.f32 %v9928_v16, %v7044_v26  ;;  %v9930_v44 = vld [vmem:[#allocation29_spill] sm:$0xff] }
 0x207   : > { %v7188_v37 = vadd.f32 %v1375_v17, %v9922_v50  ;;  %v1584_v7 = vpop.f32.mrf.mxu1  ;;  %1758 = vmatpush.msra.mxu2 %v1691_v34  ;;  %v3251_v17 = vmul.f32 %v6952_v61, %v7176_v45 }
 0x208   : > { %v7197_v14 = vadd.f32 %v1584_v7, %v9922_v50  ;;  %2855 = vmatpush.msrb.mxu0 %v2740_v31  ;;  %v3253_v34 = vmul.f32 %v6993_v54, %v7185_v27 }
 0x209   : > { %9923 = vst [vmem:[#allocation44_spill] sm:$0xff] %v7188_v37  ;;  %5039 = vmatmul.msk.f32.gmra.mxu0 %vm1048_vm0, %v655_v38  ;;  %1759 = vmatpush.msra.mxu2 %v1689_v63  ;;  %v1727_v18 = vmul.f32 %v7188_v37, %v6990_v24  ;;  %v7210_v7 = vmul.f32 %v7188_v37, %v6602_v49 }
 0x20a   : > { %9927 = vst [vmem:[#allocation13_spill] sm:$0xff] %v7197_v14  ;;  %5103 = vmatmul.msk.f32.gmra.mxu1 %vm1048_vm0, %v655_v38  ;;  %2856 = vmatpush.msrb.mxu0 %v2738_v4  ;;  %v1728_v31 = vmul.f32 %v7197_v14, %v6997_v3  ;;  %v2776_v10 = vmul.f32 %v7197_v14, %v7001_v12  ;;  %v9929_v12 = vld [vmem:[#allocation123_spill] sm:$0xff]  ;;  %v9931_v4 = vld [vmem:[#allocation10_spill] sm:$0xff] }
 0x20b   : > { %v7219_v50 = vmul.f32 %v7197_v14, %v6617_v56  ;;  %1788 = vmatpush.msra.mxu3 %v1727_v18  ;;  %v1725_v24 = vmul.f32 %v7137_v42, %v6949_v53  ;;  %v7225_v49 = vmul.f32 %v7197_v14, %v6613_v39  ;;  %v7229_v38 = vmul.f32 %v7188_v37, %v6606_v59  ;;  %v9932_v39 = vld [vmem:[#allocation114_spill] sm:$0xff] }
 0x20c   : > { %3263 = vmatpush.msra.mxu0 %v3253_v34  ;;  %1852 = vmatpush.msrb.mxu2 %v1728_v31  ;;  %v1726_v63 = vmul.f32 %v7142_v1, %v9929_v12  ;;  %v2774_v56 = vmul.f32 %v7142_v1, %v7008_v58  ;;  %v7237_v34 = vadd.f32 %v9931_v4, %v9930_v44  ;;  %v9933_v31 = vld [vmem:[#allocation115_spill] sm:$0xff]  ;;  %v7265_v4 = vld [vmem:[%s9935_s4] sm:$0xff] }
 0x20d   : > { %2885 = vmatpush.msrb.mxu1 %v2776_v10  ;;  %1789 = vmatpush.msra.mxu3 %v1725_v24  ;;  %v3249_v53 = vmul.f32 %v9932_v39, %v7194_v15  ;;  %v1723_v59 = vmul.f32 %v7095_v9, %v6908_v51  ;;  %v1724_v10 = vmul.f32 %v7098_v23, %v9933_v31  ;;  %v656_v51 = vld [vmem:[%s9766_s2 + $0x1c0] sm:$0xff] }
 0x20e   : > { %3264 = vmatpush.msra.mxu0 %v3251_v17  ;;  %1853 = vmatpush.msrb.mxu2 %v1726_v63  ;;  %v7243_v18 = vpop.f32.mrf.mxu0  ;;  %v2772_v58 = vmul.f32 %v7098_v23, %v7038_v6  ;;  %v3247_v17 = vmul.f32 %v6876_v19, %v7237_v34  ;;  %v1721_v24 = vmul.f32 %v7052_v60, %v6753_v32  ;;  %v9934_v63 = vld [vmem:[#allocation82_spill] sm:$0xff] }
 0x20f   : > { %2886 = vmatpush.msrb.mxu1 %v2774_v56  ;;  %v7249_v44 = vpop.f32.mrf.mxu1  ;;  %1790 = vmatpush.msra.mxu3 %v1723_v59  ;;  %v1722_v6 = vmul.f32 %v7057_v13, %v9934_v63  ;;  %v2770_v56 = vmul.f32 %v7057_v13, %v7044_v26  ;;  %v3245_v32 = vmul.f32 %v6849_v20, %v7185_v27 }
 0x210   : > { %3265 = vmatpush.msra.mxu0 %v3249_v53  ;;  %1854 = vmatpush.msrb.mxu2 %v1724_v10  ;;  %v7270_v53 = vld [vmem:[%s9935_s4 + $0x8] sm:$0xff]  ;;  %v3261_v26 = vmul.f32 %v7188_v37, %v7185_v27  ;;  %v3243_v59 = vmul.f32 %v6822_v22, %v7176_v45  ;;  %v3259_v10 = vmul.f32 %v7137_v42, %v7176_v45 }
 0x211   : > { %2887 = vmatpush.msrb.mxu1 %v2772_v58  ;;  %1791 = vmatpush.msra.mxu3 %v1721_v24  ;;  %v3241_v24 = vmul.f32 %v6795_v47, %v7194_v15 }
 0x212   : > { %3266 = vmatpush.msra.mxu0 %v3247_v17  ;;  %5104 = vmatmul.msk.f32.gmra.mxu1 %vm1048_vm0, %v656_v51  ;;  %v9936_v17 = vld [vmem:[#allocation127_spill] sm:$0xff] }
 0x213   : > { %5040 = vmatmul.msk.f32.gmra.mxu0 %vm1048_vm0, %v656_v51  ;;  %1855 = vmatpush.msrb.mxu2 %v1722_v6  ;;  %v3257_v6 = vmul.f32 %v7095_v9, %v7194_v15 }
 0x214   : > { %2888 = vmatpush.msrb.mxu1 %v2770_v56  ;;  %1760 = vmatmul.f32.vlgmr.msra.gmra.mxu2 %v7265_v4  ;;  %v9937_v56 = vld [vmem:[#allocation119_spill] sm:$0xff] }
 0x215   : > { %5112 = vmatmul.msk.f32.vlgmr.msra.gmra.mxu3 %vm1048_vm0, %v7270_v53  ;;  %3267 = vmatpush.msra.mxu0 %v3245_v32  ;;  %v9938_v32 = vld [vmem:[#allocation81_spill] sm:$0xff] }
 0x216   : > { %1808 = vmatpush.msrb.mxu3 %v7026_v41  ;;  %3307 = vmatpush.msra.mxu1 %v3261_v26  ;;  %v7286_v58 = vpop.f32.mrf.mxu0  ;;  %v657_v41 = vld [vmem:[%s9766_s2 + $0x1c8] sm:$0xff]  ;;  %v3239_v26 = vmul.f32 %v9938_v32, %v7237_v34 }
 0x217   : > { %3268 = vmatpush.msra.mxu0 %v3243_v59  ;;  %v7289_v51 = vpop.f32.mrf.mxu1  ;;  %v7304_v59 = vld [vmem:[%s9935_s4 + $0x10] sm:$0xff] }
 0x218   : > { %1809 = vmatpush.msrb.mxu3 %v9936_v17  ;;  %3308 = vmatpush.msra.mxu1 %v3259_v10  ;;  %v3255_v17 = vmul.f32 %v7052_v60, %v7237_v34  ;;  %v7312_v10 = vld [vmem:[%s9935_s4 + $0x18] sm:$0xff] }
 0x219   : > { %3269 = vmatpush.msra.mxu0 %v3241_v24  ;;  %v9939_v24 = vld [vmem:[#allocation111_spill] sm:$0xff] }
 0x21a   : > { %1810 = vmatpush.msrb.mxu3 %v9937_v56  ;;  %3309 = vmatpush.msra.mxu1 %v3257_v6  ;;  %v1712_v56 = vmul.f32 %v6852_v46, %v6997_v3  ;;  %v3237_v6 = vmul.f32 %v6725_v0, %v7185_v27  ;;  %v3233_v46 = vmul.f32 %v6671_v55, %v7194_v15 }
 0x21b   : > { %5041 = vmatmul.msk.f32.gmra.mxu0 %vm1048_vm0, %v657_v41  ;;  %5105 = vmatmul.msk.f32.gmra.mxu1 %vm1048_vm0, %v657_v41  ;;  %v1708_v41 = vmul.f32 %v6798_v5, %v9933_v31  ;;  %v3227_v5 = vmul.f32 %v9912_v35, %v7176_v45 }
 0x21c   : > { %1811 = vmatpush.msrb.mxu3 %v9939_v24  ;;  %3270 = vmatpush.msra.mxu0 %v3239_v26  ;;  %v1710_v24 = vmul.f32 %v6825_v40, %v9929_v12  ;;  %v3235_v26 = vmul.f32 %v6698_v21, %v7176_v45  ;;  %v1700_v45 = vmul.f32 %v6674_v2, %v9933_v31 }
 0x21d   : > { %3310 = vmatpush.msra.mxu1 %v3255_v17  ;;  %1763 = vmatmul.f32.gmra.mxu2 %v7304_v59 }
 0x21e   : > { %5113 = vmatmul.msk.f32.gmra.mxu3 %vm1048_vm0, %v7312_v10  ;;  %3271 = vmatpush.msra.mxu0 %v3237_v6  ;;  %v7327_v17 = vpop.f32.mrf.mxu0  ;;  %v3231_v6 = vmul.f32 %v6644_v36, %v7237_v34 }
 0x21f   : > { %1812 = vmatpush.msrb.mxu3 %v1712_v56  ;;  %9940 = vst [vmem:[#allocation25_spill] sm:$0xff] %v7327_v17  ;;  %v7329_v32 = vpop.f32.mrf.mxu1  ;;  %v658_v56 = vld [vmem:[%s9766_s2 + $0x1d0] sm:$0xff] }
 0x220   : > { %3272 = vmatpush.msra.mxu0 %v3235_v26  ;;  %v7349_v26 = vld [vmem:[%s9935_s4 + $0x28] sm:$0xff]  ;;  %v9941_v17 = vld [vmem:[#allocation86_spill] sm:$0xff] }
 0x221   : > { %1813 = vmatpush.msrb.mxu3 %v1710_v24  ;;  %v7343_v24 = vld [vmem:[%s9935_s4 + $0x20] sm:$0xff] }
 0x222   : > { %3273 = vmatpush.msra.mxu0 %v3233_v46  ;;  %v3229_v46 = vmul.f32 %v6609_v43, %v7185_v27  ;;  %v1702_v27 = vmul.f32 %v6701_v33, %v9929_v12 }
 0x223   : > { %1814 = vmatpush.msrb.mxu3 %v1708_v41  ;;  %5042 = vmatmul.msk.f32.gmra.mxu0 %vm1048_vm0, %v658_v56  ;;  %v1704_v41 = vmul.f32 %v6728_v57, %v6997_v3 }
 0x224   : > { %3274 = vmatpush.msra.mxu0 %v3231_v6  ;;  %5106 = vmatmul.msk.f32.gmra.mxu1 %vm1048_vm0, %v658_v56  ;;  %v3225_v56 = vmul.f32 %v9916_v8, %v7194_v15  ;;  %v659_v6 = vld [vmem:[%s9766_s2 + $0x1d8] sm:$0xff] }
 0x225   : > { %1815 = vmatpush.msrb.mxu3 %v9941_v17  ;;  %1766 = vmatmul.f32.gmra.mxu2 %v7343_v24  ;;  %v7388_v15 = vld [vmem:[%s9935_s4 + $0x38] sm:$0xff] }
 0x226   : > { %5114 = vmatmul.msk.f32.gmra.mxu3 %vm1048_vm0, %v7349_v26  ;;  %3275 = vmatpush.msra.mxu0 %v3229_v46  ;;  %v7362_v40 = vpop.f32.mrf.mxu0  ;;  %v3223_v46 = vmul.f32 %v9924_v62, %v7237_v34  ;;  %v1696_v34 = vmul.f32 %v6620_v30, %v6997_v3  ;;  %v1692_v3 = vmul.f32 %v9919_v28, %v9933_v31  ;;  %v9966_v30 = vld [vmem:[#allocation34_spill] sm:$0xff] }
 0x227   : > { %9942 = vst [vmem:[#allocation15_spill] sm:$0xff] %v7362_v40  ;;  %1816 = vmatpush.msrb.mxu3 %v1704_v41  ;;  %v7366_v17 = vpop.f32.mrf.mxu1  ;;  %v1698_v41 = vmul.f32 %v6647_v48, %v9934_v63  ;;  %v9948_v40 = vld [vmem:[#allocation120_spill] sm:$0xff] }
 0x228   : > { %3276 = vmatpush.msra.mxu0 %v3227_v5  ;;  %v7383_v5 = vld [vmem:[%s9935_s4 + $0x30] sm:$0xff] }
 0x229   : > { %1817 = vmatpush.msrb.mxu3 %v1702_v27 }
 0x22a   : > { %3277 = vmatpush.msra.mxu0 %v3225_v56  ;;  %v1694_v56 = vmul.f32 %v9915_v11, %v9929_v12  ;;  %v7413_v12 = vld [vmem:[%s9935_s4 + $0x40] sm:$0xff] }
 0x22b   : > { %1818 = vmatpush.msrb.mxu3 %v1700_v45  ;;  %5043 = vmatmul.msk.f32.gmra.mxu0 %vm1048_vm0, %v659_v6 }
 0x22c   : > { %3278 = vmatpush.msra.mxu0 %v3223_v46  ;;  %5107 = vmatmul.msk.f32.gmra.mxu1 %vm1048_vm0, %v659_v6  ;;  %v660_v6 = vld [vmem:[%s9766_s2 + $0x1e0] sm:$0xff]  ;;  %v1690_v46 = vmul.f32 %v9928_v16, %v9934_v63  ;;  %v9951_v16 = vld [vmem:[#allocation105_spill] sm:$0xff] }
 0x22d   : > { %1819 = vmatpush.msrb.mxu3 %v1698_v41  ;;  %1769 = vmatmul.f32.gmra.mxu2 %v7383_v5  ;;  %v7418_v41 = vld [vmem:[%s9935_s4 + $0x48] sm:$0xff] }
 0x22e   : > { %5115 = vmatmul.msk.f32.gmra.mxu3 %vm1048_vm0, %v7388_v15  ;;  %v7396_v27 = vpop.f32.mrf.mxu0 }
 0x22f   : > { %1820 = vmatpush.msrb.mxu3 %v1696_v34  ;;  %v7400_v45 = vpop.f32.mrf.mxu1  ;;  %v661_v34 = vld [vmem:[%s9766_s2 + $0x1e8] sm:$0xff] }
 0x231   : > { %1821 = vmatpush.msrb.mxu3 %v1694_v56 }
 0x233   : > { %1822 = vmatpush.msrb.mxu3 %v1692_v3  ;;  %5044 = vmatmul.msk.f32.gmra.mxu0 %vm1048_vm0, %v660_v6  ;;  %v662_v3 = vld [vmem:[%s9766_s2 + $0x1f0] sm:$0xff] }
 0x234   : > { %5108 = vmatmul.msk.f32.gmra.mxu1 %vm1048_vm0, %v660_v6 }
 0x235   : > { %1823 = vmatpush.msrb.mxu3 %v1690_v46  ;;  %1772 = vmatmul.f32.gmra.mxu2 %v7413_v12 }
 0x236   : > { %5116 = vmatmul.msk.f32.gmra.mxu3 %vm1048_vm0, %v7418_v41  ;;  %v7424_v31 = vpop.f32.mrf.mxu0 }
 0x237   : > { %v7426_v63 = vpop.f32.mrf.mxu1 }
 0x23b   : > { %5045 = vmatmul.msk.f32.gmra.mxu0 %vm1048_vm0, %v661_v34 }
 0x23c   : > { %5109 = vmatmul.msk.f32.gmra.mxu1 %vm1048_vm0, %v661_v34 }
 0x23d   : > { %5117 = vmatmul.msk.f32.vlgmr.msrb.gmra.mxu2 %vm1048_vm0, %v7270_v53 }
 0x23e   : > { %1824 = vmatmul.f32.vlgmr.msrb.gmra.mxu3 %v7265_v4  ;;  %v7436_v56 = vpop.f32.mrf.mxu0 }
 0x23f   : > { %9943 = vst [vmem:[#allocation11_spill] sm:$0xff] %v7436_v56  ;;  %v7438_v6 = vpop.f32.mrf.mxu1  ;;  %v9946_v56 = vld [vmem:[#allocation128_spill] sm:$0xff] }
 0x243   : > { %5046 = vmatmul.msk.f32.gmra.mxu0 %vm1048_vm0, %v662_v3 }
 0x244   : > { %5110 = vmatmul.msk.f32.gmra.mxu1 %vm1048_vm0, %v662_v3 }
 0x245   : > { %5118 = vmatmul.msk.f32.gmra.mxu2 %vm1048_vm0, %v7312_v10 }
 0x246   : > { %1827 = vmatmul.f32.gmra.mxu3 %v7304_v59  ;;  %v7448_v46 = vpop.f32.mrf.mxu0 }
 0x247   : > { %9944 = vst [vmem:[#allocation37_spill] sm:$0xff] %v7448_v46  ;;  %v7450_v34 = vpop.f32.mrf.mxu1 }
 0x24b   : > { %2857 = vmatmul.f32.vlgmr.msrb.gmra.mxu0 %v7265_v4 }
 0x24c   : > { %3327 = vmatpush.msrb.mxu0 %v7030_v52  ;;  %5217 = vmatmul.msk.f32.vlgmr.msrb.gmra.mxu1 %vm1048_vm0, %v7270_v53  ;;  %v9949_v52 = vld [vmem:[#allocation112_spill] sm:$0xff] }
 0x24d   : > { %3371 = vmatpush.msrb.mxu1 %v7219_v50  ;;  %5119 = vmatmul.msk.f32.gmra.mxu2 %vm1048_vm0, %v7349_v26  ;;  %v9950_v50 = vld [vmem:[#allocation136_spill] sm:$0xff] }
 0x24e   : > { %1830 = vmatmul.f32.gmra.mxu3 %v7343_v24  ;;  %v7458_v3 = vpop.f32.mrf.mxu0  ;;  %3328 = vmatpush.msrb.mxu0 %v9946_v56 }
 0x24f   : > { %9945 = vst [vmem:[#allocation12_spill] sm:$0xff] %v7458_v3  ;;  %v7463_v46 = vpop.f32.mrf.mxu1  ;;  %3372 = vmatpush.msrb.mxu1 %v7158_v25  ;;  %v9955_v25 = vld [vmem:[#allocation93_spill] sm:$0xff] }
 0x250   : > { %9947 = vst [vmem:[#allocation123_spill] sm:$0xff] %v7463_v46  ;;  %3329 = vmatpush.msrb.mxu0 %v9948_v40  ;;  %v9953_v40 = vld [vmem:[#allocation99_spill] sm:$0xff] }
 0x251   : > { %3373 = vmatpush.msrb.mxu1 %v7115_v29 }
 0x252   : > { %3330 = vmatpush.msrb.mxu0 %v9949_v52  ;;  %v9956_v52 = vld [vmem:[#allocation87_spill] sm:$0xff] }
 0x253   : > { %3374 = vmatpush.msrb.mxu1 %v9950_v50  ;;  %2860 = vmatmul.f32.gmra.mxu0 %v7304_v59 }
 0x254   : > { %5218 = vmatmul.msk.f32.gmra.mxu1 %vm1048_vm0, %v7312_v10  ;;  %3331 = vmatpush.msrb.mxu0 %v9951_v16  ;;  %v9957_v16 = vld [vmem:[#allocation79_spill] sm:$0xff] }
 0x255   : > { %5120 = vmatmul.msk.f32.gmra.mxu2 %vm1048_vm0, %v7388_v15 }
 0x256   : > { %1833 = vmatmul.f32.gmra.mxu3 %v7383_v5  ;;  %v7475_v56 = vpop.f32.mrf.mxu0  ;;  %3332 = vmatpush.msrb.mxu0 %v9953_v40  ;;  %v9959_v40 = vld [vmem:[#allocation73_spill] sm:$0xff] }
 0x257   : > { %9952 = vst [vmem:[#allocation29_spill] sm:$0xff] %v7475_v56  ;;  %v7480_v29 = vpop.f32.mrf.mxu1 }
 0x258   : > { %9954 = vst [vmem:[#allocation10_spill] sm:$0xff] %v7480_v29  ;;  %3333 = vmatpush.msrb.mxu0 %v9955_v25  ;;  %v9960_v25 = vld [vmem:[#allocation67_spill] sm:$0xff] }
 0x259   : > { %v10004_v29 = vld [vmem:[#allocation47_spill] sm:$0xff] }
 0x25a   : > { %3334 = vmatpush.msrb.mxu0 %v9956_v52  ;;  %v9961_v52 = vld [vmem:[#allocation61_spill] sm:$0xff] }
 0x25b   : > { %2863 = vmatmul.f32.gmra.mxu0 %v7343_v24 }
 0x25c   : > { %5219 = vmatmul.msk.f32.gmra.mxu1 %vm1048_vm0, %v7349_v26  ;;  %3335 = vmatpush.msrb.mxu0 %v9957_v16  ;;  %v9962_v16 = vld [vmem:[#allocation55_spill] sm:$0xff] }
 0x25d   : > { %5121 = vmatmul.msk.f32.gmra.mxu2 %vm1048_vm0, %v7418_v41 }
 0x25e   : > { %1836 = vmatmul.f32.gmra.mxu3 %v7413_v12  ;;  %v7489_v50 = vpop.f32.mrf.mxu0  ;;  %3336 = vmatpush.msrb.mxu0 %v9959_v40  ;;  %v9965_v40 = vld [vmem:[#allocation42_spill] sm:$0xff] }
 0x25f   : > { %9958 = vst [vmem:[#allocation115_spill] sm:$0xff] %v7489_v50  ;;  %v7494_v56 = vpop.f32.mrf.mxu1  ;;  %v9964_v50 = vld [vmem:[#allocation49_spill] sm:$0xff] }
 0x260   : > { %3337 = vmatpush.msrb.mxu0 %v9960_v25 }
 0x262   : > { %3338 = vmatpush.msrb.mxu0 %v9961_v52 }
 0x263   : > { %2866 = vmatmul.f32.gmra.mxu0 %v7383_v5 }
 0x264   : > { %5220 = vmatmul.msk.f32.gmra.mxu1 %vm1048_vm0, %v7388_v15  ;;  %3339 = vmatpush.msrb.mxu0 %v9962_v16 }
 0x266   : > { %v7502_v28 = vpop.f32.mrf.mxu0  ;;  %3340 = vmatpush.msrb.mxu0 %v9964_v50 }
 0x267   : > { %9963 = vst [vmem:[#allocation82_spill] sm:$0xff] %v7502_v28  ;;  %v7505_v11 = vpop.f32.mrf.mxu1  ;;  %v7531_v28 = vpop.f32.mrf.mxu3 }
 0x268   : > { %3341 = vmatpush.msrb.mxu0 %v9965_v40  ;;  %9973 = vst [vmem:[#allocation112_spill] sm:$0xff] %v7531_v28 }
 0x26a   : > { %3342 = vmatpush.msrb.mxu0 %v9966_v30 }
 0x26b   : > { %2869 = vmatmul.f32.gmra.mxu0 %v7413_v12 }
 0x26c   : > { %5221 = vmatmul.msk.f32.gmra.mxu1 %vm1048_vm0, %v7418_v41 }
 0x26e   : > { %v7512_v25 = vpop.f32.mrf.mxu0 }
 0x26f   : > { %9967 = vst [vmem:[#allocation127_spill] sm:$0xff] %v7512_v25  ;;  %v7514_v52 = vpop.f32.mrf.mxu1  ;;  %v7542_v2 = vpop.f32.mrf.mxu3 }
 0x270   : > { %9968 = vst [vmem:[#allocation119_spill] sm:$0xff] %v7514_v52 }
 0x271   : > { %9976 = vst [vmem:[#allocation99_spill] sm:$0xff] %v7542_v2 }
 0x273   : > { %3279 = vmatmul.f32.vlgmr.msra.gmra.mxu0 %v7265_v4 }
 0x274   : > { %5262 = vmatmul.msk.f32.vlgmr.msra.gmra.mxu1 %vm1048_vm0, %v7270_v53 }
 0x276   : > { %v7519_v50 = vpop.f32.mrf.mxu0 }
 0x277   : > { %9969 = vst [vmem:[#allocation111_spill] sm:$0xff] %v7519_v50  ;;  %v7521_v16 = vpop.f32.mrf.mxu1 }
 0x278   : > { %9970 = vst [vmem:[#allocation86_spill] sm:$0xff] %v7521_v16 }
 0x27b   : > { %3282 = vmatmul.f32.gmra.mxu0 %v7304_v59 }
 0x27c   : > { %5263 = vmatmul.msk.f32.gmra.mxu1 %vm1048_vm0, %v7312_v10 }
 0x27e   : > { %v7526_v30 = vpop.f32.mrf.mxu0 }
 0x27f   : > { %9971 = vst [vmem:[#allocation128_spill] sm:$0xff] %v7526_v30  ;;  %v7528_v40 = vpop.f32.mrf.mxu1 }
 0x280   : > { %9972 = vst [vmem:[#allocation120_spill] sm:$0xff] %v7528_v40 }
 0x283   : > { %3285 = vmatmul.f32.gmra.mxu0 %v7343_v24 }
 0x284   : > { %5264 = vmatmul.msk.f32.gmra.mxu1 %vm1048_vm0, %v7349_v26 }
 0x286   : > { %v7535_v48 = vpop.f32.mrf.mxu0 }
 0x287   : > { %9974 = vst [vmem:[#allocation136_spill] sm:$0xff] %v7535_v48  ;;  %v7537_v50 = vpop.f32.mrf.mxu1 }
 0x288   : > { %9975 = vst [vmem:[#allocation105_spill] sm:$0xff] %v7537_v50 }
 0x28b   : > { %3288 = vmatmul.f32.gmra.mxu0 %v7383_v5 }
 0x28c   : > { %5265 = vmatmul.msk.f32.gmra.mxu1 %vm1048_vm0, %v7388_v15 }
 0x28f   : > { %v7546_v33 = vpop.f32.mrf.mxu1 }
 0x290   : > { %v7544_v30 = vpop.f32.mrf.mxu0  ;;  %9978 = vst [vmem:[#allocation87_spill] sm:$0xff] %v7546_v33 }
 0x291   : > { %9977 = vst [vmem:[#allocation93_spill] sm:$0xff] %v7544_v30 }
 0x293   : > { %3291 = vmatmul.f32.gmra.mxu0 %v7413_v12 }
 0x294   : > { %5266 = vmatmul.msk.f32.gmra.mxu1 %vm1048_vm0, %v7418_v41 }
 0x297   : > { %v1761_v28 = vpop.f32.mrf.mxu2 }
 0x298   : > { %v1793_v48 = vpop.f32.mrf.mxu3  ;;  %v7551_v57 = vpop.f32.mrf.mxu0 }
 0x299   : > { %9979 = vst [vmem:[#allocation79_spill] sm:$0xff] %v7551_v57  ;;  %v7553_v62 = vpop.f32.mrf.mxu1  ;;  %v1794_v47 = vadd.f32 %v1793_v48, %v1761_v28 }
 0x29a   : > { %9980 = vst [vmem:[#allocation73_spill] sm:$0xff] %v7553_v62 }
 0x29b   : > { %3343 = vmatmul.f32.vlgmr.msrb.gmra.mxu0 %v7265_v4 }
 0x29c   : > { %5267 = vmatmul.msk.f32.vlgmr.msrb.gmra.mxu1 %vm1048_vm0, %v7270_v53 }
 0x2a0   : > { %v1764_v2 = vpop.f32.mrf.mxu2  ;;  %v7558_v35 = vpop.f32.mrf.mxu0 }
 0x2a1   : > { %v1796_v8 = vpop.f32.mrf.mxu3  ;;  %9981 = vst [vmem:[#allocation67_spill] sm:$0xff] %v7558_v35  ;;  %v7560_v43 = vpop.f32.mrf.mxu1 }
 0x2a2   : > { %9982 = vst [vmem:[#allocation61_spill] sm:$0xff] %v7560_v43  ;;  %v1797_v0 = vadd.f32 %v1796_v8, %v1764_v2 }
 0x2a3   : > { %3346 = vmatmul.f32.gmra.mxu0 %v7304_v59 }
 0x2a4   : > { %5268 = vmatmul.msk.f32.gmra.mxu1 %vm1048_vm0, %v7312_v10 }
 0x2a8   : > { %v1767_v36 = vpop.f32.mrf.mxu2  ;;  %v7565_v57 = vpop.f32.mrf.mxu0 }
 0x2a9   : > { %9983 = vst [vmem:[#allocation55_spill] sm:$0xff] %v7565_v57  ;;  %v1799_v55 = vpop.f32.mrf.mxu3  ;;  %v7567_v21 = vpop.f32.mrf.mxu1  ;;  %v1872_v57 = vmax.f32 %v1794_v47, %v1797_v0 }
 0x2aa   : > { %9984 = vst [vmem:[#allocation49_spill] sm:$0xff] %v7567_v21  ;;  %v1800_v10 = vadd.f32 %v1799_v55, %v1767_v36 }
 0x2ab   : > { %3349 = vmatmul.f32.gmra.mxu0 %v7343_v24 }
 0x2ac   : > { %5269 = vmatmul.msk.f32.gmra.mxu1 %vm1048_vm0, %v7349_v26  ;;  %v1874_v24 = vmax.f32 %v1872_v57, %v1800_v10 }
 0x2b0   : > { %v7572_v4 = vpop.f32.mrf.mxu0  ;;  %v1770_v53 = vpop.f32.mrf.mxu2 }
 0x2b1   : > { %9985 = vst [vmem:[#allocation42_spill] sm:$0xff] %v7572_v4  ;;  %v1802_v35 = vpop.f32.mrf.mxu3  ;;  %v7574_v59 = vpop.f32.mrf.mxu1 }
 0x2b2   : > { %9986 = vst [vmem:[#allocation34_spill] sm:$0xff] %v7574_v59  ;;  %v1803_v22 = vadd.f32 %v1802_v35, %v1770_v53 }
 0x2b3   : > { %3352 = vmatmul.f32.gmra.mxu0 %v7383_v5 }
 0x2b4   : > { %5270 = vmatmul.msk.f32.gmra.mxu1 %vm1048_vm0, %v7388_v15  ;;  %v1876_v4 = vmax.f32 %v1874_v24, %v1803_v22 }
 0x2b8   : > { %v7579_v20 = vpop.f32.mrf.mxu0  ;;  %v1773_v26 = vpop.f32.mrf.mxu2 }
 0x2b9   : > { %9987 = vst [vmem:[#allocation147_spill] sm:$0xff] %v7579_v20  ;;  %v1805_v19 = vpop.f32.mrf.mxu3  ;;  %v7581_v61 = vpop.f32.mrf.mxu1 }
 0x2ba   : > { %v1806_v39 = vadd.f32 %v1805_v19, %v1773_v26  ;;  %9988 = vst [vmem:[#allocation148_spill] sm:$0xff] %v7581_v61 }
 0x2bb   : > { %3355 = vmatmul.f32.gmra.mxu0 %v7413_v12 }
 0x2bc   : > { %v1878_v2 = vmax.f32 %v1876_v4, %v1806_v39  ;;  %5271 = vmatmul.msk.f32.gmra.mxu1 %vm1048_vm0, %v7418_v41 }
 0x2be   : > { %v1880_v48 = vsub.f32 %v1794_v47, %v1878_v2  ;;  %v1882_v36 = vsub.f32 %v1797_v0, %v1878_v2  ;;  %v1884_v55 = vsub.f32 %v1800_v10, %v1878_v2  ;;  %v1886_v8 = vsub.f32 %v1803_v22, %v1878_v2 }
 0x2bf   : > { %v1888_v5 = vsub.f32 %v1806_v39, %v1878_v2 }
 0x2c0   : > { %v1890_v35 = vmul.f32 1.442695, %v1880_v48  ;;  %v1894_v57 = vmul.f32 1.442695, %v1882_v36  ;;  %v7586_v28 = vpop.f32.mrf.mxu0  ;;  %v1898_v15 = vmul.f32 1.442695, %v1884_v55  ;;  %v1857_v19 = vpop.f32.mrf.mxu2 }
 0x2c1   : > { %9989 = vst [vmem:[#allocation149_spill] sm:$0xff] %v7586_v28  ;;  %v1825_v53 = vpop.f32.mrf.mxu3  ;;  %v7588_v24 = vpop.f32.mrf.mxu1  ;;  %v1902_v12 = vmul.f32 1.442695, %v1886_v8  ;;  %v1906_v4 = vmul.f32 1.442695, %v1888_v5 }
 0x2c2   : > { %5472 = vpow2.f32 %v1890_v35  ;;  %9990 = vst [vmem:[#allocation150_spill] sm:$0xff] %v7588_v24 }
 0x2c3   : > { %5474 = vpow2.f32 %v1894_v57 }
 0x2c4   : > { %5476 = vpow2.f32 %v1898_v15 }
 0x2c5   : > { %5478 = vpow2.f32 %v1902_v12 }
 0x2c6   : > { %5480 = vpow2.f32 %v1906_v4 }
 0x2c8   : > { %v7590_v47 = vpop.eup %5472  ;;  %v7592_v0 = vpop.f32.mrf.mxu0 }
 0x2c9   : > { %v5475_v22 = vpop.eup %5474  ;;  %v1828_v41 = vpop.f32.mrf.mxu3 }
 0x2ca   : > { %v1860_v10 = vpop.f32.mrf.mxu2  ;;  %v1910_v39 = vadd.f32 %v5475_v22, %v7590_v47  ;;  %v7595_v26 = vpop.f32.mrf.mxu1 }
 0x2cb   : > { %v5477_v2 = vpop.eup %5476 }
 0x2cc   : > { %v1912_v48 = vadd.f32 %v5477_v2, %v1910_v39  ;;  %v5479_v36 = vpop.eup %5478  ;;  %v1861_v39 = vadd.f32 %v1860_v10, %v1828_v41 }
 0x2cd   : > { %v5481_v8 = vpop.eup %5480 }
 0x2ce   : > { %v1914_v55 = vadd.f32 %v5479_v36, %v1912_v48  ;;  %v1858_v48 = vadd.f32 %v1857_v19, %v1825_v53 }
 0x2d0   : > { %v1916_v35 = vadd.f32 %v5481_v8, %v1914_v55  ;;  %v7597_v5 = vpop.f32.mrf.mxu0  ;;  %v1873_v33 = vmax.f32 %v1858_v48, %v1861_v39 }
 0x2d1   : > { %v1831_v57 = vpop.f32.mrf.mxu3 }
 0x2d2   : > { %5482 = vrcp.f32 %v1916_v35  ;;  %v1863_v15 = vpop.f32.mrf.mxu2  ;;  %v7599_v12 = vpop.f32.mrf.mxu1  ;;  %v1929_v21 = vand.u32 2147483648, %v1916_v35  ;;  %v1927_v62 = vand.u32 2147483647, %v1916_v35  ;;  %vm1923_vm2 = vweird.f32 %v1916_v35 }
 0x2d3   : > { %v1864_v55 = vadd.f32 %v1863_v15, %v1831_v57 }
 0x2d4   : > { %v1930_v16 = vor.u32 1.1754944e-38, %v1929_v21  ;;  %vm1928_vm4 = vcmp.eq.f32.partialorder %v1927_v62, 8.507059e+37 }
 0x2d5   : > { %v1875_v52 = vmax.f32 %v1873_v33, %v1864_v55 }
 0x2d8   : > { %v5483_v4 = vpop.eup %5482  ;;  %v7601_v24 = vpop.f32.mrf.mxu0 }
 0x2d9   : > { %v1919_v59 = vmul.f32 %v5483_v4, %v1916_v35  ;;  %v1834_v61 = vpop.f32.mrf.mxu3  ;;  %vm1924_vm1 = vweird.f32 %v5483_v4 }
 0x2da   : > { %v1866_v20 = vpop.f32.mrf.mxu2  ;;  %v7603_v28 = vpop.f32.mrf.mxu1  ;;  %vm1925_vm3 = vmor %vm1923_vm2, %vm1924_vm1 }
 0x2db   : > { %v1920_v54 = vsub.f32 1.0, %v1919_v59  ;;  %v1867_v50 = vadd.f32 %v1866_v20, %v1834_v61 }
 0x2dd   : > { %v1921_v43 = vmul.f32 %v5483_v4, %v1920_v54  ;;  %v1877_v19 = vmax.f32 %v1875_v52, %v1867_v50 }
 0x2df   : > { %v1922_v40 = vadd.f32 %v5483_v4, %v1921_v43 }
 0x2e0   : > { %v7605_v25 = vpop.f32.mrf.mxu0 }
 0x2e1   : > { %v1837_v30 = vpop.f32.mrf.mxu3  ;;  %v1926_v3 = vsel %vm1925_vm3, %v5483_v4, %v1922_v40 }
 0x2e2   : > { %v1869_v41 = vpop.f32.mrf.mxu2  ;;  %v7607_v59 = vpop.f32.mrf.mxu1  ;;  %v1931_v53 = vsel %vm1928_vm4, %v1930_v16, %v1926_v3 }
 0x2e3   : > { %v1870_v54 = vadd.f32 %v1869_v41, %v1837_v30  ;;  %v1954_v10 = vmul.f32 %v5481_v8, %v1931_v53  ;;  %v1952_v20 = vmul.f32 %v5479_v36, %v1931_v53  ;;  %v1950_v33 = vmul.f32 %v5477_v2, %v1931_v53  ;;  %v7617_v30 = vld [vmem:[%s9589_s5] sm:$0xff]  ;;  %v7633_v41 = vld [vmem:[%s9589_s5 + $0x8] sm:$0xff] }
 0x2e4   : > { %v1948_v62 = vmul.f32 %v5475_v22, %v1931_v53  ;;  %v1946_v16 = vmul.f32 %v7590_v47, %v1931_v53  ;;  %v9991_v2 = vld [vmem:[#allocation132_spill] sm:$0xff]  ;;  %v9992_v47 = vld [vmem:[#allocation125_spill] sm:$0xff] }
 0x2e5   : > { %v1879_v57 = vmax.f32 %v1877_v19, %v1870_v54  ;;  %2028 = vmatpush.msra.mxu3 %v1954_v10 }
 0x2e7   : > { %v1881_v43 = vsub.f32 %v1858_v48, %v1879_v57  ;;  %v1883_v61 = vsub.f32 %v1861_v39, %v1879_v57  ;;  %v1885_v35 = vsub.f32 %v1864_v55, %v1879_v57  ;;  %2029 = vmatpush.msra.mxu3 %v1952_v20  ;;  %v1887_v21 = vsub.f32 %v1867_v50, %v1879_v57  ;;  %v9993_v55 = vld [vmem:[#allocation117_spill] sm:$0xff]  ;;  %v9995_v20 = vld [vmem:[#allocation103_spill] sm:$0xff] }
 0x2e8   : > { %v7609_v40 = vpop.f32.mrf.mxu0  ;;  %v1889_v4 = vsub.f32 %v1870_v54, %v1879_v57  ;;  %v9994_v54 = vld [vmem:[#allocation109_spill] sm:$0xff] }
 0x2e9   : > { %v1892_v15 = vmul.f32 1.442695, %v1881_v43  ;;  %v1896_v13 = vmul.f32 1.442695, %v1883_v61  ;;  %2030 = vmatpush.msra.mxu3 %v1950_v33  ;;  %v1900_v3 = vmul.f32 1.442695, %v1885_v35 }
 0x2ea   : > { %v7611_v52 = vpop.f32.mrf.mxu1  ;;  %v1904_v50 = vmul.f32 1.442695, %v1887_v21  ;;  %v1908_v22 = vmul.f32 1.442695, %v1889_v4  ;;  %v9996_v35 = vld [vmem:[#allocation97_spill] sm:$0xff]  ;;  %v9998_v4 = vld [vmem:[#allocation84_spill] sm:$0xff] }
 0x2eb   : > { %5484 = vpow2.f32 %v1892_v15  ;;  %2031 = vmatpush.msra.mxu3 %v1948_v62  ;;  %v9997_v15 = vld [vmem:[#allocation91_spill] sm:$0xff]  ;;  %v7644_v62 = vld [vmem:[%s9589_s5 + $0x10] sm:$0xff] }
 0x2ec   : > { %5486 = vpow2.f32 %v1896_v13 }
 0x2ed   : > { %2032 = vmatpush.msra.mxu3 %v1946_v16  ;;  %5488 = vpow2.f32 %v1900_v3  ;;  %v9999_v3 = vld [vmem:[#allocation77_spill] sm:$0xff] }
 0x2ee   : > { %5122 = vmatmul.msk.f32.vlgmr.msra.gmra.mxu3 %vm1956_vm5, %v7617_v30  ;;  %5490 = vpow2.f32 %v1904_v50  ;;  %v10000_v50 = vld [vmem:[#allocation71_spill] sm:$0xff] }
 0x2ef   : > { %2291 = vmatpush.msrb.mxu3 %v9991_v2  ;;  %5492 = vpow2.f32 %v1908_v22 }
 0x2f0   : > { %v3280_v8 = vpop.f32.mrf.mxu0 }
 0x2f1   : > { %v7622_v36 = vpop.eup %5484  ;;  %2292 = vmatpush.msrb.mxu3 %v9992_v47 }
 0x2f2   : > { %v7625_v39 = vpop.eup %5486  ;;  %v3312_v48 = vpop.f32.mrf.mxu1 }
 0x2f3   : > { %v1911_v13 = vadd.f32 %v7625_v39, %v7622_v36  ;;  %2293 = vmatpush.msrb.mxu3 %v9993_v55  ;;  %v5489_v53 = vpop.eup %5488  ;;  %v7655_v55 = vld [vmem:[%s9589_s5 + $0x18] sm:$0xff] }
 0x2f4   : > { %v5491_v10 = vpop.eup %5490 }
 0x2f5   : > { %v1913_v19 = vadd.f32 %v5489_v53, %v1911_v13  ;;  %2294 = vmatpush.msrb.mxu3 %v9994_v54  ;;  %v5493_v43 = vpop.eup %5492  ;;  %v10001_v13 = vld [vmem:[#allocation65_spill] sm:$0xff]  ;;  %v3313_v54 = vadd.f32 %v3312_v48, %v3280_v8 }
 0x2f6   : > { %5123 = vmatmul.msk.f32.gmra.mxu3 %vm1956_vm5, %v7633_v41 }
 0x2f7   : > { %v1915_v57 = vadd.f32 %v5491_v10, %v1913_v19  ;;  %2295 = vmatpush.msrb.mxu3 %v9995_v20  ;;  %v10002_v20 = vld [vmem:[#allocation59_spill] sm:$0xff] }
 0x2f8   : > { %v3283_v33 = vpop.f32.mrf.mxu0 }
 0x2f9   : > { %v1917_v61 = vadd.f32 %v5493_v43, %v1915_v57  ;;  %2296 = vmatpush.msrb.mxu3 %v9996_v35 }
 0x2fa   : > { %v3315_v21 = vpop.f32.mrf.mxu1 }
 0x2fb   : > { %5494 = vrcp.f32 %v1917_v61  ;;  %2297 = vmatpush.msrb.mxu3 %v9997_v15  ;;  %v3316_v57 = vadd.f32 %v3315_v21, %v3283_v33  ;;  %v1943_v35 = vand.u32 2147483648, %v1917_v61  ;;  %vm1937_vm7 = vweird.f32 %v1917_v61  ;;  %v10005_v21 = vld [vmem:[#allocation40_spill] sm:$0xff] }
 0x2fd   : > { %2298 = vmatpush.msrb.mxu3 %v9998_v4  ;;  %v1941_v4 = vand.u32 2147483647, %v1917_v61  ;;  %v1944_v8 = vor.u32 1.1754944e-38, %v1943_v35 }
 0x2fe   : > { %5124 = vmatmul.msk.f32.gmra.mxu3 %vm1956_vm5, %v7644_v62 }
 0x2ff   : > { %2299 = vmatpush.msrb.mxu3 %v9999_v3  ;;  %v10003_v3 = vld [vmem:[#allocation53_spill] sm:$0xff]  ;;  %vm1942_vm9 = vcmp.eq.f32.partialorder %v1941_v4, 8.507059e+37 }
 0x300   : > { %v3286_v22 = vpop.f32.mrf.mxu0 }
 0x301   : > { %v5495_v16 = vpop.eup %5494  ;;  %2300 = vmatpush.msrb.mxu3 %v10000_v50 }
 0x302   : > { %v1933_v2 = vmul.f32 %v5495_v16, %v1917_v61  ;;  %v3318_v47 = vpop.f32.mrf.mxu1  ;;  %vm1938_vm6 = vweird.f32 %v5495_v16 }
 0x303   : > { %2301 = vmatpush.msrb.mxu3 %v10001_v13  ;;  %v3391_v13 = vmax.f32 %v3313_v54, %v3316_v57  ;;  %v3319_v23 = vadd.f32 %v3318_v47, %v3286_v22  ;;  %vm1939_vm8 = vmor %vm1937_vm7, %vm1938_vm6  ;;  %v10006_v22 = vld [vmem:[#allocation32_spill] sm:$0xff] }
 0x304   : > { %v1934_v19 = vsub.f32 1.0, %v1933_v2 }
 0x305   : > { %2302 = vmatpush.msrb.mxu3 %v10002_v20  ;;  %v3393_v61 = vmax.f32 %v3391_v13, %v3319_v23 }
 0x306   : > { %5125 = vmatmul.msk.f32.gmra.mxu3 %vm1956_vm5, %v7655_v55  ;;  %v1935_v15 = vmul.f32 %v5495_v16, %v1934_v19 }
 0x307   : > { %2303 = vmatpush.msrb.mxu3 %v10003_v3  ;;  %v7666_v3 = vld [vmem:[%s9589_s5 + $0x20] sm:$0xff] }
 0x308   : > { %v1936_v50 = vadd.f32 %v5495_v16, %v1935_v15  ;;  %v3289_v2 = vpop.f32.mrf.mxu0 }
 0x309   : > { %2304 = vmatpush.msrb.mxu3 %v10004_v29  ;;  %v10007_v29 = vld [vmem:[#allocation134_spill] sm:$0xff] }
 0x30a   : > { %v3321_v48 = vpop.f32.mrf.mxu1  ;;  %v1940_v33 = vsel %vm1939_vm8, %v5495_v16, %v1936_v50  ;;  %v10008_v16 = vld [vmem:[#allocation129_spill] sm:$0xff] }
 0x30b   : > { %2305 = vmatpush.msrb.mxu3 %v10005_v21  ;;  %v1945_v20 = vsel %vm1942_vm9, %v1944_v8, %v1940_v33  ;;  %v3322_v15 = vadd.f32 %v3321_v48, %v3289_v2  ;;  %v10009_v50 = vld [vmem:[#allocation121_spill] sm:$0xff]  ;;  %v10011_v21 = vld [vmem:[#allocation106_spill] sm:$0xff] }
 0x30c   : > { %v1955_v19 = vmul.f32 %v5493_v43, %v1945_v20  ;;  %v1953_v47 = vmul.f32 %v5491_v10, %v1945_v20  ;;  %v1951_v43 = vmul.f32 %v5489_v53, %v1945_v20  ;;  %v1949_v13 = vmul.f32 %v7625_v39, %v1945_v20  ;;  %v10010_v48 = vld [vmem:[#allocation113_spill] sm:$0xff] }
 0x30d   : > { %2306 = vmatpush.msrb.mxu3 %v10006_v22  ;;  %v3395_v35 = vmax.f32 %v3393_v61, %v3322_v15  ;;  %v1947_v10 = vmul.f32 %v7622_v36, %v1945_v20  ;;  %v7680_v33 = vld [vmem:[%s9589_s5 + $0x28] sm:$0xff]  ;;  %v10012_v36 = vld [vmem:[#allocation100_spill] sm:$0xff] }
 0x30e   : > { %2105 = vmatpush.msra.mxu2 %v1955_v19  ;;  %5126 = vmatmul.msk.f32.gmra.mxu3 %vm1956_vm5, %v7666_v3 }
 0x30f   : > { %2355 = vmatpush.msra.mxu3 %v10007_v29 }
 0x310   : > { %2106 = vmatpush.msra.mxu2 %v1953_v47  ;;  %v3292_v4 = vpop.f32.mrf.mxu0 }
 0x311   : > { %2356 = vmatpush.msra.mxu3 %v10008_v16 }
 0x312   : > { %2107 = vmatpush.msra.mxu2 %v1951_v43  ;;  %v3324_v2 = vpop.f32.mrf.mxu1 }
 0x313   : > { %2357 = vmatpush.msra.mxu3 %v10009_v50  ;;  %v3325_v8 = vadd.f32 %v3324_v2, %v3292_v4  ;;  %v10015_v4 = vld [vmem:[#allocation88_spill] sm:$0xff]  ;;  %v7695_v50 = vld [vmem:[%s9589_s5 + $0x30] sm:$0xff]  ;;  %v10018_v2 = vld [vmem:[#allocation135_spill] sm:$0xff] }
 0x314   : > { %2108 = vmatpush.msra.mxu2 %v1949_v13  ;;  %v10016_v13 = vld [vmem:[#allocation140_spill] sm:$0xff] }
 0x315   : > { %2358 = vmatpush.msra.mxu3 %v10010_v48  ;;  %v3397_v53 = vmax.f32 %v3395_v35, %v3325_v8 }
 0x316   : > { %2109 = vmatpush.msra.mxu2 %v1947_v10  ;;  %5127 = vmatmul.msk.f32.gmra.mxu3 %vm1956_vm5, %v7680_v33 }
 0x317   : > { %2359 = vmatpush.msra.mxu3 %v10011_v21  ;;  %v3399_v19 = vsub.f32 %v3313_v54, %v3397_v53  ;;  %v3401_v61 = vsub.f32 %v3316_v57, %v3397_v53  ;;  %v3403_v22 = vsub.f32 %v3319_v23, %v3397_v53  ;;  %v3405_v39 = vsub.f32 %v3322_v15, %v3397_v53  ;;  %v10013_v54 = vld [vmem:[#allocation94_spill] sm:$0xff]  ;;  %v10014_v57 = vld [vmem:[#allocation144_spill] sm:$0xff]  ;;  %v10020_v21 = vld [vmem:[#allocation145_spill] sm:$0xff] }
 0x318   : > { %v3407_v29 = vsub.f32 %v3325_v8, %v3397_v53  ;;  %5142 = vmatmul.msk.f32.vlgmr.msra.gmra.mxu2 %vm1956_vm5, %v7617_v30  ;;  %v3344_v43 = vpop.f32.mrf.mxu0  ;;  %v10019_v8 = vld [vmem:[#allocation74_spill] sm:$0xff] }
 0x319   : > { %2360 = vmatpush.msra.mxu3 %v10012_v36  ;;  %v3409_v20 = vmul.f32 1.442695, %v3399_v19  ;;  %v3413_v47 = vmul.f32 1.442695, %v3401_v61  ;;  %v3417_v16 = vmul.f32 1.442695, %v3403_v22  ;;  %2335 = vmatpush.msrb.mxu2 %v7210_v7 }
 0x31a   : > { %v3421_v35 = vmul.f32 1.442695, %v3405_v39  ;;  %v3376_v23 = vpop.f32.mrf.mxu1  ;;  %v3425_v15 = vmul.f32 1.442695, %v3407_v29  ;;  %v10017_v7 = vld [vmem:[#allocation80_spill] sm:$0xff]  ;;  %v10022_v29 = vld [vmem:[#allocation141_spill] sm:$0xff] }
 0x31b   : > { %2361 = vmatpush.msra.mxu3 %v10013_v54  ;;  %5496 = vpow2.f32 %v3409_v20  ;;  %2336 = vmatpush.msrb.mxu2 %v10014_v57  ;;  %v10021_v19 = vld [vmem:[#allocation68_spill] sm:$0xff]  ;;  %v10023_v36 = vld [vmem:[#allocation62_spill] sm:$0xff]  ;;  %v7719_v20 = vld [vmem:[%s9589_s5 + $0x38] sm:$0xff] }
 0x31c   : > { %5498 = vpow2.f32 %v3413_v47  ;;  %v10025_v54 = vld [vmem:[#allocation56_spill] sm:$0xff] }
 0x31d   : > { %2362 = vmatpush.msra.mxu3 %v10015_v4  ;;  %5500 = vpow2.f32 %v3417_v16  ;;  %2337 = vmatpush.msrb.mxu2 %v10016_v13 }
 0x31e   : > { %5502 = vpow2.f32 %v3421_v35  ;;  %5128 = vmatmul.msk.f32.gmra.mxu3 %vm1956_vm5, %v7695_v50  ;;  %v10024_v35 = vld [vmem:[#allocation137_spill] sm:$0xff] }
 0x31f   : > { %2363 = vmatpush.msra.mxu3 %v10017_v7  ;;  %2338 = vmatpush.msrb.mxu2 %v10018_v2  ;;  %5504 = vpow2.f32 %v3425_v15  ;;  %v10026_v15 = vld [vmem:[#allocation50_spill] sm:$0xff]  ;;  %v10027_v7 = vld [vmem:[#allocation43_spill] sm:$0xff] }
 0x320   : > { %5143 = vmatmul.msk.f32.gmra.mxu2 %vm1956_vm5, %v7633_v41  ;;  %v3347_v10 = vpop.f32.mrf.mxu0 }
 0x321   : > { %2399 = vmatpush.msra.mxu2 %v7225_v49  ;;  %2364 = vmatpush.msra.mxu3 %v10019_v8  ;;  %v7704_v48 = vpop.eup %5496  ;;  %v10028_v8 = vld [vmem:[#allocation35_spill] sm:$0xff] }
 0x322   : > { %v7708_v53 = vpop.eup %5498  ;;  %v3379_v61 = vpop.f32.mrf.mxu1 }
 0x323   : > { %2400 = vmatpush.msra.mxu2 %v10020_v21  ;;  %2365 = vmatpush.msra.mxu3 %v10021_v19  ;;  %v5501_v22 = vpop.eup %5500  ;;  %v3429_v39 = vadd.f32 %v7708_v53, %v7704_v48  ;;  %v7733_v21 = vld [vmem:[%s9589_s5 + $0x40] sm:$0xff]  ;;  %v3377_v19 = vadd.f32 %v3376_v23, %v3344_v43 }
 0x324   : > { %v5503_v49 = vpop.eup %5502 }
 0x325   : > { %2401 = vmatpush.msra.mxu2 %v10022_v29  ;;  %2366 = vmatpush.msra.mxu3 %v10023_v36  ;;  %v3431_v47 = vadd.f32 %v5501_v22, %v3429_v39  ;;  %v5505_v16 = vpop.eup %5504  ;;  %v3380_v39 = vadd.f32 %v3379_v61, %v3347_v10 }
 0x326   : > { %5129 = vmatmul.msk.f32.gmra.mxu3 %vm1956_vm5, %v7719_v20 }
 0x327   : > { %2402 = vmatpush.msra.mxu2 %v10024_v35  ;;  %2367 = vmatpush.msra.mxu3 %v10025_v54  ;;  %v3433_v57 = vadd.f32 %v5503_v49, %v3431_v47  ;;  %v3392_v36 = vmax.f32 %v3377_v19, %v3380_v39 }
 0x328   : > { %5144 = vmatmul.msk.f32.gmra.mxu2 %vm1956_vm5, %v7644_v62  ;;  %v3350_v13 = vpop.f32.mrf.mxu0 }
 0x329   : > { %2368 = vmatpush.msra.mxu3 %v10026_v15  ;;  %v3435_v4 = vadd.f32 %v5505_v16, %v3433_v57 }
 0x32a   : > { %v3382_v2 = vpop.f32.mrf.mxu1 }
 0x32b   : > { %2369 = vmatpush.msra.mxu3 %v10027_v7  ;;  %5506 = vrcp.f32 %v3435_v4  ;;  %v3383_v47 = vadd.f32 %v3382_v2, %v3350_v13  ;;  %v3448_v15 = vand.u32 2147483648, %v3435_v4  ;;  %v7742_v7 = vld [vmem:[%s9589_s5 + $0x48] sm:$0xff]  ;;  %vm3442_vm10 = vweird.f32 %v3435_v4 }
 0x32c   : > { %v3446_v23 = vand.u32 2147483647, %v3435_v4 }
 0x32d   : > { %2370 = vmatpush.msra.mxu3 %v10028_v8  ;;  %v3394_v10 = vmax.f32 %v3392_v36, %v3383_v47  ;;  %v3449_v13 = vor.u32 1.1754944e-38, %v3448_v15 }
 0x32e   : > { %5130 = vmatmul.msk.f32.gmra.mxu3 %vm1956_vm5, %v7733_v21  ;;  %vm3447_vm13 = vcmp.eq.f32.partialorder %v3446_v23, 8.507059e+37 }
 0x330   : > { %5145 = vmatmul.msk.f32.gmra.mxu2 %vm1956_vm5, %v7655_v55  ;;  %v3353_v35 = vpop.f32.mrf.mxu0 }
 0x331   : > { %v5507_v29 = vpop.eup %5506 }
 0x332   : > { %v3438_v54 = vmul.f32 %v5507_v29, %v3435_v4  ;;  %v3385_v57 = vpop.f32.mrf.mxu1  ;;  %vm3443_vm11 = vweird.f32 %v5507_v29  ;;  %v7751_v4 = vld [vmem:[%s9589_s5 + $0x50] sm:$0xff] }
 0x333   : > { %v3386_v61 = vadd.f32 %v3385_v57, %v3353_v35  ;;  %vm3444_vm12 = vmor %vm3442_vm10, %vm3443_vm11 }
 0x334   : > { %v3439_v43 = vsub.f32 1.0, %v3438_v54 }
 0x335   : > { %v3396_v1 = vmax.f32 %v3394_v10, %v3386_v61 }
 0x336   : > { %v3440_v8 = vmul.f32 %v5507_v29, %v3439_v43  ;;  %5131 = vmatmul.msk.f32.gmra.mxu3 %vm1956_vm5, %v7742_v7 }
 0x338   : > { %v3441_v2 = vadd.f32 %v5507_v29, %v3440_v8  ;;  %5146 = vmatmul.msk.f32.gmra.mxu2 %vm1956_vm5, %v7666_v3  ;;  %v3356_v14 = vpop.f32.mrf.mxu0 }
 0x33a   : > { %v3388_v46 = vpop.f32.mrf.mxu1  ;;  %v3445_v54 = vsel %vm3444_vm12, %v5507_v29, %v3441_v2 }
 0x33b   : > { %v3389_v60 = vadd.f32 %v3388_v46, %v3356_v14  ;;  %v3450_v9 = vsel %vm3447_vm13, %v3449_v13, %v3445_v54 }
 0x33c   : > { %v3473_v36 = vmul.f32 %v5505_v16, %v3450_v9  ;;  %v3471_v35 = vmul.f32 %v5503_v49, %v3450_v9  ;;  %v3469_v15 = vmul.f32 %v5501_v22, %v3450_v9  ;;  %v3467_v14 = vmul.f32 %v7708_v53, %v3450_v9 }
 0x33d   : > { %v3398_v57 = vmax.f32 %v3396_v1, %v3389_v60  ;;  %v3465_v22 = vmul.f32 %v7704_v48, %v3450_v9 }
 0x33e   : > { %3486 = vmatpush.msra.mxu0 %v3473_v36  ;;  %5132 = vmatmul.msk.f32.gmra.mxu3 %vm1956_vm5, %v7751_v4 }
 0x33f   : > { %v3400_v43 = vsub.f32 %v3377_v19, %v3398_v57  ;;  %v3402_v23 = vsub.f32 %v3380_v39, %v3398_v57  ;;  %v3404_v10 = vsub.f32 %v3383_v47, %v3398_v57  ;;  %v3406_v8 = vsub.f32 %v3386_v61, %v3398_v57  ;;  %v7773_v39 = vld [vmem:[%s9589_s5 + $0x60] sm:$0xff] }
 0x340   : > { %v3408_v29 = vsub.f32 %v3389_v60, %v3398_v57  ;;  %3487 = vmatpush.msra.mxu0 %v3471_v35  ;;  %5147 = vmatmul.msk.f32.gmra.mxu2 %vm1956_vm5, %v7680_v33  ;;  %v7762_v60 = vld [vmem:[%s9589_s5 + $0x58] sm:$0xff]  ;;  %v7784_v35 = vld [vmem:[%s9589_s5 + $0x68] sm:$0xff] }
 0x341   : > { %v3411_v46 = vmul.f32 1.442695, %v3400_v43  ;;  %v3415_v13 = vmul.f32 1.442695, %v3402_v23  ;;  %v3419_v2 = vmul.f32 1.442695, %v3404_v10 }
 0x342   : > { %v3423_v1 = vmul.f32 1.442695, %v3406_v8  ;;  %3488 = vmatpush.msra.mxu0 %v3469_v15  ;;  %v3427_v49 = vmul.f32 1.442695, %v3408_v29  ;;  %v7795_v23 = vld [vmem:[%s9589_s5 + $0x70] sm:$0xff] }
 0x343   : > { %5508 = vpow2.f32 %v3411_v46 }
 0x344   : > { %5510 = vpow2.f32 %v3415_v13  ;;  %3489 = vmatpush.msra.mxu0 %v3467_v14 }
 0x345   : > { %5512 = vpow2.f32 %v3419_v2 }
 0x346   : > { %5514 = vpow2.f32 %v3423_v1  ;;  %3490 = vmatpush.msra.mxu0 %v3465_v22  ;;  %5133 = vmatmul.msk.f32.gmra.mxu3 %vm1956_vm5, %v7762_v60  ;;  %v7806_v1 = vld [vmem:[%s9589_s5 + $0x78] sm:$0xff] }
 0x347   : > { %5272 = vmatmul.msk.f32.vlgmr.msra.gmra.mxu0 %vm1956_vm5, %v7617_v30  ;;  %5516 = vpow2.f32 %v3427_v49 }
 0x348   : > { %5148 = vmatmul.msk.f32.gmra.mxu2 %vm1956_vm5, %v7695_v50 }
 0x349   : > { %v5509_v9 = vpop.eup %5508 }
 0x34a   : > { %v5511_v48 = vpop.eup %5510 }
 0x34b   : > { %v5513_v53 = vpop.eup %5512  ;;  %v3430_v16 = vadd.f32 %v5511_v48, %v5509_v9 }
 0x34c   : > { %v5515_v19 = vpop.eup %5514 }
 0x34d   : > { %v3432_v47 = vadd.f32 %v5513_v53, %v3430_v16  ;;  %v5517_v61 = vpop.eup %5516 }
 0x34e   : > { %5134 = vmatmul.msk.f32.gmra.mxu3 %vm1956_vm5, %v7773_v39 }
 0x34f   : > { %v3434_v54 = vadd.f32 %v5515_v19, %v3432_v47  ;;  %5273 = vmatmul.msk.f32.gmra.mxu0 %vm1956_vm5, %v7633_v41 }
 0x350   : > { %5149 = vmatmul.msk.f32.gmra.mxu2 %vm1956_vm5, %v7719_v20 }
 0x351   : > { %v3436_v36 = vadd.f32 %v5517_v61, %v3434_v54 }
 0x353   : > { %5518 = vrcp.f32 %v3436_v36  ;;  %v3462_v43 = vand.u32 2147483648, %v3436_v36  ;;  %vm3456_vm14 = vweird.f32 %v3436_v36  ;;  %v3460_v8 = vand.u32 2147483647, %v3436_v36 }
 0x355   : > { %v3463_v14 = vor.u32 1.1754944e-38, %v3462_v43  ;;  %vm3461_vm2 = vcmp.eq.f32.partialorder %v3460_v8, 8.507059e+37  ;;  %v7866_v43 = vld [vmem:[%s9589_s5 + $0x98] sm:$0xff] }
 0x356   : > { %5135 = vmatmul.msk.f32.gmra.mxu3 %vm1956_vm5, %v7784_v35 }
 0x357   : > { %5274 = vmatmul.msk.f32.gmra.mxu0 %vm1956_vm5, %v7644_v62 }
 0x358   : > { %5150 = vmatmul.msk.f32.gmra.mxu2 %vm1956_vm5, %v7733_v21 }
 0x359   : > { %v5519_v57 = vpop.eup %5518 }
 0x35a   : > { %v3452_v15 = vmul.f32 %v5519_v57, %v3436_v36  ;;  %vm3457_vm15 = vweird.f32 %v5519_v57 }
 0x35b   : > { %vm3458_vm1 = vmor %vm3456_vm14, %vm3457_vm15 }
 0x35c   : > { %v3453_v10 = vsub.f32 1.0, %v3452_v15  ;;  %v7851_v15 = vld [vmem:[%s9589_s5 + $0x90] sm:$0xff] }
 0x35e   : > { %v3454_v29 = vmul.f32 %v5519_v57, %v3453_v10  ;;  %5136 = vmatmul.msk.f32.gmra.mxu3 %vm1956_vm5, %v7795_v23 }
 0x35f   : > { %5275 = vmatmul.msk.f32.gmra.mxu0 %vm1956_vm5, %v7655_v55 }
 0x360   : > { %v3455_v46 = vadd.f32 %v5519_v57, %v3454_v29  ;;  %5151 = vmatmul.msk.f32.gmra.mxu2 %vm1956_vm5, %v7742_v7  ;;  %v7882_v29 = vpop.permute.xlu0 %940 }
 0x361   : > { %10036 = vst [vmem:[#allocation84_spill] sm:$0xff] %v7882_v29 }
 0x362   : > { %v3459_v13 = vsel %vm3458_vm1, %v5519_v57, %v3455_v46 }
 0x363   : > { %v3464_v2 = vsel %vm3461_vm2, %v3463_v14, %v3459_v13  ;;  %v7889_v14 = vld [vmem:[%s9935_s4] sm:$0xff] }
 0x364   : > { %v3474_v22 = vmul.f32 %v5517_v61, %v3464_v2  ;;  %v3472_v49 = vmul.f32 %v5515_v19, %v3464_v2  ;;  %v3470_v16 = vmul.f32 %v5513_v53, %v3464_v2  ;;  %v3468_v47 = vmul.f32 %v5511_v48, %v3464_v2  ;;  %v7817_v19 = vld [vmem:[%s9589_s5 + $0x80] sm:$0xff]  ;;  %v7827_v48 = vpop.permute.xlu1 %945  ;;  %v7829_v53 = vpop.permute.xlu2 %965  ;;  %v7834_v61 = vld [vmem:[%s9589_s5 + $0x88] sm:$0xff] }
 0x365   : > { %v3466_v54 = vmul.f32 %v5509_v9, %v3464_v2  ;;  %10029 = vst [vmem:[#allocation132_spill] sm:$0xff] %v7827_v48 }
 0x366   : > { %3563 = vmatpush.msra.mxu1 %v3474_v22  ;;  %5137 = vmatmul.msk.f32.gmra.mxu3 %vm1956_vm5, %v7806_v1  ;;  %10030 = vst [vmem:[#allocation125_spill] sm:$0xff] %v7829_v53 }
 0x367   : > { %5276 = vmatmul.msk.f32.gmra.mxu0 %vm1956_vm5, %v7666_v3 }
 0x368   : > { %3564 = vmatpush.msra.mxu1 %v3472_v49  ;;  %5152 = vmatmul.msk.f32.gmra.mxu2 %vm1956_vm5, %v7751_v4 }
 0x36a   : > { %3565 = vmatpush.msra.mxu1 %v3470_v16 }
 0x36c   : > { %3566 = vmatpush.msra.mxu1 %v3468_v47  ;;  %v7844_v36 = vpop.permute.xlu1 %960  ;;  %v7846_v57 = vpop.permute.xlu2 %985 }
 0x36d   : > { %10031 = vst [vmem:[#allocation117_spill] sm:$0xff] %v7844_v36 }
 0x36e   : > { %3567 = vmatpush.msra.mxu1 %v3466_v54  ;;  %5138 = vmatmul.msk.f32.gmra.mxu3 %vm1956_vm5, %v7817_v19  ;;  %10032 = vst [vmem:[#allocation109_spill] sm:$0xff] %v7846_v57 }
 0x36f   : > { %5277 = vmatmul.msk.f32.gmra.mxu0 %vm1956_vm5, %v7680_v33  ;;  %5292 = vmatmul.msk.f32.vlgmr.msra.gmra.mxu1 %vm1956_vm5, %v7617_v30 }
 0x370   : > { %5153 = vmatmul.msk.f32.gmra.mxu2 %vm1956_vm5, %v7762_v60 }
 0x371   : > { %v2034_v9 = vpop.f32.mrf.mxu3 }
 0x374   : > { %v7868_v10 = vpop.permute.xlu1 %955  ;;  %v7870_v8 = vpop.permute.xlu2 %980 }
 0x375   : > { %10034 = vst [vmem:[#allocation97_spill] sm:$0xff] %v7870_v8  ;;  %v7921_v54 = vadd.f32 %v7424_v31, %v7868_v10 }
 0x376   : > { %5139 = vmatmul.msk.f32.gmra.mxu3 %vm1956_vm5, %v7834_v61 }
 0x377   : > { %5278 = vmatmul.msk.f32.gmra.mxu0 %vm1956_vm5, %v7695_v50  ;;  %5293 = vmatmul.msk.f32.gmra.mxu1 %vm1956_vm5, %v7633_v41  ;;  %10041 = vst [vmem:[#allocation53_spill] sm:$0xff] %v7921_v54 }
 0x378   : > { %5154 = vmatmul.msk.f32.gmra.mxu2 %vm1956_vm5, %v7773_v39 }
 0x379   : > { %v2037_v30 = vpop.f32.mrf.mxu3 }
 0x37c   : > { %v931_v46 = vpop.permute.xlu1 %930  ;;  %v951_v13 = vpop.permute.xlu2 %950 }
 0x37d   : > { %v7898_v2 = vadd.f32 %v7396_v27, %v951_v13  ;;  %v936_v27 = vpop.permute.xlu0 %935 }
 0x37e   : > { %5140 = vmatmul.msk.f32.gmra.mxu3 %vm1956_vm5, %v7851_v15 }
 0x37f   : > { %5279 = vmatmul.msk.f32.gmra.mxu0 %vm1956_vm5, %v7719_v20  ;;  %5294 = vmatmul.msk.f32.gmra.mxu1 %vm1956_vm5, %v7644_v62  ;;  %10038 = vst [vmem:[#allocation71_spill] sm:$0xff] %v7898_v2 }
 0x380   : > { %5155 = vmatmul.msk.f32.gmra.mxu2 %vm1956_vm5, %v7784_v35 }
 0x381   : > { %v7861_v41 = vpop.f32.mrf.mxu3 }
 0x382   : > { %10033 = vst [vmem:[#allocation103_spill] sm:$0xff] %v7861_v41 }
 0x386   : > { %5141 = vmatmul.msk.f32.gmra.mxu3 %vm1956_vm5, %v7866_v43 }
 0x387   : > { %5280 = vmatmul.msk.f32.gmra.mxu0 %vm1956_vm5, %v7733_v21  ;;  %5295 = vmatmul.msk.f32.gmra.mxu1 %vm1956_vm5, %v7655_v55  ;;  %v7895_v55 = vadd.f32 %v7243_v18, %v931_v46  ;;  %v7911_v18 = vld [vmem:[%s9935_s4 + $0x10] sm:$0xff] }
 0x388   : > { %5156 = vmatmul.msk.f32.gmra.mxu2 %vm1956_vm5, %v7795_v23 }
 0x389   : > { %v7880_v62 = vpop.f32.mrf.mxu3  ;;  %10037 = vst [vmem:[#allocation77_spill] sm:$0xff] %v7895_v55  ;;  %v2171_v49 = vmul.f32 %v2034_v9, %v7895_v55 }
 0x38a   : > { %10035 = vst [vmem:[#allocation91_spill] sm:$0xff] %v7880_v62 }
 0x38e   : > { %2307 = vmatmul.f32.vlgmr.msrb.gmra.mxu3 %v7889_v14 }
 0x38f   : > { %5281 = vmatmul.msk.f32.gmra.mxu0 %vm1956_vm5, %v7742_v7  ;;  %5296 = vmatmul.msk.f32.gmra.mxu1 %vm1956_vm5, %v7666_v3  ;;  %v7917_v3 = vadd.f32 %v7286_v58, %v936_v27  ;;  %v7934_v58 = vld [vmem:[%s9935_s4 + $0x20] sm:$0xff] }
 0x390   : > { %5157 = vmatmul.msk.f32.gmra.mxu2 %vm1956_vm5, %v7806_v1 }
 0x391   : > { %v2046_v22 = vpop.f32.mrf.mxu3  ;;  %10040 = vst [vmem:[#allocation59_spill] sm:$0xff] %v7917_v3 }
 0x392   : > { %v2179_v16 = vmul.f32 %v2046_v22, %v7898_v2  ;;  %v2173_v22 = vmul.f32 %v2037_v30, %v7917_v3  ;;  %v7944_v30 = vadd.f32 %v7289_v51, %v936_v27 }
 0x394   : > { %v7904_v47 = vadd.f32 %v2179_v16, %v2171_v49  ;;  %10044 = vst [vmem:[#allocation32_spill] sm:$0xff] %v7944_v30 }
 0x396   : > { %10039 = vst [vmem:[#allocation65_spill] sm:$0xff] %v7904_v47  ;;  %2310 = vmatmul.f32.gmra.mxu3 %v7911_v18 }
 0x397   : > { %5282 = vmatmul.msk.f32.gmra.mxu0 %vm1956_vm5, %v7751_v4  ;;  %5297 = vmatmul.msk.f32.gmra.mxu1 %vm1956_vm5, %v7680_v33 }
 0x398   : > { %5158 = vmatmul.msk.f32.gmra.mxu2 %vm1956_vm5, %v7817_v19 }
 0x399   : > { %v2049_v9 = vpop.f32.mrf.mxu3 }
 0x39a   : > { %v2181_v49 = vmul.f32 %v2049_v9, %v7921_v54  ;;  %v7993_v54 = vadd.f32 %v7400_v45, %v951_v13  ;;  %v8015_v45 = vadd.f32 %v7426_v63, %v7868_v10  ;;  %v8030_v63 = vld [vmem:[%s9935_s4 + $0x28] sm:$0xff] }
 0x39b   : > { %v2111_v16 = vpop.f32.mrf.mxu2  ;;  %10056 = vst [vmem:[#allocation135_spill] sm:$0xff] %v8030_v63 }
 0x39c   : > { %v7927_v62 = vadd.f32 %v2181_v49, %v2173_v22  ;;  %v7952_v49 = vld [vmem:[%s9935_s4 + $0x30] sm:$0xff]  ;;  %10049 = vst [vmem:[#allocation106_spill] sm:$0xff] %v7993_v54 }
 0x39d   : > { %10053 = vst [vmem:[#allocation88_spill] sm:$0xff] %v8015_v45 }
 0x39e   : > { %10042 = vst [vmem:[#allocation47_spill] sm:$0xff] %v7927_v62  ;;  %2313 = vmatmul.f32.gmra.mxu3 %v7934_v58  ;;  %v7990_v62 = vadd.f32 %v7249_v44, %v931_v46  ;;  %v8009_v44 = vld [vmem:[%s9935_s4 + $0x18] sm:$0xff] }
 0x39f   : > { %5283 = vmatmul.msk.f32.gmra.mxu0 %vm1956_vm5, %v7762_v60  ;;  %5298 = vmatmul.msk.f32.gmra.mxu1 %vm1956_vm5, %v7695_v50  ;;  %10052 = vst [vmem:[#allocation144_spill] sm:$0xff] %v8009_v44 }
 0x3a0   : > { %5159 = vmatmul.msk.f32.gmra.mxu2 %vm1956_vm5, %v7834_v61  ;;  %10048 = vst [vmem:[#allocation113_spill] sm:$0xff] %v7990_v62  ;;  %v2172_v55 = vmul.f32 %v2111_v16, %v7990_v62  ;;  %v8044_v16 = vld [vmem:[%s9935_s4 + $0x38] sm:$0xff] }
 0x3a1   : > { %v7941_v31 = vpop.f32.mrf.mxu3  ;;  %10058 = vst [vmem:[#allocation145_spill] sm:$0xff] %v8044_v16 }
 0x3a2   : > { %10043 = vst [vmem:[#allocation40_spill] sm:$0xff] %v7941_v31  ;;  %v7985_v31 = vld [vmem:[%s9935_s4 + $0x8] sm:$0xff] }
 0x3a3   : > { %v2114_v9 = vpop.f32.mrf.mxu2  ;;  %10047 = vst [vmem:[#allocation121_spill] sm:$0xff] %v7985_v31 }
 0x3a4   : > { %v2174_v22 = vmul.f32 %v2114_v9, %v7944_v30  ;;  %v7966_v9 = vld [vmem:[%s9935_s4 + $0x40] sm:$0xff] }
 0x3a6   : > { %2316 = vmatmul.f32.gmra.mxu3 %v7952_v49 }
 0x3a7   : > { %5284 = vmatmul.msk.f32.gmra.mxu0 %vm1956_vm5, %v7773_v39  ;;  %5299 = vmatmul.msk.f32.gmra.mxu1 %vm1956_vm5, %v7719_v20 }
 0x3a8   : > { %5160 = vmatmul.msk.f32.gmra.mxu2 %vm1956_vm5, %v7851_v15 }
 0x3a9   : > { %v7959_v51 = vpop.f32.mrf.mxu3 }
 0x3aa   : > { %10045 = vst [vmem:[#allocation134_spill] sm:$0xff] %v7959_v51 }
 0x3ab   : > { %v2117_v27 = vpop.f32.mrf.mxu2 }
 0x3ae   : > { %2319 = vmatmul.f32.gmra.mxu3 %v7966_v9 }
 0x3af   : > { %5285 = vmatmul.msk.f32.gmra.mxu0 %vm1956_vm5, %v7784_v35  ;;  %5300 = vmatmul.msk.f32.gmra.mxu1 %vm1956_vm5, %v7733_v21 }
 0x3b0   : > { %5161 = vmatmul.msk.f32.gmra.mxu2 %vm1956_vm5, %v7866_v43 }
 0x3b1   : > { %v7973_v41 = vpop.f32.mrf.mxu3 }
 0x3b2   : > { %10046 = vst [vmem:[#allocation129_spill] sm:$0xff] %v7973_v41 }
 0x3b3   : > { %v7975_v51 = vpop.f32.mrf.mxu2 }
 0x3b6   : > { %2371 = vmatmul.f32.vlgmr.msra.gmra.mxu3 %v7889_v14 }
 0x3b7   : > { %5286 = vmatmul.msk.f32.gmra.mxu0 %vm1956_vm5, %v7795_v23  ;;  %5301 = vmatmul.msk.f32.gmra.mxu1 %vm1956_vm5, %v7742_v7 }
 0x3b8   : > { %5162 = vmatmul.msk.f32.vlgmr.msrb.gmra.mxu2 %vm1048_vm0, %v7985_v31 }
 0x3b9   : > { %v7995_v3 = vpop.f32.mrf.mxu3 }
 0x3ba   : > { %10050 = vst [vmem:[#allocation100_spill] sm:$0xff] %v7995_v3 }
 0x3bb   : > { %v2123_v47 = vpop.f32.mrf.mxu2 }
 0x3bc   : > { %v2180_v41 = vmul.f32 %v2123_v47, %v7993_v54 }
 0x3be   : > { %v7999_v2 = vadd.f32 %v2180_v41, %v2172_v55  ;;  %2374 = vmatmul.f32.gmra.mxu3 %v7911_v18 }
 0x3bf   : > { %5287 = vmatmul.msk.f32.gmra.mxu0 %vm1956_vm5, %v7806_v1  ;;  %5302 = vmatmul.msk.f32.gmra.mxu1 %vm1956_vm5, %v7751_v4 }
 0x3c0   : > { %10051 = vst [vmem:[#allocation94_spill] sm:$0xff] %v7999_v2  ;;  %5163 = vmatmul.msk.f32.gmra.mxu2 %vm1048_vm0, %v8009_v44  ;;  %v8082_v2 = vadd.f32 %v7329_v32, %v7882_v29  ;;  %v8099_v32 = vadd.f32 %v7450_v34, %v7829_v53 }
 0x3c1   : > { %v8018_v13 = vpop.f32.mrf.mxu3 }
 0x3c2   : > { %10054 = vst [vmem:[#allocation140_spill] sm:$0xff] %v8018_v13 }
 0x3c3   : > { %v2126_v41 = vpop.f32.mrf.mxu2  ;;  %10065 = vst [vmem:[#allocation43_spill] sm:$0xff] %v8082_v2 }
 0x3c4   : > { %v2182_v46 = vmul.f32 %v2126_v41, %v8015_v45  ;;  %v8056_v41 = vld [vmem:[%s9935_s4 + $0x48] sm:$0xff]  ;;  %10069 = vst [vmem:[#allocation153_spill] sm:$0xff] %v8099_v32 }
 0x3c5   : > { %10059 = vst [vmem:[#allocation68_spill] sm:$0xff] %v8056_v41 }
 0x3c6   : > { %v8020_v55 = vadd.f32 %v2182_v46, %v2174_v22  ;;  %2377 = vmatmul.f32.gmra.mxu3 %v7934_v58 }
 0x3c7   : > { %5288 = vmatmul.msk.f32.gmra.mxu0 %vm1956_vm5, %v7817_v19  ;;  %5303 = vmatmul.msk.f32.gmra.mxu1 %vm1956_vm5, %v7762_v60 }
 0x3c8   : > { %10055 = vst [vmem:[#allocation80_spill] sm:$0xff] %v8020_v55  ;;  %5164 = vmatmul.msk.f32.gmra.mxu2 %vm1048_vm0, %v8030_v63  ;;  %v8076_v55 = vadd.f32 %v7438_v6, %v7844_v36 }
 0x3c9   : > { %v8037_v47 = vpop.f32.mrf.mxu3 }
 0x3ca   : > { %10057 = vst [vmem:[#allocation74_spill] sm:$0xff] %v8037_v47 }
 0x3cb   : > { %v2129_v10 = vpop.f32.mrf.mxu2  ;;  %10064 = vst [vmem:[#allocation50_spill] sm:$0xff] %v8076_v55 }
 0x3ce   : > { %2380 = vmatmul.f32.gmra.mxu3 %v7952_v49 }
 0x3cf   : > { %5289 = vmatmul.msk.f32.gmra.mxu0 %vm1956_vm5, %v7834_v61  ;;  %5304 = vmatmul.msk.f32.gmra.mxu1 %vm1956_vm5, %v7773_v39 }
 0x3d0   : > { %5165 = vmatmul.msk.f32.gmra.mxu2 %vm1048_vm0, %v8044_v16 }
 0x3d1   : > { %v8060_v46 = vpop.f32.mrf.mxu3 }
 0x3d2   : > { %10060 = vst [vmem:[#allocation141_spill] sm:$0xff] %v8060_v46 }
 0x3d3   : > { %v2132_v22 = vpop.f32.mrf.mxu2 }
 0x3d6   : > { %2383 = vmatmul.f32.gmra.mxu3 %v7966_v9 }
 0x3d7   : > { %5290 = vmatmul.msk.f32.gmra.mxu0 %vm1956_vm5, %v7851_v15  ;;  %5305 = vmatmul.msk.f32.gmra.mxu1 %vm1956_vm5, %v7784_v35 }
 0x3d8   : > { %5166 = vmatmul.msk.f32.gmra.mxu2 %vm1048_vm0, %v8056_v41 }
 0x3d9   : > { %v8070_v13 = vpop.f32.mrf.mxu3 }
 0x3da   : > { %10062 = vst [vmem:[#allocation137_spill] sm:$0xff] %v8070_v13  ;;  %v8089_v13 = vadd.f32 %v7494_v56, %v7870_v8  ;;  %v8107_v56 = vadd.f32 %v7366_v17, %v7827_v48 }
 0x3db   : > { %v8062_v47 = vpop.f32.mrf.mxu2 }
 0x3dc   : > { %10061 = vst [vmem:[#allocation62_spill] sm:$0xff] %v8062_v47  ;;  %v2184_v47 = vmul.f32 %v2129_v10, %v8076_v55  ;;  %v2178_v34 = vmul.f32 %v7975_v51, %v8107_v56 }
 0x3dd   : > { %10066 = vst [vmem:[#allocation35_spill] sm:$0xff] %v8089_v13 }
 0x3de   : > { %10071 = vst [vmem:[#allocation155_spill] sm:$0xff] %v8107_v56 }
 0x3df   : > { %5291 = vmatmul.msk.f32.gmra.mxu0 %vm1956_vm5, %v7866_v43  ;;  %5306 = vmatmul.msk.f32.gmra.mxu1 %vm1956_vm5, %v7795_v23 }
 0x3e0   : > { %5167 = vmatmul.msk.f32.vlgmr.msra.gmra.mxu2 %vm1048_vm0, %v7985_v31 }
 0x3e1   : > { %v8095_v62 = vpop.f32.mrf.mxu3 }
 0x3e2   : > { %10068 = vst [vmem:[#allocation152_spill] sm:$0xff] %v8095_v62 }
 0x3e3   : > { %v8072_v3 = vpop.f32.mrf.mxu2 }
 0x3e4   : > { %10063 = vst [vmem:[#allocation56_spill] sm:$0xff] %v8072_v3  ;;  %v2176_v3 = vmul.f32 %v2117_v27, %v8082_v2  ;;  %v8114_v27 = vadd.f32 %v7505_v11, %v7846_v57 }
 0x3e6   : > { %v2216_v36 = vadd.f32 %v2184_v47, %v2176_v3  ;;  %v2186_v3 = vmul.f32 %v2132_v22, %v8099_v32  ;;  %10072 = vst [vmem:[#allocation156_spill] sm:$0xff] %v8114_v27 }
 0x3e7   : > { %5307 = vmatmul.msk.f32.gmra.mxu1 %vm1956_vm5, %v7806_v1 }
 0x3e8   : > { %5168 = vmatmul.msk.f32.gmra.mxu2 %vm1048_vm0, %v8009_v44  ;;  %v2218_v47 = vadd.f32 %v2186_v3, %v2178_v34 }
 0x3e9   : > { %v8121_v17 = vpop.f32.mrf.mxu3 }
 0x3ea   : > { %10074 = vst [vmem:[#allocation158_spill] sm:$0xff] %v8121_v17 }
 0x3eb   : > { %v2141_v6 = vpop.f32.mrf.mxu2 }
 0x3ec   : > { %v2192_v46 = vmul.f32 %v2141_v6, %v8089_v13  ;;  %v8093_v54 = vpop.f32.mrf.mxu1 }
 0x3ed   : > { %10067 = vst [vmem:[#allocation151_spill] sm:$0xff] %v8093_v54 }
 0x3ee   : > { %v8101_v10 = vadd.f32 %v2216_v36, %v2192_v46 }
 0x3ef   : > { %5308 = vmatmul.msk.f32.gmra.mxu1 %vm1956_vm5, %v7817_v19 }
 0x3f0   : > { %10070 = vst [vmem:[#allocation154_spill] sm:$0xff] %v8101_v10  ;;  %5169 = vmatmul.msk.f32.gmra.mxu2 %vm1048_vm0, %v8030_v63 }
 0x3f1   : > { %v8135_v51 = vpop.f32.mrf.mxu3 }
 0x3f2   : > { %10077 = vst [vmem:[#allocation161_spill] sm:$0xff] %v8135_v51 }
 0x3f3   : > { %v2144_v36 = vpop.f32.mrf.mxu2 }
 0x3f4   : > { %v2194_v46 = vmul.f32 %v2144_v36, %v8114_v27  ;;  %v3572_v6 = vpop.f32.mrf.mxu1 }
 0x3f5   : > { %v3632_v57 = vmul.f32 %v3572_v6, %v7944_v30 }
 0x3f6   : > { %v8119_v54 = vadd.f32 %v2218_v47, %v2194_v46 }
 0x3f7   : > { %5309 = vmatmul.msk.f32.gmra.mxu1 %vm1956_vm5, %v7834_v61 }
 0x3f8   : > { %10073 = vst [vmem:[#allocation157_spill] sm:$0xff] %v8119_v54  ;;  %5170 = vmatmul.msk.f32.gmra.mxu2 %vm1048_vm0, %v8044_v16 }
 0x3f9   : > { %v8143_v36 = vpop.f32.mrf.mxu3 }
 0x3fa   : > { %10080 = vst [vmem:[#allocation164_spill] sm:$0xff] %v8143_v36 }
 0x3fb   : > { %v8127_v11 = vpop.f32.mrf.mxu2 }
 0x3fc   : > { %10075 = vst [vmem:[#allocation159_spill] sm:$0xff] %v8127_v11  ;;  %v8129_v22 = vpop.f32.mrf.mxu1 }
 0x3fd   : > { %10076 = vst [vmem:[#allocation160_spill] sm:$0xff] %v8129_v22 }
 0x3ff   : > { %5310 = vmatmul.msk.f32.gmra.mxu1 %vm1956_vm5, %v7851_v15 }
 0x400   : > { %5171 = vmatmul.msk.f32.gmra.mxu2 %vm1048_vm0, %v8056_v41 }
 0x401   : > { %v8152_v8 = vpop.f32.mrf.mxu3 }
 0x402   : > { %10084 = vst [vmem:[#allocation168_spill] sm:$0xff] %v8152_v8 }
 0x403   : > { %v8137_v3 = vpop.f32.mrf.mxu2 }
 0x404   : > { %10078 = vst [vmem:[#allocation162_spill] sm:$0xff] %v8137_v3  ;;  %v8139_v34 = vpop.f32.mrf.mxu1 }
 0x405   : > { %10079 = vst [vmem:[#allocation163_spill] sm:$0xff] %v8139_v34 }
 0x407   : > { %5311 = vmatmul.msk.f32.gmra.mxu1 %vm1956_vm5, %v7866_v43 }
 0x409   : > { %v8159_v34 = vpop.f32.mrf.mxu3 }
 0x40a   : > { %10087 = vst [vmem:[#allocation171_spill] sm:$0xff] %v8159_v34 }
 0x40b   : > { %v8145_v47 = vpop.f32.mrf.mxu2 }
 0x40c   : > { %10081 = vst [vmem:[#allocation165_spill] sm:$0xff] %v8145_v47  ;;  %v8147_v46 = vpop.f32.mrf.mxu1 }
 0x40d   : > { %10082 = vst [vmem:[#allocation166_spill] sm:$0xff] %v8147_v46 }
 0x411   : > { %v2308_v22 = vpop.f32.mrf.mxu3 }
 0x413   : > { %v8149_v17 = vpop.f32.mrf.mxu2 }
 0x414   : > { %10083 = vst [vmem:[#allocation167_spill] sm:$0xff] %v8149_v17  ;;  %v3584_v62 = vpop.f32.mrf.mxu1 }
 0x415   : > { %v3640_v53 = vmul.f32 %v3584_v62, %v8015_v45 }
 0x417   : > { %v8155_v48 = vadd.f32 %v3640_v53, %v3632_v57 }
 0x419   : > { %10085 = vst [vmem:[#allocation169_spill] sm:$0xff] %v8155_v48  ;;  %v2311_v46 = vpop.f32.mrf.mxu3 }
 0x41b   : > { %v8157_v29 = vpop.f32.mrf.mxu2 }
 0x41c   : > { %10086 = vst [vmem:[#allocation170_spill] sm:$0xff] %v8157_v29 }
 0x421   : > { %v2314_v6 = vpop.f32.mrf.mxu3 }
 0x423   : > { %v8161_v36 = vpop.f32.mrf.mxu2 }
 0x424   : > { %10088 = vst [vmem:[#allocation172_spill] sm:$0xff] %v8161_v36 }
 0x429   : > { %v2317_v8 = vpop.f32.mrf.mxu3 }
 0x42b   : > { %v8163_v54 = vpop.f32.mrf.mxu2 }
 0x42c   : > { %10089 = vst [vmem:[#allocation173_spill] sm:$0xff] %v8163_v54 }
 0x431   : > { %v2320_v62 = vpop.f32.mrf.mxu3 }
 0x433   : > { %v8165_v17 = vpop.f32.mrf.mxu2 }
 0x434   : > { %10090 = vst [vmem:[#allocation174_spill] sm:$0xff] %v8165_v17 }
 0x439   : > { %v2372_v27 = vpop.f32.mrf.mxu3 }
 0x43b   : > { %v2340_v10 = vpop.f32.mrf.mxu2 }
 0x43c   : > { %v2341_v48 = vadd.f32 %v2340_v10, %v2308_v22 }
 0x443   : > { %v2343_v47 = vpop.f32.mrf.mxu2 }
 0x444   : > { %v2344_v57 = vadd.f32 %v2343_v47, %v2311_v46  ;;  %v2375_v47 = vpop.f32.mrf.mxu3 }
 0x446   : > { %v2419_v11 = vmax.f32 %v2341_v48, %v2344_v57 }
 0x44b   : > { %v2346_v3 = vpop.f32.mrf.mxu2 }
 0x44c   : > { %v2347_v29 = vadd.f32 %v2346_v3, %v2314_v6 }
 0x44e   : > { %v2421_v36 = vmax.f32 %v2419_v11, %v2347_v29 }
 0x453   : > { %v2349_v53 = vpop.f32.mrf.mxu2 }
 0x454   : > { %v2350_v34 = vadd.f32 %v2349_v53, %v2317_v8 }
 0x456   : > { %v2423_v13 = vmax.f32 %v2421_v36, %v2350_v34 }
 0x45b   : > { %v2352_v51 = vpop.f32.mrf.mxu2 }
 0x45c   : > { %v2353_v54 = vadd.f32 %v2352_v51, %v2320_v62 }
 0x45e   : > { %v2425_v41 = vmax.f32 %v2423_v13, %v2353_v54 }
 0x460   : > { %v2427_v32 = vsub.f32 %v2341_v48, %v2425_v41  ;;  %v2429_v17 = vsub.f32 %v2344_v57, %v2425_v41  ;;  %v2431_v56 = vsub.f32 %v2347_v29, %v2425_v41  ;;  %v2433_v16 = vsub.f32 %v2350_v34, %v2425_v41  ;;  %v2378_v29 = vpop.f32.mrf.mxu3 }
 0x461   : > { %v2435_v63 = vsub.f32 %v2353_v54, %v2425_v41 }
 0x462   : > { %v2437_v55 = vmul.f32 1.442695, %v2427_v32  ;;  %v2441_v2 = vmul.f32 1.442695, %v2429_v17  ;;  %v2445_v45 = vmul.f32 1.442695, %v2431_v56 }
 0x463   : > { %v2404_v44 = vpop.f32.mrf.mxu2  ;;  %v2449_v10 = vmul.f32 1.442695, %v2433_v16  ;;  %v2453_v8 = vmul.f32 1.442695, %v2435_v63 }
 0x464   : > { %5520 = vpow2.f32 %v2437_v55  ;;  %v2405_v36 = vadd.f32 %v2404_v44, %v2372_v27 }
 0x465   : > { %5522 = vpow2.f32 %v2441_v2 }
 0x466   : > { %5524 = vpow2.f32 %v2445_v45 }
 0x467   : > { %5526 = vpow2.f32 %v2449_v10 }
 0x468   : > { %5528 = vpow2.f32 %v2453_v8  ;;  %v2381_v55 = vpop.f32.mrf.mxu3 }
 0x46a   : > { %v5521_v11 = vpop.eup %5520 }
 0x46b   : > { %v5523_v22 = vpop.eup %5522  ;;  %v2407_v13 = vpop.f32.mrf.mxu2 }
 0x46c   : > { %v2457_v48 = vadd.f32 %v5523_v22, %v5521_v11  ;;  %v5525_v51 = vpop.eup %5524  ;;  %v2408_v63 = vadd.f32 %v2407_v13, %v2375_v47 }
 0x46d   : > { %v5527_v32 = vpop.eup %5526 }
 0x46e   : > { %v2459_v3 = vadd.f32 %v5525_v51, %v2457_v48  ;;  %v5529_v54 = vpop.eup %5528  ;;  %v2420_v57 = vmax.f32 %v2405_v36, %v2408_v63 }
 0x470   : > { %v2461_v17 = vadd.f32 %v5527_v32, %v2459_v3  ;;  %v2384_v8 = vpop.f32.mrf.mxu3 }
 0x472   : > { %v2463_v41 = vadd.f32 %v5529_v54, %v2461_v17 }
 0x473   : > { %v2410_v56 = vpop.f32.mrf.mxu2 }
 0x474   : > { %5530 = vrcp.f32 %v2463_v41  ;;  %v2411_v46 = vadd.f32 %v2410_v56, %v2378_v29  ;;  %v2476_v6 = vand.u32 2147483648, %v2463_v41  ;;  %v2474_v53 = vand.u32 2147483647, %v2463_v41 }
 0x475   : > { %vm2470_vm4 = vweird.f32 %v2463_v41 }
 0x476   : > { %v2422_v3 = vmax.f32 %v2420_v57, %v2411_v46  ;;  %v2477_v17 = vor.u32 1.1754944e-38, %v2476_v6  ;;  %vm2475_vm7 = vcmp.eq.f32.partialorder %v2474_v53, 8.507059e+37 }
 0x47a   : > { %v5531_v2 = vpop.eup %5530 }
 0x47b   : > { %v2466_v16 = vmul.f32 %v5531_v2, %v2463_v41  ;;  %v2413_v45 = vpop.f32.mrf.mxu2  ;;  %vm2471_vm3 = vweird.f32 %v5531_v2 }
 0x47c   : > { %v2414_v10 = vadd.f32 %v2413_v45, %v2381_v55  ;;  %vm2472_vm6 = vmor %vm2470_vm4, %vm2471_vm3 }
 0x47d   : > { %v2467_v34 = vsub.f32 1.0, %v2466_v16 }
 0x47e   : > { %v2424_v37 = vmax.f32 %v2422_v3, %v2414_v10  ;;  %v8181_v3 = vld [vmem:[%s9589_s5 + $0x8] sm:$0xff] }
 0x47f   : > { %v2468_v62 = vmul.f32 %v5531_v2, %v2467_v34 }
 0x481   : > { %v2469_v48 = vadd.f32 %v5531_v2, %v2468_v62 }
 0x483   : > { %v2416_v42 = vpop.f32.mrf.mxu2  ;;  %v2473_v31 = vsel %vm2472_vm6, %v5531_v2, %v2469_v48 }
 0x484   : > { %v2417_v47 = vadd.f32 %v2416_v42, %v2384_v8  ;;  %v2478_v13 = vsel %vm2475_vm7, %v2477_v17, %v2473_v31  ;;  %v10094_v8 = vld [vmem:[#allocation110_spill] sm:$0xff] }
 0x485   : > { %v2501_v44 = vmul.f32 %v5529_v54, %v2478_v13  ;;  %v2499_v29 = vmul.f32 %v5527_v32, %v2478_v13  ;;  %v2497_v45 = vmul.f32 %v5525_v51, %v2478_v13  ;;  %v2495_v2 = vmul.f32 %v5523_v22, %v2478_v13  ;;  %v8170_v32 = vld [vmem:[%s9589_s5] sm:$0xff]  ;;  %v10091_v51 = vld [vmem:[#allocation133_spill] sm:$0xff] }
 0x486   : > { %v2426_v27 = vmax.f32 %v2424_v37, %v2417_v47  ;;  %v2493_v31 = vmul.f32 %v5521_v11, %v2478_v13 }
 0x487   : > { %2514 = vmatpush.msrb.mxu3 %v2501_v44  ;;  %v10096_v44 = vld [vmem:[#allocation98_spill] sm:$0xff] }
 0x488   : > { %v2428_v56 = vsub.f32 %v2405_v36, %v2426_v27  ;;  %v2430_v16 = vsub.f32 %v2408_v63, %v2426_v27  ;;  %v2432_v34 = vsub.f32 %v2411_v46, %v2426_v27  ;;  %v2434_v55 = vsub.f32 %v2414_v10, %v2426_v27  ;;  %v10092_v63 = vld [vmem:[#allocation126_spill] sm:$0xff] }
 0x489   : > { %2515 = vmatpush.msrb.mxu3 %v2499_v29  ;;  %v2436_v57 = vsub.f32 %v2417_v47, %v2426_v27  ;;  %v10093_v46 = vld [vmem:[#allocation118_spill] sm:$0xff]  ;;  %v10095_v47 = vld [vmem:[#allocation104_spill] sm:$0xff]  ;;  %v10098_v29 = vld [vmem:[#allocation85_spill] sm:$0xff] }
 0x48a   : > { %v2439_v41 = vmul.f32 1.442695, %v2428_v56  ;;  %v2443_v62 = vmul.f32 1.442695, %v2430_v16  ;;  %v2447_v6 = vmul.f32 1.442695, %v2432_v34 }
 0x48b   : > { %2516 = vmatpush.msrb.mxu3 %v2497_v45  ;;  %v2451_v42 = vmul.f32 1.442695, %v2434_v55  ;;  %v2455_v37 = vmul.f32 1.442695, %v2436_v57  ;;  %v10097_v27 = vld [vmem:[#allocation92_spill] sm:$0xff]  ;;  %v8192_v56 = vld [vmem:[%s9589_s5 + $0x10] sm:$0xff] }
 0x48c   : > { %5532 = vpow2.f32 %v2439_v41  ;;  %v10099_v16 = vld [vmem:[#allocation78_spill] sm:$0xff]  ;;  %v10100_v45 = vld [vmem:[#allocation72_spill] sm:$0xff] }
 0x48d   : > { %5534 = vpow2.f32 %v2443_v62  ;;  %2517 = vmatpush.msrb.mxu3 %v2495_v2  ;;  %v10101_v41 = vld [vmem:[#allocation66_spill] sm:$0xff] }
 0x48e   : > { %5536 = vpow2.f32 %v2447_v6  ;;  %v10102_v6 = vld [vmem:[#allocation60_spill] sm:$0xff] }
 0x48f   : > { %2518 = vmatpush.msrb.mxu3 %v2493_v31  ;;  %5538 = vpow2.f32 %v2451_v42  ;;  %v8203_v31 = vld [vmem:[%s9589_s5 + $0x18] sm:$0xff] }
 0x490   : > { %5172 = vmatmul.msk.f32.vlgmr.msrb.gmra.mxu3 %vm1956_vm5, %v8170_v32  ;;  %5540 = vpow2.f32 %v2455_v37  ;;  %v10103_v37 = vld [vmem:[#allocation54_spill] sm:$0xff] }
 0x491   : > { %2777 = vmatpush.msra.mxu3 %v10091_v51 }
 0x492   : > { %v5533_v22 = vpop.eup %5532 }
 0x493   : > { %v5535_v54 = vpop.eup %5534  ;;  %2778 = vmatpush.msra.mxu3 %v10092_v63 }
 0x494   : > { %v2458_v11 = vadd.f32 %v5535_v54, %v5533_v22  ;;  %v5537_v36 = vpop.eup %5536 }
 0x495   : > { %2779 = vmatpush.msra.mxu3 %v10093_v46  ;;  %v5539_v10 = vpop.eup %5538 }
 0x496   : > { %v2460_v53 = vadd.f32 %v5537_v36, %v2458_v11  ;;  %v5541_v17 = vpop.eup %5540  ;;  %v10104_v11 = vld [vmem:[#allocation48_spill] sm:$0xff] }
 0x497   : > { %2780 = vmatpush.msra.mxu3 %v10094_v8  ;;  %v10105_v8 = vld [vmem:[#allocation41_spill] sm:$0xff] }
 0x498   : > { %v2462_v48 = vadd.f32 %v5539_v10, %v2460_v53  ;;  %5173 = vmatmul.msk.f32.gmra.mxu3 %vm1956_vm5, %v8181_v3 }
 0x499   : > { %2781 = vmatpush.msra.mxu3 %v10095_v47  ;;  %v10106_v47 = vld [vmem:[#allocation33_spill] sm:$0xff] }
 0x49a   : > { %v2464_v13 = vadd.f32 %v5541_v17, %v2462_v48 }
 0x49b   : > { %2782 = vmatpush.msra.mxu3 %v10096_v44 }
 0x49c   : > { %5542 = vrcp.f32 %v2464_v13  ;;  %v2490_v57 = vand.u32 2147483648, %v2464_v13  ;;  %v2488_v42 = vand.u32 2147483647, %v2464_v13  ;;  %vm2484_vm9 = vweird.f32 %v2464_v13 }
 0x49d   : > { %2783 = vmatpush.msra.mxu3 %v10097_v27  ;;  %v8214_v27 = vld [vmem:[%s9589_s5 + $0x20] sm:$0xff] }
 0x49e   : > { %v2491_v63 = vor.u32 1.1754944e-38, %v2490_v57  ;;  %vm2489_vm11 = vcmp.eq.f32.partialorder %v2488_v42, 8.507059e+37 }
 0x49f   : > { %2784 = vmatpush.msra.mxu3 %v10098_v29 }
 0x4a0   : > { %5174 = vmatmul.msk.f32.gmra.mxu3 %vm1956_vm5, %v8192_v56 }
 0x4a1   : > { %2785 = vmatpush.msra.mxu3 %v10099_v16 }
 0x4a2   : > { %v5543_v34 = vpop.eup %5542 }
 0x4a3   : > { %v2480_v55 = vmul.f32 %v5543_v34, %v2464_v13  ;;  %2786 = vmatpush.msra.mxu3 %v10100_v45  ;;  %vm2485_vm8 = vweird.f32 %v5543_v34  ;;  %v2900_v45 = vadd.f32 %v7607_v59, %v7605_v25 }
 0x4a4   : > { %vm2486_vm10 = vmor %vm2484_vm9, %vm2485_vm8 }
 0x4a5   : > { %2787 = vmatpush.msra.mxu3 %v10101_v41  ;;  %v2481_v62 = vsub.f32 1.0, %v2480_v55 }
 0x4a7   : > { %2788 = vmatpush.msra.mxu3 %v10102_v6  ;;  %v2482_v2 = vmul.f32 %v5543_v34, %v2481_v62 }
 0x4a8   : > { %5175 = vmatmul.msk.f32.gmra.mxu3 %vm1956_vm5, %v8203_v31 }
 0x4a9   : > { %2789 = vmatpush.msra.mxu3 %v10103_v37  ;;  %v2483_v51 = vadd.f32 %v5543_v34, %v2482_v2 }
 0x4ab   : > { %2790 = vmatpush.msra.mxu3 %v10104_v11  ;;  %v2487_v46 = vsel %vm2486_vm10, %v5543_v34, %v2483_v51  ;;  %v10109_v34 = vld [vmem:[#allocation138_spill] sm:$0xff] }
 0x4ac   : > { %v2492_v53 = vsel %vm2489_vm11, %v2491_v63, %v2487_v46 }
 0x4ad   : > { %2791 = vmatpush.msra.mxu3 %v10105_v8  ;;  %v2502_v48 = vmul.f32 %v5541_v17, %v2492_v53  ;;  %v2500_v44 = vmul.f32 %v5539_v10, %v2492_v53  ;;  %v2498_v13 = vmul.f32 %v5537_v36, %v2492_v53  ;;  %v2496_v29 = vmul.f32 %v5535_v54, %v2492_v53  ;;  %v10107_v10 = vld [vmem:[#allocation146_spill] sm:$0xff] }
 0x4ae   : > { %v2494_v16 = vmul.f32 %v5533_v22, %v2492_v53  ;;  %v10108_v17 = vld [vmem:[#allocation142_spill] sm:$0xff]  ;;  %v2894_v22 = vadd.f32 %v7599_v12, %v7597_v5  ;;  %v2897_v36 = vadd.f32 %v7603_v28, %v7601_v24 }
 0x4af   : > { %2792 = vmatpush.msra.mxu3 %v10106_v47  ;;  %2591 = vmatpush.msrb.mxu2 %v2502_v48 }
 0x4b0   : > { %5176 = vmatmul.msk.f32.gmra.mxu3 %vm1956_vm5, %v8214_v27 }
 0x4b1   : > { %2592 = vmatpush.msrb.mxu2 %v2500_v44 }
 0x4b3   : > { %2593 = vmatpush.msrb.mxu2 %v2498_v13 }
 0x4b5   : > { %2594 = vmatpush.msrb.mxu2 %v2496_v29 }
 0x4b7   : > { %2595 = vmatpush.msrb.mxu2 %v2494_v16 }
 0x4b8   : > { %5177 = vmatmul.msk.f32.gmra.mxu3 %vm1956_vm5, %v7680_v33  ;;  %5192 = vmatmul.msk.f32.vlgmr.msrb.gmra.mxu2 %vm1956_vm5, %v8170_v32  ;;  %v2891_v33 = vadd.f32 %v7595_v26, %v7592_v0  ;;  %v2903_v26 = vadd.f32 %v7611_v52, %v7609_v40 }
 0x4b9   : > { %2821 = vmatpush.msra.mxu2 %v7229_v38  ;;  %v8247_v38 = vld [vmem:[%s9589_s5 + $0x28] sm:$0xff] }
 0x4ba   : > { %v2906_v54 = vmax.f32 %v2891_v33, %v2894_v22 }
 0x4bb   : > { %2822 = vmatpush.msra.mxu2 %v10107_v10 }
 0x4bc   : > { %v2908_v55 = vmax.f32 %v2906_v54, %v2897_v36 }
 0x4bd   : > { %2823 = vmatpush.msra.mxu2 %v10108_v17 }
 0x4be   : > { %v2910_v0 = vmax.f32 %v2908_v55, %v2900_v45  ;;  %v10116_v55 = vld [vmem:[#allocation24_spill] sm:$0xff] }
 0x4bf   : > { %2824 = vmatpush.msra.mxu2 %v10109_v34 }
 0x4c0   : > { %5178 = vmatmul.msk.f32.gmra.mxu3 %vm1956_vm5, %v7695_v50  ;;  %5193 = vmatmul.msk.f32.gmra.mxu2 %vm1956_vm5, %v8181_v3  ;;  %v2912_v5 = vmax.f32 %v2910_v0, %v2903_v26 }
 0x4c2   : > { %v2914_v28 = vsub.f32 %v2891_v33, %v2912_v5  ;;  %v2916_v24 = vsub.f32 %v2894_v22, %v2912_v5  ;;  %v2918_v12 = vsub.f32 %v2897_v36, %v2912_v5  ;;  %v2920_v40 = vsub.f32 %v2900_v45, %v2912_v5  ;;  %v10117_v45 = vld [vmem:[#allocation26_spill] sm:$0xff] }
 0x4c3   : > { %v8333_v0 = vadd.f32 %v10117_v45, %v10116_v55 }
 0x4c4   : > { %v2925_v25 = vmul.f32 1.442695, %v2914_v28  ;;  %v2929_v59 = vmul.f32 1.442695, %v2916_v24  ;;  %v2933_v52 = vmul.f32 1.442695, %v2918_v12 }
 0x4c5   : > { %v10121_v24 = vld [vmem:[#allocation121_spill] sm:$0xff]  ;;  %v10124_v12 = vld [vmem:[#allocation14_spill] sm:$0xff] }
 0x4c6   : > { %5544 = vpow2.f32 %v2925_v25  ;;  %v10123_v25 = vld [vmem:[#allocation19_spill] sm:$0xff] }
 0x4c7   : > { %5546 = vpow2.f32 %v2929_v59 }
 0x4c8   : > { %5179 = vmatmul.msk.f32.gmra.mxu3 %vm1956_vm5, %v7719_v20  ;;  %5194 = vmatmul.msk.f32.gmra.mxu2 %vm1956_vm5, %v8192_v56  ;;  %5548 = vpow2.f32 %v2933_v52  ;;  %v10126_v52 = vld [vmem:[#allocation17_spill] sm:$0xff] }
 0x4cc   : > { %v5545_v41 = vpop.eup %5544 }
 0x4d0   : > { %5180 = vmatmul.msk.f32.gmra.mxu3 %vm1956_vm5, %v7733_v21  ;;  %5195 = vmatmul.msk.f32.gmra.mxu2 %vm1956_vm5, %v8203_v31 }
 0x4d8   : > { %5181 = vmatmul.msk.f32.gmra.mxu3 %vm1956_vm5, %v7742_v7  ;;  %5196 = vmatmul.msk.f32.gmra.mxu2 %vm1956_vm5, %v8214_v27 }
 0x4e0   : > { %5182 = vmatmul.msk.f32.gmra.mxu3 %vm1956_vm5, %v7751_v4  ;;  %5197 = vmatmul.msk.f32.gmra.mxu2 %vm1956_vm5, %v8247_v38 }
 0x4e8   : > { %5183 = vmatmul.msk.f32.gmra.mxu3 %vm1956_vm5, %v7762_v60  ;;  %5198 = vmatmul.msk.f32.gmra.mxu2 %vm1956_vm5, %v7695_v50  ;;  %v2922_v50 = vsub.f32 %v2903_v26, %v2912_v5  ;;  %v10118_v26 = vld [vmem:[#allocation21_spill] sm:$0xff]  ;;  %v10119_v5 = vld [vmem:[#allocation22_spill] sm:$0xff] }
 0x4ea   : > { %v2941_v62 = vmul.f32 1.442695, %v2922_v50 }
 0x4f0   : > { %5184 = vmatmul.msk.f32.gmra.mxu3 %vm1956_vm5, %v7773_v39  ;;  %5199 = vmatmul.msk.f32.gmra.mxu2 %vm1956_vm5, %v7719_v20  ;;  %v2937_v20 = vmul.f32 1.442695, %v2920_v40  ;;  %v10125_v40 = vld [vmem:[#allocation28_spill] sm:$0xff] }
 0x4f1   : > { %v8351_v50 = vadd.f32 %v10126_v52, %v10125_v40  ;;  %v10146_v52 = vld [vmem:[#allocation123_spill] sm:$0xff] }
 0x4f2   : > { %5550 = vpow2.f32 %v2937_v20 }
 0x4f3   : > { %5552 = vpow2.f32 %v2941_v62 }
 0x4f8   : > { %5185 = vmatmul.msk.f32.gmra.mxu3 %vm1956_vm5, %v7784_v35  ;;  %5200 = vmatmul.msk.f32.gmra.mxu2 %vm1956_vm5, %v7733_v21  ;;  %v5547_v21 = vpop.eup %5546 }
 0x4f9   : > { %v2944_v57 = vadd.f32 %v5547_v21, %v5545_v41  ;;  %v5549_v6 = vpop.eup %5548 }
 0x4fa   : > { %v5551_v2 = vpop.eup %5550 }
 0x4fb   : > { %v5553_v51 = vpop.eup %5552 }
 0x500   : > { %5186 = vmatmul.msk.f32.gmra.mxu3 %vm1956_vm5, %v7795_v23  ;;  %5201 = vmatmul.msk.f32.gmra.mxu2 %vm1956_vm5, %v7742_v7  ;;  %v2946_v7 = vadd.f32 %v5549_v6, %v2944_v57  ;;  %v10129_v57 = vld [vmem:[#allocation113_spill] sm:$0xff] }
 0x502   : > { %v2948_v42 = vadd.f32 %v5551_v2, %v2946_v7  ;;  %v10130_v7 = vld [vmem:[#allocation106_spill] sm:$0xff] }
 0x504   : > { %v2950_v63 = vadd.f32 %v5553_v51, %v2948_v42  ;;  %v10131_v42 = vld [vmem:[#allocation9_spill] sm:$0xff] }
 0x506   : > { %5554 = vrcp.f32 %v2950_v63  ;;  %v2976_v48 = vand.u32 2147483648, %v2950_v63  ;;  %vm2970_vm12 = vweird.f32 %v2950_v63 }
 0x508   : > { %5187 = vmatmul.msk.f32.gmra.mxu3 %vm1956_vm5, %v7806_v1  ;;  %5202 = vmatmul.msk.f32.gmra.mxu2 %vm1956_vm5, %v7751_v4  ;;  %v2977_v44 = vor.u32 1.1754944e-38, %v2976_v48 }
 0x510   : > { %5188 = vmatmul.msk.f32.gmra.mxu3 %vm1956_vm5, %v7817_v19  ;;  %5203 = vmatmul.msk.f32.gmra.mxu2 %vm1956_vm5, %v7762_v60  ;;  %v5555_v60 = vpop.eup %5554 }
 0x511   : > { %v2966_v46 = vmul.f32 %v5555_v60, %v2950_v63  ;;  %vm2971_vm13 = vweird.f32 %v5555_v60 }
 0x512   : > { %vm2972_vm14 = vmor %vm2970_vm12, %vm2971_vm13 }
 0x513   : > { %v8285_v37 = vpop.f32.mrf.mxu3 }
 0x518   : > { %5189 = vmatmul.msk.f32.gmra.mxu3 %vm1956_vm5, %v7834_v61  ;;  %5204 = vmatmul.msk.f32.gmra.mxu2 %vm1956_vm5, %v7773_v39  ;;  %v2967_v39 = vsub.f32 1.0, %v2966_v46 }
 0x51a   : > { %v2968_v53 = vmul.f32 %v5555_v60, %v2967_v39 }
 0x51b   : > { %v8291_v4 = vpop.f32.mrf.mxu3 }
 0x51c   : > { %10110 = vst [vmem:[#allocation133_spill] sm:$0xff] %v8291_v4  ;;  %v2969_v47 = vadd.f32 %v5555_v60, %v2968_v53  ;;  %v10134_v53 = vld [vmem:[#allocation88_spill] sm:$0xff] }
 0x51e   : > { %v2973_v13 = vsel %vm2972_vm14, %v5555_v60, %v2969_v47  ;;  %v10132_v60 = vld [vmem:[#allocation144_spill] sm:$0xff]  ;;  %v8366_v47 = vpop.permute.xlu0 %1005 }
 0x51f   : > { %10135 = vst [vmem:[#allocation78_spill] sm:$0xff] %v8366_v47 }
 0x520   : > { %5190 = vmatmul.msk.f32.gmra.mxu3 %vm1956_vm5, %v7851_v15  ;;  %5205 = vmatmul.msk.f32.gmra.mxu2 %vm1956_vm5, %v7784_v35  ;;  %v2974_v35 = vand.u32 2147483647, %v2950_v63 }
 0x522   : > { %vm2975_vm15 = vcmp.eq.f32.partialorder %v2974_v35, 8.507059e+37 }
 0x523   : > { %v8297_v11 = vpop.f32.mrf.mxu3  ;;  %v2978_v29 = vsel %vm2975_vm15, %v2977_v44, %v2973_v13  ;;  %v10136_v44 = vld [vmem:[#allocation135_spill] sm:$0xff] }
 0x524   : > { %10111 = vst [vmem:[#allocation126_spill] sm:$0xff] %v8297_v11  ;;  %v2986_v16 = vmul.f32 %v5551_v2, %v2978_v29  ;;  %v2984_v17 = vmul.f32 %v5549_v6, %v2978_v29  ;;  %v2982_v34 = vmul.f32 %v5547_v21, %v2978_v29  ;;  %v2980_v33 = vmul.f32 %v5545_v41, %v2978_v29  ;;  %v10128_v21 = vld [vmem:[#allocation8_spill] sm:$0xff] }
 0x528   : > { %5191 = vmatmul.msk.f32.gmra.mxu3 %vm1956_vm5, %v7866_v43  ;;  %5206 = vmatmul.msk.f32.gmra.mxu2 %vm1956_vm5, %v7795_v23  ;;  %v2988_v23 = vmul.f32 %v5553_v51, %v2978_v29  ;;  %v3741_v51 = vmul.f32 %v10131_v42, %v8351_v50 }
 0x52a   : > { %3077 = vmatpush.msrb.mxu2 %v2988_v23  ;;  %v10138_v23 = vld [vmem:[#allocation43_spill] sm:$0xff] }
 0x52b   : > { %v8303_v8 = vpop.f32.mrf.mxu3 }
 0x52c   : > { %10112 = vst [vmem:[#allocation118_spill] sm:$0xff] %v8303_v8  ;;  %3078 = vmatpush.msrb.mxu2 %v2986_v16 }
 0x52e   : > { %3079 = vmatpush.msrb.mxu2 %v2984_v17  ;;  %v10139_v17 = vld [vmem:[#allocation50_spill] sm:$0xff] }
 0x530   : > { %5207 = vmatmul.msk.f32.gmra.mxu2 %vm1956_vm5, %v7806_v1  ;;  %2793 = vmatmul.f32.vlgmr.msra.gmra.mxu3 %v7889_v14 }
 0x531   : > { %3080 = vmatpush.msrb.mxu2 %v2982_v34 }
 0x533   : > { %v8308_v10 = vpop.f32.mrf.mxu3  ;;  %3081 = vmatpush.msrb.mxu2 %v2980_v33 }
 0x538   : > { %5208 = vmatmul.msk.f32.gmra.mxu2 %vm1956_vm5, %v7817_v19  ;;  %2796 = vmatmul.f32.gmra.mxu3 %v7911_v18 }
 0x53b   : > { %v8313_v1 = vpop.f32.mrf.mxu3  ;;  %v2597_v22 = vpop.f32.mrf.mxu2 }
 0x53c   : > { %10113 = vst [vmem:[#allocation110_spill] sm:$0xff] %v8313_v1  ;;  %v2658_v6 = vmul.f32 %v2597_v22, %v10129_v57  ;;  %v8374_v22 = vpop.permute.xlu0 %975 }
 0x53d   : > { %10140 = vst [vmem:[#allocation66_spill] sm:$0xff] %v8374_v22 }
 0x540   : > { %5209 = vmatmul.msk.f32.gmra.mxu2 %vm1956_vm5, %v7834_v61  ;;  %2799 = vmatmul.f32.gmra.mxu3 %v7934_v58 }
 0x543   : > { %v8318_v14 = vpop.f32.mrf.mxu3  ;;  %v2600_v54 = vpop.f32.mrf.mxu2 }
 0x544   : > { %10114 = vst [vmem:[#allocation104_spill] sm:$0xff] %v8318_v14  ;;  %v2660_v36 = vmul.f32 %v2600_v54, %v7944_v30  ;;  %v10141_v54 = vld [vmem:[#allocation145_spill] sm:$0xff]  ;;  %v10173_v14 = vld [vmem:[#allocation156_spill] sm:$0xff] }
 0x548   : > { %5210 = vmatmul.msk.f32.gmra.mxu2 %vm1956_vm5, %v7851_v15  ;;  %2802 = vmatmul.f32.gmra.mxu3 %v7952_v49  ;;  %v8337_v15 = vadd.f32 %v10119_v5, %v10118_v26  ;;  %v10120_v49 = vld [vmem:[#allocation44_spill] sm:$0xff] }
 0x549   : > { %v3747_v28 = vmul.f32 %v10120_v49, %v8333_v0  ;;  %v10142_v49 = vld [vmem:[#allocation155_spill] sm:$0xff] }
 0x54a   : > { %v3745_v59 = vmul.f32 %v10124_v12, %v8337_v15  ;;  %v10144_v12 = vld [vmem:[#allocation68_spill] sm:$0xff] }
 0x54b   : > { %v8324_v19 = vpop.f32.mrf.mxu3  ;;  %v2603_v18 = vpop.f32.mrf.mxu2 }
 0x54c   : > { %10115 = vst [vmem:[#allocation98_spill] sm:$0xff] %v8324_v19  ;;  %v2662_v16 = vmul.f32 %v2603_v18, %v10138_v23  ;;  %v8382_v18 = vpop.permute.xlu2 %1025 }
 0x54d   : > { %10145 = vst [vmem:[#allocation60_spill] sm:$0xff] %v8382_v18 }
 0x550   : > { %5211 = vmatmul.msk.f32.gmra.mxu2 %vm1956_vm5, %v7866_v43  ;;  %2805 = vmatmul.f32.gmra.mxu3 %v7966_v9  ;;  %v10122_v43 = vld [vmem:[#allocation36_spill] sm:$0xff] }
 0x551   : > { %v8345_v9 = vadd.f32 %v10123_v25, %v10122_v43 }
 0x553   : > { %v8329_v61 = vpop.f32.mrf.mxu3  ;;  %v2606_v58 = vpop.f32.mrf.mxu2  ;;  %v3743_v62 = vmul.f32 %v10128_v21, %v8345_v9 }
 0x558   : > { %5212 = vmatmul.msk.f32.vlgmr.msra.gmra.mxu2 %vm1048_vm0, %v10121_v24 }
 0x559   : > { %3793 = vmatpush.msra.mxu2 %v3747_v28  ;;  %v10143_v28 = vld [vmem:[#allocation153_spill] sm:$0xff] }
 0x55b   : > { %3794 = vmatpush.msra.mxu2 %v3745_v59  ;;  %v8353_v20 = vpop.f32.mrf.mxu3  ;;  %v2609_v41 = vpop.f32.mrf.mxu2 }
 0x55c   : > { %10127 = vst [vmem:[#allocation92_spill] sm:$0xff] %v8353_v20  ;;  %v2666_v2 = vmul.f32 %v2609_v41, %v10130_v7  ;;  %v971_v59 = vpop.permute.xlu0 %970 }
 0x55d   : > { %3795 = vmatpush.msra.mxu2 %v3743_v62  ;;  %v8385_v41 = vadd.f32 %v10146_v52, %v971_v59  ;;  %v8421_v52 = vpop.permute.xlu2 %1020 }
 0x55e   : > { %v2698_v63 = vadd.f32 %v2666_v2, %v2658_v6  ;;  %v10148_v2 = vld [vmem:[#allocation27_spill] sm:$0xff]  ;;  %10157 = vst [vmem:[#allocation41_spill] sm:$0xff] %v8421_v52 }
 0x55f   : > { %3796 = vmatpush.msra.mxu2 %v3741_v51  ;;  %v10149_v51 = vld [vmem:[#allocation23_spill] sm:$0xff] }
 0x560   : > { %5213 = vmatmul.msk.f32.gmra.mxu2 %vm1048_vm0, %v10132_v60  ;;  %v8396_v60 = vadd.f32 %v10149_v51, %v10118_v26  ;;  %v10154_v26 = vld [vmem:[#allocation18_spill] sm:$0xff] }
 0x563   : > { %v8363_v46 = vpop.f32.mrf.mxu3  ;;  %v2612_v39 = vpop.f32.mrf.mxu2 }
 0x564   : > { %10133 = vst [vmem:[#allocation85_spill] sm:$0xff] %v8363_v46  ;;  %v2668_v48 = vmul.f32 %v2612_v39, %v10134_v53  ;;  %v10150_v39 = vld [vmem:[#allocation13_spill] sm:$0xff] }
 0x566   : > { %v2700_v35 = vadd.f32 %v2668_v48, %v2660_v36  ;;  %v2664_v36 = vmul.f32 %v2606_v58, %v10142_v49  ;;  %v8392_v58 = vadd.f32 %v10148_v2, %v10116_v55 }
 0x568   : > { %5214 = vmatmul.msk.f32.gmra.mxu2 %vm1048_vm0, %v10136_v44  ;;  %v3748_v48 = vmul.f32 %v10150_v39, %v8392_v58  ;;  %v10151_v44 = vld [vmem:[#allocation20_spill] sm:$0xff]  ;;  %v991_v39 = vpop.permute.xlu0 %990 }
 0x56b   : > { %v8370_v13 = vpop.f32.mrf.mxu3  ;;  %v2615_v29 = vpop.f32.mrf.mxu2 }
 0x56c   : > { %10137 = vst [vmem:[#allocation72_spill] sm:$0xff] %v8370_v13  ;;  %v2670_v34 = vmul.f32 %v2615_v29, %v10139_v17  ;;  %v8404_v29 = vadd.f32 %v10151_v44, %v10122_v43 }
 0x56e   : > { %v2702_v33 = vadd.f32 %v2670_v34, %v2662_v16  ;;  %v10152_v16 = vld [vmem:[#allocation143_spill] sm:$0xff] }
 0x56f   : > { %v3746_v55 = vmul.f32 %v10152_v16, %v8396_v60  ;;  %v10162_v16 = vld [vmem:[#allocation71_spill] sm:$0xff] }
 0x570   : > { %5215 = vmatmul.msk.f32.gmra.mxu2 %vm1048_vm0, %v10141_v54  ;;  %v8414_v54 = vadd.f32 %v10154_v26, %v10125_v40 }
 0x573   : > { %v2556_v45 = vpop.f32.mrf.mxu3  ;;  %v2618_v5 = vpop.f32.mrf.mxu2 }
 0x574   : > { %v2672_v24 = vmul.f32 %v2618_v5, %v10143_v28 }
 0x576   : > { %v2704_v25 = vadd.f32 %v2672_v24, %v2664_v36  ;;  %v10156_v24 = vld [vmem:[#allocation139_spill] sm:$0xff] }
 0x577   : > { %v3744_v43 = vmul.f32 %v10156_v24, %v8404_v29 }
 0x578   : > { %5216 = vmatmul.msk.f32.gmra.mxu2 %vm1048_vm0, %v10144_v12 }
 0x57b   : > { %v8387_v21 = vpop.f32.mrf.mxu3  ;;  %v2621_v62 = vpop.f32.mrf.mxu2 }
 0x57c   : > { %10147 = vst [vmem:[#allocation54_spill] sm:$0xff] %v8387_v21  ;;  %v2674_v6 = vmul.f32 %v2621_v62, %v8385_v41  ;;  %v10158_v62 = vld [vmem:[#allocation16_spill] sm:$0xff]  ;;  %v8457_v21 = vpop.permute.xlu1 %1000 }
 0x57d   : > { %10174 = vst [vmem:[#allocation24_spill] sm:$0xff] %v8457_v21 }
 0x57e   : > { %v2706_v42 = vadd.f32 %v2698_v63, %v2674_v6  ;;  %v10153_v63 = vld [vmem:[#allocation10_spill] sm:$0xff]  ;;  %v3742_v6 = vmul.f32 %v10158_v62, %v8414_v54 }
 0x57f   : > { %v8410_v34 = vadd.f32 %v10153_v63, %v8374_v22  ;;  %v10163_v63 = vld [vmem:[#allocation35_spill] sm:$0xff] }
 0x580   : > { %5242 = vmatmul.msk.f32.vlgmr.msrb.gmra.mxu2 %vm1956_vm5, %v8170_v32  ;;  %v8613_v22 = vld [vmem:[%s9589_s5 + $0x78] sm:$0xff] }
 0x581   : > { %3857 = vmatpush.msrb.mxu2 %v3748_v48  ;;  %v10160_v48 = vld [vmem:[#allocation12_spill] sm:$0xff]  ;;  %10217 = vst [vmem:[#allocation153_spill] sm:$0xff] %v8613_v22 }
 0x582   : > { %v8430_v44 = vadd.f32 %v10160_v48, %v971_v59  ;;  %v1011_v59 = vpop.permute.xlu2 %1010  ;;  %v10168_v48 = vld [vmem:[#allocation93_spill] sm:$0xff] }
 0x583   : > { %3858 = vmatpush.msrb.mxu2 %v3746_v55  ;;  %v8416_v5 = vpop.f32.mrf.mxu3  ;;  %v2624_v36 = vpop.f32.mrf.mxu2  ;;  %v2665_v55 = vmul.f32 %v8308_v10, %v10162_v16  ;;  %v8445_v13 = vadd.f32 %v10168_v48, %v1011_v59  ;;  %v10170_v10 = vld [vmem:[#allocation141_spill] sm:$0xff] }
 0x584   : > { %10155 = vst [vmem:[#allocation48_spill] sm:$0xff] %v8416_v5  ;;  %v2676_v12 = vmul.f32 %v2624_v36, %v8410_v34  ;;  %v10164_v36 = vld [vmem:[#allocation127_spill] sm:$0xff] }
 0x585   : > { %3859 = vmatpush.msrb.mxu2 %v3744_v43  ;;  %10161 = vst [vmem:[#allocation146_spill] sm:$0xff] %v8430_v44  ;;  %v8436_v24 = vadd.f32 %v10164_v36, %v991_v39 }
 0x586   : > { %v2708_v2 = vadd.f32 %v2700_v35, %v2676_v12  ;;  %v10166_v35 = vld [vmem:[#allocation129_spill] sm:$0xff]  ;;  %10169 = vst [vmem:[#allocation138_spill] sm:$0xff] %v8445_v13 }
 0x587   : > { %3860 = vmatpush.msrb.mxu2 %v3742_v6  ;;  %10165 = vst [vmem:[#allocation142_spill] sm:$0xff] %v8436_v24  ;;  %v2187_v43 = vmul.f32 %v10166_v35, %v8430_v44  ;;  %v10167_v12 = vld [vmem:[#allocation77_spill] sm:$0xff]  ;;  %v2673_v6 = vmul.f32 %v8329_v61, %v8430_v44  ;;  %v2681_v36 = vmul.f32 %v2556_v45, %v8436_v24 }
 0x588   : > { %5243 = vmatmul.msk.f32.gmra.mxu2 %vm1956_vm5, %v8181_v3  ;;  %v2657_v62 = vmul.f32 %v8285_v37, %v10167_v12  ;;  %v10171_v35 = vld [vmem:[#allocation65_spill] sm:$0xff] }
 0x589   : > { %v2219_v19 = vadd.f32 %v10171_v35, %v2187_v43  ;;  %v10172_v37 = vld [vmem:[#allocation161_spill] sm:$0xff]  ;;  %v10176_v43 = vld [vmem:[#allocation119_spill] sm:$0xff] }
 0x58a   : > { %v2697_v8 = vadd.f32 %v2665_v55, %v2657_v62  ;;  %v2203_v5 = vmul.f32 %v10172_v37, %v8445_v13 }
 0x58b   : > { %v8427_v40 = vpop.f32.mrf.mxu3  ;;  %v2627_v51 = vpop.f32.mrf.mxu2 }
 0x58c   : > { %10159 = vst [vmem:[#allocation33_spill] sm:$0xff] %v8427_v40  ;;  %v2678_v26 = vmul.f32 %v2627_v51, %v10163_v63  ;;  %v2195_v51 = vmul.f32 %v10170_v10, %v8436_v24  ;;  %v2705_v61 = vadd.f32 %v2697_v8, %v2673_v6  ;;  %v8464_v8 = vadd.f32 %v10176_v43, %v991_v39  ;;  %v10181_v39 = vld [vmem:[#allocation120_spill] sm:$0xff]  ;;  %v10186_v43 = vld [vmem:[#allocation62_spill] sm:$0xff] }
 0x58d   : > { %v8480_v37 = vadd.f32 %v10181_v39, %v8457_v21  ;;  %v8507_v39 = vld [vmem:[%s9589_s5 + $0x38] sm:$0xff] }
 0x58e   : > { %v2710_v40 = vadd.f32 %v2702_v33, %v2678_v26  ;;  %v2227_v46 = vadd.f32 %v2219_v19, %v2195_v51  ;;  %v2713_v48 = vadd.f32 %v2705_v61, %v2681_v36  ;;  %10177 = vst [vmem:[#allocation21_spill] sm:$0xff] %v8464_v8 }
 0x58f   : > { %10182 = vst [vmem:[#allocation121_spill] sm:$0xff] %v8480_v37 }
 0x590   : > { %5244 = vmatmul.msk.f32.gmra.mxu2 %vm1956_vm5, %v8192_v56  ;;  %v2235_v55 = vadd.f32 %v2227_v46, %v2203_v5  ;;  %v8469_v46 = vpop.permute.xlu1 %995 }
 0x591   : > { %10178 = vst [vmem:[#allocation22_spill] sm:$0xff] %v8469_v46 }
 0x593   : > { %v2568_v33 = vpop.f32.mrf.mxu3  ;;  %v2630_v26 = vpop.f32.mrf.mxu2 }
 0x594   : > { %v2689_v11 = vmul.f32 %v2568_v33, %v8445_v13  ;;  %v2680_v10 = vmul.f32 %v2630_v26, %v10173_v14  ;;  %v8486_v26 = vld [vmem:[%s9589_s5 + $0x30] sm:$0xff] }
 0x596   : > { %v2721_v62 = vadd.f32 %v2713_v48, %v2689_v11  ;;  %v2712_v45 = vadd.f32 %v2704_v25, %v2680_v10  ;;  %v10179_v11 = vld [vmem:[#allocation86_spill] sm:$0xff] }
 0x597   : > { %v8473_v25 = vadd.f32 %v10179_v11, %v8469_v46 }
 0x598   : > { %v8459_v20 = vadd.f32 %v2721_v62, %v2235_v55  ;;  %5245 = vmatmul.msk.f32.gmra.mxu2 %vm1956_vm5, %v8203_v31  ;;  %v8517_v21 = vpop.permute.xlu1 %1015 }
 0x599   : > { %10180 = vst [vmem:[#allocation44_spill] sm:$0xff] %v8473_v25 }
 0x59a   : > { %10175 = vst [vmem:[#allocation26_spill] sm:$0xff] %v8459_v20 }
 0x59b   : > { %v2633_v6 = vpop.f32.mrf.mxu2  ;;  %v8495_v62 = vpop.f32.mrf.mxu3  ;;  %10193 = vst [vmem:[#allocation28_spill] sm:$0xff] %v8517_v21 }
 0x59c   : > { %v2682_v19 = vmul.f32 %v2633_v6, %v8464_v8  ;;  %10185 = vst [vmem:[#allocation19_spill] sm:$0xff] %v8495_v62  ;;  %v10195_v62 = vld [vmem:[#allocation73_spill] sm:$0xff] }
 0x59d   : > { %v8523_v13 = vadd.f32 %v10195_v62, %v8517_v21 }
 0x59e   : > { %v2714_v51 = vadd.f32 %v2706_v42, %v2682_v19  ;;  %v10187_v19 = vld [vmem:[#allocation87_spill] sm:$0xff] }
 0x59f   : > { %v8500_v11 = vadd.f32 %v10187_v19, %v1011_v59  ;;  %10196 = vst [vmem:[#allocation8_spill] sm:$0xff] %v8523_v13 }
 0x5a0   : > { %5246 = vmatmul.msk.f32.gmra.mxu2 %vm1956_vm5, %v8214_v27 }
 0x5a1   : > { %10188 = vst [vmem:[#allocation14_spill] sm:$0xff] %v8500_v11 }
 0x5a3   : > { %v2636_v5 = vpop.f32.mrf.mxu2  ;;  %v8519_v20 = vpop.f32.mrf.mxu3 }
 0x5a4   : > { %v2684_v36 = vmul.f32 %v2636_v5, %v8473_v25  ;;  %v10189_v5 = vld [vmem:[#allocation159_spill] sm:$0xff]  ;;  %10194 = vst [vmem:[#allocation17_spill] sm:$0xff] %v8519_v20  ;;  %v10202_v20 = vld [vmem:[#allocation165_spill] sm:$0xff] }
 0x5a5   : > { %v2200_v21 = vmul.f32 %v10202_v20, %v8480_v37 }
 0x5a6   : > { %v2716_v35 = vadd.f32 %v2708_v2, %v2684_v36  ;;  %v10183_v2 = vld [vmem:[#allocation105_spill] sm:$0xff]  ;;  %v2196_v36 = vmul.f32 %v10189_v5, %v8464_v8 }
 0x5a7   : > { %v8492_v48 = vadd.f32 %v10183_v2, %v8366_v47  ;;  %v10191_v2 = vld [vmem:[#allocation170_spill] sm:$0xff] }
 0x5a8   : > { %5247 = vmatmul.msk.f32.gmra.mxu2 %vm1956_vm5, %v8247_v38 }
 0x5a9   : > { %10184 = vst [vmem:[#allocation36_spill] sm:$0xff] %v8492_v48 }
 0x5ab   : > { %v2639_v42 = vpop.f32.mrf.mxu2 }
 0x5ac   : > { %v2686_v61 = vmul.f32 %v2639_v42, %v8480_v37  ;;  %v10190_v42 = vld [vmem:[#allocation94_spill] sm:$0xff] }
 0x5ae   : > { %v2718_v33 = vadd.f32 %v2710_v40, %v2686_v61  ;;  %v2188_v40 = vmul.f32 %v10186_v43, %v8385_v41  ;;  %v10192_v43 = vld [vmem:[#allocation56_spill] sm:$0xff] }
 0x5af   : > { %v2190_v19 = vmul.f32 %v10192_v43, %v8410_v34 }
 0x5b0   : > { %5248 = vmatmul.msk.f32.gmra.mxu2 %vm1956_vm5, %v8486_v26  ;;  %v2220_v61 = vadd.f32 %v10190_v42, %v2188_v40  ;;  %v10197_v40 = vld [vmem:[#allocation162_spill] sm:$0xff] }
 0x5b1   : > { %v2198_v42 = vmul.f32 %v10197_v40, %v8473_v25 }
 0x5b3   : > { %v2642_v10 = vpop.f32.mrf.mxu2 }
 0x5b4   : > { %v2688_v55 = vmul.f32 %v2642_v10, %v8492_v48  ;;  %v2204_v10 = vmul.f32 %v10191_v2, %v8500_v11 }
 0x5b6   : > { %v2720_v6 = vadd.f32 %v2712_v45, %v2688_v55  ;;  %v2228_v55 = vadd.f32 %v2220_v61, %v2196_v36  ;;  %v8532_v36 = vld [vmem:[%s9589_s5 + $0x40] sm:$0xff] }
 0x5b8   : > { %5249 = vmatmul.msk.f32.gmra.mxu2 %vm1956_vm5, %v8507_v39  ;;  %v2236_v5 = vadd.f32 %v2228_v55, %v2204_v10  ;;  %v10199_v10 = vld [vmem:[#allocation172_spill] sm:$0xff] }
 0x5bb   : > { %v2645_v45 = vpop.f32.mrf.mxu2 }
 0x5bc   : > { %v2690_v59 = vmul.f32 %v2645_v45, %v8500_v11  ;;  %v2206_v45 = vmul.f32 %v10199_v10, %v8523_v13  ;;  %v10206_v10 = vld [vmem:[#allocation154_spill] sm:$0xff] }
 0x5be   : > { %v2722_v47 = vadd.f32 %v2714_v51, %v2690_v59  ;;  %v10198_v51 = vld [vmem:[#allocation80_spill] sm:$0xff] }
 0x5bf   : > { %v2222_v61 = vadd.f32 %v10198_v51, %v2190_v19  ;;  %v8551_v19 = vld [vmem:[%s9589_s5 + $0x48] sm:$0xff] }
 0x5c0   : > { %v8527_v2 = vadd.f32 %v2722_v47, %v2236_v5  ;;  %5250 = vmatmul.msk.f32.gmra.mxu2 %vm1956_vm5, %v8532_v36  ;;  %v10200_v5 = vld [vmem:[#allocation61_spill] sm:$0xff] }
 0x5c1   : > { %v2230_v55 = vadd.f32 %v2222_v61, %v2198_v42  ;;  %v8542_v40 = vadd.f32 %v10200_v5, %v8421_v52  ;;  %v8555_v42 = vpop.f32.mrf.mxu3 }
 0x5c2   : > { %10204 = vst [vmem:[#allocation144_spill] sm:$0xff] %v8555_v42 }
 0x5c3   : > { %v2648_v62 = vpop.f32.mrf.mxu2  ;;  %v2238_v43 = vadd.f32 %v2230_v55, %v2206_v45  ;;  %10201 = vst [vmem:[#allocation106_spill] sm:$0xff] %v8542_v40  ;;  %v2232_v45 = vadd.f32 %v10206_v10, %v2200_v21  ;;  %v10212_v10 = vld [vmem:[#allocation157_spill] sm:$0xff] }
 0x5c4   : > { %v2692_v59 = vmul.f32 %v2648_v62, %v8523_v13 }
 0x5c6   : > { %v2724_v47 = vadd.f32 %v2716_v35, %v2692_v59  ;;  %v10205_v35 = vld [vmem:[#allocation173_spill] sm:$0xff] }
 0x5c7   : > { %v2208_v51 = vmul.f32 %v10205_v35, %v8542_v40  ;;  %v10207_v59 = vld [vmem:[#allocation49_spill] sm:$0xff]  ;;  %v8572_v35 = vld [vmem:[%s9589_s5 + $0x50] sm:$0xff] }
 0x5c8   : > { %v8546_v4 = vadd.f32 %v2724_v47, %v2238_v43  ;;  %5251 = vmatmul.msk.f32.gmra.mxu2 %vm1956_vm5, %v8551_v19  ;;  %v8563_v43 = vadd.f32 %v10207_v59, %v8382_v18  ;;  %v10209_v47 = vld [vmem:[#allocation167_spill] sm:$0xff] }
 0x5c9   : > { %v2240_v62 = vadd.f32 %v2232_v45, %v2208_v51  ;;  %v2202_v5 = vmul.f32 %v10209_v47, %v8492_v48  ;;  %v2794_v21 = vpop.f32.mrf.mxu3  ;;  %v8585_v47 = vld [vmem:[%s9589_s5 + $0x58] sm:$0xff] }
 0x5ca   : > { %10203 = vst [vmem:[#allocation9_spill] sm:$0xff] %v8546_v4 }
 0x5cb   : > { %v2651_v61 = vpop.f32.mrf.mxu2  ;;  %10208 = vst [vmem:[#allocation88_spill] sm:$0xff] %v8563_v43  ;;  %v2234_v45 = vadd.f32 %v10212_v10, %v2202_v5  ;;  %v8592_v5 = vld [vmem:[%s9589_s5 + $0x60] sm:$0xff] }
 0x5cc   : > { %v2694_v20 = vmul.f32 %v2651_v61, %v8542_v40  ;;  %10214 = vst [vmem:[#allocation50_spill] sm:$0xff] %v8592_v5 }
 0x5ce   : > { %v2726_v55 = vadd.f32 %v2718_v33, %v2694_v20  ;;  %v10211_v33 = vld [vmem:[#allocation174_spill] sm:$0xff] }
 0x5cf   : > { %v2210_v51 = vmul.f32 %v10211_v33, %v8563_v43 }
 0x5d0   : > { %v8567_v52 = vadd.f32 %v2726_v55, %v2240_v62  ;;  %5252 = vmatmul.msk.f32.gmra.mxu2 %vm1956_vm5, %v8572_v35 }
 0x5d1   : > { %v2242_v59 = vadd.f32 %v2234_v45, %v2210_v51  ;;  %v2797_v18 = vpop.f32.mrf.mxu3  ;;  %v8599_v51 = vld [vmem:[%s9589_s5 + $0x68] sm:$0xff]  ;;  %v8606_v45 = vld [vmem:[%s9589_s5 + $0x70] sm:$0xff] }
 0x5d2   : > { %10210 = vst [vmem:[#allocation135_spill] sm:$0xff] %v8567_v52 }
 0x5d3   : > { %v2654_v61 = vpop.f32.mrf.mxu2  ;;  %10215 = vst [vmem:[#allocation145_spill] sm:$0xff] %v8599_v51 }
 0x5d4   : > { %v2696_v20 = vmul.f32 %v2654_v61, %v8563_v43  ;;  %10216 = vst [vmem:[#allocation155_spill] sm:$0xff] %v8606_v45 }
 0x5d6   : > { %v2728_v62 = vadd.f32 %v2720_v6, %v2696_v20 }
 0x5d8   : > { %v8580_v55 = vadd.f32 %v2728_v62, %v2242_v59  ;;  %5253 = vmatmul.msk.f32.gmra.mxu2 %vm1956_vm5, %v8585_v47 }
 0x5d9   : > { %v2800_v33 = vpop.f32.mrf.mxu3 }
 0x5da   : > { %10213 = vst [vmem:[#allocation43_spill] sm:$0xff] %v8580_v55 }
 0x5db   : > { %v2826_v42 = vpop.f32.mrf.mxu2 }
 0x5dc   : > { %v2827_v62 = vadd.f32 %v2826_v42, %v2794_v21  ;;  %v8620_v21 = vld [vmem:[%s9589_s5 + $0x80] sm:$0xff] }
 0x5dd   : > { %10218 = vst [vmem:[#allocation68_spill] sm:$0xff] %v8620_v21 }
 0x5e0   : > { %5254 = vmatmul.msk.f32.gmra.mxu2 %vm1956_vm5, %v8592_v5 }
 0x5e1   : > { %v2803_v10 = vpop.f32.mrf.mxu3 }
 0x5e3   : > { %v2829_v6 = vpop.f32.mrf.mxu2 }
 0x5e4   : > { %v2830_v59 = vadd.f32 %v2829_v6, %v2797_v18 }
 0x5e6   : > { %v2905_v24 = vmax.f32 %v2827_v62, %v2830_v59 }
 0x5e8   : > { %5255 = vmatmul.msk.f32.gmra.mxu2 %vm1956_vm5, %v8599_v51 }
 0x5e9   : > { %v2806_v44 = vpop.f32.mrf.mxu3 }
 0x5eb   : > { %v2832_v61 = vpop.f32.mrf.mxu2 }
 0x5ec   : > { %v2833_v46 = vadd.f32 %v2832_v61, %v2800_v33 }
 0x5ee   : > { %v2907_v16 = vmax.f32 %v2905_v24, %v2833_v46 }
 0x5f0   : > { %5256 = vmatmul.msk.f32.gmra.mxu2 %vm1956_vm5, %v8606_v45 }
 0x5f3   : > { %v2835_v20 = vpop.f32.mrf.mxu2 }
 0x5f4   : > { %v2836_v1 = vadd.f32 %v2835_v20, %v2803_v10 }
 0x5f6   : > { %v2909_v55 = vmax.f32 %v2907_v16, %v2836_v1 }
 0x5f8   : > { %5257 = vmatmul.msk.f32.gmra.mxu2 %vm1956_vm5, %v8613_v22 }
 0x5fb   : > { %v2838_v12 = vpop.f32.mrf.mxu2 }
 0x5fc   : > { %v2839_v43 = vadd.f32 %v2838_v12, %v2806_v44  ;;  %v8627_v12 = vld [vmem:[%s9589_s5 + $0x88] sm:$0xff] }
 0x5fd   : > { %10219 = vst [vmem:[#allocation123_spill] sm:$0xff] %v8627_v12 }
 0x5fe   : > { %v2911_v45 = vmax.f32 %v2909_v55, %v2839_v43 }
 0x600   : > { %v2913_v51 = vsub.f32 %v2827_v62, %v2911_v45  ;;  %v2915_v18 = vsub.f32 %v2830_v59, %v2911_v45  ;;  %v2917_v42 = vsub.f32 %v2833_v46, %v2911_v45  ;;  %5258 = vmatmul.msk.f32.gmra.mxu2 %vm1956_vm5, %v8620_v21  ;;  %v2919_v6 = vsub.f32 %v2836_v1, %v2911_v45 }
 0x601   : > { %v2921_v10 = vsub.f32 %v2839_v43, %v2911_v45 }
 0x602   : > { %v2923_v33 = vmul.f32 1.442695, %v2913_v51  ;;  %v2927_v61 = vmul.f32 1.442695, %v2915_v18  ;;  %v2931_v24 = vmul.f32 1.442695, %v2917_v42 }
 0x603   : > { %v3083_v20 = vpop.f32.mrf.mxu2  ;;  %v2935_v44 = vmul.f32 1.442695, %v2919_v6  ;;  %v2939_v16 = vmul.f32 1.442695, %v2921_v10  ;;  %v8635_v42 = vld [vmem:[%s9589_s5 + $0x90] sm:$0xff]  ;;  %v8641_v10 = vpop.f32.mrf.mxu1 }
 0x604   : > { %5556 = vpow2.f32 %v2923_v33  ;;  %10220 = vst [vmem:[#allocation27_spill] sm:$0xff] %v8635_v42 }
 0x605   : > { %5558 = vpow2.f32 %v2927_v61 }
 0x606   : > { %5560 = vpow2.f32 %v2931_v24  ;;  %v8646_v24 = vld [vmem:[%s9589_s5 + $0x98] sm:$0xff] }
 0x607   : > { %5562 = vpow2.f32 %v2935_v44  ;;  %10221 = vst [vmem:[#allocation23_spill] sm:$0xff] %v8646_v24 }
 0x608   : > { %5259 = vmatmul.msk.f32.gmra.mxu2 %vm1956_vm5, %v8627_v12  ;;  %5564 = vpow2.f32 %v2939_v16 }
 0x60a   : > { %v5557_v1 = vpop.eup %5556 }
 0x60b   : > { %v5559_v46 = vpop.eup %5558  ;;  %v3086_v43 = vpop.f32.mrf.mxu2 }
 0x60c   : > { %v2943_v55 = vadd.f32 %v5559_v46, %v5557_v1  ;;  %v3146_v51 = vmul.f32 %v3086_v43, %v7944_v30  ;;  %v5561_v45 = vpop.eup %5560  ;;  %v8659_v12 = vpop.f32.mrf.mxu1 }
 0x60d   : > { %v5563_v62 = vpop.eup %5562 }
 0x60e   : > { %v2945_v59 = vadd.f32 %v5561_v45, %v2943_v55  ;;  %v5565_v6 = vpop.eup %5564 }
 0x610   : > { %v2947_v18 = vadd.f32 %v5563_v62, %v2945_v59  ;;  %5260 = vmatmul.msk.f32.gmra.mxu2 %vm1956_vm5, %v8635_v42  ;;  %v8655_v42 = vld [vmem:[%s9935_s4 + $0x8] sm:$0xff] }
 0x612   : > { %v2949_v33 = vadd.f32 %v5565_v6, %v2947_v18 }
 0x613   : > { %v8639_v61 = vpop.f32.mrf.mxu2 }
 0x614   : > { %5566 = vrcp.f32 %v2949_v33  ;;  %v2962_v59 = vand.u32 2147483648, %v2949_v33  ;;  %v2960_v30 = vand.u32 2147483647, %v2949_v33  ;;  %vm2956_vm2 = vweird.f32 %v2949_v33 }
 0x616   : > { %v2963_v21 = vor.u32 1.1754944e-38, %v2962_v59  ;;  %vm2961_vm4 = vcmp.eq.f32.partialorder %v2960_v30, 8.507059e+37  ;;  %v10227_v59 = vld [vmem:[#allocation101_spill] sm:$0xff] }
 0x618   : > { %5261 = vmatmul.msk.f32.gmra.mxu2 %vm1956_vm5, %v8646_v24 }
 0x61a   : > { %v5567_v44 = vpop.eup %5566 }
 0x61b   : > { %v2952_v16 = vmul.f32 %v5567_v44, %v2949_v33  ;;  %v8650_v43 = vpop.f32.mrf.mxu2  ;;  %vm2957_vm1 = vweird.f32 %v5567_v44  ;;  %v8672_v33 = vpop.f32.mrf.mxu1 }
 0x61c   : > { %vm2958_vm3 = vmor %vm2956_vm2, %vm2957_vm1  ;;  %10222 = vst [vmem:[#allocation13_spill] sm:$0xff] %v8672_v33 }
 0x61d   : > { %v2953_v55 = vsub.f32 1.0, %v2952_v16 }
 0x61f   : > { %v2954_v18 = vmul.f32 %v5567_v44, %v2953_v55  ;;  %v3144_v55 = vmul.f32 %v3083_v20, %v10129_v57 }
 0x620   : > { %5312 = vmatmul.msk.f32.vlgmr.msra.gmra.mxu2 %vm1048_vm0, %v8655_v42 }
 0x621   : > { %v2955_v24 = vadd.f32 %v5567_v44, %v2954_v18  ;;  %v8668_v18 = vld [vmem:[%s9935_s4 + $0x18] sm:$0xff] }
 0x623   : > { %v3095_v22 = vpop.f32.mrf.mxu2  ;;  %v2959_v16 = vsel %vm2958_vm3, %v5567_v44, %v2955_v24  ;;  %v8692_v24 = vpop.f32.mrf.mxu1 }
 0x624   : > { %v3152_v52 = vmul.f32 %v3095_v22, %v10130_v7  ;;  %v2964_v48 = vsel %vm2961_vm4, %v2963_v21, %v2959_v16  ;;  %v3731_v16 = vmul.f32 %v10227_v59, %v8333_v0  ;;  %v10233_v59 = vld [vmem:[#allocation63_spill] sm:$0xff] }
 0x625   : > { %v2987_v40 = vmul.f32 %v5565_v6, %v2964_v48  ;;  %v2985_v4 = vmul.f32 %v5563_v62, %v2964_v48  ;;  %v2983_v30 = vmul.f32 %v5561_v45, %v2964_v48  ;;  %v2981_v21 = vmul.f32 %v5559_v46, %v2964_v48  ;;  %v10223_v62 = vld [vmem:[#allocation130_spill] sm:$0xff] }
 0x626   : > { %v8663_v5 = vadd.f32 %v3152_v52, %v3144_v55  ;;  %v3739_v6 = vmul.f32 %v10223_v62, %v8333_v0  ;;  %v8703_v55 = vld [vmem:[%s9935_s4 + $0x38] sm:$0xff] }
 0x627   : > { %3000 = vmatpush.msrb.mxu3 %v2987_v40  ;;  %v2979_v40 = vmul.f32 %v5557_v1, %v2964_v48  ;;  %v10224_v48 = vld [vmem:[#allocation122_spill] sm:$0xff] }
 0x628   : > { %5313 = vmatmul.msk.f32.gmra.mxu2 %vm1048_vm0, %v8668_v18  ;;  %v3737_v1 = vmul.f32 %v10224_v48, %v8337_v15  ;;  %v10231_v48 = vld [vmem:[#allocation75_spill] sm:$0xff] }
 0x629   : > { %3001 = vmatpush.msrb.mxu3 %v2985_v4  ;;  %v8684_v4 = vld [vmem:[%s9935_s4 + $0x28] sm:$0xff] }
 0x62b   : > { %3002 = vmatpush.msrb.mxu3 %v2983_v30  ;;  %v3098_v22 = vpop.f32.mrf.mxu2  ;;  %v10228_v30 = vld [vmem:[#allocation95_spill] sm:$0xff] }
 0x62c   : > { %v3154_v52 = vmul.f32 %v3098_v22, %v10134_v53  ;;  %v3729_v22 = vmul.f32 %v10228_v30, %v8337_v15 }
 0x62d   : > { %3003 = vmatpush.msrb.mxu3 %v2981_v21 }
 0x62e   : > { %v8675_v20 = vadd.f32 %v3154_v52, %v3146_v51  ;;  %v10225_v51 = vld [vmem:[#allocation114_spill] sm:$0xff]  ;;  %v10229_v52 = vld [vmem:[#allocation89_spill] sm:$0xff] }
 0x62f   : > { %3004 = vmatpush.msrb.mxu3 %v2979_v40  ;;  %v3735_v45 = vmul.f32 %v10225_v51, %v8345_v9  ;;  %v3727_v40 = vmul.f32 %v10229_v52, %v8345_v9  ;;  %v8722_v51 = vld [vmem:[%s9935_s4 + $0x48] sm:$0xff] }
 0x630   : > { %5222 = vmatmul.msk.f32.vlgmr.msrb.gmra.mxu3 %vm1956_vm5, %v8170_v32  ;;  %5314 = vmatmul.msk.f32.gmra.mxu2 %vm1048_vm0, %v8684_v4  ;;  %v10226_v32 = vld [vmem:[#allocation107_spill] sm:$0xff] }
 0x631   : > { %3749 = vmatpush.msra.mxu3 %v3739_v6  ;;  %v3733_v44 = vmul.f32 %v10226_v32, %v8351_v50  ;;  %v8713_v6 = vpop.f32.mrf.mxu1 }
 0x633   : > { %3750 = vmatpush.msra.mxu3 %v3737_v1  ;;  %v3101_v46 = vpop.f32.mrf.mxu2  ;;  %v3723_v1 = vmul.f32 %v10231_v48, %v8333_v0 }
 0x635   : > { %3751 = vmatpush.msra.mxu3 %v3735_v45  ;;  %v10232_v45 = vld [vmem:[#allocation69_spill] sm:$0xff] }
 0x636   : > { %v3721_v32 = vmul.f32 %v10232_v45, %v8337_v15 }
 0x637   : > { %3752 = vmatpush.msra.mxu3 %v3733_v44 }
 0x638   : > { %5223 = vmatmul.msk.f32.gmra.mxu3 %vm1956_vm5, %v8181_v3  ;;  %5315 = vmatmul.msk.f32.gmra.mxu2 %vm1048_vm0, %v8703_v55  ;;  %v10230_v3 = vld [vmem:[#allocation81_spill] sm:$0xff] }
 0x639   : > { %3753 = vmatpush.msra.mxu3 %v3731_v16  ;;  %v3725_v62 = vmul.f32 %v10230_v3, %v8351_v50  ;;  %v3719_v16 = vmul.f32 %v10233_v59, %v8345_v9  ;;  %v10236_v3 = vld [vmem:[#allocation45_spill] sm:$0xff] }
 0x63b   : > { %3754 = vmatpush.msra.mxu3 %v3729_v22  ;;  %v3104_v21 = vpop.f32.mrf.mxu2  ;;  %v10235_v22 = vld [vmem:[#allocation51_spill] sm:$0xff] }
 0x63c   : > { %v3715_v52 = vmul.f32 %v10235_v22, %v8333_v0  ;;  %v10238_v0 = vld [vmem:[#allocation30_spill] sm:$0xff] }
 0x63d   : > { %3755 = vmatpush.msra.mxu3 %v3727_v40  ;;  %v8740_v40 = vpop.f32.mrf.mxu1 }
 0x63f   : > { %3756 = vmatpush.msra.mxu3 %v3725_v62  ;;  %v3713_v62 = vmul.f32 %v10236_v3, %v8337_v15  ;;  %v10243_v3 = vld [vmem:[#allocation108_spill] sm:$0xff] }
 0x640   : > { %5224 = vmatmul.msk.f32.gmra.mxu3 %vm1956_vm5, %v8192_v56  ;;  %5316 = vmatmul.msk.f32.gmra.mxu2 %vm1048_vm0, %v8722_v51  ;;  %v10234_v56 = vld [vmem:[#allocation57_spill] sm:$0xff] }
 0x641   : > { %3757 = vmatpush.msra.mxu3 %v3723_v1  ;;  %v3717_v30 = vmul.f32 %v10234_v56, %v8351_v50  ;;  %v10237_v1 = vld [vmem:[#allocation38_spill] sm:$0xff] }
 0x642   : > { %v3711_v45 = vmul.f32 %v10237_v1, %v8345_v9  ;;  %v3148_v9 = vmul.f32 %v8639_v61, %v10138_v23  ;;  %v3158_v1 = vmul.f32 %v3104_v21, %v10143_v28 }
 0x643   : > { %3758 = vmatpush.msra.mxu3 %v3721_v32  ;;  %v8728_v44 = vpop.f32.mrf.mxu2  ;;  %v3709_v32 = vmul.f32 %v10238_v0, %v8351_v50  ;;  %v10241_v50 = vld [vmem:[#allocation116_spill] sm:$0xff] }
 0x644   : > { %v3736_v56 = vmul.f32 %v10241_v50, %v8404_v29 }
 0x645   : > { %3759 = vmatpush.msra.mxu3 %v3719_v16  ;;  %v10240_v16 = vld [vmem:[#allocation124_spill] sm:$0xff] }
 0x646   : > { %v3738_v15 = vmul.f32 %v10240_v16, %v8396_v60 }
 0x647   : > { %3760 = vmatpush.msra.mxu3 %v3717_v30  ;;  %v8763_v30 = vpop.f32.mrf.mxu1 }
 0x648   : > { %5225 = vmatmul.msk.f32.gmra.mxu3 %vm1956_vm5, %v8203_v31  ;;  %5317 = vmatmul.msk.f32.vlgmr.msrb.gmra.mxu2 %vm1048_vm0, %v8655_v42  ;;  %v10239_v31 = vld [vmem:[#allocation131_spill] sm:$0xff]  ;;  %v3156_v42 = vmul.f32 %v3101_v46, %v10139_v17  ;;  %10242 = vst [vmem:[#allocation20_spill] sm:$0xff] %v8763_v30 }
 0x649   : > { %3761 = vmatpush.msra.mxu3 %v3715_v52  ;;  %v3740_v59 = vmul.f32 %v10239_v31, %v8392_v58  ;;  %v10246_v31 = vld [vmem:[#allocation90_spill] sm:$0xff] }
 0x64a   : > { %v3188_v22 = vadd.f32 %v3156_v42, %v3148_v9 }
 0x64b   : > { %3762 = vmatpush.msra.mxu3 %v3713_v62  ;;  %v8744_v48 = vpop.f32.mrf.mxu2 }
 0x64d   : > { %3763 = vmatpush.msra.mxu3 %v3711_v45  ;;  %v10245_v45 = vld [vmem:[#allocation96_spill] sm:$0xff] }
 0x64e   : > { %v3730_v0 = vmul.f32 %v10245_v45, %v8396_v60 }
 0x64f   : > { %3764 = vmatpush.msra.mxu3 %v3709_v32  ;;  %v3150_v32 = vmul.f32 %v8650_v43, %v10142_v49  ;;  %v3608_v50 = vpop.f32.mrf.mxu1  ;;  %v10249_v43 = vld [vmem:[#allocation70_spill] sm:$0xff] }
 0x650   : > { %5318 = vmatmul.msk.f32.gmra.mxu2 %vm1048_vm0, %v8668_v18  ;;  %5226 = vmatmul.msk.f32.gmra.mxu3 %vm1956_vm5, %v8214_v27  ;;  %v3734_v18 = vmul.f32 %v10243_v3, %v8414_v54  ;;  %v10244_v27 = vld [vmem:[#allocation102_spill] sm:$0xff] }
 0x651   : > { %3813 = vmatpush.msrb.mxu3 %v3740_v59  ;;  %v3732_v61 = vmul.f32 %v10244_v27, %v8392_v58  ;;  %v3728_v59 = vmul.f32 %v10246_v31, %v8404_v29  ;;  %v3190_v16 = vadd.f32 %v3158_v1, %v3150_v32 }
 0x653   : > { %3814 = vmatpush.msrb.mxu3 %v3738_v15  ;;  %v3113_v46 = vpop.f32.mrf.mxu2  ;;  %v10247_v15 = vld [vmem:[#allocation83_spill] sm:$0xff] }
 0x654   : > { %v3164_v52 = vmul.f32 %v3113_v46, %v10163_v63  ;;  %v3726_v9 = vmul.f32 %v10247_v15, %v8414_v54  ;;  %v3722_v46 = vmul.f32 %v10249_v43, %v8396_v60 }
 0x655   : > { %3815 = vmatpush.msrb.mxu3 %v3736_v56 }
 0x656   : > { %v8768_v62 = vadd.f32 %v3188_v22, %v3164_v52  ;;  %v10250_v22 = vld [vmem:[#allocation64_spill] sm:$0xff] }
 0x657   : > { %3816 = vmatpush.msrb.mxu3 %v3734_v18  ;;  %v3720_v52 = vmul.f32 %v10250_v22, %v8404_v29  ;;  %v10251_v18 = vld [vmem:[#allocation58_spill] sm:$0xff]  ;;  %v3611_v45 = vpop.f32.mrf.mxu1  ;;  %v10258_v22 = vld [vmem:[#allocation169_spill] sm:$0xff] }
 0x658   : > { %5319 = vmatmul.msk.f32.gmra.mxu2 %vm1048_vm0, %v8684_v4  ;;  %5227 = vmatmul.msk.f32.gmra.mxu3 %vm1956_vm5, %v8247_v38  ;;  %v10248_v38 = vld [vmem:[#allocation76_spill] sm:$0xff]  ;;  %v3718_v27 = vmul.f32 %v10251_v18, %v8414_v54  ;;  %v3642_v18 = vmul.f32 %v8641_v10, %v10139_v17  ;;  %v3658_v10 = vmul.f32 %v3611_v45, %v8480_v37 }
 0x659   : > { %3817 = vmatpush.msrb.mxu3 %v3732_v61  ;;  %v3724_v56 = vmul.f32 %v10248_v38, %v8392_v58  ;;  %v10252_v61 = vld [vmem:[#allocation52_spill] sm:$0xff]  ;;  %v3652_v45 = vmul.f32 %v8740_v40, %v10173_v14 }
 0x65a   : > { %v3716_v1 = vmul.f32 %v10252_v61, %v8392_v58  ;;  %v10259_v61 = vld [vmem:[#allocation160_spill] sm:$0xff] }
 0x65b   : > { %3818 = vmatpush.msrb.mxu3 %v3730_v0  ;;  %v3116_v42 = vpop.f32.mrf.mxu2 }
 0x65c   : > { %v3166_v21 = vmul.f32 %v3116_v42, %v10173_v14 }
 0x65d   : > { %3819 = vmatpush.msrb.mxu3 %v3728_v59  ;;  %v10255_v59 = vld [vmem:[#allocation31_spill] sm:$0xff] }
 0x65e   : > { %v8786_v4 = vadd.f32 %v3190_v16, %v3166_v21  ;;  %v3710_v58 = vmul.f32 %v10255_v59, %v8414_v54 }
 0x65f   : > { %3820 = vmatpush.msrb.mxu3 %v3726_v9  ;;  %v3614_v42 = vpop.f32.mrf.mxu1 }
 0x660   : > { %5320 = vmatmul.msk.f32.gmra.mxu2 %vm1048_vm0, %v8703_v55  ;;  %5228 = vmatmul.msk.f32.gmra.mxu3 %vm1956_vm5, %v8486_v26  ;;  %v10253_v55 = vld [vmem:[#allocation46_spill] sm:$0xff]  ;;  %v10254_v26 = vld [vmem:[#allocation39_spill] sm:$0xff] }
 0x661   : > { %3821 = vmatpush.msrb.mxu3 %v3724_v56  ;;  %v3714_v0 = vmul.f32 %v10253_v55, %v8396_v60  ;;  %v3712_v32 = vmul.f32 %v10254_v26, %v8404_v29  ;;  %v3160_v29 = vmul.f32 %v8728_v44, %v8385_v41  ;;  %v3648_v56 = vmul.f32 %v8692_v24, %v8410_v34 }
 0x663   : > { %3822 = vmatpush.msrb.mxu3 %v3722_v46  ;;  %v3119_v3 = vpop.f32.mrf.mxu2  ;;  %v3192_v54 = vadd.f32 %v8663_v5, %v3160_v29 }
 0x664   : > { %v3168_v16 = vmul.f32 %v3119_v3, %v8464_v8  ;;  %v10324_v8 = vld [vmem:[#allocation48_spill] sm:$0xff] }
 0x665   : > { %3823 = vmatpush.msrb.mxu3 %v3720_v52  ;;  %v3680_v52 = vadd.f32 %v10258_v22, %v3648_v56  ;;  %v10265_v56 = vld [vmem:[#allocation36_spill] sm:$0xff] }
 0x666   : > { %v3200_v15 = vadd.f32 %v3192_v54, %v3168_v16  ;;  %v10263_v16 = vld [vmem:[#allocation106_spill] sm:$0xff] }
 0x667   : > { %3824 = vmatpush.msrb.mxu3 %v3718_v27 }
 0x668   : > { %5321 = vmatmul.msk.f32.gmra.mxu2 %vm1048_vm0, %v8722_v51  ;;  %5229 = vmatmul.msk.f32.gmra.mxu3 %vm1956_vm5, %v8507_v39  ;;  %v8816_v51 = vpop.f32.mrf.mxu1 }
 0x669   : > { %3825 = vmatpush.msrb.mxu3 %v3716_v1  ;;  %10256 = vst [vmem:[#allocation143_spill] sm:$0xff] %v8816_v51 }
 0x66b   : > { %3826 = vmatpush.msrb.mxu3 %v3714_v0  ;;  %v3122_v31 = vpop.f32.mrf.mxu2  ;;  %v10260_v0 = vld [vmem:[#allocation9_spill] sm:$0xff] }
 0x66c   : > { %v3170_v44 = vmul.f32 %v3122_v31, %v8473_v25 }
 0x66d   : > { %3827 = vmatpush.msrb.mxu3 %v3712_v32  ;;  %v10261_v32 = vld [vmem:[#allocation50_spill] sm:$0xff] }
 0x66f   : > { %3828 = vmatpush.msrb.mxu3 %v3710_v58 }
 0x670   : > { %5230 = vmatmul.msk.f32.gmra.mxu3 %vm1956_vm5, %v8532_v36  ;;  %v3620_v9 = vpop.f32.mrf.mxu1 }
 0x673   : > { %v3125_v60 = vpop.f32.mrf.mxu2 }
 0x674   : > { %v3172_v55 = vmul.f32 %v3125_v60, %v8480_v37  ;;  %v3644_v60 = vmul.f32 %v8659_v12, %v10143_v28  ;;  %v3660_v12 = vmul.f32 %v3614_v42, %v10265_v56  ;;  %v10273_v42 = vld [vmem:[#allocation153_spill] sm:$0xff] }
 0x678   : > { %5231 = vmatmul.msk.f32.gmra.mxu3 %vm1956_vm5, %v8551_v19  ;;  %v3162_v19 = vmul.f32 %v8744_v48, %v8410_v34  ;;  %v3664_v48 = vmul.f32 %v3620_v9, %v8523_v13  ;;  %v3623_v1 = vpop.f32.mrf.mxu1  ;;  %v10264_v9 = vld [vmem:[#allocation163_spill] sm:$0xff] }
 0x679   : > { %v3666_v54 = vmul.f32 %v3623_v1, %v10263_v16 }
 0x67a   : > { %v3194_v5 = vadd.f32 %v8675_v20, %v3162_v19  ;;  %v3650_v20 = vmul.f32 %v8713_v6, %v10163_v63  ;;  %v3636_v19 = vmul.f32 %v10264_v9, %v10142_v49  ;;  %v5660_v9 = vld [vmem:[%s9935_s4 + $0x10] sm:$0xff] }
 0x67b   : > { %v3128_v39 = vpop.f32.mrf.mxu2 }
 0x67c   : > { %v3202_v3 = vadd.f32 %v3194_v5, %v3170_v44  ;;  %v3174_v44 = vmul.f32 %v3128_v39, %v10265_v56  ;;  %v3676_v22 = vadd.f32 %v3644_v60, %v3636_v19  ;;  %v10279_v60 = vld [vmem:[#allocation71_spill] sm:$0xff] }
 0x67e   : > { %v3206_v40 = vadd.f32 %v8786_v4, %v3174_v44  ;;  %v10275_v4 = vld [vmem:[#allocation123_spill] sm:$0xff]  ;;  %v10281_v44 = vld [vmem:[#allocation53_spill] sm:$0xff] }
 0x680   : > { %5232 = vmatmul.msk.f32.gmra.mxu3 %vm1956_vm5, %v8572_v35  ;;  %v3656_v35 = vmul.f32 %v3608_v50, %v8473_v25  ;;  %v10311_v25 = vld [vmem:[#allocation104_spill] sm:$0xff] }
 0x683   : > { %v3131_v21 = vpop.f32.mrf.mxu2 }
 0x684   : > { %v3176_v36 = vmul.f32 %v3131_v21, %v8500_v11  ;;  %v3204_v21 = vadd.f32 %v8768_v62, %v3172_v55  ;;  %v10267_v62 = vld [vmem:[#allocation145_spill] sm:$0xff]  ;;  %v10274_v55 = vld [vmem:[#allocation68_spill] sm:$0xff]  ;;  %v10322_v11 = vld [vmem:[#allocation103_spill] sm:$0xff] }
 0x686   : > { %v3208_v38 = vadd.f32 %v3200_v15, %v3176_v36 }
 0x688   : > { %v8831_v43 = vadd.f32 %v3208_v38, %v8527_v2  ;;  %5233 = vmatmul.msk.f32.gmra.mxu3 %vm1956_vm5, %v8585_v47  ;;  %v3688_v2 = vadd.f32 %v3680_v52, %v3656_v35  ;;  %v3634_v47 = vmul.f32 %v10259_v61, %v10138_v23  ;;  %v10266_v35 = vld [vmem:[#allocation135_spill] sm:$0xff] }
 0x68a   : > { %10257 = vst [vmem:[#allocation10_spill] sm:$0xff] %v8831_v43  ;;  %v3696_v50 = vadd.f32 %v3688_v2, %v3664_v48  ;;  %v3674_v31 = vadd.f32 %v3642_v18, %v3634_v47  ;;  %v10270_v47 = vld [vmem:[#allocation43_spill] sm:$0xff] }
 0x68b   : > { %v3134_v46 = vpop.f32.mrf.mxu2 }
 0x68c   : > { %v3178_v24 = vmul.f32 %v3134_v46, %v8523_v13  ;;  %v3682_v29 = vadd.f32 %v3674_v31, %v3650_v20  ;;  %v3626_v46 = vpop.f32.mrf.mxu1  ;;  %v10271_v20 = vld [vmem:[#allocation155_spill] sm:$0xff] }
 0x68e   : > { %v3210_v27 = vadd.f32 %v3202_v3, %v3178_v24  ;;  %v3690_v15 = vadd.f32 %v3682_v29, %v3658_v10  ;;  %v3684_v3 = vadd.f32 %v3676_v22, %v3652_v45  ;;  %v10269_v24 = vld [vmem:[#allocation88_spill] sm:$0xff]  ;;  %v10277_v10 = vld [vmem:[#allocation23_spill] sm:$0xff]  ;;  %v5662_v22 = vld [vmem:[%s9935_s4 + $0x30] sm:$0xff] }
 0x68f   : > { %v3668_v18 = vmul.f32 %v3626_v46, %v10269_v24  ;;  %v5659_v29 = vld [vmem:[%s9935_s4] sm:$0xff]  ;;  %v10280_v45 = vld [vmem:[#allocation59_spill] sm:$0xff] }
 0x690   : > { %v3218_v26 = vadd.f32 %v3210_v27, %v10260_v0  ;;  %5234 = vmatmul.msk.f32.gmra.mxu3 %vm1956_vm5, %v10261_v32  ;;  %v3698_v38 = vadd.f32 %v3690_v15, %v3666_v54  ;;  %v3692_v39 = vadd.f32 %v3684_v3, %v3660_v12  ;;  %v10276_v32 = vld [vmem:[#allocation27_spill] sm:$0xff]  ;;  %v5661_v46 = vld [vmem:[%s9935_s4 + $0x20] sm:$0xff] }
 0x692   : > { %v8851_v59 = vadd.f32 %v3696_v50, %v3218_v26  ;;  %v3700_v61 = vadd.f32 %v3692_v39, %v3668_v18 }
 0x693   : > { %v3137_v58 = vpop.f32.mrf.mxu2 }
 0x694   : > { %10262 = vst [vmem:[#allocation18_spill] sm:$0xff] %v8851_v59  ;;  %v3180_v6 = vmul.f32 %v3137_v58, %v10263_v16 }
 0x696   : > { %v3212_v36 = vadd.f32 %v3204_v21, %v3180_v6  ;;  %v10278_v21 = vld [vmem:[#allocation77_spill] sm:$0xff] }
 0x698   : > { %v3220_v5 = vadd.f32 %v3212_v36, %v10266_v35  ;;  %5235 = vmatmul.msk.f32.gmra.mxu3 %vm1956_vm5, %v10267_v62 }
 0x69a   : > { %v8867_v52 = vadd.f32 %v3698_v38, %v3220_v5 }
 0x69b   : > { %v3140_v48 = vpop.f32.mrf.mxu2 }
 0x69c   : > { %10268 = vst [vmem:[#allocation139_spill] sm:$0xff] %v8867_v52  ;;  %v3182_v2 = vmul.f32 %v3140_v48, %v10269_v24  ;;  %v5663_v48 = vld [vmem:[%s9935_s4 + $0x40] sm:$0xff]  ;;  %v10297_v52 = vld [vmem:[#allocation138_spill] sm:$0xff] }
 0x69e   : > { %v3214_v27 = vadd.f32 %v3206_v40, %v3182_v2 }
 0x6a0   : > { %v3222_v1 = vadd.f32 %v3214_v27, %v10270_v47  ;;  %5236 = vmatmul.msk.f32.gmra.mxu3 %vm1956_vm5, %v10271_v20 }
 0x6a2   : > { %v8875_v50 = vadd.f32 %v3700_v61, %v3222_v1  ;;  %v10282_v1 = vld [vmem:[#allocation146_spill] sm:$0xff] }
 0x6a4   : > { %10272 = vst [vmem:[#allocation16_spill] sm:$0xff] %v8875_v50  ;;  %v10296_v50 = vld [vmem:[#allocation54_spill] sm:$0xff] }
 0x6a8   : > { %5237 = vmatmul.msk.f32.gmra.mxu3 %vm1956_vm5, %v10273_v42  ;;  %v10283_v42 = vld [vmem:[#allocation66_spill] sm:$0xff] }
 0x6b0   : > { %5238 = vmatmul.msk.f32.gmra.mxu3 %vm1956_vm5, %v10274_v55  ;;  %v10284_v55 = vld [vmem:[#allocation29_spill] sm:$0xff] }
 0x6b3   : > { %v3006_v0 = vpop.f32.mrf.mxu3 }
 0x6b4   : > { %v3143_v6 = vmul.f32 %v3006_v0, %v10278_v21  ;;  %v8925_v0 = vadd.f32 %v10284_v55, %v10283_v42  ;;  %v10294_v42 = vld [vmem:[#allocation79_spill] sm:$0xff] }
 0x6b8   : > { %5239 = vmatmul.msk.f32.gmra.mxu3 %vm1956_vm5, %v10275_v4  ;;  %v10285_v4 = vld [vmem:[#allocation110_spill] sm:$0xff] }
 0x6bb   : > { %v3009_v26 = vpop.f32.mrf.mxu3 }
 0x6bc   : > { %v3145_v38 = vmul.f32 %v3009_v26, %v10280_v45  ;;  %v2667_v26 = vmul.f32 %v10285_v4, %v10281_v44 }
 0x6c0   : > { %5240 = vmatmul.msk.f32.gmra.mxu3 %vm1956_vm5, %v10276_v32  ;;  %v10286_v32 = vld [vmem:[#allocation142_spill] sm:$0xff] }
 0x6c3   : > { %v8885_v31 = vpop.f32.mrf.mxu3 }
 0x6c8   : > { %5241 = vmatmul.msk.f32.gmra.mxu3 %vm1956_vm5, %v10277_v10 }
 0x6cb   : > { %v8889_v58 = vpop.f32.mrf.mxu3 }
 0x6d0   : > { %3765 = vmatmul.f32.vlgmr.msra.gmra.mxu3 %v5659_v29 }
 0x6d3   : > { %v3018_v54 = vpop.f32.mrf.mxu3 }
 0x6d4   : > { %v3151_v15 = vmul.f32 %v3018_v54, %v10279_v60  ;;  %v10288_v54 = vld [vmem:[#allocation111_spill] sm:$0xff] }
 0x6d6   : > { %v3183_v36 = vadd.f32 %v3151_v15, %v3143_v6  ;;  %v10289_v15 = vld [vmem:[#allocation133_spill] sm:$0xff] }
 0x6d8   : > { %3768 = vmatmul.f32.gmra.mxu3 %v5660_v9 }
 0x6db   : > { %v3021_v19 = vpop.f32.mrf.mxu3 }
 0x6dc   : > { %v3153_v35 = vmul.f32 %v3021_v19, %v10281_v44  ;;  %v10290_v19 = vld [vmem:[#allocation92_spill] sm:$0xff] }
 0x6de   : > { %v3185_v5 = vadd.f32 %v3153_v35, %v3145_v38  ;;  %v2675_v38 = vmul.f32 %v10290_v19, %v8925_v0 }
 0x6e0   : > { %3771 = vmatmul.f32.gmra.mxu3 %v5661_v46 }
 0x6e3   : > { %v8904_v62 = vpop.f32.mrf.mxu3 }
 0x6e8   : > { %3774 = vmatmul.f32.gmra.mxu3 %v5662_v22 }
 0x6eb   : > { %v8909_v12 = vpop.f32.mrf.mxu3 }
 0x6f0   : > { %3777 = vmatmul.f32.gmra.mxu3 %v5663_v48 }
 0x6f3   : > { %v3030_v3 = vpop.f32.mrf.mxu3 }
 0x6f4   : > { %v3159_v20 = vmul.f32 %v3030_v3, %v10282_v1  ;;  %v10293_v3 = vld [vmem:[#allocation28_spill] sm:$0xff] }
 0x6f5   : > { %v8944_v55 = vadd.f32 %v10294_v42, %v10293_v3  ;;  %v10302_v3 = vld [vmem:[#allocation125_spill] sm:$0xff] }
 0x6f6   : > { %v3191_v35 = vadd.f32 %v3183_v36, %v3159_v20  ;;  %v10298_v36 = vld [vmem:[#allocation132_spill] sm:$0xff]  ;;  %v10299_v20 = vld [vmem:[#allocation15_spill] sm:$0xff]  ;;  %v10303_v42 = vld [vmem:[#allocation37_spill] sm:$0xff] }
 0x6f7   : > { %v8953_v56 = vadd.f32 %v10299_v20, %v10298_v36  ;;  %v8961_v59 = vadd.f32 %v10303_v42, %v10302_v3  ;;  %v10306_v36 = vld [vmem:[#allocation97_spill] sm:$0xff]  ;;  %v10307_v20 = vld [vmem:[#allocation115_spill] sm:$0xff] }
 0x6f8   : > { %3829 = vmatmul.f32.vlgmr.msrb.gmra.mxu3 %v5659_v29  ;;  %v10287_v29 = vld [vmem:[#allocation22_spill] sm:$0xff]  ;;  %v8970_v37 = vadd.f32 %v10307_v20, %v10306_v36  ;;  %v10310_v3 = vld [vmem:[#allocation47_spill] sm:$0xff]  ;;  %v10315_v36 = vld [vmem:[#allocation24_spill] sm:$0xff] }
 0x6f9   : > { %v8932_v6 = vadd.f32 %v10288_v54, %v10287_v29  ;;  %v10316_v20 = vld [vmem:[#allocation128_spill] sm:$0xff] }
 0x6fa   : > { %v8987_v43 = vadd.f32 %v10316_v20, %v10315_v36  ;;  %v10323_v20 = vld [vmem:[#allocation140_spill] sm:$0xff] }
 0x6fb   : > { %v3033_v18 = vpop.f32.mrf.mxu3  ;;  %v2191_v30 = vmul.f32 %v10323_v20, %v8970_v37 }
 0x700   : > { %3832 = vmatmul.f32.gmra.mxu3 %v5660_v9  ;;  %v2659_v9 = vmul.f32 %v10289_v15, %v10280_v45  ;;  %v2683_v15 = vmul.f32 %v10296_v50, %v8932_v6  ;;  %v10305_v50 = vld [vmem:[#allocation19_spill] sm:$0xff] }
 0x702   : > { %v2699_v54 = vadd.f32 %v2667_v26, %v2659_v9  ;;  %v10304_v26 = vld [vmem:[#allocation137_spill] sm:$0xff] }
 0x703   : > { %v8914_v40 = vpop.f32.mrf.mxu3  ;;  %v2197_v9 = vmul.f32 %v10304_v26, %v8932_v6 }
 0x708   : > { %3835 = vmatmul.f32.gmra.mxu3 %v5661_v46  ;;  %v10291_v46 = vld [vmem:[#allocation84_spill] sm:$0xff] }
 0x70b   : > { %v8916_v2 = vpop.f32.mrf.mxu3 }
 0x710   : > { %3838 = vmatmul.f32.gmra.mxu3 %v5662_v22  ;;  %v10292_v22 = vld [vmem:[#allocation25_spill] sm:$0xff] }
 0x713   : > { %v3042_v39 = vpop.f32.mrf.mxu3 }
 0x714   : > { %v3167_v10 = vmul.f32 %v3042_v39, %v10286_v32  ;;  %v10295_v39 = vld [vmem:[#allocation100_spill] sm:$0xff] }
 0x715   : > { %v2189_v4 = vmul.f32 %v10295_v39, %v8925_v0  ;;  %v2707_v39 = vadd.f32 %v2699_v54, %v2675_v38  ;;  %v10312_v38 = vld [vmem:[#allocation164_spill] sm:$0xff] }
 0x716   : > { %v3199_v24 = vadd.f32 %v3191_v35, %v3167_v10  ;;  %v2691_v10 = vmul.f32 %v10305_v50, %v8944_v55  ;;  %v3161_v35 = vmul.f32 %v3033_v18, %v8925_v0  ;;  %v2205_v54 = vmul.f32 %v10312_v38, %v8944_v55  ;;  %v10320_v38 = vld [vmem:[#allocation41_spill] sm:$0xff] }
 0x717   : > { %v2221_v42 = vadd.f32 %v10310_v3, %v2189_v4  ;;  %v2715_v50 = vadd.f32 %v2707_v39, %v2683_v15  ;;  %v10318_v4 = vld [vmem:[#allocation126_spill] sm:$0xff]  ;;  %v10321_v15 = vld [vmem:[#allocation67_spill] sm:$0xff] }
 0x718   : > { %3841 = vmatmul.f32.gmra.mxu3 %v5663_v48  ;;  %v8940_v48 = vadd.f32 %v10292_v22, %v10291_v46  ;;  %v10300_v46 = vld [vmem:[#allocation117_spill] sm:$0xff]  ;;  %v10301_v22 = vld [vmem:[#allocation11_spill] sm:$0xff]  ;;  %v8997_v39 = vadd.f32 %v10321_v15, %v10320_v38 }
 0x719   : > { %v8957_v16 = vadd.f32 %v10301_v22, %v10300_v46  ;;  %v10308_v46 = vld [vmem:[#allocation109_spill] sm:$0xff]  ;;  %v10309_v22 = vld [vmem:[#allocation82_spill] sm:$0xff] }
 0x71a   : > { %v8974_v13 = vadd.f32 %v10309_v22, %v10308_v46  ;;  %v10317_v46 = vld [vmem:[#allocation40_spill] sm:$0xff]  ;;  %v2661_v3 = vmul.f32 %v10318_v4, %v8940_v48  ;;  %v2175_v36 = vmul.f32 %v10322_v11, %v8940_v48  ;;  %v2685_v4 = vmul.f32 %v10324_v8, %v8987_v43 }
 0x71b   : > { %v3045_v27 = vpop.f32.mrf.mxu3  ;;  %v2669_v26 = vmul.f32 %v10311_v25, %v8957_v16  ;;  %v2183_v22 = vmul.f32 %v10317_v46, %v8957_v16  ;;  %v10319_v25 = vld [vmem:[#allocation85_spill] sm:$0xff]  ;;  %v3147_v8 = vmul.f32 %v8885_v31, %v8940_v48 }
 0x71c   : > { %v3169_v18 = vmul.f32 %v3045_v27, %v8932_v6  ;;  %v2677_v51 = vmul.f32 %v10319_v25, %v8970_v37  ;;  %v2229_v27 = vadd.f32 %v2221_v42, %v2197_v9  ;;  %v3155_v25 = vmul.f32 %v8904_v62, %v8957_v16  ;;  %v10326_v42 = vld [vmem:[#allocation17_spill] sm:$0xff] }
 0x71d   : > { %v2701_v46 = vadd.f32 %v2669_v26, %v2661_v3 }
 0x71f   : > { %v2709_v11 = vadd.f32 %v2701_v46, %v2677_v51  ;;  %v3798_v51 = vpop.f32.mrf.mxu2  ;;  %v10331_v46 = vld [vmem:[#allocation72_spill] sm:$0xff] }
 0x723   : > { %v8918_v61 = vpop.f32.mrf.mxu3 }
 0x724   : > { %v3171_v31 = vmul.f32 %v8918_v61, %v8987_v43  ;;  %v10338_v61 = vld [vmem:[#allocation91_spill] sm:$0xff] }
 0x72b   : > { %v8920_v47 = vpop.f32.mrf.mxu3 }
 0x733   : > { %v3054_v29 = vpop.f32.mrf.mxu3 }
 0x734   : > { %v3175_v19 = vmul.f32 %v3054_v29, %v10297_v52 }
 0x736   : > { %v3207_v29 = vadd.f32 %v3199_v24, %v3175_v19  ;;  %v10313_v24 = vld [vmem:[#allocation26_spill] sm:$0xff] }
 0x738   : > { %v8983_v19 = vadd.f32 %v3207_v29, %v10313_v24  ;;  %v2723_v29 = vadd.f32 %v2715_v50, %v2691_v10  ;;  %v3193_v24 = vadd.f32 %v3185_v5, %v3161_v35  ;;  %v2215_v10 = vadd.f32 %v2183_v22, %v2175_v36  ;;  %v10325_v5 = vld [vmem:[#allocation152_spill] sm:$0xff]  ;;  %v10328_v22 = vld [vmem:[#allocation98_spill] sm:$0xff] }
 0x739   : > { %v2199_v35 = vmul.f32 %v10325_v5, %v8987_v43  ;;  %v2693_v50 = vmul.f32 %v10326_v42, %v8997_v39  ;;  %v2671_v15 = vmul.f32 %v10328_v22, %v8961_v59  ;;  %v10336_v42 = vld [vmem:[#allocation55_spill] sm:$0xff] }
 0x73a   : > { %10314 = vst [vmem:[#allocation12_spill] sm:$0xff] %v8983_v19  ;;  %v2237_v19 = vadd.f32 %v2229_v27, %v2205_v54  ;;  %v3201_v38 = vadd.f32 %v3193_v24, %v3169_v18  ;;  %v3163_v54 = vmul.f32 %v8914_v40, %v8970_v37  ;;  %v2223_v62 = vadd.f32 %v2215_v10, %v2191_v30  ;;  %v10327_v18 = vld [vmem:[#allocation168_spill] sm:$0xff]  ;;  %v10329_v24 = vld [vmem:[#allocation134_spill] sm:$0xff] }
 0x73b   : > { %v3057_v33 = vpop.f32.mrf.mxu3  ;;  %v2717_v27 = vadd.f32 %v2709_v11, %v2685_v4  ;;  %v2185_v36 = vmul.f32 %v10329_v24, %v8961_v59  ;;  %v10330_v30 = vld [vmem:[#allocation118_spill] sm:$0xff]  ;;  %v10333_v4 = vld [vmem:[#allocation136_spill] sm:$0xff]  ;;  %v3157_v24 = vmul.f32 %v8909_v12, %v8961_v59 }
 0x73c   : > { %v3177_v9 = vmul.f32 %v3057_v33, %v8944_v55  ;;  %v2731_v26 = vadd.f32 %v2723_v29, %v2237_v19  ;;  %v2207_v33 = vmul.f32 %v10327_v18, %v8997_v39  ;;  %v3187_v19 = vadd.f32 %v3155_v25, %v3147_v8  ;;  %v10332_v10 = vld [vmem:[#allocation78_spill] sm:$0xff]  ;;  %v10335_v11 = vld [vmem:[#allocation60_spill] sm:$0xff] }
 0x73d   : > { %v2231_v40 = vadd.f32 %v2223_v62, %v2199_v35  ;;  %v2663_v20 = vmul.f32 %v10330_v30, %v8953_v56  ;;  %v9032_v5 = vadd.f32 %v10333_v4, %v10332_v10  ;;  %v9036_v25 = vadd.f32 %v10336_v42, %v10335_v11  ;;  %v10339_v35 = vld [vmem:[#allocation74_spill] sm:$0xff]  ;;  %v10342_v42 = vld [vmem:[#allocation144_spill] sm:$0xff] }
 0x73e   : > { %v3209_v3 = vadd.f32 %v3201_v38, %v3177_v9  ;;  %v2679_v38 = vmul.f32 %v10331_v46, %v8974_v13  ;;  %v2725_v9 = vadd.f32 %v2717_v27, %v2693_v50  ;;  %v3195_v8 = vadd.f32 %v3187_v19, %v3163_v54  ;;  %v10340_v50 = vld [vmem:[#allocation33_spill] sm:$0xff]  ;;  %v10341_v54 = vld [vmem:[#allocation158_spill] sm:$0xff] }
 0x73f   : > { %10334 = vst [vmem:[#allocation35_spill] sm:$0xff] %v9032_v5  ;;  %v2239_v62 = vadd.f32 %v2231_v40, %v2207_v33  ;;  %v2703_v18 = vadd.f32 %v2671_v15, %v2663_v20  ;;  %v2687_v27 = vmul.f32 %v10340_v50, %v9032_v5  ;;  %v2201_v19 = vmul.f32 %v10341_v54, %v9032_v5 }
 0x740   : > { %v9024_v29 = vadd.f32 %v3209_v3, %v2731_v26  ;;  %10337 = vst [vmem:[#allocation127_spill] sm:$0xff] %v9036_v25  ;;  %v2177_v26 = vmul.f32 %v10338_v61, %v8953_v56  ;;  %v2193_v3 = vmul.f32 %v10339_v35, %v8974_v13  ;;  %v3203_v30 = vadd.f32 %v3195_v8, %v3171_v31  ;;  %v10343_v31 = vld [vmem:[#allocation171_spill] sm:$0xff] }
 0x741   : > { %v2711_v4 = vadd.f32 %v2703_v18, %v2679_v38  ;;  %v2733_v11 = vadd.f32 %v2725_v9, %v2239_v62  ;;  %v2695_v33 = vmul.f32 %v10342_v42, %v9036_v25  ;;  %v3149_v15 = vmul.f32 %v8889_v58, %v8953_v56 }
 0x742   : > { %v2217_v10 = vadd.f32 %v2185_v36, %v2177_v26  ;;  %v3165_v40 = vmul.f32 %v8916_v2, %v8974_v13  ;;  %v2209_v8 = vmul.f32 %v10343_v31, %v9036_v25  ;;  %v3173_v38 = vmul.f32 %v8920_v47, %v9032_v5  ;;  %v3801_v26 = vpop.f32.mrf.mxu2 }
 0x743   : > { %v3060_v22 = vpop.f32.mrf.mxu3  ;;  %v2719_v36 = vadd.f32 %v2711_v4, %v2687_v27  ;;  %v3189_v61 = vadd.f32 %v3157_v24, %v3149_v15 }
 0x744   : > { %v3179_v46 = vmul.f32 %v3060_v22, %v8997_v39  ;;  %v2225_v12 = vadd.f32 %v2217_v10, %v2193_v3 }
 0x745   : > { %v2727_v62 = vadd.f32 %v2719_v36, %v2695_v33  ;;  %v3197_v18 = vadd.f32 %v3189_v61, %v3165_v40 }
 0x746   : > { %v3211_v20 = vadd.f32 %v3203_v30, %v3179_v46  ;;  %v2233_v35 = vadd.f32 %v2225_v12, %v2201_v19 }
 0x747   : > { %v3205_v50 = vadd.f32 %v3197_v18, %v3173_v38 }
 0x748   : > { %v9059_v9 = vadd.f32 %v3211_v20, %v2733_v11  ;;  %v2241_v22 = vadd.f32 %v2233_v35, %v2209_v8 }
 0x74a   : > { %10344 = vst [vmem:[#allocation129_spill] sm:$0xff] %v9059_v9  ;;  %v2735_v3 = vadd.f32 %v2727_v62, %v2241_v22  ;;  %v3804_v24 = vpop.f32.mrf.mxu2 }
 0x74b   : > { %v3063_v58 = vpop.f32.mrf.mxu3 }
 0x74c   : > { %v3181_v2 = vmul.f32 %v3063_v58, %v9036_v25 }
 0x74e   : > { %v3213_v30 = vadd.f32 %v3205_v50, %v3181_v2 }
 0x750   : > { %v9062_v46 = vadd.f32 %v3213_v30, %v2735_v3 }
 0x752   : > { %10345 = vst [vmem:[#allocation93_spill] sm:$0xff] %v9062_v46  ;;  %v3807_v54 = vpop.f32.mrf.mxu2 }
 0x753   : > { %v3766_v27 = vpop.f32.mrf.mxu3 }
 0x754   : > { %v3799_v19 = vadd.f32 %v3798_v51, %v3766_v27 }
 0x75a   : > { %v3810_v4 = vpop.f32.mrf.mxu2 }
 0x75b   : > { %v3769_v10 = vpop.f32.mrf.mxu3 }
 0x75c   : > { %v3802_v42 = vadd.f32 %v3801_v26, %v3769_v10 }
 0x75e   : > { %v3877_v15 = vmax.f32 %v3799_v19, %v3802_v42 }
 0x762   : > { %v3862_v20 = vpop.f32.mrf.mxu2 }
 0x763   : > { %v3772_v47 = vpop.f32.mrf.mxu3 }
 0x764   : > { %v3805_v33 = vadd.f32 %v3804_v24, %v3772_v47 }
 0x766   : > { %v3879_v12 = vmax.f32 %v3877_v15, %v3805_v33 }
 0x76a   : > { %v3865_v26 = vpop.f32.mrf.mxu2 }
 0x76b   : > { %v3775_v11 = vpop.f32.mrf.mxu3 }
 0x76c   : > { %v3808_v40 = vadd.f32 %v3807_v54, %v3775_v11 }
 0x76e   : > { %v3881_v8 = vmax.f32 %v3879_v12, %v3808_v40 }
 0x773   : > { %v3778_v31 = vpop.f32.mrf.mxu3 }
 0x774   : > { %v3811_v36 = vadd.f32 %v3810_v4, %v3778_v31  ;;  %v3868_v4 = vpop.f32.mrf.mxu2 }
 0x776   : > { %v3883_v61 = vmax.f32 %v3881_v8, %v3811_v36 }
 0x778   : > { %v3885_v38 = vsub.f32 %v3799_v19, %v3883_v61  ;;  %v3887_v35 = vsub.f32 %v3802_v42, %v3883_v61  ;;  %v3889_v62 = vsub.f32 %v3805_v33, %v3883_v61  ;;  %v3891_v18 = vsub.f32 %v3808_v40, %v3883_v61 }
 0x779   : > { %v3893_v50 = vsub.f32 %v3811_v36, %v3883_v61 }
 0x77a   : > { %v3895_v58 = vmul.f32 1.442695, %v3885_v38  ;;  %v3899_v22 = vmul.f32 1.442695, %v3887_v35  ;;  %v3903_v2 = vmul.f32 1.442695, %v3889_v62 }
 0x77b   : > { %v3830_v3 = vpop.f32.mrf.mxu3  ;;  %v3907_v51 = vmul.f32 1.442695, %v3891_v18  ;;  %v3911_v30 = vmul.f32 1.442695, %v3893_v50 }
 0x77c   : > { %5568 = vpow2.f32 %v3895_v58  ;;  %v3871_v12 = vpop.f32.mrf.mxu2  ;;  %v3863_v35 = vadd.f32 %v3862_v20, %v3830_v3 }
 0x77d   : > { %5570 = vpow2.f32 %v3899_v22 }
 0x77e   : > { %5572 = vpow2.f32 %v3903_v2 }
 0x77f   : > { %5574 = vpow2.f32 %v3907_v51 }
 0x780   : > { %5576 = vpow2.f32 %v3911_v30 }
 0x782   : > { %v5569_v27 = vpop.eup %5568 }
 0x783   : > { %v5571_v24 = vpop.eup %5570  ;;  %v3833_v10 = vpop.f32.mrf.mxu3 }
 0x784   : > { %v3915_v54 = vadd.f32 %v5571_v24, %v5569_v27  ;;  %v5573_v47 = vpop.eup %5572  ;;  %v3866_v61 = vadd.f32 %v3865_v26, %v3833_v10  ;;  %v3874_v51 = vpop.f32.mrf.mxu2 }
 0x785   : > { %v5575_v42 = vpop.eup %5574 }
 0x786   : > { %v3917_v11 = vadd.f32 %v5573_v47, %v3915_v54  ;;  %v5577_v33 = vpop.eup %5576  ;;  %v3878_v50 = vmax.f32 %v3863_v35, %v3866_v61 }
 0x788   : > { %v3919_v19 = vadd.f32 %v5575_v42, %v3917_v11 }
 0x78a   : > { %v3921_v15 = vadd.f32 %v5577_v33, %v3919_v19 }
 0x78b   : > { %v3836_v40 = vpop.f32.mrf.mxu3 }
 0x78c   : > { %5578 = vrcp.f32 %v3921_v15  ;;  %v3869_v62 = vadd.f32 %v3868_v4, %v3836_v40  ;;  %v3934_v18 = vand.u32 2147483648, %v3921_v15  ;;  %v3932_v22 = vand.u32 2147483647, %v3921_v15 }
 0x78d   : > { %vm3928_vm7 = vweird.f32 %v3921_v15 }
 0x78e   : > { %v3880_v54 = vmax.f32 %v3878_v50, %v3869_v62  ;;  %v3935_v11 = vor.u32 1.1754944e-38, %v3934_v18  ;;  %vm3933_vm9 = vcmp.eq.f32.partialorder %v3932_v22, 8.507059e+37 }
 0x792   : > { %v5579_v31 = vpop.eup %5578 }
 0x793   : > { %v3924_v8 = vmul.f32 %v5579_v31, %v3921_v15  ;;  %v3839_v36 = vpop.f32.mrf.mxu3  ;;  %vm3929_vm6 = vweird.f32 %v5579_v31 }
 0x794   : > { %v3872_v2 = vadd.f32 %v3871_v12, %v3839_v36  ;;  %vm3930_vm8 = vmor %vm3928_vm7, %vm3929_vm6 }
 0x795   : > { %v3925_v38 = vsub.f32 1.0, %v3924_v8 }
 0x796   : > { %v3882_v25 = vmax.f32 %v3880_v54, %v3872_v2  ;;  %v5666_v54 = vld [vmem:[%s9589_s5 + $0x10] sm:$0xff] }
 0x797   : > { %v3926_v58 = vmul.f32 %v5579_v31, %v3925_v38 }
 0x799   : > { %v3927_v30 = vadd.f32 %v5579_v31, %v3926_v58 }
 0x79b   : > { %v3842_v19 = vpop.f32.mrf.mxu3  ;;  %v3931_v46 = vsel %vm3930_vm8, %v5579_v31, %v3927_v30 }
 0x79c   : > { %v3875_v26 = vadd.f32 %v3874_v51, %v3842_v19  ;;  %v3936_v10 = vsel %vm3933_vm9, %v3935_v11, %v3931_v46 }
 0x79d   : > { %v3959_v20 = vmul.f32 %v5577_v33, %v3936_v10  ;;  %v3957_v4 = vmul.f32 %v5575_v42, %v3936_v10  ;;  %v3955_v36 = vmul.f32 %v5573_v47, %v3936_v10  ;;  %v3953_v31 = vmul.f32 %v5571_v24, %v3936_v10  ;;  %v5664_v42 = vld [vmem:[%s9589_s5] sm:$0xff] }
 0x79e   : > { %v3884_v3 = vmax.f32 %v3882_v25, %v3875_v26  ;;  %v3951_v46 = vmul.f32 %v5569_v27, %v3936_v10  ;;  %v5665_v27 = vld [vmem:[%s9589_s5 + $0x8] sm:$0xff] }
 0x79f   : > { %3972 = vmatpush.msra.mxu3 %v3959_v20 }
 0x7a0   : > { %v3886_v40 = vsub.f32 %v3863_v35, %v3884_v3  ;;  %v3888_v8 = vsub.f32 %v3866_v61, %v3884_v3  ;;  %v3890_v38 = vsub.f32 %v3869_v62, %v3884_v3  ;;  %v3892_v12 = vsub.f32 %v3872_v2, %v3884_v3 }
 0x7a1   : > { %3973 = vmatpush.msra.mxu3 %v3957_v4  ;;  %v3894_v50 = vsub.f32 %v3875_v26, %v3884_v3  ;;  %v5667_v4 = vld [vmem:[%s9589_s5 + $0x18] sm:$0xff] }
 0x7a2   : > { %v3897_v15 = vmul.f32 1.442695, %v3886_v40  ;;  %v3901_v58 = vmul.f32 1.442695, %v3888_v8  ;;  %v3905_v18 = vmul.f32 1.442695, %v3890_v38 }
 0x7a3   : > { %3974 = vmatpush.msra.mxu3 %v3955_v36  ;;  %v3909_v22 = vmul.f32 1.442695, %v3892_v12  ;;  %v3913_v25 = vmul.f32 1.442695, %v3894_v50 }
 0x7a4   : > { %5580 = vpow2.f32 %v3897_v15 }
 0x7a5   : > { %5582 = vpow2.f32 %v3901_v58  ;;  %3975 = vmatpush.msra.mxu3 %v3953_v31  ;;  %v5668_v58 = vld [vmem:[%s9589_s5 + $0x20] sm:$0xff] }
 0x7a6   : > { %5584 = vpow2.f32 %v3905_v18 }
 0x7a7   : > { %3976 = vmatpush.msra.mxu3 %v3951_v46  ;;  %5586 = vpow2.f32 %v3909_v22  ;;  %v5669_v22 = vld [vmem:[%s9589_s5 + $0x28] sm:$0xff]  ;;  %v5670_v46 = vld [vmem:[%s9589_s5 + $0x30] sm:$0xff] }
 0x7a8   : > { %5322 = vmatmul.msk.f32.vlgmr.msra.gmra.mxu3 %vm1956_vm5, %v5664_v42  ;;  %5588 = vpow2.f32 %v3913_v25  ;;  %v5671_v25 = vld [vmem:[%s9589_s5 + $0x38] sm:$0xff] }
 0x7aa   : > { %v5581_v47 = vpop.eup %5580 }
 0x7ab   : > { %v5583_v33 = vpop.eup %5582 }
 0x7ac   : > { %v3916_v61 = vadd.f32 %v5583_v33, %v5581_v47  ;;  %v5585_v24 = vpop.eup %5584 }
 0x7ad   : > { %v5587_v62 = vpop.eup %5586 }
 0x7ae   : > { %v3918_v35 = vadd.f32 %v5585_v24, %v3916_v61  ;;  %v5589_v51 = vpop.eup %5588  ;;  %v9114_v61 = vpop.f32.mrf.mxu0 }
 0x7b0   : > { %v3920_v2 = vadd.f32 %v5587_v62, %v3918_v35  ;;  %5323 = vmatmul.msk.f32.gmra.mxu3 %vm1956_vm5, %v5665_v27 }
 0x7b2   : > { %v3922_v30 = vadd.f32 %v5589_v51, %v3920_v2  ;;  %v5677_v2 = vld [vmem:[%s9589_s5 + $0x68] sm:$0xff] }
 0x7b4   : > { %5590 = vrcp.f32 %v3922_v30  ;;  %v3948_v10 = vand.u32 2147483648, %v3922_v30  ;;  %v3946_v3 = vand.u32 2147483647, %v3922_v30  ;;  %vm3942_vm11 = vweird.f32 %v3922_v30 }
 0x7b6   : > { %v3949_v8 = vor.u32 1.1754944e-38, %v3948_v10  ;;  %vm3947_vm13 = vcmp.eq.f32.partialorder %v3946_v3, 8.507059e+37  ;;  %v9121_v35 = vpop.f32.mrf.mxu0 }
 0x7b8   : > { %5324 = vmatmul.msk.f32.gmra.mxu3 %vm1956_vm5, %v5666_v54 }
 0x7ba   : > { %v5591_v11 = vpop.eup %5590 }
 0x7bb   : > { %v3938_v19 = vmul.f32 %v5591_v11, %v3922_v30  ;;  %vm3943_vm10 = vweird.f32 %v5591_v11 }
 0x7bc   : > { %vm3944_vm12 = vmor %vm3942_vm11, %vm3943_vm10 }
 0x7bd   : > { %v3939_v26 = vsub.f32 1.0, %v3938_v19  ;;  %v5680_v19 = vld [vmem:[%s9589_s5 + $0x80] sm:$0xff] }
 0x7bf   : > { %v3940_v20 = vmul.f32 %v5591_v11, %v3939_v26 }
 0x7c0   : > { %5325 = vmatmul.msk.f32.gmra.mxu3 %vm1956_vm5, %v5667_v4 }
 0x7c1   : > { %v3941_v40 = vadd.f32 %v5591_v11, %v3940_v20  ;;  %v5681_v20 = vld [vmem:[%s9589_s5 + $0x88] sm:$0xff] }
 0x7c3   : > { %v3945_v38 = vsel %vm3944_vm12, %v5591_v11, %v3941_v40 }
 0x7c4   : > { %v3950_v12 = vsel %vm3947_vm13, %v3949_v8, %v3945_v38  ;;  %v5683_v38 = vld [vmem:[%s9589_s5 + $0x98] sm:$0xff] }
 0x7c5   : > { %v3960_v36 = vmul.f32 %v5589_v51, %v3950_v12  ;;  %v3958_v15 = vmul.f32 %v5587_v62, %v3950_v12  ;;  %v3956_v50 = vmul.f32 %v5585_v24, %v3950_v12  ;;  %v3954_v18 = vmul.f32 %v5583_v33, %v3950_v12  ;;  %v5674_v33 = vld [vmem:[%s9589_s5 + $0x50] sm:$0xff]  ;;  %v5675_v24 = vld [vmem:[%s9589_s5 + $0x58] sm:$0xff]  ;;  %v5676_v62 = vld [vmem:[%s9589_s5 + $0x60] sm:$0xff] }
 0x7c6   : > { %v3952_v31 = vmul.f32 %v5581_v47, %v3950_v12  ;;  %v5673_v47 = vld [vmem:[%s9589_s5 + $0x48] sm:$0xff]  ;;  %v5678_v51 = vld [vmem:[%s9589_s5 + $0x70] sm:$0xff] }
 0x7c7   : > { %4049 = vmatpush.msra.mxu2 %v3960_v36 }
 0x7c8   : > { %5326 = vmatmul.msk.f32.gmra.mxu3 %vm1956_vm5, %v5668_v58 }
 0x7c9   : > { %4050 = vmatpush.msra.mxu2 %v3958_v15 }
 0x7cb   : > { %4051 = vmatpush.msra.mxu2 %v3956_v50 }
 0x7cd   : > { %4052 = vmatpush.msra.mxu2 %v3954_v18 }
 0x7cf   : > { %4053 = vmatpush.msra.mxu2 %v3952_v31 }
 0x7d0   : > { %5327 = vmatmul.msk.f32.gmra.mxu3 %vm1956_vm5, %v5669_v22  ;;  %5342 = vmatmul.msk.f32.vlgmr.msra.gmra.mxu2 %vm1956_vm5, %v5664_v42  ;;  %v5672_v42 = vld [vmem:[%s9589_s5 + $0x40] sm:$0xff] }
 0x7d8   : > { %5328 = vmatmul.msk.f32.gmra.mxu3 %vm1956_vm5, %v5670_v46  ;;  %5343 = vmatmul.msk.f32.gmra.mxu2 %vm1956_vm5, %v5665_v27  ;;  %v9133_v27 = vpop.f32.mrf.mxu0 }
 0x7e0   : > { %5329 = vmatmul.msk.f32.gmra.mxu3 %vm1956_vm5, %v5671_v25  ;;  %5344 = vmatmul.msk.f32.gmra.mxu2 %vm1956_vm5, %v5666_v54  ;;  %v9140_v30 = vpop.f32.mrf.mxu0  ;;  %v5679_v54 = vld [vmem:[%s9589_s5 + $0x78] sm:$0xff] }
 0x7e8   : > { %5330 = vmatmul.msk.f32.gmra.mxu3 %vm1956_vm5, %v5672_v42  ;;  %5345 = vmatmul.msk.f32.gmra.mxu2 %vm1956_vm5, %v5667_v4  ;;  %v9147_v11 = vpop.f32.mrf.mxu0  ;;  %v5682_v4 = vld [vmem:[%s9589_s5 + $0x90] sm:$0xff] }
 0x7f0   : > { %5331 = vmatmul.msk.f32.gmra.mxu3 %vm1956_vm5, %v5673_v47  ;;  %5346 = vmatmul.msk.f32.gmra.mxu2 %vm1956_vm5, %v5668_v58  ;;  %v9154_v10 = vpop.f32.mrf.mxu0 }
 0x7f8   : > { %5332 = vmatmul.msk.f32.gmra.mxu3 %vm1956_vm5, %v5674_v33  ;;  %5347 = vmatmul.msk.f32.gmra.mxu2 %vm1956_vm5, %v5669_v22  ;;  %v9166_v40 = vpop.f32.mrf.mxu0 }
 0x800   : > { %5333 = vmatmul.msk.f32.gmra.mxu3 %vm1956_vm5, %v5675_v24  ;;  %5348 = vmatmul.msk.f32.gmra.mxu2 %vm1956_vm5, %v5670_v46  ;;  %v9173_v36 = vpop.f32.mrf.mxu0 }
 0x808   : > { %5334 = vmatmul.msk.f32.gmra.mxu3 %vm1956_vm5, %v5676_v62  ;;  %5349 = vmatmul.msk.f32.gmra.mxu2 %vm1956_vm5, %v5671_v25  ;;  %v9178_v18 = vpop.f32.mrf.mxu0 }
 0x810   : > { %5335 = vmatmul.msk.f32.gmra.mxu3 %vm1956_vm5, %v5677_v2  ;;  %5350 = vmatmul.msk.f32.gmra.mxu2 %vm1956_vm5, %v5672_v42 }
 0x818   : > { %5336 = vmatmul.msk.f32.gmra.mxu3 %vm1956_vm5, %v5678_v51  ;;  %5351 = vmatmul.msk.f32.gmra.mxu2 %vm1956_vm5, %v5673_v47 }
 0x820   : > { %5337 = vmatmul.msk.f32.gmra.mxu3 %vm1956_vm5, %v5679_v54  ;;  %5352 = vmatmul.msk.f32.gmra.mxu2 %vm1956_vm5, %v5674_v33  ;;  %v9183_v33 = vpop.f32.mrf.mxu0 }
 0x828   : > { %5338 = vmatmul.msk.f32.gmra.mxu3 %vm1956_vm5, %v5680_v19  ;;  %5353 = vmatmul.msk.f32.gmra.mxu2 %vm1956_vm5, %v5675_v24 }
 0x82b   : > { %v3978_v26 = vpop.f32.mrf.mxu3 }
 0x82c   : > { %v4115_v58 = vmul.f32 %v3978_v26, %v10278_v21 }
 0x830   : > { %5339 = vmatmul.msk.f32.gmra.mxu3 %vm1956_vm5, %v5681_v20  ;;  %5354 = vmatmul.msk.f32.gmra.mxu2 %vm1956_vm5, %v5676_v62 }
 0x833   : > { %v3981_v3 = vpop.f32.mrf.mxu3 }
 0x834   : > { %v4117_v25 = vmul.f32 %v3981_v3, %v10280_v45 }
 0x838   : > { %5340 = vmatmul.msk.f32.gmra.mxu3 %vm1956_vm5, %v5682_v4  ;;  %5355 = vmatmul.msk.f32.gmra.mxu2 %vm1956_vm5, %v5677_v2 }
 0x83b   : > { %v3984_v8 = vpop.f32.mrf.mxu3 }
 0x83c   : > { %v4119_v2 = vmul.f32 %v3984_v8, %v8940_v48 }
 0x840   : > { %5341 = vmatmul.msk.f32.gmra.mxu3 %vm1956_vm5, %v5683_v38  ;;  %5356 = vmatmul.msk.f32.gmra.mxu2 %vm1956_vm5, %v5678_v51 }
 0x843   : > { %v3987_v12 = vpop.f32.mrf.mxu3 }
 0x848   : > { %5357 = vmatmul.msk.f32.gmra.mxu2 %vm1956_vm5, %v5679_v54  ;;  %v10346_v54 = vld [vmem:[#allocation32_spill] sm:$0xff] }
 0x84b   : > { %v3990_v15 = vpop.f32.mrf.mxu3 }
 0x84c   : > { %v4123_v50 = vmul.f32 %v3990_v15, %v10279_v60  ;;  %v9190_v15 = vpop.f32.mrf.mxu0 }
 0x84e   : > { %v4155_v31 = vadd.f32 %v4123_v50, %v4115_v58  ;;  %v4121_v50 = vmul.f32 %v3987_v12, %v8953_v56 }
 0x850   : > { %5358 = vmatmul.msk.f32.gmra.mxu2 %vm1956_vm5, %v5680_v19 }
 0x853   : > { %v3993_v22 = vpop.f32.mrf.mxu3  ;;  %v4055_v46 = vpop.f32.mrf.mxu2 }
 0x854   : > { %v4125_v42 = vmul.f32 %v3993_v22, %v10281_v44 }
 0x856   : > { %v4157_v47 = vadd.f32 %v4125_v42, %v4117_v25  ;;  %v9197_v42 = vpop.f32.mrf.mxu0 }
 0x857   : > { %10348 = vst [vmem:[#allocation65_spill] sm:$0xff] %v9197_v42 }
 0x858   : > { %5359 = vmatmul.msk.f32.gmra.mxu2 %vm1956_vm5, %v5681_v20 }
 0x85b   : > { %v3996_v24 = vpop.f32.mrf.mxu3  ;;  %v4058_v62 = vpop.f32.mrf.mxu2 }
 0x85c   : > { %v4127_v51 = vmul.f32 %v3996_v24, %v8957_v16  ;;  %v4118_v26 = vmul.f32 %v4058_v62, %v10346_v54 }
 0x85e   : > { %v4159_v19 = vadd.f32 %v4127_v51, %v4119_v2  ;;  %v4116_v51 = vmul.f32 %v4055_v46, %v10129_v57 }
 0x860   : > { %5360 = vmatmul.msk.f32.gmra.mxu2 %vm1956_vm5, %v5682_v4 }
 0x863   : > { %v3999_v3 = vpop.f32.mrf.mxu3  ;;  %v4061_v58 = vpop.f32.mrf.mxu2 }
 0x864   : > { %v4129_v22 = vmul.f32 %v3999_v3, %v8961_v59  ;;  %v3528_v3 = vpop.f32.mrf.mxu0 }
 0x866   : > { %v9194_v20 = vadd.f32 %v4129_v22, %v4121_v50 }
 0x868   : > { %10347 = vst [vmem:[#allocation141_spill] sm:$0xff] %v9194_v20  ;;  %5361 = vmatmul.msk.f32.gmra.mxu2 %vm1956_vm5, %v5683_v38 }
 0x86b   : > { %v4002_v8 = vpop.f32.mrf.mxu3  ;;  %v4064_v25 = vpop.f32.mrf.mxu2 }
 0x86c   : > { %v4131_v24 = vmul.f32 %v4002_v8, %v10282_v1  ;;  %v4122_v57 = vmul.f32 %v4064_v25, %v10142_v49  ;;  %v3637_v49 = vmul.f32 %v9147_v11, %v10279_v60  ;;  %v3629_v25 = vmul.f32 %v9114_v61, %v10278_v21 }
 0x86e   : > { %v4163_v62 = vadd.f32 %v4155_v31, %v4131_v24  ;;  %v3531_v24 = vpop.f32.mrf.mxu0 }
 0x873   : > { %v4005_v4 = vpop.f32.mrf.mxu3  ;;  %v4067_v2 = vpop.f32.mrf.mxu2 }
 0x874   : > { %v4133_v54 = vmul.f32 %v4005_v4, %v8925_v0  ;;  %v4124_v12 = vmul.f32 %v4067_v2, %v10130_v7  ;;  %v4120_v4 = vmul.f32 %v4061_v58, %v10138_v23 }
 0x876   : > { %v9203_v50 = vadd.f32 %v4157_v47, %v4133_v54  ;;  %v4156_v22 = vadd.f32 %v4124_v12, %v4116_v51  ;;  %v3534_v54 = vpop.f32.mrf.mxu0 }
 0x87b   : > { %v4008_v38 = vpop.f32.mrf.mxu3  ;;  %v4070_v20 = vpop.f32.mrf.mxu2 }
 0x87c   : > { %v4135_v9 = vmul.f32 %v4008_v38, %v8970_v37  ;;  %v4126_v5 = vmul.f32 %v4070_v20, %v10134_v53 }
 0x87e   : > { %v9207_v8 = vadd.f32 %v4159_v19, %v4135_v9  ;;  %v4158_v31 = vadd.f32 %v4126_v5, %v4118_v26  ;;  %v9215_v5 = vpop.f32.mrf.mxu0 }
 0x883   : > { %v9209_v42 = vpop.f32.mrf.mxu3  ;;  %v4073_v46 = vpop.f32.mrf.mxu2 }
 0x884   : > { %v4128_v2 = vmul.f32 %v4073_v46, %v10139_v17 }
 0x886   : > { %v4160_v47 = vadd.f32 %v4128_v2, %v4120_v4  ;;  %v3540_v46 = vpop.f32.mrf.mxu0 }
 0x88b   : > { %v4014_v51 = vpop.f32.mrf.mxu3  ;;  %v4076_v12 = vpop.f32.mrf.mxu2 }
 0x88c   : > { %v4130_v38 = vmul.f32 %v4076_v12, %v10143_v28  ;;  %v3669_v12 = vadd.f32 %v3637_v49, %v3629_v25  ;;  %v4139_v11 = vmul.f32 %v4014_v51, %v10286_v32 }
 0x88e   : > { %v4162_v53 = vadd.f32 %v4130_v38, %v4122_v57  ;;  %v3543_v60 = vpop.f32.mrf.mxu0 }
 0x893   : > { %v4017_v9 = vpop.f32.mrf.mxu3  ;;  %v4079_v19 = vpop.f32.mrf.mxu2 }
 0x894   : > { %v4132_v26 = vmul.f32 %v4079_v19, %v8385_v41  ;;  %v3661_v19 = vmul.f32 %v3540_v46, %v10297_v52 }
 0x896   : > { %v9218_v20 = vadd.f32 %v4156_v22, %v4132_v26  ;;  %v3645_v22 = vmul.f32 %v9178_v18, %v10282_v1  ;;  %v3639_v26 = vmul.f32 %v9154_v10, %v10281_v44  ;;  %v3631_v1 = vmul.f32 %v9121_v35, %v10280_v45  ;;  %v10349_v10 = vld [vmem:[#allocation12_spill] sm:$0xff] }
 0x897   : > { %v3663_v35 = vmul.f32 %v3543_v60, %v8944_v55 }
 0x898   : > { %v3671_v46 = vadd.f32 %v3639_v26, %v3631_v1 }
 0x89b   : > { %v4020_v23 = vpop.f32.mrf.mxu3  ;;  %v4082_v58 = vpop.f32.mrf.mxu2 }
 0x89c   : > { %v4134_v17 = vmul.f32 %v4082_v58, %v8410_v34  ;;  %v3653_v34 = vmul.f32 %v3528_v3, %v10286_v32  ;;  %v3655_v32 = vmul.f32 %v3531_v24, %v8932_v6 }
 0x89e   : > { %v9221_v4 = vadd.f32 %v4158_v31, %v4134_v17  ;;  %v3677_v31 = vadd.f32 %v3669_v12, %v3645_v22 }
 0x8a0   : > { %v3685_v21 = vadd.f32 %v3677_v31, %v3653_v34 }
 0x8a2   : > { %v3693_v3 = vadd.f32 %v3685_v21, %v3661_v19 }
 0x8a3   : > { %v9225_v28 = vpop.f32.mrf.mxu3  ;;  %v4085_v57 = vpop.f32.mrf.mxu2 }
 0x8a4   : > { %v4136_v2 = vmul.f32 %v4085_v57, %v10163_v63  ;;  %v3647_v63 = vmul.f32 %v9183_v33, %v8925_v0  ;;  %v3701_v49 = vadd.f32 %v3693_v3, %v10349_v10  ;;  %v4141_v0 = vmul.f32 %v4017_v9, %v8932_v6  ;;  %v3546_v57 = vpop.f32.mrf.mxu0 }
 0x8a5   : > { %v3657_v9 = vmul.f32 %v3534_v54, %v8987_v43  ;;  %v3665_v31 = vmul.f32 %v3546_v57, %v8997_v39  ;;  %v10350_v54 = vld [vmem:[#allocation65_spill] sm:$0xff] }
 0x8a6   : > { %v9233_v38 = vadd.f32 %v4160_v47, %v4136_v2  ;;  %v4171_v47 = vadd.f32 %v4163_v62, %v4139_v11  ;;  %v3679_v45 = vadd.f32 %v3671_v46, %v3647_v63  ;;  %v3641_v62 = vmul.f32 %v9166_v40, %v8957_v16  ;;  %v10359_v57 = vld [vmem:[#allocation13_spill] sm:$0xff] }
 0x8a7   : > { %v4173_v2 = vadd.f32 %v9203_v50, %v4141_v0  ;;  %v3635_v50 = vmul.f32 %v9140_v30, %v8953_v56  ;;  %v3651_v60 = vmul.f32 %v10350_v54, %v8974_v13  ;;  %v10352_v56 = vld [vmem:[#allocation129_spill] sm:$0xff]  ;;  %v10365_v54 = vld [vmem:[#allocation44_spill] sm:$0xff] }
 0x8ab   : > { %v4026_v61 = vpop.f32.mrf.mxu3  ;;  %v4088_v18 = vpop.f32.mrf.mxu2 }
 0x8ac   : > { %v4147_v58 = vmul.f32 %v4026_v61, %v10297_v52  ;;  %v4138_v17 = vmul.f32 %v4088_v18, %v10173_v14  ;;  %v3687_v52 = vadd.f32 %v3679_v45, %v3655_v32  ;;  %v3633_v14 = vmul.f32 %v9133_v27, %v8940_v48  ;;  %v10353_v61 = vld [vmem:[#allocation127_spill] sm:$0xff]  ;;  %v10356_v45 = vld [vmem:[#allocation166_spill] sm:$0xff] }
 0x8ad   : > { %v4143_v48 = vmul.f32 %v4020_v23, %v8987_v43  ;;  %v3549_v43 = vpop.f32.mrf.mxu0  ;;  %v10351_v23 = vld [vmem:[#allocation35_spill] sm:$0xff] }
 0x8ae   : > { %v4179_v51 = vadd.f32 %v4171_v47, %v4147_v58  ;;  %v9246_v44 = vadd.f32 %v4162_v53, %v4138_v17  ;;  %v3649_v53 = vmul.f32 %v9190_v15, %v8970_v37  ;;  %v3695_v22 = vadd.f32 %v3687_v52, %v3663_v35 }
 0x8af   : > { %v3673_v6 = vadd.f32 %v3641_v62, %v3633_v14  ;;  %v3643_v37 = vmul.f32 %v9173_v36, %v8961_v59  ;;  %v3659_v1 = vmul.f32 %v9215_v5, %v10351_v23  ;;  %v4137_v59 = vmul.f32 %v9209_v42, %v8974_v13  ;;  %v10355_v13 = vld [vmem:[#allocation93_spill] sm:$0xff]  ;;  %v10358_v62 = vld [vmem:[#allocation151_spill] sm:$0xff] }
 0x8b0   : > { %v4187_v33 = vadd.f32 %v4179_v51, %v3701_v49  ;;  %v3703_v16 = vadd.f32 %v3695_v22, %v9024_v29  ;;  %v4175_v29 = vadd.f32 %v9207_v8, %v4143_v48  ;;  %v3667_v18 = vmul.f32 %v3549_v43, %v10353_v61  ;;  %v10361_v22 = vld [vmem:[#allocation20_spill] sm:$0xff]  ;;  %v10367_v43 = vld [vmem:[#allocation121_spill] sm:$0xff] }
 0x8b1   : > { %v3681_v40 = vadd.f32 %v3673_v6, %v3649_v53  ;;  %v3675_v21 = vadd.f32 %v3643_v37, %v3635_v50  ;;  %v4145_v3 = vmul.f32 %v9225_v28, %v10351_v23  ;;  %v3638_v35 = vmul.f32 %v10356_v45, %v10130_v7  ;;  %v10357_v28 = vld [vmem:[#allocation113_spill] sm:$0xff]  ;;  %v10362_v7 = vld [vmem:[#allocation14_spill] sm:$0xff] }
 0x8b2   : > { %v3630_v52 = vmul.f32 %v10358_v62, %v10357_v28  ;;  %v3646_v14 = vmul.f32 %v10359_v57, %v8385_v41  ;;  %v10360_v53 = vld [vmem:[#allocation21_spill] sm:$0xff]  ;;  %v10364_v50 = vld [vmem:[#allocation10_spill] sm:$0xff] }
 0x8b3   : > { %v4029_v24 = vpop.f32.mrf.mxu3  ;;  %v4091_v25 = vpop.f32.mrf.mxu2  ;;  %v3689_v15 = vadd.f32 %v3681_v40, %v3657_v9  ;;  %v3683_v63 = vadd.f32 %v3675_v21, %v3651_v60  ;;  %v10363_v9 = vld [vmem:[#allocation143_spill] sm:$0xff]  ;;  %v4197_v21 = vld [vmem:[%s9590_s6 + $0x10] sm:$0xff] }
 0x8b4   : > { %v4149_v12 = vmul.f32 %v4029_v24, %v8944_v55  ;;  %v3670_v24 = vadd.f32 %v3638_v35, %v3630_v52 }
 0x8b5   : > { %v3697_v11 = vadd.f32 %v3689_v15, %v3665_v31  ;;  %v3691_v47 = vadd.f32 %v3683_v63, %v3659_v1  ;;  %v4196_v15 = vld [vmem:[%s9590_s6 + $0x8] sm:$0xff]  ;;  %v10368_v1 = vld [vmem:[#allocation18_spill] sm:$0xff] }
 0x8b6   : > { %v4181_v34 = vadd.f32 %v4173_v2, %v4149_v12  ;;  %v3654_v2 = vmul.f32 %v10361_v22, %v10360_v53  ;;  %v4195_v12 = vld [vmem:[%s9590_s6] sm:$0xff]  ;;  %v3678_v6 = vadd.f32 %v3670_v24, %v3646_v14  ;;  %v10375_v14 = vld [vmem:[#allocation149_spill] sm:$0xff] }
 0x8b7   : > { %v3705_v30 = vadd.f32 %v3697_v11, %v10352_v56  ;;  %v3699_v32 = vadd.f32 %v3691_v47, %v3667_v18  ;;  %v10369_v56 = vld [vmem:[#allocation106_spill] sm:$0xff] }
 0x8b8   : > { %v4189_v27 = vadd.f32 %v4181_v34, %v3703_v16  ;;  %v3662_v34 = vmul.f32 %v10363_v9, %v10362_v7  ;;  %v4140_v16 = vmul.f32 %v4091_v25, %v10360_v53  ;;  %v3686_v41 = vadd.f32 %v3678_v6, %v3654_v2 }
 0x8b9   : > { %v3707_v42 = vadd.f32 %v3699_v32, %v10355_v13  ;;  %v1046_v13 = vpop.permute.xlu0 %1045 }
 0x8ba   : > { %v3694_v31 = vadd.f32 %v3686_v41, %v3662_v34  ;;  %v4172_v48 = vadd.f32 %v9218_v20, %v4140_v16  ;;  %v10377_v16 = vld [vmem:[#allocation42_spill] sm:$0xff] }
 0x8bb   : > { %v4032_v55 = vpop.f32.mrf.mxu3  ;;  %v4094_v19 = vpop.f32.mrf.mxu2 }
 0x8bc   : > { %v4151_v26 = vmul.f32 %v4032_v55, %v8997_v39  ;;  %v10354_v39 = vld [vmem:[#allocation141_spill] sm:$0xff]  ;;  %v3702_v55 = vadd.f32 %v3694_v31, %v10364_v50  ;;  %v4142_v60 = vmul.f32 %v4094_v19, %v10365_v54  ;;  %v4303_v50 = vld [vmem:[%s9592_s8 + $0x10] sm:$0xff]  ;;  %v4304_v54 = vld [vmem:[%s9592_s8 + $0x18] sm:$0xff] }
 0x8bd   : > { %v4169_v58 = vadd.f32 %v10354_v39, %v4137_v59 }
 0x8be   : > { %v4183_v36 = vadd.f32 %v4175_v29, %v4151_v26  ;;  %v4174_v11 = vadd.f32 %v9221_v4, %v4142_v60  ;;  %v10366_v29 = vld [vmem:[#allocation8_spill] sm:$0xff]  ;;  %v4198_v4 = vld [vmem:[%s9590_s6 + $0x18] sm:$0xff] }
 0x8bf   : > { %v4177_v5 = vadd.f32 %v4169_v58, %v4145_v3  ;;  %v10371_v3 = vld [vmem:[#allocation139_spill] sm:$0xff]  ;;  %v10372_v58 = vld [vmem:[#allocation88_spill] sm:$0xff] }
 0x8c0   : > { %v4191_v8 = vadd.f32 %v4183_v36, %v3705_v30 }
 0x8c1   : > { %v4216_v45 = vpop.permute.xlu0 %4215 }
 0x8c3   : > { %v4035_v17 = vpop.f32.mrf.mxu3  ;;  %v4097_v46 = vpop.f32.mrf.mxu2 }
 0x8c4   : > { %v4153_v51 = vmul.f32 %v4035_v17, %v10353_v61  ;;  %v4144_v23 = vmul.f32 %v4097_v46, %v10367_v43  ;;  %v10370_v61 = vld [vmem:[#allocation36_spill] sm:$0xff] }
 0x8c6   : > { %v4185_v10 = vadd.f32 %v4177_v5, %v4153_v51  ;;  %v4176_v36 = vadd.f32 %v9233_v38, %v4144_v23  ;;  %v10373_v38 = vld [vmem:[#allocation16_spill] sm:$0xff]  ;;  %v4221_v51 = vpop.permute.xlu1 %4220 }
 0x8c7   : > { %v10380_v23 = vld [vmem:[#allocation148_spill] sm:$0xff] }
 0x8c8   : > { %v4193_v49 = vadd.f32 %v4185_v10, %v3707_v42  ;;  %v1041_v42 = vpop.permute.xlu2 %1040 }
 0x8c9   : > { %v1445_v24 = vadd.f32 %v10375_v14, %v1041_v42  ;;  %v1031_v34 = vpop.permute.xlu0 %1030 }
 0x8ca   : > { %4247 = vmatpush.msrb.mxu0 %v4193_v49  ;;  %v1439_v41 = vadd.f32 %v10377_v16, %v1031_v34  ;;  %v594_v16 = vld [vmem:[%s9398_s28 + $0x10] sm:$0xff] }
 0x8cb   : > { %v4100_v0 = vpop.f32.mrf.mxu2 }
 0x8cc   : > { %4248 = vmatpush.msrb.mxu0 %v4191_v8  ;;  %v4146_v18 = vmul.f32 %v4100_v0, %v10370_v61  ;;  %v10374_v0 = vld [vmem:[#allocation112_spill] sm:$0xff] }
 0x8cd   : > { %v1448_v28 = vadd.f32 %v10374_v0, %v1046_v13 }
 0x8ce   : > { %4249 = vmatpush.msrb.mxu0 %v4189_v27  ;;  %v4178_v39 = vadd.f32 %v9246_v44, %v4146_v18  ;;  %v1036_v49 = vpop.permute.xlu1 %1035 }
 0x8d0   : > { %4250 = vmatpush.msrb.mxu0 %v4187_v33  ;;  %v4211_v57 = vpop.permute.xlu2 %4210 }
 0x8d1   : > { %5362 = vmatmul.msk.f32.vlgmr.msrb.gmra.mxu0 %vm1048_vm0, %v4195_v12 }
 0x8d3   : > { %v4103_v40 = vpop.f32.mrf.mxu2 }
 0x8d4   : > { %v4148_v27 = vmul.f32 %v4103_v40, %v10362_v7 }
 0x8d6   : > { %v4180_v37 = vadd.f32 %v4172_v48, %v4148_v27  ;;  %v4206_v2 = vpop.permute.xlu1 %4205  ;;  %v4301_v48 = vld [vmem:[%s9592_s8] sm:$0xff] }
 0x8d8   : > { %v4188_v25 = vadd.f32 %v4180_v37, %v3702_v55  ;;  %v4302_v37 = vld [vmem:[%s9592_s8 + $0x8] sm:$0xff] }
 0x8d9   : > { %5363 = vmatmul.msk.f32.gmra.mxu0 %vm1048_vm0, %v4196_v15 }
 0x8db   : > { %v4106_v33 = vpop.f32.mrf.mxu2 }
 0x8dc   : > { %v4150_v26 = vmul.f32 %v4106_v33, %v10366_v29 }
 0x8de   : > { %v4182_v20 = vadd.f32 %v4174_v11, %v4150_v26  ;;  %v10379_v26 = vld [vmem:[#allocation150_spill] sm:$0xff] }
 0x8e0   : > { %v4190_v59 = vadd.f32 %v4182_v20, %v10368_v1  ;;  %v1654_v20 = vadd.f32 %v10379_v26, %v1041_v42  ;;  %v1651_v1 = vadd.f32 %v10380_v23, %v1036_v49  ;;  %v4407_v42 = vld [vmem:[%s9594_s10] sm:$0xff]  ;;  %v593_v23 = vld [vmem:[%s9398_s28 + $0x8] sm:$0xff] }
 0x8e1   : > { %5364 = vmatmul.msk.f32.gmra.mxu0 %vm1048_vm0, %v4197_v21 }
 0x8e3   : > { %v4109_v19 = vpop.f32.mrf.mxu2 }
 0x8e4   : > { %v4152_v30 = vmul.f32 %v4109_v19, %v10369_v56 }
 0x8e6   : > { %v4184_v63 = vadd.f32 %v4176_v36, %v4152_v30  ;;  %v10381_v36 = vld [vmem:[#allocation34_spill] sm:$0xff] }
 0x8e7   : > { %v1648_v56 = vadd.f32 %v10381_v36, %v1031_v34 }
 0x8e8   : > { %v4192_v8 = vadd.f32 %v4184_v63, %v10371_v3  ;;  %v4327_v3 = vpop.permute.xlu2 %4326 }
 0x8e9   : > { %5365 = vmatmul.msk.f32.gmra.mxu0 %vm1048_vm0, %v4198_v4 }
 0x8eb   : > { %v4112_v47 = vpop.f32.mrf.mxu2 }
 0x8ec   : > { %v4154_v17 = vmul.f32 %v4112_v47, %v10372_v58 }
 0x8ee   : > { %v4186_v46 = vadd.f32 %v4178_v39, %v4154_v17  ;;  %v4317_v17 = vpop.permute.xlu1 %4316 }
 0x8f0   : > { %v4194_v32 = vadd.f32 %v4186_v46, %v10373_v38 }
 0x8f2   : > { %4276 = vmatpush.msrb.mxu1 %v4194_v32  ;;  %v4312_v32 = vpop.permute.xlu2 %4311 }
 0x8f4   : > { %4277 = vmatpush.msrb.mxu1 %v4192_v8  ;;  %v4322_v8 = vpop.permute.xlu0 %4321 }
 0x8f6   : > { %4278 = vmatpush.msrb.mxu1 %v4190_v59 }
 0x8f8   : > { %4279 = vmatpush.msrb.mxu1 %v4188_v25  ;;  %v10378_v25 = vld [vmem:[#allocation99_spill] sm:$0xff] }
 0x8f9   : > { %5366 = vmatmul.msk.f32.vlgmr.msrb.gmra.mxu1 %vm1048_vm0, %v4195_v12  ;;  %v10376_v12 = vld [vmem:[#allocation147_spill] sm:$0xff]  ;;  %v1657_v33 = vadd.f32 %v10378_v25, %v1046_v13 }
 0x8fa   : > { %v1442_v6 = vadd.f32 %v10376_v12, %v1036_v49  ;;  %v4408_v49 = vld [vmem:[%s9594_s10 + $0x8] sm:$0xff] }
 0x901   : > { %5367 = vmatmul.msk.f32.gmra.mxu1 %vm1048_vm0, %v4196_v15 }
 0x909   : > { %5368 = vmatmul.msk.f32.gmra.mxu1 %vm1048_vm0, %v4197_v21 }
 0x911   : > { %5369 = vmatmul.msk.f32.gmra.mxu1 %vm1048_vm0, %v4198_v4 }
 0x94e   : > { %v4252_v5 = vpop.f32.mrf.mxu0 }
 0x94f   : > { %v4253_v7 = vadd.f32 %v4252_v5, %v4206_v2 }
 0x951   : > { %v9340_v31 = vadd.f32 %v4253_v7, %v1439_v41  ;;  %v592_v41 = vld [vmem:[%s9398_s28] sm:$0xff] }
 0x956   : > { %v4255_v44 = vpop.f32.mrf.mxu0 }
 0x957   : > { %v4256_v53 = vadd.f32 %v4255_v44, %v4211_v57 }
 0x959   : > { %v9337_v40 = vadd.f32 %v4256_v53, %v1442_v6  ;;  %v598_v53 = vld [vmem:[%s9398_s28 + $0x30] sm:$0xff] }
 0x95e   : > { %v4258_v10 = vpop.f32.mrf.mxu0 }
 0x95f   : > { %v4259_v62 = vadd.f32 %v4258_v10, %v4216_v45 }
 0x961   : > { %v9333_v9 = vadd.f32 %v4259_v62, %v1445_v24 }
 0x966   : > { %v4261_v35 = vpop.f32.mrf.mxu0 }
 0x967   : > { %v4262_v52 = vadd.f32 %v4261_v35, %v4221_v51  ;;  %v4409_v35 = vld [vmem:[%s9594_s10 + $0x10] sm:$0xff] }
 0x969   : > { %v9330_v22 = vadd.f32 %v4262_v52, %v1448_v28  ;;  %v4410_v28 = vld [vmem:[%s9594_s10 + $0x18] sm:$0xff] }
 0x96b   : > { %4353 = vmatpush.msra.mxu0 %v9330_v22 }
 0x96d   : > { %4354 = vmatpush.msra.mxu0 %v9333_v9 }
 0x96f   : > { %4355 = vmatpush.msra.mxu0 %v9337_v40 }
 0x971   : > { %4356 = vmatpush.msra.mxu0 %v9340_v31 }
 0x972   : > { %5370 = vmatmul.msk.f32.vlgmr.msra.gmra.mxu0 %vm1048_vm0, %v4301_v48 }
 0x976   : > { %v4281_v27 = vpop.f32.mrf.mxu1 }
 0x977   : > { %v4282_v59 = vadd.f32 %v4281_v27, %v4206_v2  ;;  %v596_v2 = vld [vmem:[%s9398_s28 + $0x20] sm:$0xff]  ;;  %v4518_v27 = vld [vmem:[%s9597_s13 + $0x8] sm:$0xff] }
 0x979   : > { %v9372_v63 = vadd.f32 %v4282_v59, %v1648_v56 }
 0x97a   : > { %5371 = vmatmul.msk.f32.gmra.mxu0 %vm1048_vm0, %v4302_v37 }
 0x97e   : > { %v4284_v15 = vpop.f32.mrf.mxu1 }
 0x97f   : > { %v4285_v21 = vadd.f32 %v4284_v15, %v4211_v57  ;;  %v4433_v15 = vpop.permute.xlu0 %4432 }
 0x981   : > { %v9369_v30 = vadd.f32 %v4285_v21, %v1651_v1  ;;  %v4428_v1 = vpop.permute.xlu1 %4427 }
 0x982   : > { %5372 = vmatmul.msk.f32.gmra.mxu0 %vm1048_vm0, %v4303_v50 }
 0x986   : > { %v4287_v55 = vpop.f32.mrf.mxu1 }
 0x987   : > { %v4288_v11 = vadd.f32 %v4287_v55, %v4216_v45  ;;  %v4418_v55 = vpop.permute.xlu0 %4417 }
 0x989   : > { %v9365_v19 = vadd.f32 %v4288_v11, %v1654_v20  ;;  %v597_v11 = vld [vmem:[%s9398_s28 + $0x28] sm:$0xff] }
 0x98a   : > { %5373 = vmatmul.msk.f32.gmra.mxu0 %vm1048_vm0, %v4304_v54 }
 0x98e   : > { %v4290_v60 = vpop.f32.mrf.mxu1 }
 0x98f   : > { %v4291_v29 = vadd.f32 %v4290_v60, %v4221_v51 }
 0x991   : > { %v9362_v43 = vadd.f32 %v4291_v29, %v1657_v33  ;;  %v599_v33 = vld [vmem:[%s9398_s28 + $0x38] sm:$0xff]  ;;  %v4423_v29 = vpop.permute.xlu2 %4422 }
 0x993   : > { %4382 = vmatpush.msra.mxu1 %v9362_v43 }
 0x995   : > { %4383 = vmatpush.msra.mxu1 %v9365_v19 }
 0x997   : > { %4384 = vmatpush.msra.mxu1 %v9369_v30 }
 0x999   : > { %4385 = vmatpush.msra.mxu1 %v9372_v63 }
 0x99a   : > { %5374 = vmatmul.msk.f32.vlgmr.msra.gmra.mxu1 %vm1048_vm0, %v4301_v48  ;;  %v4517_v48 = vld [vmem:[%s9597_s13] sm:$0xff] }
 0x9a2   : > { %5375 = vmatmul.msk.f32.gmra.mxu1 %vm1048_vm0, %v4302_v37  ;;  %v4519_v37 = vld [vmem:[%s9597_s13 + $0x10] sm:$0xff] }
 0x9aa   : > { %5376 = vmatmul.msk.f32.gmra.mxu1 %vm1048_vm0, %v4303_v50  ;;  %v4520_v50 = vld [vmem:[%s9597_s13 + $0x18] sm:$0xff] }
 0x9b2   : > { %5377 = vmatmul.msk.f32.gmra.mxu1 %vm1048_vm0, %v4304_v54 }
 0x9ef   : > { %v4358_v4 = vpop.f32.mrf.mxu0 }
 0x9f0   : > { %v4359_v5 = vadd.f32 %v4358_v4, %v4312_v32 }
 0x9f2   : > { %v4399_v13 = vmax.f32 %v4359_v5, 0.0 }
 0x9f7   : > { %v4361_v61 = vpop.f32.mrf.mxu0 }
 0x9f8   : > { %v4362_v46 = vadd.f32 %v4361_v61, %v4317_v17 }
 0x9fa   : > { %v4401_v44 = vmax.f32 %v4362_v46, 0.0 }
 0x9ff   : > { %v4364_v18 = vpop.f32.mrf.mxu0 }
 0xa00   : > { %v4365_v39 = vadd.f32 %v4364_v18, %v4322_v8 }
 0xa02   : > { %v4403_v51 = vmax.f32 %v4365_v39, 0.0 }
 0xa07   : > { %v4367_v47 = vpop.f32.mrf.mxu0 }
 0xa08   : > { %v4368_v58 = vadd.f32 %v4367_v47, %v4327_v3 }
 0xa0a   : > { %v4405_v38 = vmax.f32 %v4368_v58, 0.0  ;;  %v4515_v58 = vld [vmem:[%s9596_s12 + $0x10] sm:$0xff] }
 0xa0c   : > { %4459 = vmatpush.msrb.mxu0 %v4405_v38  ;;  %v4516_v38 = vld [vmem:[%s9596_s12 + $0x18] sm:$0xff] }
 0xa0e   : > { %4460 = vmatpush.msrb.mxu0 %v4403_v51 }
 0xa10   : > { %4461 = vmatpush.msrb.mxu0 %v4401_v44 }
 0xa12   : > { %4462 = vmatpush.msrb.mxu0 %v4399_v13 }
 0xa13   : > { %5378 = vmatmul.msk.f32.vlgmr.msrb.gmra.mxu0 %vm1048_vm0, %v4407_v42 }
 0xa14   : > { %4545 = vmatpush.msra.mxu0 %v598_v53 }
 0xa16   : > { %4546 = vmatpush.msra.mxu0 %v596_v2 }
 0xa17   : > { %v4387_v10 = vpop.f32.mrf.mxu1 }
 0xa18   : > { %v4388_v12 = vadd.f32 %v4387_v10, %v4312_v32  ;;  %4547 = vmatpush.msra.mxu0 %v594_v16 }
 0xa1a   : > { %v4400_v34 = vmax.f32 %v4388_v12, 0.0  ;;  %4548 = vmatpush.msra.mxu0 %v592_v41 }
 0xa1b   : > { %5379 = vmatmul.msk.f32.gmra.mxu0 %vm1048_vm0, %v4408_v49 }
 0xa1f   : > { %v4390_v45 = vpop.f32.mrf.mxu1 }
 0xa20   : > { %v4391_v14 = vadd.f32 %v4390_v45, %v4317_v17  ;;  %v9505_v45 = vpop.permute.xlu1 %4667 }
 0xa22   : > { %v4402_v7 = vmax.f32 %v4391_v14, 0.0 }
 0xa23   : > { %5380 = vmatmul.msk.f32.gmra.mxu0 %vm1048_vm0, %v4409_v35 }
 0xa27   : > { %v4393_v0 = vpop.f32.mrf.mxu1 }
 0xa28   : > { %v4394_v52 = vadd.f32 %v4393_v0, %v4322_v8 }
 0xa2a   : > { %v4404_v6 = vmax.f32 %v4394_v52, 0.0  ;;  %v9508_v52 = vpop.permute.xlu2 %4672 }
 0xa2b   : > { %5381 = vmatmul.msk.f32.gmra.mxu0 %vm1048_vm0, %v4410_v28 }
 0xa2f   : > { %v4396_v62 = vpop.f32.mrf.mxu1 }
 0xa30   : > { %v4397_v57 = vadd.f32 %v4396_v62, %v4327_v3  ;;  %v4514_v3 = vld [vmem:[%s9596_s12 + $0x8] sm:$0xff] }
 0xa32   : > { %v4406_v24 = vmax.f32 %v4397_v57, 0.0 }
 0xa33   : > { %5386 = vmatmul.msk.f32.vlgmr.msra.gmra.mxu0 %vm1048_vm0, %v4517_v48 }
 0xa34   : > { %4488 = vmatpush.msrb.mxu1 %v4406_v24 }
 0xa36   : > { %4489 = vmatpush.msrb.mxu1 %v4404_v6 }
 0xa38   : > { %4490 = vmatpush.msrb.mxu1 %v4402_v7  ;;  %v9513_v7 = vpop.permute.xlu0 %4677 }
 0xa3a   : > { %4491 = vmatpush.msrb.mxu1 %v4400_v34 }
 0xa3b   : > { %5382 = vmatmul.msk.f32.vlgmr.msrb.gmra.mxu1 %vm1048_vm0, %v4407_v42  ;;  %5387 = vmatmul.msk.f32.gmra.mxu0 %vm1048_vm0, %v4518_v27 }
 0xa3c   : > { %4574 = vmatpush.msra.mxu1 %v599_v33 }
 0xa3e   : > { %4575 = vmatpush.msra.mxu1 %v597_v11 }
 0xa43   : > { %5383 = vmatmul.msk.f32.gmra.mxu1 %vm1048_vm0, %v4408_v49  ;;  %5388 = vmatmul.msk.f32.gmra.mxu0 %vm1048_vm0, %v4519_v37 }
 0xa4b   : > { %5384 = vmatmul.msk.f32.gmra.mxu1 %vm1048_vm0, %v4409_v35  ;;  %5389 = vmatmul.msk.f32.gmra.mxu0 %vm1048_vm0, %v4520_v50 }
 0xa53   : > { %5385 = vmatmul.msk.f32.gmra.mxu1 %vm1048_vm0, %v4410_v28 }
 0xa90   : > { %v4464_v54 = vpop.f32.mrf.mxu0 }
 0xa91   : > { %v4465_v60 = vadd.f32 %v4464_v54, %v4418_v55 }
 0xa93   : > { %v9426_v25 = vadd.f32 %v4465_v60, %v9340_v31  ;;  %v595_v31 = vld [vmem:[%s9398_s28 + $0x18] sm:$0xff]  ;;  %v9518_v60 = vpop.permute.xlu1 %4682  ;;  %s9551_s28 = sshll.u32 %s4881_s27, 4  ;;  %s4885_s28 = int_to_ptr.hbm [resolvable:$true] %s9551_s28 }
 0xa94   : > { %4576 = vmatpush.msra.mxu1 %v595_v31  ;;  %s5698_s25 = sshra.s32 %s4885_s28, 4  ;;  %s5699_s25 = int_to_ptr.hbm [resolvable:$true] %s5698_s25 }
 0xa95   : > { %4853 = vst [vmem:[%s9430_s16] sm:$0xff] %v9426_v25  ;;  %s5700_s17 = scalar_lea.hbm %s5699_s25, 128  ;;  %p5705_p2 = scmp.lt.s32.totalorder %s5699_s25, %s9599_s15 }
 0xa96   : > { %4577 = vmatpush.msra.mxu1 %v593_v23  ;;  %p5701_p13 = scmp.ne.s32.totalorder %s5699_s25, %s5700_s17  ;;  %p5706_p3 = scmp.lt.s32.totalorder %s5704_s1, %s5700_s17 }
 0xa97   : > { %5390 = vmatmul.msk.f32.vlgmr.msra.gmra.mxu1 %vm1048_vm0, %v4517_v48 }
 0xa98   : > { %v4467_v26 = vpop.f32.mrf.mxu0  ;;  %p5702_p0 = pnand %p5701_p13, %p5874_p6  ;;  %p5707_p4 = por %p5706_p3, %p5705_p2 }
 0xa99   : > { %v4468_v20 = vadd.f32 %v4467_v26, %v4423_v29 }
 0xa9a   : > { %p5703_p1 = pneg %p5702_p0 }
 0xa9b   : > { %v9435_v21 = vadd.f32 %v4468_v20, %v9337_v40 }
 0xa9c   : > { %p5708_p5 = pnand %p5707_p4, %p5703_p1 }
 0xa9d   : > { %4855 = vst [vmem:[%s9430_s16 + $0x10] sm:$0xff] %v9435_v21 }
 0xa9f   : > { %5391 = vmatmul.msk.f32.gmra.mxu1 %vm1048_vm0, %v4518_v27 }
 0xaa0   : > { %v4470_v59 = vpop.f32.mrf.mxu0 }
 0xaa1   : > { %v4471_v36 = vadd.f32 %v4470_v59, %v4428_v1 }
 0xaa3   : > { %v9443_v56 = vadd.f32 %v4471_v36, %v9333_v9  ;;  %v4513_v9 = vld [vmem:[%s9596_s12] sm:$0xff] }
 0xaa5   : > { %4857 = vst [vmem:[%s9430_s16 + $0x20] sm:$0xff] %v9443_v56 }
 0xaa7   : > { %5392 = vmatmul.msk.f32.gmra.mxu1 %vm1048_vm0, %v4519_v37 }
 0xaa8   : > { %v4473_v40 = vpop.f32.mrf.mxu0 }
 0xaa9   : > { %v4474_v4 = vadd.f32 %v4473_v40, %v4433_v15 }
 0xaab   : > { %v9449_v61 = vadd.f32 %v4474_v4, %v9330_v22 }
 0xaad   : > { %4859 = vst [vmem:[%s9430_s16 + $0x30] sm:$0xff] %v9449_v61  ;;  %4615 = vmatpush.msrb.mxu0 %v9449_v61 }
 0xaaf   : > { %4616 = vmatpush.msrb.mxu0 %v9443_v56  ;;  %5393 = vmatmul.msk.f32.gmra.mxu1 %vm1048_vm0, %v4520_v50 }
 0xab1   : > { %4617 = vmatpush.msrb.mxu0 %v9435_v21 }
 0xab3   : > { %4618 = vmatpush.msrb.mxu0 %v9426_v25 }
 0xab4   : > { %5394 = vmatmul.msk.f32.vlgmr.msrb.gmra.mxu0 %vm1048_vm0, %v4513_v9 }
 0xab8   : > { %v4493_v22 = vpop.f32.mrf.mxu1 }
 0xab9   : > { %v4494_v18 = vadd.f32 %v4493_v22, %v4418_v55 }
 0xabb   : > { %v9467_v8 = vadd.f32 %v4494_v18, %v9372_v63 }
 0xabc   : > { %5395 = vmatmul.msk.f32.gmra.mxu0 %vm1048_vm0, %v4514_v3 }
 0xabd   : > { %4854 = vst [vmem:[%s9430_s16 + $0x8] sm:$0xff] %v9467_v8 }
 0xac0   : > { %v4496_v47 = vpop.f32.mrf.mxu1 }
 0xac1   : > { %v4497_v39 = vadd.f32 %v4496_v47, %v4423_v29 }
 0xac3   : > { %v9476_v17 = vadd.f32 %v4497_v39, %v9369_v30 }
 0xac4   : > { %5396 = vmatmul.msk.f32.gmra.mxu0 %vm1048_vm0, %v4515_v58 }
 0xac5   : > { %4856 = vst [vmem:[%s9430_s16 + $0x18] sm:$0xff] %v9476_v17 }
 0xac8   : > { %v4499_v63 = vpop.f32.mrf.mxu1 }
 0xac9   : > { %v4500_v46 = vadd.f32 %v4499_v63, %v4428_v1 }
 0xacb   : > { %v9485_v32 = vadd.f32 %v4500_v46, %v9365_v19 }
 0xacc   : > { %5397 = vmatmul.msk.f32.gmra.mxu0 %vm1048_vm0, %v4516_v38 }
 0xacd   : > { %4858 = vst [vmem:[%s9430_s16 + $0x28] sm:$0xff] %v9485_v32 }
 0xad0   : > { %v4502_v5 = vpop.f32.mrf.mxu1 }
 0xad1   : > { %v4503_v30 = vadd.f32 %v4502_v5, %v4433_v15 }
 0xad3   : > { %v9491_v51 = vadd.f32 %v4503_v30, %v9362_v43  ;;  %v4550_v43 = vpop.f32.mrf.mxu0 }
 0xad5   : > { %4860 = vst [vmem:[%s9430_s16 + $0x38] sm:$0xff] %v9491_v51  ;;  %4644 = vmatpush.msrb.mxu1 %v9491_v51 }
 0xad7   : > { %4645 = vmatpush.msrb.mxu1 %v9485_v32 }
 0xad9   : > { %4646 = vmatpush.msrb.mxu1 %v9476_v17 }
 0xadb   : > { %4647 = vmatpush.msrb.mxu1 %v9467_v8  ;;  %v4553_v19 = vpop.f32.mrf.mxu0 }
 0xadc   : > { %5398 = vmatmul.msk.f32.vlgmr.msrb.gmra.mxu1 %vm1048_vm0, %v4513_v9 }
 0xae3   : > { %v4556_v44 = vpop.f32.mrf.mxu0 }
 0xae4   : > { %5399 = vmatmul.msk.f32.gmra.mxu1 %vm1048_vm0, %v4514_v3 }
 0xaeb   : > { %v4559_v13 = vpop.f32.mrf.mxu0 }
 0xaec   : > { %5400 = vmatmul.msk.f32.gmra.mxu1 %vm1048_vm0, %v4515_v58 }
 0xaf4   : > { %5401 = vmatmul.msk.f32.gmra.mxu1 %vm1048_vm0, %v4516_v38 }
 0xb14   : > { %v9503_v10 = vpop.f32.mrf.mxu1 }
 0xb1c   : > { %v9510_v57 = vpop.f32.mrf.mxu1 }
 0xb24   : > { %v9516_v16 = vpop.f32.mrf.mxu1 }
 0xb2c   : > { %v9521_v40 = vpop.f32.mrf.mxu1 }
 0xb31   : > { %v4620_v42 = vpop.f32.mrf.mxu0 }
 0xb32   : > { %v4621_v49 = vadd.f32 %v4620_v42, %v4550_v43 }
 0xb34   : > { %v4685_v35 = vadd.f32 %v9505_v45, %v4621_v49 }
 0xb36   : > { %v5402_v0 = vmul.f32 -1.442695, %v4685_v35 }
 0xb38   : > { %5592 = vpow2.f32 %v5402_v0 }
 0xb39   : > { %v4623_v28 = vpop.f32.mrf.mxu0 }
 0xb3a   : > { %v4624_v62 = vadd.f32 %v4623_v28, %v4553_v19 }
 0xb3c   : > { %v4687_v14 = vadd.f32 %v9508_v52, %v4624_v62 }
 0xb3e   : > { %v5593_v24 = vpop.eup %5592  ;;  %v5404_v53 = vmul.f32 -1.442695, %v4687_v14 }
 0xb3f   : > { %v4717_v2 = vadd.f32 1.0, %v5593_v24 }
 0xb40   : > { %5594 = vpow2.f32 %v5404_v53 }
 0xb41   : > { %5596 = vrcp.f32 %v4717_v2  ;;  %v4626_v12 = vpop.f32.mrf.mxu0  ;;  %v4736_v33 = vand.u32 2147483648, %v4717_v2  ;;  %v4734_v29 = vand.u32 2147483647, %v4717_v2  ;;  %vm4730_vm5 = vweird.f32 %v4717_v2 }
 0xb42   : > { %v4627_v6 = vadd.f32 %v4626_v12, %v4556_v44 }
 0xb43   : > { %v4737_v59 = vor.u32 1.1754944e-38, %v4736_v33  ;;  %vm4735_vm15 = vcmp.eq.f32.partialorder %v4734_v29, 8.507059e+37 }
 0xb44   : > { %v4689_v34 = vadd.f32 %v9513_v7, %v4627_v6 }
 0xb46   : > { %v5595_v41 = vpop.eup %5594  ;;  %v5406_v48 = vmul.f32 -1.442695, %v4689_v34 }
 0xb47   : > { %v5597_v27 = vpop.eup %5596  ;;  %v4719_v37 = vadd.f32 1.0, %v5595_v41 }
 0xb48   : > { %v4726_v15 = vmul.f32 %v5597_v27, %v4717_v2  ;;  %5598 = vpow2.f32 %v5406_v48  ;;  %vm4731_vm0 = vweird.f32 %v5597_v27 }
 0xb49   : > { %5600 = vrcp.f32 %v4719_v37  ;;  %v4629_v50 = vpop.f32.mrf.mxu0  ;;  %vm4732_vm14 = vmor %vm4730_vm5, %vm4731_vm0  ;;  %v4766_v47 = vand.u32 2147483648, %v4719_v37  ;;  %v4764_v58 = vand.u32 2147483647, %v4719_v37  ;;  %vm4760_vm2 = vweird.f32 %v4719_v37 }
 0xb4a   : > { %v4727_v55 = vsub.f32 1.0, %v4726_v15  ;;  %v4630_v54 = vadd.f32 %v4629_v50, %v4559_v13 }
 0xb4b   : > { %v4767_v5 = vor.u32 1.1754944e-38, %v4766_v47  ;;  %vm4765_vm4 = vcmp.eq.f32.partialorder %v4764_v58, 8.507059e+37 }
 0xb4c   : > { %v4728_v11 = vmul.f32 %v5597_v27, %v4727_v55  ;;  %v4691_v26 = vadd.f32 %v9518_v60, %v4630_v54 }
 0xb4e   : > { %v5599_v20 = vpop.eup %5598  ;;  %v4729_v31 = vadd.f32 %v5597_v27, %v4728_v11  ;;  %v5408_v23 = vmul.f32 -1.442695, %v4691_v26 }
 0xb4f   : > { %v5601_v1 = vpop.eup %5600  ;;  %v4721_v36 = vadd.f32 1.0, %v5599_v20 }
 0xb50   : > { %v4733_v4 = vsel %vm4732_vm14, %v5597_v27, %v4729_v31  ;;  %v4756_v9 = vmul.f32 %v5601_v1, %v4719_v37  ;;  %5602 = vpow2.f32 %v5408_v23  ;;  %vm4761_vm1 = vweird.f32 %v5601_v1 }
 0xb51   : > { %v4738_v22 = vsel %vm4735_vm15, %v4737_v59, %v4733_v4  ;;  %5604 = vrcp.f32 %v4721_v36  ;;  %vm4762_vm3 = vmor %vm4760_vm2, %vm4761_vm1  ;;  %v4796_v35 = vand.u32 2147483648, %v4721_v36  ;;  %v4794_v28 = vand.u32 2147483647, %v4721_v36 }
 0xb52   : > { %v4845_v18 = vmul.f32 %v4738_v22, %v9426_v25  ;;  %v4757_v3 = vsub.f32 1.0, %v4756_v9  ;;  %vm4790_vm7 = vweird.f32 %v4721_v36 }
 0xb53   : > { %v4797_v2 = vor.u32 1.1754944e-38, %v4796_v35  ;;  %vm4795_vm9 = vcmp.eq.f32.partialorder %v4794_v28, 8.507059e+37 }
 0xb54   : > { %4861 = vst [vmem:[%s9430_s16 + $0x40] sm:$0xff] %v4845_v18  ;;  %v4758_v39 = vmul.f32 %v5601_v1, %v4757_v3 }
 0xb56   : > { %v5603_v63 = vpop.eup %5602  ;;  %v4759_v46 = vadd.f32 %v5601_v1, %v4758_v39 }
 0xb57   : > { %v5605_v38 = vpop.eup %5604  ;;  %v4723_v30 = vadd.f32 1.0, %v5603_v63 }
 0xb58   : > { %v4763_v43 = vsel %vm4762_vm3, %v5601_v1, %v4759_v46  ;;  %v4786_v19 = vmul.f32 %v5605_v38, %v4721_v36  ;;  %vm4791_vm6 = vweird.f32 %v5605_v38 }
 0xb59   : > { %v4768_v44 = vsel %vm4765_vm4, %v4767_v5, %v4763_v43  ;;  %5606 = vrcp.f32 %v4723_v30  ;;  %v4649_v25 = vpop.f32.mrf.mxu1  ;;  %vm4792_vm8 = vmor %vm4790_vm7, %vm4791_vm6  ;;  %v4826_v27 = vand.u32 2147483648, %v4723_v30  ;;  %v4824_v37 = vand.u32 2147483647, %v4723_v30 }
 0xb5a   : > { %v4847_v13 = vmul.f32 %v4768_v44, %v9435_v21  ;;  %v4787_v42 = vsub.f32 1.0, %v4786_v19  ;;  %v4650_v49 = vadd.f32 %v4649_v25, %v9503_v10  ;;  %vm4820_vm11 = vweird.f32 %v4723_v30 }
 0xb5b   : > { %v4827_v33 = vor.u32 1.1754944e-38, %v4826_v27  ;;  %vm4825_vm13 = vcmp.eq.f32.partialorder %v4824_v37, 8.507059e+37 }
 0xb5c   : > { %4863 = vst [vmem:[%s9430_s16 + $0x50] sm:$0xff] %v4847_v13  ;;  %v4788_v0 = vmul.f32 %v5605_v38, %v4787_v42  ;;  %v4686_v62 = vadd.f32 %v9505_v45, %v4650_v49 }
 0xb5e   : > { %v4789_v14 = vadd.f32 %v5605_v38, %v4788_v0  ;;  %v5403_v24 = vmul.f32 -1.442695, %v4686_v62 }
 0xb5f   : > { %v5607_v53 = vpop.eup %5606 }
 0xb60   : > { %v4793_v12 = vsel %vm4792_vm8, %v5605_v38, %v4789_v14  ;;  %v4816_v21 = vmul.f32 %v5607_v53, %v4723_v30  ;;  %5608 = vpow2.f32 %v5403_v24  ;;  %vm4821_vm10 = vweird.f32 %v5607_v53 }
 0xb61   : > { %v4798_v6 = vsel %vm4795_vm9, %v4797_v2, %v4793_v12  ;;  %v4652_v10 = vpop.f32.mrf.mxu1  ;;  %vm4822_vm12 = vmor %vm4820_vm11, %vm4821_vm10 }
 0xb62   : > { %v4849_v34 = vmul.f32 %v4798_v6, %v9443_v56  ;;  %v4817_v41 = vsub.f32 1.0, %v4816_v21  ;;  %v4653_v48 = vadd.f32 %v4652_v10, %v9510_v57 }
 0xb64   : > { %4865 = vst [vmem:[%s9430_s16 + $0x60] sm:$0xff] %v4849_v34  ;;  %v4818_v45 = vmul.f32 %v5607_v53, %v4817_v41  ;;  %v4688_v15 = vadd.f32 %v9508_v52, %v4653_v48 }
 0xb66   : > { %v5609_v50 = vpop.eup %5608  ;;  %v4819_v55 = vadd.f32 %v5607_v53, %v4818_v45  ;;  %v5405_v54 = vmul.f32 -1.442695, %v4688_v15 }
 0xb67   : > { %v4718_v11 = vadd.f32 1.0, %v5609_v50 }
 0xb68   : > { %v4823_v29 = vsel %vm4822_vm12, %v5607_v53, %v4819_v55  ;;  %5610 = vpow2.f32 %v5405_v54 }
 0xb69   : > { %v4828_v56 = vsel %vm4825_vm13, %v4827_v33, %v4823_v29  ;;  %5612 = vrcp.f32 %v4718_v11  ;;  %v4655_v57 = vpop.f32.mrf.mxu1  ;;  %v4751_v18 = vand.u32 2147483648, %v4718_v11  ;;  %vm4745_vm5 = vweird.f32 %v4718_v11 }
 0xb6a   : > { %v4851_v26 = vmul.f32 %v4828_v56, %v9449_v61  ;;  %v4656_v20 = vadd.f32 %v4655_v57, %v9516_v16  ;;  %v4749_v61 = vand.u32 2147483647, %v4718_v11 }
 0xb6b   : > { %v4752_v63 = vor.u32 1.1754944e-38, %v4751_v18 }
 0xb6c   : > { %4867 = vst [vmem:[%s9430_s16 + $0x70] sm:$0xff] %v4851_v26  ;;  %v4690_v52 = vadd.f32 %v9513_v7, %v4656_v20  ;;  %vm4750_vm15 = vcmp.eq.f32.partialorder %v4749_v61, 8.507059e+37 }
 0xb6e   : > { %v5611_v31 = vpop.eup %5610  ;;  %v5407_v23 = vmul.f32 -1.442695, %v4690_v52 }
 0xb6f   : > { %v5613_v1 = vpop.eup %5612  ;;  %v4720_v59 = vadd.f32 1.0, %v5611_v31 }
 0xb70   : > { %v4741_v36 = vmul.f32 %v5613_v1, %v4718_v11  ;;  %5614 = vpow2.f32 %v5407_v23  ;;  %vm4746_vm0 = vweird.f32 %v5613_v1 }
 0xb71   : > { %5616 = vrcp.f32 %v4720_v59  ;;  %v4658_v4 = vpop.f32.mrf.mxu1  ;;  %vm4747_vm14 = vmor %vm4745_vm5, %vm4746_vm0  ;;  %v4781_v19 = vand.u32 2147483648, %v4720_v59  ;;  %v4779_v44 = vand.u32 2147483647, %v4720_v59  ;;  %vm4775_vm2 = vweird.f32 %v4720_v59 }
 0xb72   : > { %v4742_v9 = vsub.f32 1.0, %v4741_v36  ;;  %v4659_v22 = vadd.f32 %v4658_v4, %v9521_v40 }
 0xb73   : > { %v4782_v49 = vor.u32 1.1754944e-38, %v4781_v19  ;;  %vm4780_vm4 = vcmp.eq.f32.partialorder %v4779_v44, 8.507059e+37 }
 0xb74   : > { %v4743_v3 = vmul.f32 %v5613_v1, %v4742_v9  ;;  %v4692_v16 = vadd.f32 %v9518_v60, %v4659_v22 }
 0xb76   : > { %v5615_v47 = vpop.eup %5614  ;;  %v4744_v39 = vadd.f32 %v5613_v1, %v4743_v3  ;;  %v5409_v7 = vmul.f32 -1.442695, %v4692_v16 }
 0xb77   : > { %v5617_v58 = vpop.eup %5616  ;;  %v4722_v46 = vadd.f32 1.0, %v5615_v47 }
 0xb78   : > { %v4748_v38 = vsel %vm4747_vm14, %v5613_v1, %v4744_v39  ;;  %v4771_v5 = vmul.f32 %v5617_v58, %v4720_v59  ;;  %5618 = vpow2.f32 %v5409_v7  ;;  %vm4776_vm1 = vweird.f32 %v5617_v58 }
 0xb79   : > { %v4753_v40 = vsel %vm4750_vm15, %v4752_v63, %v4748_v38  ;;  %5620 = vrcp.f32 %v4722_v46  ;;  %vm4777_vm3 = vmor %vm4775_vm2, %vm4776_vm1  ;;  %v4811_v24 = vand.u32 2147483648, %v4722_v46  ;;  %v4809_v2 = vand.u32 2147483647, %v4722_v46 }
 0xb7a   : > { %v4846_v30 = vmul.f32 %v4753_v40, %v9467_v8  ;;  %v4772_v43 = vsub.f32 1.0, %v4771_v5  ;;  %vm4805_vm7 = vweird.f32 %v4722_v46 }
 0xb7b   : > { %v4812_v6 = vor.u32 1.1754944e-38, %v4811_v24  ;;  %vm4810_vm9 = vcmp.eq.f32.partialorder %v4809_v2, 8.507059e+37 }
 0xb7c   : > { %4862 = vst [vmem:[%s9430_s16 + $0x48] sm:$0xff] %v4846_v30  ;;  %v4773_v60 = vmul.f32 %v5617_v58, %v4772_v43 }
 0xb7e   : > { %v5619_v25 = vpop.eup %5618  ;;  %v4774_v13 = vadd.f32 %v5617_v58, %v4773_v60 }
 0xb7f   : > { %v5621_v42 = vpop.eup %5620  ;;  %v4724_v35 = vadd.f32 1.0, %v5619_v25 }
 0xb80   : > { %v4778_v0 = vsel %vm4777_vm3, %v5617_v58, %v4774_v13  ;;  %v4801_v28 = vmul.f32 %v5621_v42, %v4722_v46  ;;  %vm4806_vm6 = vweird.f32 %v5621_v42 }
 0xb81   : > { %v4783_v62 = vsel %vm4780_vm4, %v4782_v49, %v4778_v0  ;;  %5622 = vrcp.f32 %v4724_v35  ;;  %vm4807_vm8 = vmor %vm4805_vm7, %vm4806_vm6  ;;  %v4841_v27 = vand.u32 2147483648, %v4724_v35  ;;  %v4839_v37 = vand.u32 2147483647, %v4724_v35 }
 0xb82   : > { %v4848_v8 = vmul.f32 %v4783_v62, %v9476_v17  ;;  %v4802_v14 = vsub.f32 1.0, %v4801_v28  ;;  %vm4835_vm11 = vweird.f32 %v4724_v35 }
 0xb83   : > { %v4842_v50 = vor.u32 1.1754944e-38, %v4841_v27  ;;  %vm4840_vm13 = vcmp.eq.f32.partialorder %v4839_v37, 8.507059e+37 }
 0xb84   : > { %4864 = vst [vmem:[%s9430_s16 + $0x58] sm:$0xff] %v4848_v8  ;;  %v4803_v53 = vmul.f32 %v5621_v42, %v4802_v14 }
 0xb86   : > { %v4804_v12 = vadd.f32 %v5621_v42, %v4803_v53 }
 0xb87   : > { %v5623_v21 = vpop.eup %5622 }
 0xb88   : > { %v4808_v10 = vsel %vm4807_vm8, %v5621_v42, %v4804_v12  ;;  %v4831_v34 = vmul.f32 %v5623_v21, %v4724_v35  ;;  %vm4836_vm10 = vweird.f32 %v5623_v21 }
 0xb89   : > { %v4813_v41 = vsel %vm4810_vm9, %v4812_v6, %v4808_v10  ;;  %vm4837_vm12 = vmor %vm4835_vm11, %vm4836_vm10 }
 0xb8a   : > { %v4850_v17 = vmul.f32 %v4813_v41, %v9485_v32  ;;  %v4832_v48 = vsub.f32 1.0, %v4831_v34 }
 0xb8c   : > { %4866 = vst [vmem:[%s9430_s16 + $0x68] sm:$0xff] %v4850_v17  ;;  %v4833_v45 = vmul.f32 %v5623_v21, %v4832_v48 }
 0xb8e   : > { %v4834_v15 = vadd.f32 %v5623_v21, %v4833_v45 }
 0xb90   : > { %v4838_v32 = vsel %vm4837_vm12, %v5623_v21, %v4834_v15 }
 0xb91   : > { %v4843_v55 = vsel %vm4840_vm13, %v4842_v50, %v4838_v32 }
 0xb92   : > { %v4852_v54 = vmul.f32 %v4843_v55, %v9491_v51 }
 0xb94   : > { %4868 = vst [vmem:[%s9430_s16 + $0x78] sm:$0xff] %v4852_v54 }
 0xb95   : > { %5711 = shalt.err (!%p5708_p5)
}
 0xb96   : > { %s5749_s22 = smov 256   ;;  %s5750_s16 = smov 1024  }
 0xb97   : > { %s5751_s4 = smov 16  }
 0xb98   : > { %5426 = dma.vmem_to_hbm [thread:$0]  (%p5874_p6), %s4883_s23, 2048, %s4885_s28, %s4870_s0, %s5749_s22, %s5750_s16, %s5751_s4  }
 0xb99 PF: > { %p5432_p7 = scmp.ge.s32.totalorder %s5746_s21, 2  ;;  %s4899_s26 = sand.u32 1, %s5734_s18  }
 0xb9a   : > { %s4900_s2 = scalar_lea.sflag [#allocation5], %s4899_s26 }
 0xb9b   : > { %p5429_p9 = pnand %p5432_p7, %p5878_p8 }
 0xb9d   : > { %p5430_p10 = pneg %p5429_p9 }
 0xb9f   : > { %5729 = dma.done.wait (%p5430_p10), %s4900_s2, 2048  }
 0xba0   : > { %5731 = vsyncadd (%p5430_p10), %s4900_s2, 4294965248  ;;  %s10384_s1 = sld [smem:[#allocation7_spill]]  ;;  %p25_p11 = scmp.ge.s32.totalorder %s5855_s24, 6  }
 0xba1   : > { %s10385_s18 = smov %s5738_s19  ;;  %s10386_s19 = smov %s5742_s20 }
 0xba2   : > { %s10388_s21 = smov %s5855_s24  ;;  %27 = sbr.rel (!%p25_p11) target bundleno = 9 (0x9), region = 174 }
 0xba6   : > { %s10387_s20 = smov %s10384_s1 }
 0xba7   :  { %4906 = vsyncpa [#allocation5], 1 }
 0xba8   :  { %4908 = vsyncpa [#allocation5 + $0x1], 1 }

</bundles_post_ra>
